<compile_context>
chip_gen: v7x
topology: tpu7x:2x2x1
jax: 0.10.0
libtpu: 0.0.40
codegen_flags: <defaults>
</compile_context>

<pallas_src>
import functools

import jax
import jax.numpy as jnp
from jax.experimental import pallas as pl
from jax.experimental.pallas import tpu as pltpu


# ------------------------------ Pallas kernel -------------------------------

def _mha_heads(q, k, v, *, num_heads, scale):
    """Multi-head attention on 2-D (tokens, channels) operands, heads unrolled.

    q: (Nq, C), k/v: (Nk, C).  Returns (Nq, C).  All data stays in VMEM; the
    unrolled per-head loop keeps every matmul 2-D (well-supported MXU path)
    while the kernel-level layout remains lane-dense on C.
    """
    _, c = q.shape
    d = c // num_heads
    outs = []
    for h in range(num_heads):
        sl = slice(h * d, (h + 1) * d)
        qh = q[:, sl]                                   # (Nq, D)
        kh = k[:, sl]                                   # (Nk, D)
        vh = v[:, sl]                                   # (Nk, D)
        # scores = qh @ kh^T (contract head-dim, no explicit transpose)
        s = jax.lax.dot_general(qh, kh, (((1,), (1,)), ((), ())),
                                preferred_element_type=jnp.float32) * scale
        s = s - jnp.max(s, axis=-1, keepdims=True)
        p = jnp.exp(s)
        p = p * pl.reciprocal(jnp.sum(p, axis=-1, keepdims=True), approx=True)
        outs.append(jnp.dot(p, vh, preferred_element_type=jnp.float32))
    return jnp.concatenate(outs, axis=-1)               # (Nq, C)


def _hybrid_attention_kernel(q_ref, kv_ref,
                             sa_qkv_w_ref, sa_pw_ref, sa_pb_ref,
                             ca_q_w_ref, ca_kv_w_ref, ca_pw_ref, ca_pb_ref,
                             o_ref, *, num_heads, scale):
    # One batch sample per grid step.
    x = q_ref[0].astype(jnp.float32)                    # (Nq, C) query tokens
    y = kv_ref[0].astype(jnp.float32)                   # (Nk, C) key tokens
    c = x.shape[-1]

    # ---- SelfAttention(query) ----------------------------------------------
    qkv = jnp.dot(x, sa_qkv_w_ref[...], preferred_element_type=jnp.float32)
    sa = _mha_heads(qkv[:, :c], qkv[:, c:2 * c], qkv[:, 2 * c:],
                    num_heads=num_heads, scale=scale)
    sa = jnp.dot(sa, sa_pw_ref[...],
                 preferred_element_type=jnp.float32) + sa_pb_ref[...]

    # ---- CrossAttention(query, key) ----------------------------------------
    qc = jnp.dot(x, ca_q_w_ref[...], preferred_element_type=jnp.float32)
    kvc = jnp.dot(y, ca_kv_w_ref[...], preferred_element_type=jnp.float32)
    ca = _mha_heads(qc, kvc[:, :c], kvc[:, c:],
                    num_heads=num_heads, scale=scale)
    ca = jnp.dot(ca, ca_pw_ref[...],
                 preferred_element_type=jnp.float32) + ca_pb_ref[...]

    # ---- HybridAttention: self_attn + cross_attn ----------------------------
    o_ref[0] = (sa + ca).astype(o_ref.dtype)


# ------------------------------ wrapper --------------------------------------

def hybrid_attention(query, key, params, *, num_heads):
    """query: (B, Nq, C), key: (B, Nk, C) -> (B, Nq, C)."""
    B, Nq, C = query.shape
    Nk = key.shape[1]
    scale = (C // num_heads) ** (-0.5)

    def _const(shape):
        # Weights: constant block index -> resident in VMEM across grid steps.
        return pl.BlockSpec(shape, lambda *_: (0,) * len(shape))

    kernel = functools.partial(_hybrid_attention_kernel,
                               num_heads=num_heads, scale=scale)
    return pl.pallas_call(
        kernel,
        out_shape=jax.ShapeDtypeStruct((B, Nq, C), query.dtype),
        grid=(B,),
        in_specs=[
            pl.BlockSpec((1, Nq, C), lambda b: (b, 0, 0)),   # query tokens
            pl.BlockSpec((1, Nk, C), lambda b: (b, 0, 0)),   # key tokens
            _const((C, 3 * C)),                              # self-attn qkv W
            _const((C, C)),                                  # self-attn proj W
            _const((1, C)),                                  # self-attn proj b
            _const((C, C)),                                  # cross-attn q W
            _const((C, 2 * C)),                              # cross-attn kv W
            _const((C, C)),                                  # cross-attn proj W
            _const((1, C)),                                  # cross-attn proj b
        ],
        out_specs=pl.BlockSpec((1, Nq, C), lambda b: (b, 0, 0)),
        compiler_params=pltpu.CompilerParams(
            dimension_semantics=("parallel",)),              # v7x megacore
    )(query, key,
      params["sa_qkv_w"], params["sa_proj_w"], params["sa_proj_b"],
      params["ca_q_w"], params["ca_kv_w"], params["ca_proj_w"],
      params["ca_proj_b"])


# ------------------------- pure-JAX reference (check) ------------------------

def _reference(query, key, params, num_heads):
    B, Nq, C = query.shape
    D = C // num_heads
    scale = D ** (-0.5)

    def split_heads(t):
        return t.reshape(t.shape[0], t.shape[1], num_heads, D).transpose(0, 2, 1, 3)

    def attn(q, k, v):
        s = jnp.einsum("bhnd,bhmd->bhnm", q, k) * scale
        p = jax.nn.softmax(s, axis=-1)
        o = jnp.einsum("bhnm,bhmd->bhnd", p, v)
        return o.transpose(0, 2, 1, 3).reshape(B, -1, C)

    qkv = query @ params["sa_qkv_w"]
    sa = attn(split_heads(qkv[..., :C]), split_heads(qkv[..., C:2 * C]),
              split_heads(qkv[..., 2 * C:]))
    sa = sa @ params["sa_proj_w"] + params["sa_proj_b"]

    qc = query @ params["ca_q_w"]
    kv = key @ params["ca_kv_w"]
    ca = attn(split_heads(qc), split_heads(kv[..., :C]), split_heads(kv[..., C:]))
    ca = ca @ params["ca_proj_w"] + params["ca_proj_b"]
    return sa + ca


# ------------------------------ parameter init -------------------------------

def init_params(rng, dim):
    ks = jax.random.split(rng, 7)

    def dense(k, cin, cout):
        return jax.random.normal(k, (cin, cout), jnp.float32) * 0.02

    def bias(k, cout):
        return jax.random.normal(k, (1, cout), jnp.float32) * 0.02

    # qkv_bias=False (module default): q/kv/qkv projections have no bias.
    return dict(
        sa_qkv_w=dense(ks[0], dim, 3 * dim),
        sa_proj_w=dense(ks[1], dim, dim),
        sa_proj_b=bias(ks[2], dim),
        ca_q_w=dense(ks[3], dim, dim),
        ca_kv_w=dense(ks[4], dim, 2 * dim),
        ca_proj_w=dense(ks[5], dim, dim),
        ca_proj_b=bias(ks[6], dim),
    )


# ------------------------------------ main -----------------------------------

if __name__ == "__main__":
    root = jax.random.PRNGKey(0)
    kq, kk, kp = jax.random.split(root, 3)

    B, Nq, Nk = 2, 64, 32
    dim, num_heads = 128, 8          # head_dim = 16; C=128 fills the lane axis

    query = jax.random.normal(kq, (B, Nq, dim), jnp.float32)
    key = jax.random.normal(kk, (B, Nk, dim), jnp.float32)
    params = init_params(kp, dim)

    out = hybrid_attention(query, key, params, num_heads=num_heads)
    out = jax.block_until_ready(out)

    assert out.shape == (B, Nq, dim), out.shape
    assert bool(jnp.all(jnp.isfinite(out)))

    ref = _reference(query, key, params, num_heads)
    err = float(jnp.max(jnp.abs(out - ref)))
    # Loose tolerance: approx reciprocal in the softmax denominator.
    assert err < 2e-2, f"max abs err vs reference: {err}"

    print("KERNEL_OK")
</pallas_src>

<mosaic_0001>
module attributes {stable_mosaic.version = 11 : i64} {
  func.func @_hybrid_attention_kernel(%arg0: i32, %arg1: memref<1x64x128xf32, #tpu.memory_space<vmem>>, %arg2: memref<1x32x128xf32, #tpu.memory_space<vmem>>, %arg3: memref<128x384xf32, #tpu.memory_space<vmem>>, %arg4: memref<128x128xf32, #tpu.memory_space<vmem>>, %arg5: memref<1x128xf32, #tpu.memory_space<vmem>>, %arg6: memref<128x128xf32, #tpu.memory_space<vmem>>, %arg7: memref<128x256xf32, #tpu.memory_space<vmem>>, %arg8: memref<128x128xf32, #tpu.memory_space<vmem>>, %arg9: memref<1x128xf32, #tpu.memory_space<vmem>>, %arg10: memref<1x64x128xf32, #tpu.memory_space<vmem>>) attributes {dimension_semantics = [#tpu.dimension_semantics<parallel>], iteration_bounds = array<i64: 2>, scalar_prefetch = 0 : i64, scratch_operands = 0 : i64, tpu.core_type = #tpu.core_type<tc>, window_params = [{transform_indices = @transform_0, window_bounds = array<i64: 1, 64, 128>}, {transform_indices = @transform_1, window_bounds = array<i64: 1, 32, 128>}, {pipeline_mode = #tpu.pipeline_mode<synchronous>, transform_indices = @transform_2, window_bounds = array<i64: 128, 384>}, {pipeline_mode = #tpu.pipeline_mode<synchronous>, transform_indices = @transform_3, window_bounds = array<i64: 128, 128>}, {pipeline_mode = #tpu.pipeline_mode<synchronous>, transform_indices = @transform_4, window_bounds = array<i64: 1, 128>}, {pipeline_mode = #tpu.pipeline_mode<synchronous>, transform_indices = @transform_5, window_bounds = array<i64: 128, 128>}, {pipeline_mode = #tpu.pipeline_mode<synchronous>, transform_indices = @transform_6, window_bounds = array<i64: 128, 256>}, {pipeline_mode = #tpu.pipeline_mode<synchronous>, transform_indices = @transform_7, window_bounds = array<i64: 128, 128>}, {pipeline_mode = #tpu.pipeline_mode<synchronous>, transform_indices = @transform_8, window_bounds = array<i64: 1, 128>}, {transform_indices = @transform_9, window_bounds = array<i64: 1, 64, 128>}]} {
    %c0 = arith.constant 0 : index
    %c0_0 = arith.constant 0 : index
    %c0_1 = arith.constant 0 : index
    %0 = vector.load %arg1[%c0, %c0_0, %c0_1] : memref<1x64x128xf32, #tpu.memory_space<vmem>>, vector<1x64x128xf32>
    %1 = vector.shape_cast %0 : vector<1x64x128xf32> to vector<64x128xf32>
    %c0_2 = arith.constant 0 : index
    %c0_3 = arith.constant 0 : index
    %c0_4 = arith.constant 0 : index
    %2 = vector.load %arg2[%c0_2, %c0_3, %c0_4] : memref<1x32x128xf32, #tpu.memory_space<vmem>>, vector<1x32x128xf32>
    %3 = vector.shape_cast %2 : vector<1x32x128xf32> to vector<32x128xf32>
    %c0_5 = arith.constant 0 : index
    %c0_6 = arith.constant 0 : index
    %4 = vector.load %arg3[%c0_5, %c0_6] : memref<128x384xf32, #tpu.memory_space<vmem>>, vector<128x384xf32>
    %cst = arith.constant dense<0.000000e+00> : vector<64x384xf32>
    %5 = tpu.matmul %1, %4, %cst {dimension_numbers = #tpu.dot_dimension_numbers<[1], [0], [0], [1], [0, 0, 1, 1], [], []>} : vector<64x128xf32>, vector<128x384xf32>, vector<64x384xf32> -> vector<64x384xf32>
    %6 = vector.extract_strided_slice %5 {offsets = [0, 0], sizes = [64, 128], strides = [1, 1]} : vector<64x384xf32> to vector<64x128xf32>
    %7 = vector.extract_strided_slice %5 {offsets = [0, 128], sizes = [64, 128], strides = [1, 1]} : vector<64x384xf32> to vector<64x128xf32>
    %8 = vector.extract_strided_slice %5 {offsets = [0, 256], sizes = [64, 128], strides = [1, 1]} : vector<64x384xf32> to vector<64x128xf32>
    %9 = vector.extract_strided_slice %6 {offsets = [0, 0], sizes = [64, 16], strides = [1, 1]} : vector<64x128xf32> to vector<64x16xf32>
    %10 = vector.extract_strided_slice %7 {offsets = [0, 0], sizes = [64, 16], strides = [1, 1]} : vector<64x128xf32> to vector<64x16xf32>
    %11 = vector.extract_strided_slice %8 {offsets = [0, 0], sizes = [64, 16], strides = [1, 1]} : vector<64x128xf32> to vector<64x16xf32>
    %cst_7 = arith.constant dense<0.000000e+00> : vector<64x64xf32>
    %12 = tpu.matmul %9, %10, %cst_7 {dimension_numbers = #tpu.dot_dimension_numbers<[1], [1], [0], [0], [0, 0, 1, 0], [], []>} : vector<64x16xf32>, vector<64x16xf32>, vector<64x64xf32> -> vector<64x64xf32>
    %cst_8 = arith.constant 2.500000e-01 : f32
    %13 = vector.broadcast %cst_8 : f32 to vector<64x64xf32>
    %14 = arith.mulf %12, %13 : vector<64x64xf32>
    %cst_9 = arith.constant dense<0xFF800000> : vector<64xf32>
    %15 = vector.multi_reduction <maximumf>, %14, %cst_9 [1] : vector<64x64xf32> to vector<64xf32>
    %16 = vector.shape_cast %15 : vector<64xf32> to vector<64x1xf32>
    %17 = vector.broadcast %16 : vector<64x1xf32> to vector<64x64xf32>
    %18 = arith.subf %14, %17 : vector<64x64xf32>
    %19 = math.exp %18 : vector<64x64xf32>
    %cst_10 = arith.constant dense<0.000000e+00> : vector<64xf32>
    %20 = vector.multi_reduction <add>, %19, %cst_10 [1] : vector<64x64xf32> to vector<64xf32>
    %21 = vector.shape_cast %20 : vector<64xf32> to vector<64x1xf32>
    %22 = tpu.reciprocal %21 {approx = true} : vector<64x1xf32> -> vector<64x1xf32>
    %23 = vector.broadcast %22 : vector<64x1xf32> to vector<64x64xf32>
    %24 = arith.mulf %19, %23 : vector<64x64xf32>
    %cst_11 = arith.constant dense<0.000000e+00> : vector<64x16xf32>
    %25 = tpu.matmul %24, %11, %cst_11 {dimension_numbers = #tpu.dot_dimension_numbers<[1], [0], [0], [1], [0, 0, 1, 1], [], []>} : vector<64x64xf32>, vector<64x16xf32>, vector<64x16xf32> -> vector<64x16xf32>
    %26 = vector.extract_strided_slice %6 {offsets = [0, 16], sizes = [64, 16], strides = [1, 1]} : vector<64x128xf32> to vector<64x16xf32>
    %27 = vector.extract_strided_slice %7 {offsets = [0, 16], sizes = [64, 16], strides = [1, 1]} : vector<64x128xf32> to vector<64x16xf32>
    %28 = vector.extract_strided_slice %8 {offsets = [0, 16], sizes = [64, 16], strides = [1, 1]} : vector<64x128xf32> to vector<64x16xf32>
    %cst_12 = arith.constant dense<0.000000e+00> : vector<64x64xf32>
    %29 = tpu.matmul %26, %27, %cst_12 {dimension_numbers = #tpu.dot_dimension_numbers<[1], [1], [0], [0], [0, 0, 1, 0], [], []>} : vector<64x16xf32>, vector<64x16xf32>, vector<64x64xf32> -> vector<64x64xf32>
    %cst_13 = arith.constant 2.500000e-01 : f32
    %30 = vector.broadcast %cst_13 : f32 to vector<64x64xf32>
    %31 = arith.mulf %29, %30 : vector<64x64xf32>
    %cst_14 = arith.constant dense<0xFF800000> : vector<64xf32>
    %32 = vector.multi_reduction <maximumf>, %31, %cst_14 [1] : vector<64x64xf32> to vector<64xf32>
    %33 = vector.shape_cast %32 : vector<64xf32> to vector<64x1xf32>
    %34 = vector.broadcast %33 : vector<64x1xf32> to vector<64x64xf32>
    %35 = arith.subf %31, %34 : vector<64x64xf32>
    %36 = math.exp %35 : vector<64x64xf32>
    %cst_15 = arith.constant dense<0.000000e+00> : vector<64xf32>
    %37 = vector.multi_reduction <add>, %36, %cst_15 [1] : vector<64x64xf32> to vector<64xf32>
    %38 = vector.shape_cast %37 : vector<64xf32> to vector<64x1xf32>
    %39 = tpu.reciprocal %38 {approx = true} : vector<64x1xf32> -> vector<64x1xf32>
    %40 = vector.broadcast %39 : vector<64x1xf32> to vector<64x64xf32>
    %41 = arith.mulf %36, %40 : vector<64x64xf32>
    %cst_16 = arith.constant dense<0.000000e+00> : vector<64x16xf32>
    %42 = tpu.matmul %41, %28, %cst_16 {dimension_numbers = #tpu.dot_dimension_numbers<[1], [0], [0], [1], [0, 0, 1, 1], [], []>} : vector<64x64xf32>, vector<64x16xf32>, vector<64x16xf32> -> vector<64x16xf32>
    %43 = vector.extract_strided_slice %6 {offsets = [0, 32], sizes = [64, 16], strides = [1, 1]} : vector<64x128xf32> to vector<64x16xf32>
    %44 = vector.extract_strided_slice %7 {offsets = [0, 32], sizes = [64, 16], strides = [1, 1]} : vector<64x128xf32> to vector<64x16xf32>
    %45 = vector.extract_strided_slice %8 {offsets = [0, 32], sizes = [64, 16], strides = [1, 1]} : vector<64x128xf32> to vector<64x16xf32>
    %cst_17 = arith.constant dense<0.000000e+00> : vector<64x64xf32>
    %46 = tpu.matmul %43, %44, %cst_17 {dimension_numbers = #tpu.dot_dimension_numbers<[1], [1], [0], [0], [0, 0, 1, 0], [], []>} : vector<64x16xf32>, vector<64x16xf32>, vector<64x64xf32> -> vector<64x64xf32>
    %cst_18 = arith.constant 2.500000e-01 : f32
    %47 = vector.broadcast %cst_18 : f32 to vector<64x64xf32>
    %48 = arith.mulf %46, %47 : vector<64x64xf32>
    %cst_19 = arith.constant dense<0xFF800000> : vector<64xf32>
    %49 = vector.multi_reduction <maximumf>, %48, %cst_19 [1] : vector<64x64xf32> to vector<64xf32>
    %50 = vector.shape_cast %49 : vector<64xf32> to vector<64x1xf32>
    %51 = vector.broadcast %50 : vector<64x1xf32> to vector<64x64xf32>
    %52 = arith.subf %48, %51 : vector<64x64xf32>
    %53 = math.exp %52 : vector<64x64xf32>
    %cst_20 = arith.constant dense<0.000000e+00> : vector<64xf32>
    %54 = vector.multi_reduction <add>, %53, %cst_20 [1] : vector<64x64xf32> to vector<64xf32>
    %55 = vector.shape_cast %54 : vector<64xf32> to vector<64x1xf32>
    %56 = tpu.reciprocal %55 {approx = true} : vector<64x1xf32> -> vector<64x1xf32>
    %57 = vector.broadcast %56 : vector<64x1xf32> to vector<64x64xf32>
    %58 = arith.mulf %53, %57 : vector<64x64xf32>
    %cst_21 = arith.constant dense<0.000000e+00> : vector<64x16xf32>
    %59 = tpu.matmul %58, %45, %cst_21 {dimension_numbers = #tpu.dot_dimension_numbers<[1], [0], [0], [1], [0, 0, 1, 1], [], []>} : vector<64x64xf32>, vector<64x16xf32>, vector<64x16xf32> -> vector<64x16xf32>
    %60 = vector.extract_strided_slice %6 {offsets = [0, 48], sizes = [64, 16], strides = [1, 1]} : vector<64x128xf32> to vector<64x16xf32>
    %61 = vector.extract_strided_slice %7 {offsets = [0, 48], sizes = [64, 16], strides = [1, 1]} : vector<64x128xf32> to vector<64x16xf32>
    %62 = vector.extract_strided_slice %8 {offsets = [0, 48], sizes = [64, 16], strides = [1, 1]} : vector<64x128xf32> to vector<64x16xf32>
    %cst_22 = arith.constant dense<0.000000e+00> : vector<64x64xf32>
    %63 = tpu.matmul %60, %61, %cst_22 {dimension_numbers = #tpu.dot_dimension_numbers<[1], [1], [0], [0], [0, 0, 1, 0], [], []>} : vector<64x16xf32>, vector<64x16xf32>, vector<64x64xf32> -> vector<64x64xf32>
    %cst_23 = arith.constant 2.500000e-01 : f32
    %64 = vector.broadcast %cst_23 : f32 to vector<64x64xf32>
    %65 = arith.mulf %63, %64 : vector<64x64xf32>
    %cst_24 = arith.constant dense<0xFF800000> : vector<64xf32>
    %66 = vector.multi_reduction <maximumf>, %65, %cst_24 [1] : vector<64x64xf32> to vector<64xf32>
    %67 = vector.shape_cast %66 : vector<64xf32> to vector<64x1xf32>
    %68 = vector.broadcast %67 : vector<64x1xf32> to vector<64x64xf32>
    %69 = arith.subf %65, %68 : vector<64x64xf32>
    %70 = math.exp %69 : vector<64x64xf32>
    %cst_25 = arith.constant dense<0.000000e+00> : vector<64xf32>
    %71 = vector.multi_reduction <add>, %70, %cst_25 [1] : vector<64x64xf32> to vector<64xf32>
    %72 = vector.shape_cast %71 : vector<64xf32> to vector<64x1xf32>
    %73 = tpu.reciprocal %72 {approx = true} : vector<64x1xf32> -> vector<64x1xf32>
    %74 = vector.broadcast %73 : vector<64x1xf32> to vector<64x64xf32>
    %75 = arith.mulf %70, %74 : vector<64x64xf32>
    %cst_26 = arith.constant dense<0.000000e+00> : vector<64x16xf32>
    %76 = tpu.matmul %75, %62, %cst_26 {dimension_numbers = #tpu.dot_dimension_numbers<[1], [0], [0], [1], [0, 0, 1, 1], [], []>} : vector<64x64xf32>, vector<64x16xf32>, vector<64x16xf32> -> vector<64x16xf32>
    %77 = vector.extract_strided_slice %6 {offsets = [0, 64], sizes = [64, 16], strides = [1, 1]} : vector<64x128xf32> to vector<64x16xf32>
    %78 = vector.extract_strided_slice %7 {offsets = [0, 64], sizes = [64, 16], strides = [1, 1]} : vector<64x128xf32> to vector<64x16xf32>
    %79 = vector.extract_strided_slice %8 {offsets = [0, 64], sizes = [64, 16], strides = [1, 1]} : vector<64x128xf32> to vector<64x16xf32>
    %cst_27 = arith.constant dense<0.000000e+00> : vector<64x64xf32>
    %80 = tpu.matmul %77, %78, %cst_27 {dimension_numbers = #tpu.dot_dimension_numbers<[1], [1], [0], [0], [0, 0, 1, 0], [], []>} : vector<64x16xf32>, vector<64x16xf32>, vector<64x64xf32> -> vector<64x64xf32>
    %cst_28 = arith.constant 2.500000e-01 : f32
    %81 = vector.broadcast %cst_28 : f32 to vector<64x64xf32>
    %82 = arith.mulf %80, %81 : vector<64x64xf32>
    %cst_29 = arith.constant dense<0xFF800000> : vector<64xf32>
    %83 = vector.multi_reduction <maximumf>, %82, %cst_29 [1] : vector<64x64xf32> to vector<64xf32>
    %84 = vector.shape_cast %83 : vector<64xf32> to vector<64x1xf32>
    %85 = vector.broadcast %84 : vector<64x1xf32> to vector<64x64xf32>
    %86 = arith.subf %82, %85 : vector<64x64xf32>
    %87 = math.exp %86 : vector<64x64xf32>
    %cst_30 = arith.constant dense<0.000000e+00> : vector<64xf32>
    %88 = vector.multi_reduction <add>, %87, %cst_30 [1] : vector<64x64xf32> to vector<64xf32>
    %89 = vector.shape_cast %88 : vector<64xf32> to vector<64x1xf32>
    %90 = tpu.reciprocal %89 {approx = true} : vector<64x1xf32> -> vector<64x1xf32>
    %91 = vector.broadcast %90 : vector<64x1xf32> to vector<64x64xf32>
    %92 = arith.mulf %87, %91 : vector<64x64xf32>
    %cst_31 = arith.constant dense<0.000000e+00> : vector<64x16xf32>
    %93 = tpu.matmul %92, %79, %cst_31 {dimension_numbers = #tpu.dot_dimension_numbers<[1], [0], [0], [1], [0, 0, 1, 1], [], []>} : vector<64x64xf32>, vector<64x16xf32>, vector<64x16xf32> -> vector<64x16xf32>
    %94 = vector.extract_strided_slice %6 {offsets = [0, 80], sizes = [64, 16], strides = [1, 1]} : vector<64x128xf32> to vector<64x16xf32>
    %95 = vector.extract_strided_slice %7 {offsets = [0, 80], sizes = [64, 16], strides = [1, 1]} : vector<64x128xf32> to vector<64x16xf32>
    %96 = vector.extract_strided_slice %8 {offsets = [0, 80], sizes = [64, 16], strides = [1, 1]} : vector<64x128xf32> to vector<64x16xf32>
    %cst_32 = arith.constant dense<0.000000e+00> : vector<64x64xf32>
    %97 = tpu.matmul %94, %95, %cst_32 {dimension_numbers = #tpu.dot_dimension_numbers<[1], [1], [0], [0], [0, 0, 1, 0], [], []>} : vector<64x16xf32>, vector<64x16xf32>, vector<64x64xf32> -> vector<64x64xf32>
    %cst_33 = arith.constant 2.500000e-01 : f32
    %98 = vector.broadcast %cst_33 : f32 to vector<64x64xf32>
    %99 = arith.mulf %97, %98 : vector<64x64xf32>
    %cst_34 = arith.constant dense<0xFF800000> : vector<64xf32>
    %100 = vector.multi_reduction <maximumf>, %99, %cst_34 [1] : vector<64x64xf32> to vector<64xf32>
    %101 = vector.shape_cast %100 : vector<64xf32> to vector<64x1xf32>
    %102 = vector.broadcast %101 : vector<64x1xf32> to vector<64x64xf32>
    %103 = arith.subf %99, %102 : vector<64x64xf32>
    %104 = math.exp %103 : vector<64x64xf32>
    %cst_35 = arith.constant dense<0.000000e+00> : vector<64xf32>
    %105 = vector.multi_reduction <add>, %104, %cst_35 [1] : vector<64x64xf32> to vector<64xf32>
    %106 = vector.shape_cast %105 : vector<64xf32> to vector<64x1xf32>
    %107 = tpu.reciprocal %106 {approx = true} : vector<64x1xf32> -> vector<64x1xf32>
    %108 = vector.broadcast %107 : vector<64x1xf32> to vector<64x64xf32>
    %109 = arith.mulf %104, %108 : vector<64x64xf32>
    %cst_36 = arith.constant dense<0.000000e+00> : vector<64x16xf32>
    %110 = tpu.matmul %109, %96, %cst_36 {dimension_numbers = #tpu.dot_dimension_numbers<[1], [0], [0], [1], [0, 0, 1, 1], [], []>} : vector<64x64xf32>, vector<64x16xf32>, vector<64x16xf32> -> vector<64x16xf32>
    %111 = vector.extract_strided_slice %6 {offsets = [0, 96], sizes = [64, 16], strides = [1, 1]} : vector<64x128xf32> to vector<64x16xf32>
    %112 = vector.extract_strided_slice %7 {offsets = [0, 96], sizes = [64, 16], strides = [1, 1]} : vector<64x128xf32> to vector<64x16xf32>
    %113 = vector.extract_strided_slice %8 {offsets = [0, 96], sizes = [64, 16], strides = [1, 1]} : vector<64x128xf32> to vector<64x16xf32>
    %cst_37 = arith.constant dense<0.000000e+00> : vector<64x64xf32>
    %114 = tpu.matmul %111, %112, %cst_37 {dimension_numbers = #tpu.dot_dimension_numbers<[1], [1], [0], [0], [0, 0, 1, 0], [], []>} : vector<64x16xf32>, vector<64x16xf32>, vector<64x64xf32> -> vector<64x64xf32>
    %cst_38 = arith.constant 2.500000e-01 : f32
    %115 = vector.broadcast %cst_38 : f32 to vector<64x64xf32>
    %116 = arith.mulf %114, %115 : vector<64x64xf32>
    %cst_39 = arith.constant dense<0xFF800000> : vector<64xf32>
    %117 = vector.multi_reduction <maximumf>, %116, %cst_39 [1] : vector<64x64xf32> to vector<64xf32>
    %118 = vector.shape_cast %117 : vector<64xf32> to vector<64x1xf32>
    %119 = vector.broadcast %118 : vector<64x1xf32> to vector<64x64xf32>
    %120 = arith.subf %116, %119 : vector<64x64xf32>
    %121 = math.exp %120 : vector<64x64xf32>
    %cst_40 = arith.constant dense<0.000000e+00> : vector<64xf32>
    %122 = vector.multi_reduction <add>, %121, %cst_40 [1] : vector<64x64xf32> to vector<64xf32>
    %123 = vector.shape_cast %122 : vector<64xf32> to vector<64x1xf32>
    %124 = tpu.reciprocal %123 {approx = true} : vector<64x1xf32> -> vector<64x1xf32>
    %125 = vector.broadcast %124 : vector<64x1xf32> to vector<64x64xf32>
    %126 = arith.mulf %121, %125 : vector<64x64xf32>
    %cst_41 = arith.constant dense<0.000000e+00> : vector<64x16xf32>
    %127 = tpu.matmul %126, %113, %cst_41 {dimension_numbers = #tpu.dot_dimension_numbers<[1], [0], [0], [1], [0, 0, 1, 1], [], []>} : vector<64x64xf32>, vector<64x16xf32>, vector<64x16xf32> -> vector<64x16xf32>
    %128 = vector.extract_strided_slice %6 {offsets = [0, 112], sizes = [64, 16], strides = [1, 1]} : vector<64x128xf32> to vector<64x16xf32>
    %129 = vector.extract_strided_slice %7 {offsets = [0, 112], sizes = [64, 16], strides = [1, 1]} : vector<64x128xf32> to vector<64x16xf32>
    %130 = vector.extract_strided_slice %8 {offsets = [0, 112], sizes = [64, 16], strides = [1, 1]} : vector<64x128xf32> to vector<64x16xf32>
    %cst_42 = arith.constant dense<0.000000e+00> : vector<64x64xf32>
    %131 = tpu.matmul %128, %129, %cst_42 {dimension_numbers = #tpu.dot_dimension_numbers<[1], [1], [0], [0], [0, 0, 1, 0], [], []>} : vector<64x16xf32>, vector<64x16xf32>, vector<64x64xf32> -> vector<64x64xf32>
    %cst_43 = arith.constant 2.500000e-01 : f32
    %132 = vector.broadcast %cst_43 : f32 to vector<64x64xf32>
    %133 = arith.mulf %131, %132 : vector<64x64xf32>
    %cst_44 = arith.constant dense<0xFF800000> : vector<64xf32>
    %134 = vector.multi_reduction <maximumf>, %133, %cst_44 [1] : vector<64x64xf32> to vector<64xf32>
    %135 = vector.shape_cast %134 : vector<64xf32> to vector<64x1xf32>
    %136 = vector.broadcast %135 : vector<64x1xf32> to vector<64x64xf32>
    %137 = arith.subf %133, %136 : vector<64x64xf32>
    %138 = math.exp %137 : vector<64x64xf32>
    %cst_45 = arith.constant dense<0.000000e+00> : vector<64xf32>
    %139 = vector.multi_reduction <add>, %138, %cst_45 [1] : vector<64x64xf32> to vector<64xf32>
    %140 = vector.shape_cast %139 : vector<64xf32> to vector<64x1xf32>
    %141 = tpu.reciprocal %140 {approx = true} : vector<64x1xf32> -> vector<64x1xf32>
    %142 = vector.broadcast %141 : vector<64x1xf32> to vector<64x64xf32>
    %143 = arith.mulf %138, %142 : vector<64x64xf32>
    %cst_46 = arith.constant dense<0.000000e+00> : vector<64x16xf32>
    %144 = tpu.matmul %143, %130, %cst_46 {dimension_numbers = #tpu.dot_dimension_numbers<[1], [0], [0], [1], [0, 0, 1, 1], [], []>} : vector<64x64xf32>, vector<64x16xf32>, vector<64x16xf32> -> vector<64x16xf32>
    %145 = tpu.concatenate %25, %42, %59, %76, %93, %110, %127, %144 in 1 : vector<64x16xf32>, vector<64x16xf32>, vector<64x16xf32>, vector<64x16xf32>, vector<64x16xf32>, vector<64x16xf32>, vector<64x16xf32>, vector<64x16xf32> -> vector<64x128xf32>
    %c0_47 = arith.constant 0 : index
    %c0_48 = arith.constant 0 : index
    %146 = vector.load %arg4[%c0_47, %c0_48] : memref<128x128xf32, #tpu.memory_space<vmem>>, vector<128x128xf32>
    %cst_49 = arith.constant dense<0.000000e+00> : vector<64x128xf32>
    %147 = tpu.matmul %145, %146, %cst_49 {dimension_numbers = #tpu.dot_dimension_numbers<[1], [0], [0], [1], [0, 0, 1, 1], [], []>} : vector<64x128xf32>, vector<128x128xf32>, vector<64x128xf32> -> vector<64x128xf32>
    %c0_50 = arith.constant 0 : index
    %c0_51 = arith.constant 0 : index
    %148 = vector.load %arg5[%c0_50, %c0_51] : memref<1x128xf32, #tpu.memory_space<vmem>>, vector<1x128xf32>
    %149 = vector.broadcast %148 : vector<1x128xf32> to vector<64x128xf32>
    %150 = arith.addf %147, %149 : vector<64x128xf32>
    %c0_52 = arith.constant 0 : index
    %c0_53 = arith.constant 0 : index
    %151 = vector.load %arg6[%c0_52, %c0_53] : memref<128x128xf32, #tpu.memory_space<vmem>>, vector<128x128xf32>
    %cst_54 = arith.constant dense<0.000000e+00> : vector<64x128xf32>
    %152 = tpu.matmul %1, %151, %cst_54 {dimension_numbers = #tpu.dot_dimension_numbers<[1], [0], [0], [1], [0, 0, 1, 1], [], []>} : vector<64x128xf32>, vector<128x128xf32>, vector<64x128xf32> -> vector<64x128xf32>
    %c0_55 = arith.constant 0 : index
    %c0_56 = arith.constant 0 : index
    %153 = vector.load %arg7[%c0_55, %c0_56] : memref<128x256xf32, #tpu.memory_space<vmem>>, vector<128x256xf32>
    %cst_57 = arith.constant dense<0.000000e+00> : vector<32x256xf32>
    %154 = tpu.matmul %3, %153, %cst_57 {dimension_numbers = #tpu.dot_dimension_numbers<[1], [0], [0], [1], [0, 0, 1, 1], [], []>} : vector<32x128xf32>, vector<128x256xf32>, vector<32x256xf32> -> vector<32x256xf32>
    %155 = vector.extract_strided_slice %154 {offsets = [0, 0], sizes = [32, 128], strides = [1, 1]} : vector<32x256xf32> to vector<32x128xf32>
    %156 = vector.extract_strided_slice %154 {offsets = [0, 128], sizes = [32, 128], strides = [1, 1]} : vector<32x256xf32> to vector<32x128xf32>
    %157 = vector.extract_strided_slice %152 {offsets = [0, 0], sizes = [64, 16], strides = [1, 1]} : vector<64x128xf32> to vector<64x16xf32>
    %158 = vector.extract_strided_slice %155 {offsets = [0, 0], sizes = [32, 16], strides = [1, 1]} : vector<32x128xf32> to vector<32x16xf32>
    %159 = vector.extract_strided_slice %156 {offsets = [0, 0], sizes = [32, 16], strides = [1, 1]} : vector<32x128xf32> to vector<32x16xf32>
    %cst_58 = arith.constant dense<0.000000e+00> : vector<64x32xf32>
    %160 = tpu.matmul %157, %158, %cst_58 {dimension_numbers = #tpu.dot_dimension_numbers<[1], [1], [0], [0], [0, 0, 1, 0], [], []>} : vector<64x16xf32>, vector<32x16xf32>, vector<64x32xf32> -> vector<64x32xf32>
    %cst_59 = arith.constant 2.500000e-01 : f32
    %161 = vector.broadcast %cst_59 : f32 to vector<64x32xf32>
    %162 = arith.mulf %160, %161 : vector<64x32xf32>
    %cst_60 = arith.constant dense<0xFF800000> : vector<64xf32>
    %163 = vector.multi_reduction <maximumf>, %162, %cst_60 [1] : vector<64x32xf32> to vector<64xf32>
    %164 = vector.shape_cast %163 : vector<64xf32> to vector<64x1xf32>
    %165 = vector.broadcast %164 : vector<64x1xf32> to vector<64x32xf32>
    %166 = arith.subf %162, %165 : vector<64x32xf32>
    %167 = math.exp %166 : vector<64x32xf32>
    %cst_61 = arith.constant dense<0.000000e+00> : vector<64xf32>
    %168 = vector.multi_reduction <add>, %167, %cst_61 [1] : vector<64x32xf32> to vector<64xf32>
    %169 = vector.shape_cast %168 : vector<64xf32> to vector<64x1xf32>
    %170 = tpu.reciprocal %169 {approx = true} : vector<64x1xf32> -> vector<64x1xf32>
    %171 = vector.broadcast %170 : vector<64x1xf32> to vector<64x32xf32>
    %172 = arith.mulf %167, %171 : vector<64x32xf32>
    %cst_62 = arith.constant dense<0.000000e+00> : vector<64x16xf32>
    %173 = tpu.matmul %172, %159, %cst_62 {dimension_numbers = #tpu.dot_dimension_numbers<[1], [0], [0], [1], [0, 0, 1, 1], [], []>} : vector<64x32xf32>, vector<32x16xf32>, vector<64x16xf32> -> vector<64x16xf32>
    %174 = vector.extract_strided_slice %152 {offsets = [0, 16], sizes = [64, 16], strides = [1, 1]} : vector<64x128xf32> to vector<64x16xf32>
    %175 = vector.extract_strided_slice %155 {offsets = [0, 16], sizes = [32, 16], strides = [1, 1]} : vector<32x128xf32> to vector<32x16xf32>
    %176 = vector.extract_strided_slice %156 {offsets = [0, 16], sizes = [32, 16], strides = [1, 1]} : vector<32x128xf32> to vector<32x16xf32>
    %cst_63 = arith.constant dense<0.000000e+00> : vector<64x32xf32>
    %177 = tpu.matmul %174, %175, %cst_63 {dimension_numbers = #tpu.dot_dimension_numbers<[1], [1], [0], [0], [0, 0, 1, 0], [], []>} : vector<64x16xf32>, vector<32x16xf32>, vector<64x32xf32> -> vector<64x32xf32>
    %cst_64 = arith.constant 2.500000e-01 : f32
    %178 = vector.broadcast %cst_64 : f32 to vector<64x32xf32>
    %179 = arith.mulf %177, %178 : vector<64x32xf32>
    %cst_65 = arith.constant dense<0xFF800000> : vector<64xf32>
    %180 = vector.multi_reduction <maximumf>, %179, %cst_65 [1] : vector<64x32xf32> to vector<64xf32>
    %181 = vector.shape_cast %180 : vector<64xf32> to vector<64x1xf32>
    %182 = vector.broadcast %181 : vector<64x1xf32> to vector<64x32xf32>
    %183 = arith.subf %179, %182 : vector<64x32xf32>
    %184 = math.exp %183 : vector<64x32xf32>
    %cst_66 = arith.constant dense<0.000000e+00> : vector<64xf32>
    %185 = vector.multi_reduction <add>, %184, %cst_66 [1] : vector<64x32xf32> to vector<64xf32>
    %186 = vector.shape_cast %185 : vector<64xf32> to vector<64x1xf32>
    %187 = tpu.reciprocal %186 {approx = true} : vector<64x1xf32> -> vector<64x1xf32>
    %188 = vector.broadcast %187 : vector<64x1xf32> to vector<64x32xf32>
    %189 = arith.mulf %184, %188 : vector<64x32xf32>
    %cst_67 = arith.constant dense<0.000000e+00> : vector<64x16xf32>
    %190 = tpu.matmul %189, %176, %cst_67 {dimension_numbers = #tpu.dot_dimension_numbers<[1], [0], [0], [1], [0, 0, 1, 1], [], []>} : vector<64x32xf32>, vector<32x16xf32>, vector<64x16xf32> -> vector<64x16xf32>
    %191 = vector.extract_strided_slice %152 {offsets = [0, 32], sizes = [64, 16], strides = [1, 1]} : vector<64x128xf32> to vector<64x16xf32>
    %192 = vector.extract_strided_slice %155 {offsets = [0, 32], sizes = [32, 16], strides = [1, 1]} : vector<32x128xf32> to vector<32x16xf32>
    %193 = vector.extract_strided_slice %156 {offsets = [0, 32], sizes = [32, 16], strides = [1, 1]} : vector<32x128xf32> to vector<32x16xf32>
    %cst_68 = arith.constant dense<0.000000e+00> : vector<64x32xf32>
    %194 = tpu.matmul %191, %192, %cst_68 {dimension_numbers = #tpu.dot_dimension_numbers<[1], [1], [0], [0], [0, 0, 1, 0], [], []>} : vector<64x16xf32>, vector<32x16xf32>, vector<64x32xf32> -> vector<64x32xf32>
    %cst_69 = arith.constant 2.500000e-01 : f32
    %195 = vector.broadcast %cst_69 : f32 to vector<64x32xf32>
    %196 = arith.mulf %194, %195 : vector<64x32xf32>
    %cst_70 = arith.constant dense<0xFF800000> : vector<64xf32>
    %197 = vector.multi_reduction <maximumf>, %196, %cst_70 [1] : vector<64x32xf32> to vector<64xf32>
    %198 = vector.shape_cast %197 : vector<64xf32> to vector<64x1xf32>
    %199 = vector.broadcast %198 : vector<64x1xf32> to vector<64x32xf32>
    %200 = arith.subf %196, %199 : vector<64x32xf32>
    %201 = math.exp %200 : vector<64x32xf32>
    %cst_71 = arith.constant dense<0.000000e+00> : vector<64xf32>
    %202 = vector.multi_reduction <add>, %201, %cst_71 [1] : vector<64x32xf32> to vector<64xf32>
    %203 = vector.shape_cast %202 : vector<64xf32> to vector<64x1xf32>
    %204 = tpu.reciprocal %203 {approx = true} : vector<64x1xf32> -> vector<64x1xf32>
    %205 = vector.broadcast %204 : vector<64x1xf32> to vector<64x32xf32>
    %206 = arith.mulf %201, %205 : vector<64x32xf32>
    %cst_72 = arith.constant dense<0.000000e+00> : vector<64x16xf32>
    %207 = tpu.matmul %206, %193, %cst_72 {dimension_numbers = #tpu.dot_dimension_numbers<[1], [0], [0], [1], [0, 0, 1, 1], [], []>} : vector<64x32xf32>, vector<32x16xf32>, vector<64x16xf32> -> vector<64x16xf32>
    %208 = vector.extract_strided_slice %152 {offsets = [0, 48], sizes = [64, 16], strides = [1, 1]} : vector<64x128xf32> to vector<64x16xf32>
    %209 = vector.extract_strided_slice %155 {offsets = [0, 48], sizes = [32, 16], strides = [1, 1]} : vector<32x128xf32> to vector<32x16xf32>
    %210 = vector.extract_strided_slice %156 {offsets = [0, 48], sizes = [32, 16], strides = [1, 1]} : vector<32x128xf32> to vector<32x16xf32>
    %cst_73 = arith.constant dense<0.000000e+00> : vector<64x32xf32>
    %211 = tpu.matmul %208, %209, %cst_73 {dimension_numbers = #tpu.dot_dimension_numbers<[1], [1], [0], [0], [0, 0, 1, 0], [], []>} : vector<64x16xf32>, vector<32x16xf32>, vector<64x32xf32> -> vector<64x32xf32>
    %cst_74 = arith.constant 2.500000e-01 : f32
    %212 = vector.broadcast %cst_74 : f32 to vector<64x32xf32>
    %213 = arith.mulf %211, %212 : vector<64x32xf32>
    %cst_75 = arith.constant dense<0xFF800000> : vector<64xf32>
    %214 = vector.multi_reduction <maximumf>, %213, %cst_75 [1] : vector<64x32xf32> to vector<64xf32>
    %215 = vector.shape_cast %214 : vector<64xf32> to vector<64x1xf32>
    %216 = vector.broadcast %215 : vector<64x1xf32> to vector<64x32xf32>
    %217 = arith.subf %213, %216 : vector<64x32xf32>
    %218 = math.exp %217 : vector<64x32xf32>
    %cst_76 = arith.constant dense<0.000000e+00> : vector<64xf32>
    %219 = vector.multi_reduction <add>, %218, %cst_76 [1] : vector<64x32xf32> to vector<64xf32>
    %220 = vector.shape_cast %219 : vector<64xf32> to vector<64x1xf32>
    %221 = tpu.reciprocal %220 {approx = true} : vector<64x1xf32> -> vector<64x1xf32>
    %222 = vector.broadcast %221 : vector<64x1xf32> to vector<64x32xf32>
    %223 = arith.mulf %218, %222 : vector<64x32xf32>
    %cst_77 = arith.constant dense<0.000000e+00> : vector<64x16xf32>
    %224 = tpu.matmul %223, %210, %cst_77 {dimension_numbers = #tpu.dot_dimension_numbers<[1], [0], [0], [1], [0, 0, 1, 1], [], []>} : vector<64x32xf32>, vector<32x16xf32>, vector<64x16xf32> -> vector<64x16xf32>
    %225 = vector.extract_strided_slice %152 {offsets = [0, 64], sizes = [64, 16], strides = [1, 1]} : vector<64x128xf32> to vector<64x16xf32>
    %226 = vector.extract_strided_slice %155 {offsets = [0, 64], sizes = [32, 16], strides = [1, 1]} : vector<32x128xf32> to vector<32x16xf32>
    %227 = vector.extract_strided_slice %156 {offsets = [0, 64], sizes = [32, 16], strides = [1, 1]} : vector<32x128xf32> to vector<32x16xf32>
    %cst_78 = arith.constant dense<0.000000e+00> : vector<64x32xf32>
    %228 = tpu.matmul %225, %226, %cst_78 {dimension_numbers = #tpu.dot_dimension_numbers<[1], [1], [0], [0], [0, 0, 1, 0], [], []>} : vector<64x16xf32>, vector<32x16xf32>, vector<64x32xf32> -> vector<64x32xf32>
    %cst_79 = arith.constant 2.500000e-01 : f32
    %229 = vector.broadcast %cst_79 : f32 to vector<64x32xf32>
    %230 = arith.mulf %228, %229 : vector<64x32xf32>
    %cst_80 = arith.constant dense<0xFF800000> : vector<64xf32>
    %231 = vector.multi_reduction <maximumf>, %230, %cst_80 [1] : vector<64x32xf32> to vector<64xf32>
    %232 = vector.shape_cast %231 : vector<64xf32> to vector<64x1xf32>
    %233 = vector.broadcast %232 : vector<64x1xf32> to vector<64x32xf32>
    %234 = arith.subf %230, %233 : vector<64x32xf32>
    %235 = math.exp %234 : vector<64x32xf32>
    %cst_81 = arith.constant dense<0.000000e+00> : vector<64xf32>
    %236 = vector.multi_reduction <add>, %235, %cst_81 [1] : vector<64x32xf32> to vector<64xf32>
    %237 = vector.shape_cast %236 : vector<64xf32> to vector<64x1xf32>
    %238 = tpu.reciprocal %237 {approx = true} : vector<64x1xf32> -> vector<64x1xf32>
    %239 = vector.broadcast %238 : vector<64x1xf32> to vector<64x32xf32>
    %240 = arith.mulf %235, %239 : vector<64x32xf32>
    %cst_82 = arith.constant dense<0.000000e+00> : vector<64x16xf32>
    %241 = tpu.matmul %240, %227, %cst_82 {dimension_numbers = #tpu.dot_dimension_numbers<[1], [0], [0], [1], [0, 0, 1, 1], [], []>} : vector<64x32xf32>, vector<32x16xf32>, vector<64x16xf32> -> vector<64x16xf32>
    %242 = vector.extract_strided_slice %152 {offsets = [0, 80], sizes = [64, 16], strides = [1, 1]} : vector<64x128xf32> to vector<64x16xf32>
    %243 = vector.extract_strided_slice %155 {offsets = [0, 80], sizes = [32, 16], strides = [1, 1]} : vector<32x128xf32> to vector<32x16xf32>
    %244 = vector.extract_strided_slice %156 {offsets = [0, 80], sizes = [32, 16], strides = [1, 1]} : vector<32x128xf32> to vector<32x16xf32>
    %cst_83 = arith.constant dense<0.000000e+00> : vector<64x32xf32>
    %245 = tpu.matmul %242, %243, %cst_83 {dimension_numbers = #tpu.dot_dimension_numbers<[1], [1], [0], [0], [0, 0, 1, 0], [], []>} : vector<64x16xf32>, vector<32x16xf32>, vector<64x32xf32> -> vector<64x32xf32>
    %cst_84 = arith.constant 2.500000e-01 : f32
    %246 = vector.broadcast %cst_84 : f32 to vector<64x32xf32>
    %247 = arith.mulf %245, %246 : vector<64x32xf32>
    %cst_85 = arith.constant dense<0xFF800000> : vector<64xf32>
    %248 = vector.multi_reduction <maximumf>, %247, %cst_85 [1] : vector<64x32xf32> to vector<64xf32>
    %249 = vector.shape_cast %248 : vector<64xf32> to vector<64x1xf32>
    %250 = vector.broadcast %249 : vector<64x1xf32> to vector<64x32xf32>
    %251 = arith.subf %247, %250 : vector<64x32xf32>
    %252 = math.exp %251 : vector<64x32xf32>
    %cst_86 = arith.constant dense<0.000000e+00> : vector<64xf32>
    %253 = vector.multi_reduction <add>, %252, %cst_86 [1] : vector<64x32xf32> to vector<64xf32>
    %254 = vector.shape_cast %253 : vector<64xf32> to vector<64x1xf32>
    %255 = tpu.reciprocal %254 {approx = true} : vector<64x1xf32> -> vector<64x1xf32>
    %256 = vector.broadcast %255 : vector<64x1xf32> to vector<64x32xf32>
    %257 = arith.mulf %252, %256 : vector<64x32xf32>
    %cst_87 = arith.constant dense<0.000000e+00> : vector<64x16xf32>
    %258 = tpu.matmul %257, %244, %cst_87 {dimension_numbers = #tpu.dot_dimension_numbers<[1], [0], [0], [1], [0, 0, 1, 1], [], []>} : vector<64x32xf32>, vector<32x16xf32>, vector<64x16xf32> -> vector<64x16xf32>
    %259 = vector.extract_strided_slice %152 {offsets = [0, 96], sizes = [64, 16], strides = [1, 1]} : vector<64x128xf32> to vector<64x16xf32>
    %260 = vector.extract_strided_slice %155 {offsets = [0, 96], sizes = [32, 16], strides = [1, 1]} : vector<32x128xf32> to vector<32x16xf32>
    %261 = vector.extract_strided_slice %156 {offsets = [0, 96], sizes = [32, 16], strides = [1, 1]} : vector<32x128xf32> to vector<32x16xf32>
    %cst_88 = arith.constant dense<0.000000e+00> : vector<64x32xf32>
    %262 = tpu.matmul %259, %260, %cst_88 {dimension_numbers = #tpu.dot_dimension_numbers<[1], [1], [0], [0], [0, 0, 1, 0], [], []>} : vector<64x16xf32>, vector<32x16xf32>, vector<64x32xf32> -> vector<64x32xf32>
    %cst_89 = arith.constant 2.500000e-01 : f32
    %263 = vector.broadcast %cst_89 : f32 to vector<64x32xf32>
    %264 = arith.mulf %262, %263 : vector<64x32xf32>
    %cst_90 = arith.constant dense<0xFF800000> : vector<64xf32>
    %265 = vector.multi_reduction <maximumf>, %264, %cst_90 [1] : vector<64x32xf32> to vector<64xf32>
    %266 = vector.shape_cast %265 : vector<64xf32> to vector<64x1xf32>
    %267 = vector.broadcast %266 : vector<64x1xf32> to vector<64x32xf32>
    %268 = arith.subf %264, %267 : vector<64x32xf32>
    %269 = math.exp %268 : vector<64x32xf32>
    %cst_91 = arith.constant dense<0.000000e+00> : vector<64xf32>
    %270 = vector.multi_reduction <add>, %269, %cst_91 [1] : vector<64x32xf32> to vector<64xf32>
    %271 = vector.shape_cast %270 : vector<64xf32> to vector<64x1xf32>
    %272 = tpu.reciprocal %271 {approx = true} : vector<64x1xf32> -> vector<64x1xf32>
    %273 = vector.broadcast %272 : vector<64x1xf32> to vector<64x32xf32>
    %274 = arith.mulf %269, %273 : vector<64x32xf32>
    %cst_92 = arith.constant dense<0.000000e+00> : vector<64x16xf32>
    %275 = tpu.matmul %274, %261, %cst_92 {dimension_numbers = #tpu.dot_dimension_numbers<[1], [0], [0], [1], [0, 0, 1, 1], [], []>} : vector<64x32xf32>, vector<32x16xf32>, vector<64x16xf32> -> vector<64x16xf32>
    %276 = vector.extract_strided_slice %152 {offsets = [0, 112], sizes = [64, 16], strides = [1, 1]} : vector<64x128xf32> to vector<64x16xf32>
    %277 = vector.extract_strided_slice %155 {offsets = [0, 112], sizes = [32, 16], strides = [1, 1]} : vector<32x128xf32> to vector<32x16xf32>
    %278 = vector.extract_strided_slice %156 {offsets = [0, 112], sizes = [32, 16], strides = [1, 1]} : vector<32x128xf32> to vector<32x16xf32>
    %cst_93 = arith.constant dense<0.000000e+00> : vector<64x32xf32>
    %279 = tpu.matmul %276, %277, %cst_93 {dimension_numbers = #tpu.dot_dimension_numbers<[1], [1], [0], [0], [0, 0, 1, 0], [], []>} : vector<64x16xf32>, vector<32x16xf32>, vector<64x32xf32> -> vector<64x32xf32>
    %cst_94 = arith.constant 2.500000e-01 : f32
    %280 = vector.broadcast %cst_94 : f32 to vector<64x32xf32>
    %281 = arith.mulf %279, %280 : vector<64x32xf32>
    %cst_95 = arith.constant dense<0xFF800000> : vector<64xf32>
    %282 = vector.multi_reduction <maximumf>, %281, %cst_95 [1] : vector<64x32xf32> to vector<64xf32>
    %283 = vector.shape_cast %282 : vector<64xf32> to vector<64x1xf32>
    %284 = vector.broadcast %283 : vector<64x1xf32> to vector<64x32xf32>
    %285 = arith.subf %281, %284 : vector<64x32xf32>
    %286 = math.exp %285 : vector<64x32xf32>
    %cst_96 = arith.constant dense<0.000000e+00> : vector<64xf32>
    %287 = vector.multi_reduction <add>, %286, %cst_96 [1] : vector<64x32xf32> to vector<64xf32>
    %288 = vector.shape_cast %287 : vector<64xf32> to vector<64x1xf32>
    %289 = tpu.reciprocal %288 {approx = true} : vector<64x1xf32> -> vector<64x1xf32>
    %290 = vector.broadcast %289 : vector<64x1xf32> to vector<64x32xf32>
    %291 = arith.mulf %286, %290 : vector<64x32xf32>
    %cst_97 = arith.constant dense<0.000000e+00> : vector<64x16xf32>
    %292 = tpu.matmul %291, %278, %cst_97 {dimension_numbers = #tpu.dot_dimension_numbers<[1], [0], [0], [1], [0, 0, 1, 1], [], []>} : vector<64x32xf32>, vector<32x16xf32>, vector<64x16xf32> -> vector<64x16xf32>
    %293 = tpu.concatenate %173, %190, %207, %224, %241, %258, %275, %292 in 1 : vector<64x16xf32>, vector<64x16xf32>, vector<64x16xf32>, vector<64x16xf32>, vector<64x16xf32>, vector<64x16xf32>, vector<64x16xf32>, vector<64x16xf32> -> vector<64x128xf32>
    %c0_98 = arith.constant 0 : index
    %c0_99 = arith.constant 0 : index
    %294 = vector.load %arg8[%c0_98, %c0_99] : memref<128x128xf32, #tpu.memory_space<vmem>>, vector<128x128xf32>
    %cst_100 = arith.constant dense<0.000000e+00> : vector<64x128xf32>
    %295 = tpu.matmul %293, %294, %cst_100 {dimension_numbers = #tpu.dot_dimension_numbers<[1], [0], [0], [1], [0, 0, 1, 1], [], []>} : vector<64x128xf32>, vector<128x128xf32>, vector<64x128xf32> -> vector<64x128xf32>
    %c0_101 = arith.constant 0 : index
    %c0_102 = arith.constant 0 : index
    %296 = vector.load %arg9[%c0_101, %c0_102] : memref<1x128xf32, #tpu.memory_space<vmem>>, vector<1x128xf32>
    %297 = vector.broadcast %296 : vector<1x128xf32> to vector<64x128xf32>
    %298 = arith.addf %295, %297 : vector<64x128xf32>
    %299 = arith.addf %150, %298 : vector<64x128xf32>
    %c0_103 = arith.constant 0 : index
    %c0_104 = arith.constant 0 : index
    %c0_105 = arith.constant 0 : index
    %300 = vector.load %arg10[%c0_103, %c0_104, %c0_105] : memref<1x64x128xf32, #tpu.memory_space<vmem>>, vector<1x64x128xf32>
    %301 = vector.shape_cast %300 : vector<1x64x128xf32> to vector<64x128xf32>
    %302 = vector.shape_cast %299 : vector<64x128xf32> to vector<1x64x128xf32>
    tpu.vector_store %arg10[%c0_103, %c0_104, %c0_105], %302 {strides = array<i32>} : memref<1x64x128xf32, #tpu.memory_space<vmem>>, vector<1x64x128xf32>,
    return
  }
  func.func @transform_0(%arg0: i32) -> (i32, i32, i32) {
    %c0_i32 = arith.constant 0 : i32
    %c0_i32_0 = arith.constant 0 : i32
    %c0_i32_1 = arith.constant 0 : i32
    return %arg0, %c0_i32, %c0_i32_0 : i32, i32, i32
  }
  func.func @transform_1(%arg0: i32) -> (i32, i32, i32) {
    %c0_i32 = arith.constant 0 : i32
    %c0_i32_0 = arith.constant 0 : i32
    %c0_i32_1 = arith.constant 0 : i32
    return %arg0, %c0_i32, %c0_i32_0 : i32, i32, i32
  }
  func.func @transform_2(%arg0: i32) -> (i32, i32) {
    %c0_i32 = arith.constant 0 : i32
    %c0_i32_0 = arith.constant 0 : i32
    %c0_i32_1 = arith.constant 0 : i32
    return %c0_i32, %c0_i32_0 : i32, i32
  }
  func.func @transform_3(%arg0: i32) -> (i32, i32) {
    %c0_i32 = arith.constant 0 : i32
    %c0_i32_0 = arith.constant 0 : i32
    %c0_i32_1 = arith.constant 0 : i32
    return %c0_i32, %c0_i32_0 : i32, i32
  }
  func.func @transform_4(%arg0: i32) -> (i32, i32) {
    %c0_i32 = arith.constant 0 : i32
    %c0_i32_0 = arith.constant 0 : i32
    %c0_i32_1 = arith.constant 0 : i32
    return %c0_i32, %c0_i32_0 : i32, i32
  }
  func.func @transform_5(%arg0: i32) -> (i32, i32) {
    %c0_i32 = arith.constant 0 : i32
    %c0_i32_0 = arith.constant 0 : i32
    %c0_i32_1 = arith.constant 0 : i32
    return %c0_i32, %c0_i32_0 : i32, i32
  }
  func.func @transform_6(%arg0: i32) -> (i32, i32) {
    %c0_i32 = arith.constant 0 : i32
    %c0_i32_0 = arith.constant 0 : i32
    %c0_i32_1 = arith.constant 0 : i32
    return %c0_i32, %c0_i32_0 : i32, i32
  }
  func.func @transform_7(%arg0: i32) -> (i32, i32) {
    %c0_i32 = arith.constant 0 : i32
    %c0_i32_0 = arith.constant 0 : i32
    %c0_i32_1 = arith.constant 0 : i32
    return %c0_i32, %c0_i32_0 : i32, i32
  }
  func.func @transform_8(%arg0: i32) -> (i32, i32) {
    %c0_i32 = arith.constant 0 : i32
    %c0_i32_0 = arith.constant 0 : i32
    %c0_i32_1 = arith.constant 0 : i32
    return %c0_i32, %c0_i32_0 : i32, i32
  }
  func.func @transform_9(%arg0: i32) -> (i32, i32, i32) {
    %c0_i32 = arith.constant 0 : i32
    %c0_i32_0 = arith.constant 0 : i32
    %c0_i32_1 = arith.constant 0 : i32
    return %arg0, %c0_i32, %c0_i32_0 : i32, i32, i32
  }
}

</mosaic_0001>

<bundles_post_ra>
// kernel: tpu_custom_call.1
= control target key start
LH: loop header
LB: loop body
LE: loop exit
PB: predicated region body
PF: predicated region fallthrough
CT: control target
= control target key end

     0   :  { %s15790_s0 = inlined_call_operand.hbm [shape: f32[2,64,128], index: 0, kind: input, shape index: {}]   ;;  %s15791_s1 = inlined_call_operand.hbm [shape: f32[2,32,128], index: 1, kind: input, shape index: {}]   ;;  %s15792_s2 = inlined_call_operand.hbm [shape: f32[128,384], index: 2, kind: input, shape index: {}]   ;;  %s15793_s3 = inlined_call_operand.hbm [shape: f32[128,128], index: 3, kind: input, shape index: {}]   ;;  %s15794_s4 = inlined_call_operand.vmem [shape: f32[1,128], index: 4, kind: input, shape index: {}]   ;;  %s15795_s5 = inlined_call_operand.hbm [shape: f32[128,128], index: 5, kind: input, shape index: {}]   ;;  %s15796_s6 = inlined_call_operand.hbm [shape: f32[128,256], index: 6, kind: input, shape index: {}]   ;;  %s15797_s7 = inlined_call_operand.hbm [shape: f32[128,128], index: 7, kind: input, shape index: {}]   ;;  %s15798_s8 = inlined_call_operand.vmem [shape: f32[1,128], index: 8, kind: input, shape index: {}]   ;;  %s15799_s9 = inlined_call_operand.hbm [shape: f32[2,64,128], index: 9, kind: output, shape index: {}]  }
   0x1   :  { %15860 = sst [smem:[#allocation49_spill]] %s15790_s0 }
   0x2   :  { %15861 = sst [smem:[#allocation50_spill]] %s15792_s2 }
   0x3   :  { %15862 = sst [smem:[#allocation51_spill]] %s15793_s3 }
   0x4   :  { %15863 = sst [smem:[#allocation52_spill]] %s15795_s5 }
   0x5   :  { %15864 = sst [smem:[#allocation53_spill]] %s15796_s6 }
   0x6   :  { %15865 = sst [smem:[#allocation54_spill]] %s15797_s7 }
   0x7   :  { %15866 = sst [smem:[#allocation55_spill]] %s15799_s9 }
   0x8   :  { %14 = vsyncpa [#allocation3], 0 }
   0x9   :  { %16 = vsyncpa [#allocation3 + $0x1], 0 }
   0xa   :  { %17 = vsyncpa [#allocation6], 0 }
   0xb   :  { %19 = vsyncpa [#allocation6 + $0x1], 0 }
   0xc   :  { %20 = vsyncpa [#allocation9], 0 }
   0xd   :  { %21 = vsyncpa [#allocation12], 0 }
   0xe   :  { %22 = vsyncpa [#allocation4], 0 }
   0xf   :  { %24 = vsyncpa [#allocation4 + $0x1], 0  ;;  %s12656_s30 = smov 0   ;;  %s12658_s10 = smov 0  }
  0x10   :  { %s12660_s11 = smov 0   ;;  %s12662_s12 = smov 0  }
  0x11 LB: > { %s12582_s13 = smov [#allocation7]   ;;  %s12677_s15 = sadd.s32 4294967295, %s12580_s12   ;;  %s12580_s12 = sphi %s12662_s12, %s16037_s12   ;;  %s12576_s11 = sphi %s12660_s11, %s16036_s11   ;;  %s12572_s10 = sphi %s12658_s10, %s16035_s10   ;;  %s12568_s30 = sphi %s12656_s30, %s16034_s30  }
  0x12   : > { %s272_s14 = sshll.u32 %s12582_s13, 4  ;;  %p8392_p0 = scmp.ge.s32.totalorder %s12580_s12, 1  ;;  %s12682_s14 = int_to_ptr.vmem [resolvable:$true] %s272_s14 }
  0x13   : > { %p15801_p1 = scmp.eq.s32.totalorder %s12677_s15, 0  ;;  %p260_p2 = scmp.lt.s32.totalorder %s12580_s12, 3 }
  0x14   : > { %s12583_s17 = smov [#allocation8]   ;;  %s12584_s20 = smov [#allocation11]  }
  0x15   : > { %p12684_p3 = pnand %p8392_p0, %p260_p2  ;;  %s285_s18 = sshll.u32 %s12583_s17, 4  ;;  %s12697_s18 = int_to_ptr.vmem [resolvable:$true] %s285_s18 }
  0x16   : > { %s12699_s21 = sshll.u32 %s12584_s20, 4  ;;  %s15869_s2 = sld [smem:[#allocation50_spill]]  ;;  %s315_s21 = int_to_ptr.vmem [resolvable:$true] %s12699_s21 }
  0x17   : > { %s15867_s16 = scalar_select %p12684_p3, 1, 0 }
  0x18   : > { %p10986_p5 = pneg %p12684_p3 }
  0x1a   : > { %p12693_p6 = pnand %p10986_p5, %p15801_p1 }
  0x1c   : > { %s12298_s24 = scalar_lea.hbm %s15869_s2, 6144  ;;  %p12709_p8 = pneg %p12693_p6 }
  0x1d   : > { %p12299_p7 = scmp.ne.s32.totalorder %s15869_s2, %s12298_s24  ;;  %p12305_p11 = scmp.lt.u32.totalorder %s12298_s24, %s15869_s2 }
  0x1f   : > { %p12301_p9 = pnand %p12709_p8, %p12299_p7 }
  0x21   : > { %p12302_p10 = pneg %p12301_p9 }
  0x23   : > { %p12307_p12 = pnand %p12305_p11, %p12302_p10 }
  0x25   : > { %12310 = shalt.err (!%p12307_p12)
}
  0x26   : > { %s12311_s13 = scalar_lea.vmem %s12682_s14, 6144  ;;  %p12319_p5 = scmp.lt.s32.totalorder %s12682_s14, %s12682_s14 }
  0x27   : > { %p12312_p13 = scmp.ne.s32.totalorder %s12682_s14, %s12311_s13  ;;  %p12320_p4 = scmp.lt.s32.totalorder %s12311_s13, %s12311_s13 }
  0x29   : > { %p12314_p0 = pnand %p12312_p13, %p12709_p8  ;;  %p12321_p7 = por %p12320_p4, %p12319_p5 }
  0x2b   : > { %p12315_p2 = pneg %p12314_p0 }
  0x2d   : > { %p12322_p9 = pnand %p12321_p7, %p12315_p2 }
  0x2f   : > { %12325 = shalt.err (!%p12322_p9)
}
  0x30   : > { %s12585_s17 = smov 384   ;;  %s12586_s20 = smov 24  }
  0x31   : > { %10989 = dma.hbm_to_vmem [thread:$0]  (!%p12693_p6), %s15869_s2, 6144, %s12682_s14, [#allocation6], %s12585_s17, %s12585_s17, %s12586_s20  }
  0x32   : > { %s15871_s3 = sld [smem:[#allocation51_spill]] }
  0x38   : > { %s12326_s26 = scalar_lea.hbm %s15871_s3, 2048 }
  0x39   : > { %p12327_p4 = scmp.ne.s32.totalorder %s15871_s3, %s12326_s26  ;;  %p12333_p12 = scmp.lt.u32.totalorder %s12326_s26, %s15871_s3 }
  0x3b   : > { %p12329_p10 = pnand %p12327_p4, %p12709_p8 }
  0x3d   : > { %p12330_p11 = pneg %p12329_p10 }
  0x3f   : > { %p12335_p13 = pnand %p12333_p12, %p12330_p11 }
  0x41   : > { %12338 = shalt.err (!%p12335_p13)
}
  0x42   : > { %s12339_s14 = scalar_lea.vmem %s12697_s18, 2048  ;;  %p12347_p7 = scmp.lt.s32.totalorder %s12697_s18, %s12697_s18 }
  0x43   : > { %p12340_p0 = scmp.ne.s32.totalorder %s12697_s18, %s12339_s14  ;;  %p12348_p9 = scmp.lt.s32.totalorder %s12339_s14, %s12339_s14 }
  0x45   : > { %p12342_p2 = pnand %p12340_p0, %p12709_p8  ;;  %p12349_p4 = por %p12348_p9, %p12347_p7 }
  0x47   : > { %p12343_p5 = pneg %p12342_p2 }
  0x49   : > { %p12350_p10 = pnand %p12349_p4, %p12343_p5 }
  0x4b   : > { %12353 = shalt.err (!%p12350_p10)
}
  0x4c   : > { %s15803_s17 = smov 128   ;;  %s15805_s9 = smov 8  }
  0x4d   : > { %10992 = dma.hbm_to_vmem [thread:$0]  (!%p12693_p6), %s15871_s3, 2048, %s12697_s18, [#allocation9], %s15803_s17, %s15803_s17, %s15805_s9  }
  0x4e   : > { %s15872_s6 = sld [smem:[#allocation53_spill]] }
  0x54   : > { %s12354_s25 = scalar_lea.hbm %s15872_s6, 4096 }
  0x55   : > { %p12355_p11 = scmp.ne.s32.totalorder %s15872_s6, %s12354_s25  ;;  %p12361_p0 = scmp.lt.u32.totalorder %s12354_s25, %s15872_s6 }
  0x57   : > { %p12357_p12 = pnand %p12355_p11, %p12709_p8 }
  0x59   : > { %p12358_p13 = pneg %p12357_p12 }
  0x5b   : > { %p12363_p2 = pnand %p12361_p0, %p12358_p13 }
  0x5d   : > { %12366 = shalt.err (!%p12363_p2)
}
  0x5e   : > { %s12367_s14 = scalar_lea.vmem %s315_s21, 4096  ;;  %p12375_p4 = scmp.lt.s32.totalorder %s315_s21, %s315_s21 }
  0x5f   : > { %p12368_p5 = scmp.ne.s32.totalorder %s315_s21, %s12367_s14  ;;  %p12376_p10 = scmp.lt.s32.totalorder %s12367_s14, %s12367_s14 }
  0x61   : > { %p12370_p7 = pnand %p12368_p5, %p12709_p8  ;;  %p12377_p1 = por %p12376_p10, %p12375_p4 }
  0x63   : > { %p12371_p9 = pneg %p12370_p7 }
  0x65   : > { %p12378_p3 = pnand %p12377_p1, %p12371_p9 }
  0x67   : > { %12381 = shalt.err (!%p12378_p3)
}
  0x68   : > { %s12589_s18 = smov 256   ;;  %s12590_s20 = smov 16  }
  0x69   : > { %10998 = dma.hbm_to_vmem [thread:$0]  (!%p12693_p6), %s15872_s6, 4096, %s315_s21, [#allocation12], %s12589_s18, %s12589_s18, %s12590_s20  }
  0x6a   : > { %s12591_s24 = smov [#allocation10]   ;;  %s12592_s26 = smov [#allocation13]  }
  0x6b   : > { %s301_s25 = sshll.u32 %s12591_s24, 4  ;;  %s327_s28 = sshll.u32 %s12592_s26, 4  ;;  %s302_s25 = int_to_ptr.vmem [resolvable:$true] %s301_s25  ;;  %s328_s28 = int_to_ptr.vmem [resolvable:$true] %s327_s28 }
  0x6c   : > { %s15873_s5 = sld [smem:[#allocation52_spill]] }
  0x72   : > { %s12382_s14 = scalar_lea.hbm %s15873_s5, 2048 }
  0x73   : > { %p12383_p1 = scmp.ne.s32.totalorder %s15873_s5, %s12382_s14  ;;  %p12389_p12 = scmp.lt.u32.totalorder %s12382_s14, %s15873_s5 }
  0x75   : > { %p12385_p3 = pnand %p12383_p1, %p12709_p8 }
  0x77   : > { %p12386_p11 = pneg %p12385_p3 }
  0x79   : > { %p12391_p13 = pnand %p12389_p12, %p12386_p11 }
  0x7b   : > { %12394 = shalt.err (!%p12391_p13)
}
  0x7c   : > { %s12395_s21 = scalar_lea.vmem %s302_s25, 2048  ;;  %p12403_p7 = scmp.lt.s32.totalorder %s302_s25, %s302_s25 }
  0x7d   : > { %p12396_p0 = scmp.ne.s32.totalorder %s302_s25, %s12395_s21  ;;  %p12404_p9 = scmp.lt.s32.totalorder %s12395_s21, %s12395_s21 }
  0x7f   : > { %p12398_p2 = pnand %p12396_p0, %p12709_p8  ;;  %p12405_p4 = por %p12404_p9, %p12403_p7 }
  0x81   : > { %p12399_p5 = pneg %p12398_p2 }
  0x83   : > { %p12406_p10 = pnand %p12405_p4, %p12399_p5 }
  0x85   : > { %12409 = shalt.err (!%p12406_p10)
}
  0x86   : > { %s15874_s17 = smov 8   ;;  %s15875_s9 = smov 128  }
  0x87   : > { %10995 = dma.hbm_to_vmem [thread:$0]  (!%p12693_p6), %s15873_s5, 2048, %s302_s25, [#allocation9], %s15875_s9, %s15875_s9, %s15874_s17  }
  0x88   : > { %s15876_s7 = sld [smem:[#allocation54_spill]] }
  0x8e   : > { %s12410_s22 = scalar_lea.hbm %s15876_s7, 2048 }
  0x8f   : > { %p12411_p1 = scmp.ne.s32.totalorder %s15876_s7, %s12410_s22  ;;  %p12417_p12 = scmp.lt.u32.totalorder %s12410_s22, %s15876_s7 }
  0x91   : > { %p12413_p3 = pnand %p12411_p1, %p12709_p8 }
  0x93   : > { %p12414_p11 = pneg %p12413_p3 }
  0x95   : > { %p12419_p13 = pnand %p12417_p12, %p12414_p11 }
  0x97   : > { %12422 = shalt.err (!%p12419_p13)
}
  0x98   : > { %s12423_s13 = scalar_lea.vmem %s328_s28, 2048  ;;  %p12431_p7 = scmp.lt.s32.totalorder %s328_s28, %s328_s28 }
  0x99   : > { %p12424_p0 = scmp.ne.s32.totalorder %s328_s28, %s12423_s13  ;;  %p12432_p9 = scmp.lt.s32.totalorder %s12423_s13, %s12423_s13 }
  0x9b   : > { %p12426_p2 = pnand %p12424_p0, %p12709_p8  ;;  %p12433_p4 = por %p12432_p9, %p12431_p7 }
  0x9d   : > { %p12427_p5 = pneg %p12426_p2 }
  0x9f   : > { %p12434_p10 = pnand %p12433_p4, %p12427_p5 }
  0xa1   : > { %12437 = shalt.err (!%p12434_p10)
}
  0xa2   : > { %11001 = dma.hbm_to_vmem [thread:$0]  (!%p12693_p6), %s15876_s7, 2048, %s328_s28, [#allocation12], %s15875_s9, %s15875_s9, %s15874_s17  }
  0xa3   : > { %s8391_s19 = sadd.s32 4294967294, %s12580_s12   ;;  %s12819_s27 = sadd.s32 1, %s12580_s12  }
  0xa4   : > { %s37_s21 = sadd.s32 1, %s12576_s11  ;;  %s34_s2 = ssub.s32 %s12580_s12, %s12819_s27 }
  0xa5   : > { %p44_p8 = scmp.ne.s32.totalorder %s12576_s11, %s12572_s10  ;;  %p35_p1 = scmp.eq.s32.totalorder %s34_s2, 0 }
  0xa6   : > { %p45_p3 = scmp.eq.s32.totalorder %s12580_s12, 0  ;;  %p50_p11 = scmp.ne.s32.totalorder %s12572_s10, %s12568_s30 }
  0xa7   : > { %p247_p12 = scmp.eq.s32.totalorder %s12677_s15, 1  ;;  %p15877_p0 = scmp.eq.s32.totalorder %s12677_s15, 0 }
  0xa8   : > { %s12831_s3 = scalar_select %p35_p1, %s12576_s11, %s37_s21  }
  0xa9   : > { %p46_p13 = por %p45_p3, %p44_p8  ;;  %p12835_p2 = por %p15877_p0, %p50_p11 }
  0xaa   : > { %p12839_p6 = por %p247_p12, %p44_p8  ;;  %p253_p5 = scmp.eq.s32.totalorder %s8391_s19, 1 }
  0xab   : > { %p11018_p7 = scmp.lt.s32.totalorder %s12580_s12, 2  ;;  %s12845_s20 = sand.u32 1, %s12576_s11  }
  0xac   : > { %s15879_s18 = scalar_select %p12839_p6, 1, 0 }
  0xad   : > { %p12847_p9 = por %p253_p5, %p50_p11  ;;  %s8399_s23 = sshll.u32 %s12845_s20, 6 }
  0xae   : > { %s8773_s24 = sshll.u32 %s12580_s12, 10  ;;  %s15881_s0 = sld [smem:[#allocation49_spill]] }
  0xaf   : > { %s15880_s22 = scalar_select %p12847_p9, 1, 0 }
  0xb0   : > { %s348_s25 = scalar_lea.vmem [#allocation2], %s8399_s23  ;;  %p12858_p4 = pnand %p11018_p7, %p46_p13 }
  0xb1   : > { %s355_s14 = sshll.u32 %s348_s25, 4  ;;  %s345_s2 = scalar_lea.sflag [#allocation3], %s12845_s20  ;;  %s12862_s14 = int_to_ptr.vmem [resolvable:$true] %s355_s14 }
  0xb2   : > { %p12440_p8 = pneg %p12858_p4 }
  0xb4   : > { %s12856_s13 = scalar_lea.hbm %s15881_s0, %s8773_s24  ;;  %s12443_s26 = scalar_lea.hbm %s15881_s0, 2048 }
  0xb5   : > { %s12438_s5 = scalar_lea.hbm %s12856_s13, 1024  ;;  %p12444_p11 = scmp.lt.u32.totalorder %s12856_s13, %s15881_s0 }
  0xb6   : > { %p12439_p10 = scmp.ne.s32.totalorder %s12856_s13, %s12438_s5  ;;  %p12445_p12 = scmp.lt.u32.totalorder %s12443_s26, %s12438_s5 }
  0xb7   : > { %p12447_p0 = scmp.lt.u32.totalorder %s12438_s5, %s12856_s13 }
  0xb8   : > { %p12441_p1 = pnand %p12440_p8, %p12439_p10  ;;  %p12446_p13 = por %p12445_p12, %p12444_p11 }
  0xba   : > { %p12442_p3 = pneg %p12441_p1  ;;  %p12448_p5 = por %p12447_p0, %p12446_p13 }
  0xbc   : > { %p12449_p7 = pnand %p12448_p5, %p12442_p3 }
  0xbe   : > { %12452 = shalt.err (!%p12449_p7)
}
  0xbf   : > { %s12453_s21 = scalar_lea.vmem %s12862_s14, 1024  ;;  %s12593_s23 = smov [#allocation2]  }
  0xc0   : > { %p12454_p10 = scmp.ne.s32.totalorder %s12862_s14, %s12453_s21  ;;  %s12458_s24 = sshll.u32 %s12593_s23, 4  ;;  %s12459_s24 = int_to_ptr.vmem [resolvable:$false] %s12458_s24 }
  0xc1   : > { %s12460_s29 = scalar_lea.vmem %s12459_s24, 2048  ;;  %p12461_p6 = scmp.lt.s32.totalorder %s12862_s14, %s12459_s24 }
  0xc2   : > { %p12456_p1 = pnand %p12454_p10, %p12440_p8  ;;  %p12462_p11 = scmp.lt.s32.totalorder %s12460_s29, %s12453_s21 }
  0xc4   : > { %p12457_p9 = pneg %p12456_p1  ;;  %p12463_p12 = por %p12462_p11, %p12461_p6 }
  0xc6   : > { %p12464_p13 = pnand %p12463_p12, %p12457_p9 }
  0xc8   : > { %12467 = shalt.err (!%p12464_p13)
}
  0xc9   : > { %11005 = dma.hbm_to_vmem [thread:$0]  (!%p12858_p4), %s12856_s13, 1024, %s12862_s14, %s345_s2, %s15875_s9, %s15875_s9, %s15874_s17  }
  0xca   : > { %s8402_s5 = sshll.u32 %s12845_s20, 5  ;;  %s8774_s26 = sshll.u32 %s12580_s12, 9 }
  0xcb   : > { %s12901_s23 = scalar_lea.hbm %s15791_s1, %s8774_s26  ;;  %s369_s24 = scalar_lea.vmem [#allocation5], %s8402_s5 }
  0xcc   : > { %s376_s29 = sshll.u32 %s369_s24, 4  ;;  %s15883_s0 = sand.u32 1, %s12580_s12   ;;  %s12903_s29 = int_to_ptr.vmem [resolvable:$true] %s376_s29 }
  0xcd   : > { %s12907_s6 = scalar_lea.sflag [#allocation6], %s15883_s0  ;;  %s12468_s7 = scalar_lea.hbm %s12901_s23, 512 }
  0xce   : > { %p12469_p6 = scmp.ne.s32.totalorder %s12901_s23, %s12468_s7  ;;  %s12473_s14 = scalar_lea.hbm %s15791_s1, 1024 }
  0xcf   : > { %p12474_p0 = scmp.lt.u32.totalorder %s12901_s23, %s15791_s1  ;;  %p12475_p5 = scmp.lt.u32.totalorder %s12473_s14, %s12468_s7 }
  0xd0   : > { %p12471_p9 = pnand %p12469_p6, %p12440_p8  ;;  %p12477_p10 = scmp.lt.u32.totalorder %s12468_s7, %s12901_s23 }
  0xd1   : > { %p12476_p7 = por %p12475_p5, %p12474_p0 }
  0xd2   : > { %p12472_p3 = pneg %p12471_p9 }
  0xd3   : > { %p12478_p1 = por %p12477_p10, %p12476_p7 }
  0xd5   : > { %p12479_p11 = pnand %p12478_p1, %p12472_p3 }
  0xd7   : > { %12482 = shalt.err (!%p12479_p11)
}
  0xd8   : > { %s12483_s0 = scalar_lea.vmem %s12903_s29, 512  ;;  %s12594_s5 = smov [#allocation5]  }
  0xd9   : > { %p12484_p12 = scmp.ne.s32.totalorder %s12903_s29, %s12483_s0  ;;  %s12488_s21 = sshll.u32 %s12594_s5, 4  ;;  %s12489_s21 = int_to_ptr.vmem [resolvable:$false] %s12488_s21 }
  0xda   : > { %s12490_s25 = scalar_lea.vmem %s12489_s21, 1024  ;;  %p12491_p9 = scmp.lt.s32.totalorder %s12903_s29, %s12489_s21 }
  0xdb   : > { %p12486_p13 = pnand %p12484_p12, %p12440_p8  ;;  %p12492_p0 = scmp.lt.s32.totalorder %s12490_s25, %s12483_s0 }
  0xdd   : > { %p12487_p6 = pneg %p12486_p13  ;;  %p12493_p5 = por %p12492_p0, %p12491_p9 }
  0xdf   : > { %p12494_p7 = pnand %p12493_p5, %p12487_p6 }
  0xe1   : > { %12497 = shalt.err (!%p12494_p7)
}
  0xe2   : > { %11008 = dma.hbm_to_vmem [thread:$0]  (!%p12858_p4), %s12901_s23, 512, %s12903_s29, %s12907_s6, %s15875_s9, %s15875_s9, %s15874_s17  }
  0xe3   : > { %p15884_p8 = scmp.ne.s32.totalorder %s15867_s16, 0 }
  0xe5   : > { %388 = sbr.rel (%p15884_p8) target bundleno = 6808 (0x1a98), region = 56 }
  0xec   : > { %s12939_s7 = sand.u32 1, %s12572_s10  }
  0xed   : > { %s8406_s24 = sshll.u32 %s12939_s7, 6  ;;  %s391_s20 = scalar_lea.sflag [#allocation3], %s12939_s7 }
  0xee   : > { %s12945_s19 = scalar_lea.vmem [#allocation2], %s8406_s24 }
  0xef   : > { %12543 = dma.done.wait (%p12835_p2), %s391_s20, 1024  }
  0xf0   : > { %12545 = vsyncadd (%p12835_p2), %s391_s20, 4294966272  ;;  %s399_s6 = sand.u32 1, %s12677_s15   ;;  %s8407_s16 = sshll.u32 %s12939_s7, 5 }
  0xf1   : > { %s400_s17 = scalar_lea.sflag [#allocation6], %s399_s6  ;;  %s12953_s9 = scalar_lea.vmem [#allocation5], %s8407_s16 }
  0xf2   : > { %12547 = dma.done.wait (%p12835_p2), %s400_s17, 512  }
  0xf3   : > { %12549 = vsyncadd (%p12835_p2), %s400_s17, 4294966784  ;;  %p15885_p4 = scmp.eq.s32.totalorder %s12677_s15, 0 }
  0xf5   : > { %12551 = dma.done.wait (%p15885_p4), [#allocation6], 6144   ;;  %p15886_p3 = pmov %p15885_p4 }
  0xf7   : > { %12553 = vsyncadd (%p15886_p3), [#allocation6], 4294961152  ;;  %p15887_p10 = pmov %p15886_p3 }
  0xf8   : > { %p15888_p1 = pmov %p15886_p3 }
  0xf9   : > { %12555 = dma.done.wait (%p15887_p10), [#allocation9], 4096  }
  0xfa   : > { %12557 = vsyncadd (%p15888_p1), [#allocation9], 4294963200  ;;  %p15889_p11 = pmov %p15888_p1 }
  0xfb   : > { %p15890_p12 = pmov %p15888_p1 }
  0xfc   : > { %12559 = dma.done.wait (%p15889_p11), [#allocation12], 6144  }
  0xfd   : > { %12561 = vsyncadd (%p15890_p12), [#allocation12], 4294961152  ;;  %v15808_v0 = vmov 0.0   ;;  %v476_v1 = vld [vmem:[#allocation7 + $0x8] sm:$0xff]  ;;  %v479_v2 = vld [vmem:[#allocation7 + $0x20] sm:$0xff]  ;;  %vm741_vm0 = vcmask 130048  }
  0xfe   : > { %587 = vmatprep.mubr.f32.mxu0 %v15808_v0  ;;  %v475_v3 = vld [vmem:[#allocation7] sm:$0xff]  ;;  %v10264_v4 = vpack.c.bf16 %v479_v2, %v476_v1  ;;  %v478_v5 = vld [vmem:[#allocation7 + $0x18] sm:$0xff]  ;;  %v485_v7 = vld [vmem:[#allocation7 + $0x50] sm:$0xff]  ;;  %vm903_vm2 = vcmask 523264   ;;  %s12596_s28 = smov 112   ;;  %s12597_s23 = smov 96  }
  0xff   : > { %v482_v6 = vld [vmem:[#allocation7 + $0x38] sm:$0xff]  ;;  %v10266_v8 = vpack.c.bf16 %v478_v5, %v475_v3  ;;  %v481_v10 = vld [vmem:[#allocation7 + $0x30] sm:$0xff]  ;;  %v484_v11 = vld [vmem:[#allocation7 + $0x48] sm:$0xff]  ;;  %s12598_s29 = smov 80   ;;  %s12599_s13 = smov 64   ;;  %vm4287_vm3 = vcmask 261120  }
 0x100   : > { %v10268_v9 = vpack.c.bf16 %v485_v7, %v482_v6  ;;  %v488_v12 = vld [vmem:[#allocation7 + $0x68] sm:$0xff]  ;;  %10265 = vmatprep.subr.bf16.mxu0 %v10264_v4  ;;  %v491_v13 = vld [vmem:[#allocation7 + $0x80] sm:$0xff]  ;;  %v10270_v14 = vpack.c.bf16 %v484_v11, %v481_v10  ;;  %v490_v17 = vld [vmem:[#allocation7 + $0x78] sm:$0xff]  ;;  %s12600_s14 = smov 48   ;;  %s12601_s2 = smov 32   ;;  %vm4296_vm4 = vcmask 392192  }
 0x101   : > { %10267 = vmatpush1.bf16.msra.mxu0 %v10266_v8  ;;  %v10272_v15 = vpack.c.bf16 %v491_v13, %v488_v12  ;;  %v487_v16 = vld [vmem:[#allocation7 + $0x60] sm:$0xff]  ;;  %v494_v18 = vld [vmem:[#allocation7 + $0x98] sm:$0xff]  ;;  %v497_v19 = vld [vmem:[#allocation7 + $0xb0] sm:$0xff]  ;;  %s12602_s26 = smov 16   ;;  %vm4313_vm5 = vcmask 654336   ;;  %vm4322_vm6 = vcmask 785408  }
 0x102   : > { %10269 = vmatprep.subr.bf16.mxu0 %v10268_v9  ;;  %v10274_v20 = vpack.c.bf16 %v490_v17, %v487_v16  ;;  %v10276_v21 = vpack.c.bf16 %v497_v19, %v494_v18  ;;  %v493_v22 = vld [vmem:[#allocation7 + $0x90] sm:$0xff]  ;;  %v496_v23 = vld [vmem:[#allocation7 + $0xa8] sm:$0xff]  ;;  %v503_v25 = vld [vmem:[#allocation7 + $0xe0] sm:$0xff]  ;;  %vm4331_vm7 = vcmask 916480   ;;  %s462_s20 = scalar_lea.vmem [#allocation14], %s8406_s24  ;;  %s8775_s6 = sshll.u32 %s12677_s15, 10 }
 0x103   : > { %v500_v24 = vld [vmem:[#allocation7 + $0xc8] sm:$0xff]  ;;  %v463_v26 = vld [vmem:[%s12945_s19] sm:$0xff]  ;;  %v10278_v27 = vpack.c.bf16 %v496_v23, %v493_v22  ;;  %v502_v30 = vld [vmem:[#allocation7 + $0xd8] sm:$0xff]  ;;  %s16030_s17 = sld [smem:[#allocation55_spill]]  ;;  %p16031_p13 = scmp.ne.s32.totalorder %s15879_s18, 0 }
 0x104   : > { %9352 = vmatprep.mubr.f32.mxu1 %v463_v26  ;;  %v10280_v28 = vpack.c.bf16 %v503_v25, %v500_v24  ;;  %v499_v29 = vld [vmem:[#allocation7 + $0xc0] sm:$0xff]  ;;  %v506_v31 = vld [vmem:[#allocation7 + $0xf8] sm:$0xff]  ;;  %v509_v32 = vld [vmem:[#allocation7 + $0x110] sm:$0xff]  ;;  %s12603_s15 = smov [#allocation14]  }
 0x105   : > { %10271 = vmatpush1.bf16.msra.mxu0 %v10270_v14  ;;  %v10282_v33 = vpack.c.bf16 %v502_v30, %v499_v29  ;;  %v10284_v34 = vpack.c.bf16 %v509_v32, %v506_v31  ;;  %v505_v35 = vld [vmem:[#allocation7 + $0xf0] sm:$0xff]  ;;  %v508_v36 = vld [vmem:[#allocation7 + $0x108] sm:$0xff]  ;;  %v515_v38 = vld [vmem:[#allocation7 + $0x140] sm:$0xff] }
 0x106   : > { %10273 = vmatprep.subr.bf16.mxu0 %v10272_v15  ;;  %v512_v37 = vld [vmem:[#allocation7 + $0x128] sm:$0xff]  ;;  %v10286_v39 = vpack.c.bf16 %v508_v36, %v505_v35  ;;  %v511_v41 = vld [vmem:[#allocation7 + $0x120] sm:$0xff]  ;;  %v514_v42 = vld [vmem:[#allocation7 + $0x138] sm:$0xff] }
 0x107   : > { %v10288_v40 = vpack.c.bf16 %v515_v38, %v512_v37  ;;  %v518_v43 = vld [vmem:[#allocation7 + $0x158] sm:$0xff]  ;;  %v521_v44 = vld [vmem:[#allocation7 + $0x170] sm:$0xff]  ;;  %v10290_v45 = vpack.c.bf16 %v514_v42, %v511_v41  ;;  %v520_v48 = vld [vmem:[#allocation7 + $0x168] sm:$0xff] }
 0x108   : > { %v10292_v46 = vpack.c.bf16 %v521_v44, %v518_v43  ;;  %v517_v47 = vld [vmem:[#allocation7 + $0x150] sm:$0xff]  ;;  %v464_v50 = vld [vmem:[%s12945_s19 + $0x8] sm:$0xff]  ;;  %v466_v52 = vld [vmem:[%s12945_s19 + $0x18] sm:$0xff] }
 0x109   : > { %10275 = vmatpush1.bf16.msra.mxu0 %v10274_v20  ;;  %v10294_v49 = vpack.c.bf16 %v520_v48, %v517_v47  ;;  %v465_v51 = vld [vmem:[%s12945_s19 + $0x10] sm:$0xff]  ;;  %v467_v53 = vld [vmem:[%s12945_s19 + $0x20] sm:$0xff]  ;;  %v468_v54 = vld [vmem:[%s12945_s19 + $0x28] sm:$0xff] }
 0x10a   : > { %10277 = vmatprep.subr.bf16.mxu0 %v10276_v21  ;;  %v469_v55 = vld [vmem:[%s12945_s19 + $0x30] sm:$0xff]  ;;  %v470_v56 = vld [vmem:[%s12945_s19 + $0x38] sm:$0xff]  ;;  %v480_v58 = vld [vmem:[#allocation7 + $0x28] sm:$0xff] }
 0x10b   : > { %v477_v57 = vld [vmem:[#allocation7 + $0x10] sm:$0xff]  ;;  %v483_v59 = vld [vmem:[#allocation7 + $0x40] sm:$0xff]  ;;  %v486_v61 = vld [vmem:[#allocation7 + $0x58] sm:$0xff] }
 0x10c   : > { %v10296_v60 = vpack.c.bf16 %v480_v58, %v477_v57  ;;  %v10300_v62 = vpack.c.bf16 %v486_v61, %v483_v59  ;;  %v489_v63 = vld [vmem:[#allocation7 + $0x70] sm:$0xff]  ;;  %v492_v1 = vld [vmem:[#allocation7 + $0x88] sm:$0xff]  ;;  %v495_v3 = vld [vmem:[#allocation7 + $0xa0] sm:$0xff] }
 0x10d   : > { %10279 = vmatpush1.bf16.msra.mxu0 %v10278_v27  ;;  %v10304_v2 = vpack.c.bf16 %v492_v1, %v489_v63  ;;  %v498_v4 = vld [vmem:[#allocation7 + $0xb8] sm:$0xff]  ;;  %v501_v6 = vld [vmem:[#allocation7 + $0xd0] sm:$0xff]  ;;  %v504_v7 = vld [vmem:[#allocation7 + $0xe8] sm:$0xff] }
 0x10e   : > { %10281 = vmatprep.subr.bf16.mxu0 %v10280_v28  ;;  %10297 = vmatprep.subr.bf16.mxu1 %v10296_v60  ;;  %v10308_v5 = vpack.c.bf16 %v498_v4, %v495_v3  ;;  %v10312_v8 = vpack.c.bf16 %v504_v7, %v501_v6  ;;  %v507_v9 = vld [vmem:[#allocation7 + $0x100] sm:$0xff]  ;;  %v510_v10 = vld [vmem:[#allocation7 + $0x118] sm:$0xff]  ;;  %v513_v12 = vld [vmem:[#allocation7 + $0x130] sm:$0xff] }
 0x10f   : > { %10299 = vmatpush3.bf16.msra.mxu1 %v10296_v60  ;;  %v10316_v11 = vpack.c.bf16 %v510_v10, %v507_v9  ;;  %v516_v13 = vld [vmem:[#allocation7 + $0x148] sm:$0xff]  ;;  %v519_v15 = vld [vmem:[#allocation7 + $0x160] sm:$0xff]  ;;  %v522_v16 = vld [vmem:[#allocation7 + $0x178] sm:$0xff] }
 0x110   : > { %10301 = vmatprep.subr.bf16.mxu1 %v10300_v62  ;;  %v10320_v14 = vpack.c.bf16 %v516_v13, %v513_v12  ;;  %v10324_v17 = vpack.c.bf16 %v522_v16, %v519_v15  ;;  %vm12995_vm1 = vmpackc.low %vm741_vm0, %vm741_vm0 }
 0x111   : > { %10283 = vmatpush1.bf16.msra.mxu0 %v10282_v33 }
 0x112   : > { %10285 = vmatprep.subr.bf16.mxu0 %v10284_v34 }
 0x113   : > { %10303 = vmatpush3.bf16.msra.mxu1 %v10300_v62 }
 0x114   : > { %10305 = vmatprep.subr.bf16.mxu1 %v10304_v2 }
 0x115   : > { %10287 = vmatpush1.bf16.msra.mxu0 %v10286_v39 }
 0x116   : > { %10289 = vmatprep.subr.bf16.mxu0 %v10288_v40 }
 0x117   : > { %10307 = vmatpush3.bf16.msra.mxu1 %v10304_v2 }
 0x118   : > { %10309 = vmatprep.subr.bf16.mxu1 %v10308_v5 }
 0x119   : > { %10291 = vmatpush1.bf16.msra.mxu0 %v10290_v45 }
 0x11a   : > { %10293 = vmatprep.subr.bf16.mxu0 %v10292_v46 }
 0x11b   : > { %10311 = vmatpush3.bf16.msra.mxu1 %v10308_v5 }
 0x11c   : > { %10313 = vmatprep.subr.bf16.mxu1 %v10312_v8 }
 0x11d   : > { %10295 = vmatpush1.bf16.msra.mxu0 %v10294_v49 }
 0x11f   : > { %10315 = vmatpush3.bf16.msra.mxu1 %v10312_v8 }
 0x120   : > { %588 = vmatmul.mubr.f32.vlgmr.msra.gmra.mrb[0].mxu0 %v463_v26  ;;  %10317 = vmatprep.subr.bf16.mxu1 %v10316_v11 }
 0x121   : > { %593 = vmatprep.mubr.f32.mxu0 %v15808_v0 }
 0x123   : > { %10319 = vmatpush3.bf16.msra.mxu1 %v10316_v11 }
 0x124   : > { %594 = vmatmul.mubr.f32.gmra.mrb[2].mxu0 %v464_v50  ;;  %10321 = vmatprep.subr.bf16.mxu1 %v10320_v14 }
 0x125   : > { %599 = vmatprep.mubr.f32.mxu0 %v15808_v0 }
 0x127   : > { %10323 = vmatpush3.bf16.msra.mxu1 %v10320_v14 }
 0x128   : > { %600 = vmatmul.mubr.f32.gmra.mrb[4].mxu0 %v465_v51  ;;  %10325 = vmatprep.subr.bf16.mxu1 %v10324_v17 }
 0x129   : > { %605 = vmatprep.mubr.f32.mxu0 %v15808_v0 }
 0x12b   : > { %10327 = vmatpush3.bf16.msra.mxu1 %v10324_v17 }
 0x12c   : > { %606 = vmatmul.mubr.f32.gmra.mrb[6].mxu0 %v466_v52 }
 0x12d   : > { %611 = vmatprep.mubr.f32.mxu0 %v15808_v0 }
 0x12e   : > { %9353 = vmatmul.mubr.f32.vlgmr.msra.gmra.mrb[0].mxu1 %v464_v50 }
 0x12f   : > { %9355 = vmatprep.mubr.f32.mxu1 %v465_v51 }
 0x130   : > { %612 = vmatmul.mubr.f32.gmra.mrb[8].mxu0 %v467_v53 }
 0x131   : > { %617 = vmatprep.mubr.f32.mxu0 %v15808_v0 }
 0x132   : > { %9356 = vmatmul.mubr.f32.gmra.mrb[2].mxu1 %v466_v52 }
 0x133   : > { %9358 = vmatprep.mubr.f32.mxu1 %v467_v53 }
 0x134   : > { %618 = vmatmul.mubr.f32.gmra.mrb[10].mxu0 %v468_v54 }
 0x135   : > { %623 = vmatprep.mubr.f32.mxu0 %v15808_v0 }
 0x136   : > { %9359 = vmatmul.mubr.f32.gmra.mrb[4].mxu1 %v468_v54 }
 0x137   : > { %9361 = vmatprep.mubr.f32.mxu1 %v469_v55 }
 0x138   : > { %624 = vmatmul.mubr.f32.gmra.mrb[12].mxu0 %v469_v55 }
 0x139   : > { %629 = vmatprep.mubr.f32.mxu0 %v15808_v0 }
 0x13a   : > { %9362 = vmatmul.mubr.f32.gmra.mrb[6].mxu1 %v470_v56 }
 0x13c   : > { %630 = vmatmul.mubr.f32.gmra.mrb[14].mxu0 %v470_v56 }
 0x1f3   : > { %v12987_v18 = vpop.f32.mrb[0].mxu0 }
 0x1f4   : > { %v591_v19 = vpop.f32.mrb[1].mxu0  ;;  %9380 = vmatprep.mubr.msk.f32.mxu0 %vm741_vm0, %v12987_v18 }
 0x1f7   : > { %v12991_v20 = vpop.f32.mrb[2].mxu0 }
 0x1f8   : > { %v597_v21 = vpop.f32.mrb[3].mxu0 }
 0x1f9   : > { %v10328_v23 = vpack.c.bf16 %v597_v21, %v591_v19  ;;  %v12999_v24 = vpack.i.bf16 %v597_v21, %v591_v19 }
 0x1fb   : > { %v13001_v25 = vpop.f32.mrb[4].mxu0  ;;  %10330 = vmatprep.subr.msk.bf16.mxu0 %vm12995_vm1, %v10328_v23 }
 0x1fc   : > { %v603_v26 = vpop.f32.mrb[5].mxu0  ;;  %10333 = vmatpush3.bf16.xpose.msk.msra.mxu0 %vm12995_vm1, %v10328_v23 }
 0x1ff   : > { %v13007_v27 = vpop.f32.mrb[6].mxu0 }
 0x200   : > { %v609_v28 = vpop.f32.mrb[7].mxu0 }
 0x201   : > { %v10334_v29 = vpack.c.bf16 %v609_v28, %v603_v26  ;;  %v13009_v30 = vpack.i.bf16 %v609_v28, %v603_v26  ;;  %v13075_v4 = vpop.f32.mrb[0].mxu1 }
 0x202   : > { %v13077_v5 = vpop.f32.mrb[1].mxu1 }
 0x203   : > { %v13011_v31 = vpop.f32.mrb[8].mxu0  ;;  %10336 = vmatprep.subr.msk.bf16.mxu0 %vm12995_vm1, %v10334_v29  ;;  %v10352_v6 = vpack.c.bf16 %v13075_v4, %v13077_v5 }
 0x204   : > { %v615_v32 = vpop.f32.mrb[9].mxu0  ;;  %10339 = vmatpush3.bf16.xpose.msk.msra.mxu0 %vm12995_vm1, %v10334_v29 }
 0x205   : > { %v13081_v7 = vpop.f32.mrb[2].mxu1  ;;  %10353 = vmatprep.subr.bf16.mxu1 %v10352_v6 }
 0x206   : > { %v13083_v8 = vpop.f32.mrb[3].mxu1  ;;  %10355 = vmatpush3.bf16.msra.mxu1 %v10352_v6 }
 0x207   : > { %v13017_v33 = vpop.f32.mrb[10].mxu0  ;;  %v10356_v9 = vpack.c.bf16 %v13081_v7, %v13083_v8 }
 0x208   : > { %v621_v34 = vpop.f32.mrb[11].mxu0 }
 0x209   : > { %v10340_v35 = vpack.c.bf16 %v621_v34, %v615_v32  ;;  %v13019_v36 = vpack.i.bf16 %v621_v34, %v615_v32  ;;  %v13087_v10 = vpop.f32.mrb[4].mxu1  ;;  %10357 = vmatprep.subr.bf16.mxu1 %v10356_v9 }
 0x20a   : > { %v13089_v11 = vpop.f32.mrb[5].mxu1  ;;  %10359 = vmatpush3.bf16.msra.mxu1 %v10356_v9 }
 0x20b   : > { %v13021_v37 = vpop.f32.mrb[12].mxu0  ;;  %10342 = vmatprep.subr.msk.bf16.mxu0 %vm12995_vm1, %v10340_v35  ;;  %v10360_v12 = vpack.c.bf16 %v13087_v10, %v13089_v11 }
 0x20c   : > { %v627_v38 = vpop.f32.mrb[13].mxu0  ;;  %10345 = vmatpush3.bf16.xpose.msk.msra.mxu0 %vm12995_vm1, %v10340_v35 }
 0x20d   : > { %v13093_v13 = vpop.f32.mrb[6].mxu1  ;;  %10361 = vmatprep.subr.bf16.mxu1 %v10360_v12 }
 0x20e   : > { %v13095_v14 = vpop.f32.mrb[7].mxu1  ;;  %10363 = vmatpush3.bf16.msra.mxu1 %v10360_v12 }
 0x20f   : > { %v13027_v39 = vpop.f32.mrb[14].mxu0  ;;  %v10364_v15 = vpack.c.bf16 %v13093_v13, %v13095_v14 }
 0x210   : > { %v633_v40 = vpop.f32.mrb[15].mxu0 }
 0x211   : > { %v10346_v41 = vpack.c.bf16 %v633_v40, %v627_v38  ;;  %v13029_v42 = vpack.i.bf16 %v633_v40, %v627_v38  ;;  %10365 = vmatprep.subr.bf16.mxu1 %v10364_v15 }
 0x212   : > { %10367 = vmatpush3.bf16.msra.mxu1 %v10364_v15 }
 0x213   : > { %10348 = vmatprep.subr.msk.bf16.mxu0 %vm12995_vm1, %v10346_v41 }
 0x214   : > { %10351 = vmatpush3.bf16.xpose.msk.msra.mxu0 %vm12995_vm1, %v10346_v41 }
 0x21b   : > { %9381 = vmatmul.mubr.msk.f32.vlgmr.msra.gmra.mrb[16].mxu0 %vm741_vm0, %v12991_v20 }
 0x21c   : > { %9383 = vmatprep.mubr.msk.f32.mxu0 %vm741_vm0, %v13001_v25 }
 0x21f   : > { %9384 = vmatmul.mubr.msk.f32.gmra.mrb[18].mxu0 %vm741_vm0, %v13007_v27 }
 0x220   : > { %9386 = vmatprep.mubr.msk.f32.mxu0 %vm741_vm0, %v13011_v31 }
 0x223   : > { %9387 = vmatmul.mubr.msk.f32.gmra.mrb[20].mxu0 %vm741_vm0, %v13017_v33 }
 0x224   : > { %9389 = vmatprep.mubr.msk.f32.mxu0 %vm741_vm0, %v13021_v37 }
 0x227   : > { %9390 = vmatmul.mubr.msk.f32.gmra.mrb[22].mxu0 %vm741_vm0, %v13027_v39 }
 0x2ee   : > { %v9382_v43 = vpop.f32.mrb[16].mxu0 }
 0x2ef   : > { %v896_v44 = vmul.f32 0.25, %v9382_v43  ;;  %v856_v45 = vpop.f32.mrb[17].mxu0 }
 0x2f0   : > { %v895_v46 = vmul.f32 0.25, %v856_v45 }
 0x2f1   : > { %v907_v47 = vsel %vm903_vm2, %v896_v44, -inf }
 0x2f2   : > { %908 = vmax.xlane.f32.xlu0 %v907_v47  ;;  %v9385_v48 = vpop.f32.mrb[18].mxu0  ;;  %v904_v52 = vsel %vm903_vm2, %v895_v46, -inf }
 0x2f3   : > { %v13050_v49 = vmul.f32 0.25, %v9385_v48  ;;  %v866_v50 = vpop.f32.mrb[19].mxu0 }
 0x2f4   : > { %v13052_v51 = vmul.f32 0.25, %v866_v50 }
 0x2f5   : > { %v913_v53 = vsel %vm903_vm2, %v13050_v49, -inf }
 0x2f6   : > { %905 = vmax.xlane.f32.xlu0 %v904_v52  ;;  %914 = vmax.xlane.f32.xlu1 %v913_v53  ;;  %v9388_v54 = vpop.f32.mrb[20].mxu0  ;;  %v910_v58 = vsel %vm903_vm2, %v13052_v51, -inf }
 0x2f7   : > { %v876_v55 = vpop.f32.mrb[21].mxu0  ;;  %v13059_v57 = vmul.f32 0.25, %v9388_v54 }
 0x2f8   : > { %v13057_v56 = vmul.f32 0.25, %v876_v55 }
 0x2f9   : > { %v919_v1 = vsel %vm903_vm2, %v13059_v57, -inf }
 0x2fa   : > { %911 = vmax.xlane.f32.xlu1 %v910_v58  ;;  %v9391_v59 = vpop.f32.mrb[22].mxu0  ;;  %v916_v60 = vsel %vm903_vm2, %v13057_v56, -inf }
 0x2fb   : > { %917 = vmax.xlane.f32.xlu0 %v916_v60  ;;  %v886_v61 = vpop.f32.mrb[23].mxu0  ;;  %v13067_v63 = vmul.f32 0.25, %v9391_v59 }
 0x2fc   : > { %v13065_v62 = vmul.f32 0.25, %v886_v61 }
 0x2fd   : > { %v925_v3 = vsel %vm903_vm2, %v13067_v63, -inf }
 0x2fe   : > { %920 = vmax.xlane.f32.xlu1 %v919_v1  ;;  %v922_v2 = vsel %vm903_vm2, %v13065_v62, -inf }
 0x2ff   : > { %923 = vmax.xlane.f32.xlu0 %v922_v2 }
 0x302   : > { %926 = vmax.xlane.f32.xlu1 %v925_v3 }
 0x313   : > { %11084 = vrot.lane.b32.xlu1 %v13009_v30, %s12596_s28 }
 0x315   : > { %11079 = vrot.lane.b32.xlu0 %v12999_v24, %s12596_s28 }
 0x37f   : > { %v909_v16 = vpop.xlane.xlu0 %908 }
 0x380   : > { %v929_v17 = vsub.f32 %v896_v44, %v909_v16 }
 0x382   : > { %v938_v19 = vmul.f32 1.442695, %v929_v17 }
 0x383   : > { %v906_v21 = vpop.xlane.xlu0 %905  ;;  %v915_v45 = vpop.xlane.xlu1 %914 }
 0x384   : > { %11778 = vpow2.f32 %v938_v19  ;;  %v928_v23 = vsub.f32 %v895_v46, %v906_v21  ;;  %v931_v47 = vsub.f32 %v13050_v49, %v915_v45 }
 0x386   : > { %v936_v26 = vmul.f32 1.442695, %v928_v23  ;;  %v942_v52 = vmul.f32 1.442695, %v931_v47 }
 0x387   : > { %v912_v46 = vpop.xlane.xlu1 %911 }
 0x388   : > { %11780 = vpow2.f32 %v936_v26  ;;  %v918_v28 = vpop.xlane.xlu0 %917  ;;  %v930_v50 = vsub.f32 %v13052_v51, %v912_v46 }
 0x389   : > { %11782 = vpow2.f32 %v942_v52  ;;  %v932_v55 = vsub.f32 %v13057_v56, %v918_v28  ;;  %v13209_v52 = vpack.i.bf16 %v13081_v7, %v13083_v8 }
 0x38a   : > { %v940_v54 = vmul.f32 1.442695, %v930_v50 }
 0x38b   : > { %v921_v48 = vpop.xlane.xlu1 %920  ;;  %v944_v59 = vmul.f32 1.442695, %v932_v55 }
 0x38c   : > { %v924_v29 = vpop.xlane.xlu0 %923  ;;  %v933_v53 = vsub.f32 %v13059_v57, %v921_v48  ;;  %11784 = vpow2.f32 %v940_v54 }
 0x38d   : > { %v934_v9 = vsub.f32 %v13065_v62, %v924_v29 }
 0x38e   : > { %v13103_v32 = vpop.eup %11778  ;;  %v946_v58 = vmul.f32 1.442695, %v933_v53 }
 0x38f   : > { %v955_v34 = vsel %vm903_vm2, %v13103_v32, 0.0  ;;  %v927_v3 = vpop.xlane.xlu1 %926  ;;  %v948_v15 = vmul.f32 1.442695, %v934_v9 }
 0x390   : > { %956 = vadd.xlane.f32.xlu1 %v955_v34  ;;  %v11080_v35 = vpop.permute.xlu0 %11079  ;;  %11786 = vpow2.f32 %v946_v58  ;;  %v935_v6 = vsub.f32 %v13067_v63, %v927_v3 }
 0x391   : > { %v11082_v38 = vunpack.i.h.bf16 %v11080_v35  ;;  %v11081_v40 = vunpack.i.l.bf16 %v11080_v35  ;;  %11788 = vpow2.f32 %v944_v59 }
 0x392   : > { %v13107_v41 = vpop.eup %11780  ;;  %v950_v12 = vmul.f32 1.442695, %v935_v6 }
 0x393   : > { %v13109_v43 = vpack.c.bf16 %v11082_v38, %v11081_v40  ;;  %v952_v44 = vsel %vm903_vm2, %v13107_v41, 0.0  ;;  %v13124_v60 = vpop.eup %11782  ;;  %v11085_v19 = vpop.permute.xlu1 %11084 }
 0x394   : > { %953 = vadd.xlane.f32.xlu0 %v952_v44  ;;  %v961_v49 = vsel %vm903_vm2, %v13124_v60, 0.0  ;;  %11790 = vpow2.f32 %v950_v12  ;;  %v11087_v40 = vunpack.i.h.bf16 %v11085_v19  ;;  %v11086_v44 = vunpack.i.l.bf16 %v11085_v19 }
 0x395   : > { %10370 = vmatprep.subr.msk.bf16.mxu1 %vm12995_vm1, %v13109_v43  ;;  %11792 = vpow2.f32 %v948_v15 }
 0x396   : > { %v13126_v61 = vpop.eup %11784  ;;  %v10374_v47 = vpack.c.bf16 %v11087_v40, %v11086_v44 }
 0x397   : > { %v958_v56 = vsel %vm903_vm2, %v13126_v61, 0.0 }
 0x39a   : > { %v13130_v51 = vpop.eup %11786 }
 0x39b   : > { %v967_v57 = vsel %vm903_vm2, %v13130_v51, 0.0  ;;  %v13136_v1 = vpop.eup %11788 }
 0x39c   : > { %v964_v2 = vsel %vm903_vm2, %v13136_v1, 0.0 }
 0x39e   : > { %v13156_v16 = vpop.eup %11790 }
 0x39f   : > { %v973_v62 = vsel %vm903_vm2, %v13156_v16, 0.0  ;;  %v13162_v63 = vpop.eup %11792 }
 0x3a0   : > { %v970_v17 = vsel %vm903_vm2, %v13162_v63, 0.0 }
 0x3a1   : > { %11094 = vrot.lane.b32.xlu1 %v12999_v24, %s12597_s23 }
 0x3aa   : > { %11089 = vrot.lane.b32.xlu0 %v13019_v36, %s12596_s28 }
 0x3c5   : > { %962 = vadd.xlane.f32.xlu1 %v961_v49 }
 0x3c9   : > { %968 = vadd.xlane.f32.xlu1 %v967_v57  ;;  %959 = vadd.xlane.f32.xlu0 %v958_v56 }
 0x3cd   : > { %965 = vadd.xlane.f32.xlu0 %v964_v2 }
 0x3da   : > { %11104 = vrot.lane.b32.xlu1 %v13009_v30, %s12597_s23 }
 0x3e3   : > { %11099 = vrot.lane.b32.xlu0 %v13029_v42, %s12596_s28 }
 0x3e7   : > { %1121 = vrot.lane.b32.xlu0 %v12987_v18, %s12596_s28 }
 0x3eb   : > { %11109 = vrot.lane.b32.xlu0 %v13019_v36, %s12597_s23 }
 0x3ef   : > { %1127 = vrot.lane.b32.xlu0 %v13007_v27, %s12596_s28 }
 0x3f3   : > { %1129 = vrot.lane.b32.xlu0 %v13011_v31, %s12596_s28 }
 0x3f7   : > { %1133 = vrot.lane.b32.xlu0 %v13021_v37, %s12596_s28 }
 0x3fb   : > { %1547 = vrot.lane.b32.xlu0 %v12987_v18, %s12597_s23 }
 0x3fe   : > { %974 = vadd.xlane.f32.xlu1 %v973_v62 }
 0x3ff   : > { %1551 = vrot.lane.b32.xlu0 %v13001_v25, %s12597_s23 }
 0x402   : > { %971 = vadd.xlane.f32.xlu1 %v970_v17 }
 0x403   : > { %1555 = vrot.lane.b32.xlu0 %v13011_v31, %s12597_s23 }
 0x407   : > { %1559 = vrot.lane.b32.xlu0 %v13021_v37, %s12597_s23 }
 0x413   : > { %1123 = vrot.lane.b32.xlu1 %v12991_v20, %s12596_s28 }
 0x417   : > { %1125 = vrot.lane.b32.xlu1 %v13001_v25, %s12596_s28 }
 0x41b   : > { %11114 = vrot.lane.b32.xlu1 %v13029_v42, %s12597_s23 }
 0x41d   : > { %v957_v21 = vpop.xlane.xlu1 %956 }
 0x41e   : > { %11794 = vrcp.f32 %v957_v21 }
 0x41f   : > { %1131 = vrot.lane.b32.xlu1 %v13017_v33, %s12596_s28 }
 0x421   : > { %v11095_v23 = vpop.permute.xlu1 %11094  ;;  %v954_v26 = vpop.xlane.xlu0 %953 }
 0x422   : > { %v11097_v28 = vunpack.i.h.bf16 %v11095_v23  ;;  %v11096_v29 = vunpack.i.l.bf16 %v11095_v23  ;;  %11796 = vrcp.f32 %v954_v26 }
 0x423   : > { %1135 = vrot.lane.b32.xlu1 %v13027_v39, %s12596_s28 }
 0x424   : > { %v10408_v34 = vpack.c.bf16 %v11097_v28, %v11096_v29 }
 0x425   : > { %v11090_v48 = vpop.permute.xlu0 %11089 }
 0x426   : > { %10410 = vmatprep.subr.msk.bf16.mxu0 %vm12995_vm1, %v10408_v34  ;;  %v11091_v50 = vunpack.i.l.bf16 %v11090_v48 }
 0x427   : > { %10413 = vmatpush3.bf16.xpose.msk.msra.mxu0 %vm12995_vm1, %v10408_v34  ;;  %1549 = vrot.lane.b32.xlu1 %v12991_v20, %s12597_s23 }
 0x428   : > { %v11795_v35 = vpop.eup %11794 }
 0x429   : > { %v985_v46 = vmul.f32 %v11795_v35, %v13103_v32  ;;  %v11092_v32 = vunpack.i.h.bf16 %v11090_v48 }
 0x42b   : > { %1553 = vrot.lane.b32.xlu1 %v13007_v27, %s12597_s23  ;;  %v10380_v53 = vpack.c.bf16 %v11092_v32, %v11091_v50 }
 0x42c   : > { %v11797_v38 = vpop.eup %11796 }
 0x42d   : > { %v984_v45 = vmul.f32 %v11797_v38, %v13107_v41  ;;  %v13203_v41 = vpack.i.bf16 %v13075_v4, %v13077_v5  ;;  %v13217_v4 = vpack.i.bf16 %v13087_v10, %v13089_v11  ;;  %v13221_v5 = vpack.i.bf16 %v13093_v13, %v13095_v14 }
 0x42f   : > { %1557 = vrot.lane.b32.xlu1 %v13017_v33, %s12597_s23  ;;  %9408 = vmatprep.mubr.msk.f32.mxu1 %vm903_vm2, %v984_v45 }
 0x430   : > { %9409 = vmatmul.mubr.msk.f32.vlgmr.msra.gmra.mrb[8].mxu1 %vm903_vm2, %v985_v46 }
 0x431   : > { %10373 = vmatpush3.bf16.xpose.msk.msra.mxu1 %vm12995_vm1, %v13109_v43 }
 0x432   : > { %10376 = vmatprep.subr.msk.bf16.mxu1 %vm12995_vm1, %v10374_v47 }
 0x433   : > { %1561 = vrot.lane.b32.xlu1 %v13027_v39, %s12597_s23 }
 0x439   : > { %10379 = vmatpush3.bf16.xpose.msk.msra.mxu1 %vm12995_vm1, %v10374_v47 }
 0x43a   : > { %10382 = vmatprep.subr.msk.bf16.mxu1 %vm12995_vm1, %v10380_v53 }
 0x441   : > { %10385 = vmatpush3.bf16.xpose.msk.msra.mxu1 %vm12995_vm1, %v10380_v53 }
 0x452   : > { %v963_v7 = vpop.xlane.xlu1 %962 }
 0x453   : > { %11798 = vrcp.f32 %v963_v7 }
 0x456   : > { %v969_v8 = vpop.xlane.xlu1 %968  ;;  %v960_v43 = vpop.xlane.xlu0 %959 }
 0x457   : > { %11800 = vrcp.f32 %v960_v43 }
 0x458   : > { %11802 = vrcp.f32 %v969_v8 }
 0x45a   : > { %v11105_v54 = vpop.permute.xlu1 %11104  ;;  %v966_v55 = vpop.xlane.xlu0 %965 }
 0x45b   : > { %v11107_v58 = vunpack.i.h.bf16 %v11105_v54  ;;  %v11106_v59 = vunpack.i.l.bf16 %v11105_v54  ;;  %11804 = vrcp.f32 %v966_v55 }
 0x45d   : > { %v10414_v10 = vpack.c.bf16 %v11107_v58, %v11106_v59  ;;  %v11799_v13 = vpop.eup %11798 }
 0x45e   : > { %v11100_v11 = vpop.permute.xlu0 %11099  ;;  %v987_v9 = vmul.f32 %v11799_v13, %v13124_v60 }
 0x45f   : > { %v11102_v49 = vunpack.i.h.bf16 %v11100_v11  ;;  %v11101_v57 = vunpack.i.l.bf16 %v11100_v11  ;;  %10416 = vmatprep.subr.msk.bf16.mxu0 %vm12995_vm1, %v10414_v10 }
 0x460   : > { %10419 = vmatpush3.bf16.xpose.msk.msra.mxu0 %vm12995_vm1, %v10414_v10 }
 0x461   : > { %v10386_v14 = vpack.c.bf16 %v11102_v49, %v11101_v57  ;;  %v11801_v56 = vpop.eup %11800 }
 0x462   : > { %v1122_v2 = vpop.permute.xlu0 %1121  ;;  %v986_v3 = vmul.f32 %v11801_v56, %v13126_v61  ;;  %v11803_v6 = vpop.eup %11802 }
 0x463   : > { %10388 = vmatprep.subr.msk.bf16.mxu1 %vm12995_vm1, %v10386_v14  ;;  %v989_v61 = vmul.f32 %v11803_v6, %v13130_v51 }
 0x464   : > { %10391 = vmatpush3.bf16.xpose.msk.msra.mxu1 %vm12995_vm1, %v10386_v14  ;;  %9411 = vmatprep.mubr.msk.f32.mxu1 %vm903_vm2, %v986_v3 }
 0x465   : > { %v11805_v12 = vpop.eup %11804  ;;  %9412 = vmatmul.mubr.msk.f32.gmra.mrb[10].mxu1 %vm903_vm2, %v987_v9 }
 0x466   : > { %v11110_v15 = vpop.permute.xlu0 %11109  ;;  %v988_v62 = vmul.f32 %v11805_v12, %v13136_v1 }
 0x467   : > { %v11112_v17 = vunpack.i.h.bf16 %v11110_v15  ;;  %v11111_v19 = vunpack.i.l.bf16 %v11110_v15 }
 0x468   : > { %9414 = vmatprep.mubr.msk.f32.mxu1 %vm903_vm2, %v988_v62 }
 0x469   : > { %v10420_v21 = vpack.c.bf16 %v11112_v17, %v11111_v19  ;;  %9415 = vmatmul.mubr.msk.f32.gmra.mrb[12].mxu1 %vm903_vm2, %v989_v61 }
 0x46a   : > { %v1128_v23 = vpop.permute.xlu0 %1127 }
 0x46b   : > { %10422 = vmatprep.subr.msk.bf16.mxu0 %vm12995_vm1, %v10420_v21 }
 0x46c   : > { %10425 = vmatpush3.bf16.xpose.msk.msra.mxu0 %vm12995_vm1, %v10420_v21 }
 0x46e   : > { %v1130_v60 = vpop.permute.xlu0 %1129 }
 0x472   : > { %v1134_v26 = vpop.permute.xlu0 %1133 }
 0x476   : > { %v1548_v28 = vpop.permute.xlu0 %1547 }
 0x477   : > { %9492 = vmatprep.mubr.msk.f32.mxu0 %vm741_vm0, %v1548_v28 }
 0x48b   : > { %v975_v1 = vpop.xlane.xlu1 %974 }
 0x48c   : > { %11806 = vrcp.f32 %v975_v1 }
 0x48f   : > { %v972_v29 = vpop.xlane.xlu1 %971 }
 0x490   : > { %11808 = vrcp.f32 %v972_v29 }
 0x493   : > { %v1124_v51 = vpop.permute.xlu1 %1123 }
 0x496   : > { %v11807_v35 = vpop.eup %11806 }
 0x497   : > { %v1126_v34 = vpop.permute.xlu1 %1125  ;;  %v991_v47 = vmul.f32 %v11807_v35, %v13156_v16  ;;  %v1552_v16 = vpop.permute.xlu0 %1551 }
 0x49a   : > { %v11809_v38 = vpop.eup %11808 }
 0x49b   : > { %v11115_v40 = vpop.permute.xlu1 %11114  ;;  %v990_v44 = vmul.f32 %v11809_v38, %v13162_v63  ;;  %v1556_v53 = vpop.permute.xlu0 %1555 }
 0x49c   : > { %v11117_v45 = vunpack.i.h.bf16 %v11115_v40  ;;  %v11116_v46 = vunpack.i.l.bf16 %v11115_v40 }
 0x49d   : > { %9417 = vmatprep.mubr.msk.f32.mxu1 %vm903_vm2, %v990_v44 }
 0x49e   : > { %v10426_v48 = vpack.c.bf16 %v11117_v45, %v11116_v46  ;;  %9418 = vmatmul.mubr.msk.f32.gmra.mrb[14].mxu1 %vm903_vm2, %v991_v47 }
 0x49f   : > { %v1132_v32 = vpop.permute.xlu1 %1131  ;;  %9436 = vmatprep.mubr.msk.f32.mxu1 %vm741_vm0, %v1122_v2  ;;  %v1560_v43 = vpop.permute.xlu0 %1559 }
 0x4a0   : > { %10428 = vmatprep.subr.msk.bf16.mxu0 %vm12995_vm1, %v10426_v48 }
 0x4a1   : > { %10431 = vmatpush3.bf16.xpose.msk.msra.mxu0 %vm12995_vm1, %v10426_v48 }
 0x4a2   : > { %9437 = vmatmul.mubr.msk.f32.vlgmr.msra.gmra.mrb[16].mxu1 %vm741_vm0, %v1124_v51 }
 0x4a3   : > { %v1136_v63 = vpop.permute.xlu1 %1135  ;;  %9439 = vmatprep.mubr.msk.f32.mxu1 %vm741_vm0, %v1126_v34 }
 0x4a6   : > { %9440 = vmatmul.mubr.msk.f32.gmra.mrb[18].mxu1 %vm741_vm0, %v1128_v23 }
 0x4a7   : > { %v1550_v50 = vpop.permute.xlu1 %1549  ;;  %9442 = vmatprep.mubr.msk.f32.mxu1 %vm741_vm0, %v1130_v60 }
 0x4a8   : > { %9493 = vmatmul.mubr.msk.f32.vlgmr.msra.gmra.mrb[24].mxu0 %vm741_vm0, %v1550_v50 }
 0x4a9   : > { %9495 = vmatprep.mubr.msk.f32.mxu0 %vm741_vm0, %v1552_v16 }
 0x4aa   : > { %9443 = vmatmul.mubr.msk.f32.gmra.mrb[20].mxu1 %vm741_vm0, %v1132_v32 }
 0x4ab   : > { %v1554_v7 = vpop.permute.xlu1 %1553  ;;  %9445 = vmatprep.mubr.msk.f32.mxu1 %vm741_vm0, %v1134_v26 }
 0x4ac   : > { %9496 = vmatmul.mubr.msk.f32.gmra.mrb[26].mxu0 %vm741_vm0, %v1554_v7 }
 0x4ad   : > { %9498 = vmatprep.mubr.msk.f32.mxu0 %vm741_vm0, %v1556_v53 }
 0x4ae   : > { %9446 = vmatmul.mubr.msk.f32.gmra.mrb[22].mxu1 %vm741_vm0, %v1136_v63 }
 0x4af   : > { %v1558_v8 = vpop.permute.xlu1 %1557 }
 0x4b0   : > { %9499 = vmatmul.mubr.msk.f32.gmra.mrb[28].mxu0 %vm741_vm0, %v1558_v8 }
 0x4b1   : > { %9501 = vmatprep.mubr.msk.f32.mxu0 %vm741_vm0, %v1560_v43 }
 0x4b3   : > { %v1562_v54 = vpop.permute.xlu1 %1561 }
 0x4b4   : > { %9502 = vmatmul.mubr.msk.f32.gmra.mrb[30].mxu0 %vm741_vm0, %v1562_v54 }
 0x503   : > { %v13269_v55 = vpop.f32.mrb[8].mxu1 }
 0x504   : > { %15893 = vst [vmem:[#allocation21_spill] sm:$0xff] %v13269_v55  ;;  %v13271_v58 = vpop.f32.mrb[9].mxu1 }
 0x505   : > { %15894 = vst [vmem:[#allocation22_spill] sm:$0xff] %v13271_v58 }
 0x538   : > { %v13273_v59 = vpop.f32.mrb[10].mxu1 }
 0x539   : > { %15895 = vst [vmem:[#allocation23_spill] sm:$0xff] %v13273_v59  ;;  %v13275_v10 = vpop.f32.mrb[11].mxu1 }
 0x53a   : > { %15896 = vst [vmem:[#allocation24_spill] sm:$0xff] %v13275_v10 }
 0x53c   : > { %v13277_v11 = vpop.f32.mrb[12].mxu1 }
 0x53d   : > { %15897 = vst [vmem:[#allocation25_spill] sm:$0xff] %v13277_v11  ;;  %v13279_v49 = vpop.f32.mrb[13].mxu1 }
 0x53e   : > { %15898 = vst [vmem:[#allocation26_spill] sm:$0xff] %v13279_v49 }
 0x571   : > { %v13281_v57 = vpop.f32.mrb[14].mxu1 }
 0x572   : > { %15899 = vst [vmem:[#allocation27_spill] sm:$0xff] %v13281_v57  ;;  %v13283_v13 = vpop.f32.mrb[15].mxu1 }
 0x573   : > { %15900 = vst [vmem:[#allocation28_spill] sm:$0xff] %v13283_v13 }
 0x575   : > { %v9438_v14 = vpop.f32.mrb[16].mxu1 }
 0x576   : > { %v1251_v56 = vpop.f32.mrb[17].mxu1  ;;  %v13321_v50 = vmul.f32 0.25, %v9438_v14 }
 0x577   : > { %v13323_v53 = vmul.f32 0.25, %v1251_v56 }
 0x578   : > { %v1301_v7 = vsel %vm903_vm2, %v13321_v50, -inf }
 0x579   : > { %v9441_v2 = vpop.f32.mrb[18].mxu1  ;;  %v1298_v43 = vsel %vm903_vm2, %v13323_v53, -inf }
 0x57a   : > { %v1261_v3 = vpop.f32.mrb[19].mxu1  ;;  %v13327_v8 = vmul.f32 0.25, %v9441_v2 }
 0x57b   : > { %v9494_v6 = vpop.f32.mrb[24].mxu0  ;;  %v13331_v54 = vmul.f32 0.25, %v1261_v3 }
 0x57c   : > { %v13285_v9 = vmul.f32 0.25, %v9494_v6  ;;  %v1677_v12 = vpop.f32.mrb[25].mxu0  ;;  %v1307_v6 = vsel %vm903_vm2, %v13327_v8, -inf }
 0x57d   : > { %v13287_v15 = vmul.f32 0.25, %v1677_v12  ;;  %v9444_v62 = vpop.f32.mrb[20].mxu1  ;;  %v1304_v56 = vsel %vm903_vm2, %v13331_v54, -inf }
 0x57e   : > { %v1271_v17 = vpop.f32.mrb[21].mxu1  ;;  %v1727_v19 = vsel %vm903_vm2, %v13285_v9, -inf }
 0x57f   : > { %1728 = vmax.xlane.f32.xlu1 %v1727_v19  ;;  %v9497_v61 = vpop.f32.mrb[26].mxu0  ;;  %v1724_v21 = vsel %vm903_vm2, %v13287_v15, -inf  ;;  %v13335_v14 = vmul.f32 0.25, %v1271_v17  ;;  %v13349_v17 = vmul.f32 0.25, %v9444_v62 }
 0x580   : > { %v13293_v23 = vmul.f32 0.25, %v9497_v61  ;;  %1725 = vmax.xlane.f32.xlu0 %v1724_v21  ;;  %v1687_v60 = vpop.f32.mrb[27].mxu0 }
 0x581   : > { %v13295_v26 = vmul.f32 0.25, %v1687_v60  ;;  %v9447_v28 = vpop.f32.mrb[22].mxu1  ;;  %v1310_v2 = vsel %vm903_vm2, %v13335_v14, -inf  ;;  %v1313_v61 = vsel %vm903_vm2, %v13349_v17, -inf }
 0x582   : > { %v1281_v1 = vpop.f32.mrb[23].mxu1  ;;  %v1733_v29 = vsel %vm903_vm2, %v13293_v23, -inf  ;;  %v13351_v19 = vmul.f32 0.25, %v9447_v28 }
 0x583   : > { %1734 = vmax.xlane.f32.xlu1 %v1733_v29  ;;  %v9500_v51 = vpop.f32.mrb[28].mxu0  ;;  %v1730_v34 = vsel %vm903_vm2, %v13295_v26, -inf  ;;  %v13339_v12 = vmul.f32 0.25, %v1281_v1 }
 0x584   : > { %v13301_v35 = vmul.f32 0.25, %v9500_v51  ;;  %1731 = vmax.xlane.f32.xlu0 %v1730_v34  ;;  %v1697_v38 = vpop.f32.mrb[29].mxu0  ;;  %v1319_v21 = vsel %vm903_vm2, %v13351_v19, -inf }
 0x585   : > { %v13303_v40 = vmul.f32 0.25, %v1697_v38  ;;  %v1316_v3 = vsel %vm903_vm2, %v13339_v12, -inf }
 0x586   : > { %v1739_v44 = vsel %vm903_vm2, %v13301_v35, -inf }
 0x587   : > { %1740 = vmax.xlane.f32.xlu1 %v1739_v44  ;;  %v9503_v45 = vpop.f32.mrb[30].mxu0  ;;  %v1736_v46 = vsel %vm903_vm2, %v13303_v40, -inf }
 0x588   : > { %v13309_v47 = vmul.f32 0.25, %v9503_v45  ;;  %1737 = vmax.xlane.f32.xlu0 %v1736_v46  ;;  %v1707_v48 = vpop.f32.mrb[31].mxu0 }
 0x589   : > { %v13311_v32 = vmul.f32 0.25, %v1707_v48 }
 0x58a   : > { %v1745_v63 = vsel %vm903_vm2, %v13309_v47, -inf }
 0x58b   : > { %1746 = vmax.xlane.f32.xlu1 %v1745_v63  ;;  %v1742_v16 = vsel %vm903_vm2, %v13311_v32, -inf }
 0x58c   : > { %1743 = vmax.xlane.f32.xlu0 %v1742_v16 }
 0x59c   : > { %11119 = vrot.lane.b32.xlu1 %v13203_v41, %s12596_s28 }
 0x5a2   : > { %11124 = vrot.lane.b32.xlu0 %v13209_v52, %s12596_s28 }
 0x5c0   : > { %1302 = vmax.xlane.f32.xlu1 %v1301_v7 }
 0x5c1   : > { %1299 = vmax.xlane.f32.xlu0 %v1298_v43 }
 0x5c5   : > { %1308 = vmax.xlane.f32.xlu0 %v1307_v6 }
 0x5c9   : > { %1305 = vmax.xlane.f32.xlu0 %v1304_v56 }
 0x5cd   : > { %1311 = vmax.xlane.f32.xlu0 %v1310_v2 }
 0x5d1   : > { %11129 = vrot.lane.b32.xlu1 %v13217_v4, %s12596_s28  ;;  %1317 = vmax.xlane.f32.xlu0 %v1316_v3 }
 0x5e7   : > { %11134 = vrot.lane.b32.xlu0 %v13221_v5, %s12596_s28 }
 0x5f5   : > { %1314 = vmax.xlane.f32.xlu1 %v1313_v61 }
 0x5f9   : > { %1320 = vmax.xlane.f32.xlu1 %v1319_v21 }
 0x60c   : > { %v1729_v60 = vpop.xlane.xlu1 %1728 }
 0x60d   : > { %v1749_v1 = vsub.f32 %v13285_v9, %v1729_v60  ;;  %v1726_v29 = vpop.xlane.xlu0 %1725 }
 0x60e   : > { %v1748_v51 = vsub.f32 %v13287_v15, %v1726_v29 }
 0x60f   : > { %v1758_v34 = vmul.f32 1.442695, %v1749_v1 }
 0x610   : > { %v1756_v38 = vmul.f32 1.442695, %v1748_v51  ;;  %v1735_v62 = vpop.xlane.xlu1 %1734 }
 0x611   : > { %11810 = vpow2.f32 %v1758_v34  ;;  %v1732_v28 = vpop.xlane.xlu0 %1731  ;;  %v1751_v60 = vsub.f32 %v13293_v23, %v1735_v62 }
 0x612   : > { %11812 = vpow2.f32 %v1756_v38  ;;  %v1750_v29 = vsub.f32 %v13295_v26, %v1732_v28 }
 0x613   : > { %v1762_v1 = vmul.f32 1.442695, %v1751_v60 }
 0x614   : > { %v1741_v44 = vpop.xlane.xlu1 %1740  ;;  %v1760_v51 = vmul.f32 1.442695, %v1750_v29 }
 0x615   : > { %v1738_v45 = vpop.xlane.xlu0 %1737  ;;  %11814 = vpow2.f32 %v1762_v1 }
 0x616   : > { %11816 = vpow2.f32 %v1760_v51  ;;  %v1752_v34 = vsub.f32 %v13303_v40, %v1738_v45 }
 0x618   : > { %v13359_v46 = vpop.xlane.xlu1 %1746  ;;  %v1764_v23 = vmul.f32 1.442695, %v1752_v34 }
 0x619   : > { %v13361_v48 = vpop.xlane.xlu0 %1743 }
 0x61b   : > { %v13363_v63 = vpop.eup %11810 }
 0x61c   : > { %v13365_v16 = vpop.eup %11812  ;;  %v11120_v9 = vpop.permute.xlu1 %11119  ;;  %v1775_v15 = vsel %vm903_vm2, %v13363_v63, 0.0 }
 0x61d   : > { %v11122_v7 = vunpack.i.h.bf16 %v11120_v9  ;;  %v11121_v43 = vunpack.i.l.bf16 %v11120_v9  ;;  %v11125_v6 = vpop.permute.xlu0 %11124  ;;  %1776 = vadd.xlane.f32.xlu0 %v1775_v15  ;;  %v1772_v56 = vsel %vm903_vm2, %v13365_v16, 0.0 }
 0x61e   : > { %v11127_v2 = vunpack.i.h.bf16 %v11125_v6  ;;  %v11126_v3 = vunpack.i.l.bf16 %v11125_v6  ;;  %1773 = vadd.xlane.f32.xlu1 %v1772_v56  ;;  %v1753_v56 = vsub.f32 %v13301_v35, %v1741_v44 }
 0x61f   : > { %v10392_v61 = vpack.c.bf16 %v11122_v7, %v11121_v43  ;;  %v13382_v9 = vpop.eup %11814 }
 0x620   : > { %v10396_v21 = vpack.c.bf16 %v11127_v2, %v11126_v3  ;;  %v1781_v26 = vsel %vm903_vm2, %v13382_v9, 0.0  ;;  %v13390_v44 = vpop.eup %11816 }
 0x621   : > { %10393 = vmatprep.subr.bf16.mxu1 %v10392_v61  ;;  %v1778_v29 = vsel %vm903_vm2, %v13390_v44, 0.0 }
 0x622   : > { %10395 = vmatpush3.bf16.msra.mxu1 %v10392_v61  ;;  %v1766_v61 = vmul.f32 1.442695, %v1753_v56 }
 0x623   : > { %10397 = vmatprep.subr.bf16.mxu1 %v10396_v21 }
 0x626   : > { %10399 = vmatpush3.bf16.msra.mxu1 %v10396_v21 }
 0x62f   : > { %11139 = vrot.lane.b32.xlu1 %v13203_v41, %s12597_s23 }
 0x633   : > { %11149 = vrot.lane.b32.xlu1 %v13217_v4, %s12597_s23  ;;  %11144 = vrot.lane.b32.xlu0 %v13209_v52, %s12597_s23 }
 0x637   : > { %11154 = vrot.lane.b32.xlu1 %v13221_v5, %s12597_s23 }
 0x64d   : > { %v1303_v38 = vpop.xlane.xlu1 %1302 }
 0x64e   : > { %v1323_v15 = vsub.f32 %v13321_v50, %v1303_v38  ;;  %v1300_v7 = vpop.xlane.xlu0 %1299 }
 0x64f   : > { %v1322_v43 = vsub.f32 %v13323_v53, %v1300_v7 }
 0x650   : > { %v1332_v6 = vmul.f32 1.442695, %v1323_v15 }
 0x651   : > { %v1330_v62 = vmul.f32 1.442695, %v1322_v43  ;;  %v11130_v2 = vpop.permute.xlu1 %11129 }
 0x652   : > { %11818 = vpow2.f32 %v1332_v6  ;;  %v11132_v28 = vunpack.i.h.bf16 %v11130_v2  ;;  %v11131_v40 = vunpack.i.l.bf16 %v11130_v2  ;;  %v1309_v45 = vpop.xlane.xlu0 %1308  ;;  %1782 = vadd.xlane.f32.xlu0 %v1781_v26 }
 0x653   : > { %11820 = vpow2.f32 %v1330_v62  ;;  %v1325_v50 = vsub.f32 %v13327_v8, %v1309_v45 }
 0x654   : > { %v10400_v3 = vpack.c.bf16 %v11132_v28, %v11131_v40  ;;  %11822 = vpow2.f32 %v1764_v23 }
 0x655   : > { %v1336_v53 = vmul.f32 1.442695, %v1325_v50 }
 0x656   : > { %10401 = vmatprep.subr.bf16.mxu1 %v10400_v3  ;;  %v1306_v35 = vpop.xlane.xlu0 %1305 }
 0x657   : > { %11824 = vpow2.f32 %v1336_v53  ;;  %v1324_v21 = vsub.f32 %v13331_v54, %v1306_v35  ;;  %10403 = vmatpush3.bf16.msra.mxu1 %v10400_v3  ;;  %v1754_v53 = vsub.f32 %v13311_v32, %v13361_v48 }
 0x658   : > { %11826 = vpow2.f32 %v1766_v61 }
 0x659   : > { %v1334_v60 = vmul.f32 1.442695, %v1324_v21 }
 0x65a   : > { %v1312_v1 = vpop.xlane.xlu0 %1311 }
 0x65b   : > { %11828 = vpow2.f32 %v1334_v60  ;;  %v1326_v8 = vsub.f32 %v13335_v14, %v1312_v1  ;;  %1779 = vadd.xlane.f32.xlu1 %v1778_v29  ;;  %v1755_v60 = vsub.f32 %v13309_v47, %v13359_v46  ;;  %v1768_v1 = vmul.f32 1.442695, %v1754_v53 }
 0x65c   : > { %v13396_v51 = vpop.eup %11818 }
 0x65d   : > { %v13398_v34 = vpop.eup %11820  ;;  %v1338_v38 = vmul.f32 1.442695, %v1326_v8  ;;  %v1349_v15 = vsel %vm903_vm2, %v13396_v51, 0.0 }
 0x65e   : > { %v1318_v54 = vpop.xlane.xlu0 %1317  ;;  %v1346_v7 = vsel %vm903_vm2, %v13398_v34, 0.0  ;;  %v13404_v43 = vpop.eup %11822 }
 0x65f   : > { %11830 = vpow2.f32 %v1338_v38  ;;  %1350 = vadd.xlane.f32.xlu1 %v1349_v15  ;;  %1347 = vadd.xlane.f32.xlu0 %v1346_v7  ;;  %v1784_v56 = vsel %vm903_vm2, %v13404_v43, 0.0  ;;  %v1328_v29 = vsub.f32 %v13339_v12, %v1318_v54  ;;  %v1770_v7 = vmul.f32 1.442695, %v1755_v60 }
 0x661   : > { %v13406_v6 = vpop.eup %11824 }
 0x662   : > { %v11135_v14 = vpop.permute.xlu0 %11134  ;;  %v1355_v23 = vsel %vm903_vm2, %v13406_v6, 0.0  ;;  %v13412_v62 = vpop.eup %11826 }
 0x663   : > { %v11137_v2 = vunpack.i.h.bf16 %v11135_v14  ;;  %v11136_v26 = vunpack.i.l.bf16 %v11135_v14  ;;  %1785 = vadd.xlane.f32.xlu1 %v1784_v56  ;;  %1356 = vadd.xlane.f32.xlu0 %v1355_v23  ;;  %v1787_v45 = vsel %vm903_vm2, %v13412_v62, 0.0  ;;  %v1342_v14 = vmul.f32 1.442695, %v1328_v29 }
 0x665   : > { %v13414_v28 = vpop.eup %11828  ;;  %v10404_v40 = vpack.c.bf16 %v11137_v2, %v11136_v26 }
 0x666   : > { %v1352_v50 = vsel %vm903_vm2, %v13414_v28, 0.0 }
 0x667   : > { %1788 = vadd.xlane.f32.xlu1 %v1787_v45  ;;  %1353 = vadd.xlane.f32.xlu0 %v1352_v50 }
 0x668   : > { %10405 = vmatprep.subr.bf16.mxu1 %v10404_v40 }
 0x669   : > { %v13420_v3 = vpop.eup %11830  ;;  %10407 = vmatpush3.bf16.msra.mxu1 %v10404_v40 }
 0x66a   : > { %v1358_v61 = vsel %vm903_vm2, %v13420_v3, 0.0 }
 0x66b   : > { %1359 = vadd.xlane.f32.xlu0 %v1358_v61 }
 0x682   : > { %v1315_v35 = vpop.xlane.xlu1 %1314 }
 0x683   : > { %v1327_v21 = vsub.f32 %v13349_v17, %v1315_v35 }
 0x685   : > { %v1340_v8 = vmul.f32 1.442695, %v1327_v21 }
 0x686   : > { %v1321_v38 = vpop.xlane.xlu1 %1320 }
 0x687   : > { %11832 = vpow2.f32 %v1340_v8  ;;  %v1329_v15 = vsub.f32 %v13351_v19, %v1321_v38 }
 0x688   : > { %11834 = vpow2.f32 %v1768_v1 }
 0x689   : > { %v1344_v56 = vmul.f32 1.442695, %v1329_v15 }
 0x68b   : > { %11836 = vpow2.f32 %v1344_v56 }
 0x68c   : > { %11838 = vpow2.f32 %v1770_v7 }
 0x68d   : > { %11840 = vpow2.f32 %v1342_v14 }
 0x691   : > { %v13431_v32 = vpop.eup %11832 }
 0x692   : > { %v1361_v47 = vsel %vm903_vm2, %v13431_v32, 0.0  ;;  %v13435_v17 = vpop.eup %11834 }
 0x693   : > { %1362 = vadd.xlane.f32.xlu1 %v1361_v47  ;;  %v1790_v19 = vsel %vm903_vm2, %v13435_v17, 0.0 }
 0x695   : > { %v13437_v12 = vpop.eup %11836 }
 0x696   : > { %v13439_v46 = vpop.eup %11838  ;;  %v1367_v48 = vsel %vm903_vm2, %v13437_v12, 0.0 }
 0x697   : > { %v13445_v54 = vpop.eup %11840  ;;  %1791 = vadd.xlane.f32.xlu1 %v1790_v19  ;;  %1368 = vadd.xlane.f32.xlu0 %v1367_v48  ;;  %v1793_v23 = vsel %vm903_vm2, %v13439_v46, 0.0 }
 0x698   : > { %v1364_v2 = vsel %vm903_vm2, %v13445_v54, 0.0 }
 0x69b   : > { %1794 = vadd.xlane.f32.xlu1 %v1793_v23  ;;  %1365 = vadd.xlane.f32.xlu0 %v1364_v2 }
 0x6aa   : > { %v1777_v53 = vpop.xlane.xlu0 %1776 }
 0x6ab   : > { %v13451_v26 = vpop.xlane.xlu1 %1773 }
 0x6ac   : > { %11164 = vrot.lane.b32.xlu1 %v13009_v30, %s12598_s29 }
 0x6ae   : > { %v11145_v21 = vpop.permute.xlu0 %11144 }
 0x6af   : > { %v11140_v40 = vpop.permute.xlu1 %11139  ;;  %v11147_v47 = vunpack.i.h.bf16 %v11145_v21  ;;  %v11146_v19 = vunpack.i.l.bf16 %v11145_v21 }
 0x6b0   : > { %v11142_v45 = vunpack.i.h.bf16 %v11140_v40  ;;  %v11141_v50 = vunpack.i.l.bf16 %v11140_v40  ;;  %11174 = vrot.lane.b32.xlu1 %v13029_v42, %s12598_s29 }
 0x6b1   : > { %11159 = vrot.lane.b32.xlu0 %v12999_v24, %s12598_s29 }
 0x6b2   : > { %v10432_v61 = vpack.c.bf16 %v11142_v45, %v11141_v50  ;;  %v10436_v50 = vpack.c.bf16 %v11147_v47, %v11146_v19 }
 0x6b3   : > { %v11150_v35 = vpop.permute.xlu1 %11149 }
 0x6b4   : > { %1967 = vrot.lane.b32.xlu1 %v12991_v20, %s12598_s29  ;;  %10433 = vmatprep.subr.bf16.mxu1 %v10432_v61  ;;  %v11152_v40 = vunpack.i.h.bf16 %v11150_v35  ;;  %v11151_v45 = vunpack.i.l.bf16 %v11150_v35 }
 0x6b5   : > { %11169 = vrot.lane.b32.xlu0 %v13019_v36, %s12598_s29 }
 0x6b6   : > { %v10440_v21 = vpack.c.bf16 %v11152_v40, %v11151_v45 }
 0x6b7   : > { %v11155_v60 = vpop.permute.xlu1 %11154 }
 0x6b8   : > { %1971 = vrot.lane.b32.xlu1 %v13007_v27, %s12598_s29 }
 0x6b9   : > { %1965 = vrot.lane.b32.xlu0 %v12987_v18, %s12598_s29 }
 0x6bc   : > { %1975 = vrot.lane.b32.xlu1 %v13017_v33, %s12598_s29 }
 0x6bd   : > { %1969 = vrot.lane.b32.xlu0 %v13001_v25, %s12598_s29 }
 0x6c0   : > { %1979 = vrot.lane.b32.xlu1 %v13027_v39, %s12598_s29 }
 0x6c1   : > { %1973 = vrot.lane.b32.xlu0 %v13011_v31, %s12598_s29 }
 0x6c5   : > { %1977 = vrot.lane.b32.xlu0 %v13021_v37, %s12598_s29 }
 0x6df   : > { %v13477_v1 = vpop.xlane.xlu0 %1782 }
 0x6e8   : > { %v1780_v29 = vpop.xlane.xlu1 %1779 }
 0x6ec   : > { %v1351_v8 = vpop.xlane.xlu1 %1350  ;;  %v1348_v38 = vpop.xlane.xlu0 %1347 }
 0x6ed   : > { %11842 = vrcp.f32 %v1351_v8 }
 0x6ee   : > { %11844 = vrcp.f32 %v1348_v38 }
 0x6f0   : > { %v1357_v15 = vpop.xlane.xlu0 %1356 }
 0x6f1   : > { %11846 = vrcp.f32 %v1357_v15  ;;  %v11157_v15 = vunpack.i.h.bf16 %v11155_v60 }
 0x6f4   : > { %v1354_v7 = vpop.xlane.xlu0 %1353 }
 0x6f5   : > { %11848 = vrcp.f32 %v1354_v7  ;;  %v11156_v7 = vunpack.i.l.bf16 %v11155_v60  ;;  %v1786_v60 = vpop.xlane.xlu1 %1785 }
 0x6f7   : > { %v11843_v14 = vpop.eup %11842  ;;  %v10444_v35 = vpack.c.bf16 %v11157_v15, %v11156_v7 }
 0x6f8   : > { %v11845_v56 = vpop.eup %11844  ;;  %v1379_v48 = vmul.f32 %v11843_v14, %v13396_v51  ;;  %v1360_v23 = vpop.xlane.xlu0 %1359 }
 0x6f9   : > { %11850 = vrcp.f32 %v1360_v23  ;;  %v1378_v2 = vmul.f32 %v11845_v56, %v13398_v34  ;;  %v1789_v56 = vpop.xlane.xlu1 %1788 }
 0x6fb   : > { %9464 = vmatprep.mubr.msk.f32.mxu1 %vm903_vm2, %v1378_v2  ;;  %v11847_v8 = vpop.eup %11846 }
 0x6fc   : > { %9465 = vmatmul.mubr.msk.f32.vlgmr.msra.gmra.mrb[24].mxu1 %vm903_vm2, %v1379_v48  ;;  %v1381_v34 = vmul.f32 %v11847_v8, %v13406_v6 }
 0x6fd   : > { %10435 = vmatpush3.bf16.msra.mxu1 %v10432_v61 }
 0x6fe   : > { %10437 = vmatprep.subr.bf16.mxu1 %v10436_v50 }
 0x6ff   : > { %v11849_v38 = vpop.eup %11848 }
 0x700   : > { %v1380_v51 = vmul.f32 %v11849_v38, %v13414_v28 }
 0x701   : > { %10439 = vmatpush3.bf16.msra.mxu1 %v10436_v50 }
 0x702   : > { %10441 = vmatprep.subr.bf16.mxu1 %v10440_v21  ;;  %9467 = vmatprep.mubr.msk.f32.mxu1 %vm903_vm2, %v1380_v51 }
 0x703   : > { %v11851_v14 = vpop.eup %11850  ;;  %9468 = vmatmul.mubr.msk.f32.gmra.mrb[26].mxu1 %vm903_vm2, %v1381_v34 }
 0x704   : > { %v1382_v61 = vmul.f32 %v11851_v14, %v13420_v3 }
 0x705   : > { %10443 = vmatpush3.bf16.msra.mxu1 %v10440_v21 }
 0x706   : > { %10445 = vmatprep.subr.bf16.mxu1 %v10444_v35  ;;  %9470 = vmatprep.mubr.msk.f32.mxu1 %vm903_vm2, %v1382_v61 }
 0x709   : > { %10447 = vmatpush3.bf16.msra.mxu1 %v10444_v35 }
 0x720   : > { %v1363_v47 = vpop.xlane.xlu1 %1362 }
 0x721   : > { %11852 = vrcp.f32 %v1363_v47 }
 0x722   : > { %11854 = vrcp.f32 %v13451_v26 }
 0x724   : > { %v1369_v28 = vpop.xlane.xlu0 %1368  ;;  %v1792_v19 = vpop.xlane.xlu1 %1791 }
 0x725   : > { %11856 = vrcp.f32 %v1369_v28 }
 0x728   : > { %v1366_v6 = vpop.xlane.xlu0 %1365  ;;  %v1795_v45 = vpop.xlane.xlu1 %1794 }
 0x729   : > { %11858 = vrcp.f32 %v1366_v6 }
 0x72a   : > { %11860 = vrcp.f32 %v1777_v53 }
 0x72b   : > { %v11853_v48 = vpop.eup %11852  ;;  %11862 = vrcp.f32 %v1780_v29 }
 0x72c   : > { %v11160_v23 = vpop.permute.xlu0 %11159  ;;  %v1383_v3 = vmul.f32 %v11853_v48, %v13431_v32  ;;  %11864 = vrcp.f32 %v13477_v1  ;;  %v11855_v26 = vpop.eup %11854 }
 0x72d   : > { %v11162_v2 = vunpack.i.h.bf16 %v11160_v23  ;;  %v11161_v40 = vunpack.i.l.bf16 %v11160_v23  ;;  %11866 = vrcp.f32 %v1786_v60  ;;  %v11165_v15 = vpop.permute.xlu1 %11164  ;;  %v1804_v7 = vmul.f32 %v11855_v26, %v13365_v16 }
 0x72e   : > { %9471 = vmatmul.mubr.msk.f32.gmra.mrb[28].mxu1 %vm903_vm2, %v1383_v3  ;;  %11868 = vrcp.f32 %v1789_v56  ;;  %v11167_v21 = vunpack.i.h.bf16 %v11165_v15  ;;  %v11166_v51 = vunpack.i.l.bf16 %v11165_v15 }
 0x72f   : > { %v10448_v50 = vpack.c.bf16 %v11162_v2, %v11161_v40  ;;  %v11857_v8 = vpop.eup %11856  ;;  %11870 = vrcp.f32 %v1792_v19 }
 0x730   : > { %v1385_v53 = vmul.f32 %v11857_v8, %v13437_v12  ;;  %11872 = vrcp.f32 %v1795_v45  ;;  %v10454_v12 = vpack.c.bf16 %v11167_v21, %v11166_v51  ;;  %v11170_v61 = vpop.permute.xlu0 %11169 }
 0x731   : > { %10450 = vmatprep.subr.msk.bf16.mxu1 %vm12995_vm1, %v10448_v50  ;;  %v11171_v47 = vunpack.i.l.bf16 %v11170_v61  ;;  %v11175_v23 = vpop.permute.xlu1 %11174 }
 0x732   : > { %v11176_v3 = vunpack.i.l.bf16 %v11175_v23 }
 0x733   : > { %v11859_v38 = vpop.eup %11858 }
 0x734   : > { %v1384_v32 = vmul.f32 %v11859_v38, %v13445_v54  ;;  %v11861_v29 = vpop.eup %11860 }
 0x735   : > { %v11863_v1 = vpop.eup %11862  ;;  %v1805_v34 = vmul.f32 %v11861_v29, %v13363_v63  ;;  %v1968_v2 = vpop.permute.xlu1 %1967 }
 0x736   : > { %9473 = vmatprep.mubr.msk.f32.mxu1 %vm903_vm2, %v1384_v32  ;;  %v11865_v14 = vpop.eup %11864  ;;  %v1806_v54 = vmul.f32 %v11863_v1, %v13390_v44  ;;  %v11172_v44 = vunpack.i.h.bf16 %v11170_v61 }
 0x737   : > { %9474 = vmatmul.mubr.msk.f32.gmra.mrb[30].mxu1 %vm903_vm2, %v1385_v53  ;;  %v11867_v35 = vpop.eup %11866  ;;  %v1807_v16 = vmul.f32 %v11865_v14, %v13382_v9 }
 0x738   : > { %9520 = vmatprep.mubr.msk.f32.mxu1 %vm903_vm2, %v1804_v7  ;;  %v11869_v60 = vpop.eup %11868  ;;  %v1808_v63 = vmul.f32 %v11867_v35, %v13404_v43  ;;  %v10460_v48 = vpack.c.bf16 %v11172_v44, %v11171_v47  ;;  %v11177_v43 = vunpack.i.h.bf16 %v11175_v23 }
 0x739   : > { %v11871_v56 = vpop.eup %11870  ;;  %v1809_v28 = vmul.f32 %v11869_v60, %v13412_v62  ;;  %v1966_v62 = vpop.permute.xlu0 %1965 }
 0x73a   : > { %v11873_v6 = vpop.eup %11872  ;;  %v1810_v19 = vmul.f32 %v11871_v56, %v13435_v17  ;;  %v10466_v17 = vpack.c.bf16 %v11177_v43, %v11176_v3 }
 0x73b   : > { %9521 = vmatmul.mubr.msk.f32.vlgmr.msra.gmra.mrb[32].mxu1 %vm903_vm2, %v1805_v34  ;;  %v1811_v9 = vmul.f32 %v11873_v6, %v13439_v46  ;;  %v1972_v46 = vpop.permute.xlu1 %1971 }
 0x73c   : > { %10453 = vmatpush3.bf16.xpose.msk.msra.mxu1 %vm12995_vm1, %v10448_v50  ;;  %9523 = vmatprep.mubr.msk.f32.mxu1 %vm903_vm2, %v1806_v54 }
 0x73d   : > { %10456 = vmatprep.subr.msk.bf16.mxu1 %vm12995_vm1, %v10454_v12  ;;  %v1970_v40 = vpop.permute.xlu0 %1969 }
 0x73f   : > { %9524 = vmatmul.mubr.msk.f32.gmra.mrb[34].mxu1 %vm903_vm2, %v1807_v16  ;;  %v1976_v50 = vpop.permute.xlu1 %1975 }
 0x740   : > { %9526 = vmatprep.mubr.msk.f32.mxu1 %vm903_vm2, %v1808_v63 }
 0x741   : > { %v1974_v45 = vpop.permute.xlu0 %1973 }
 0x743   : > { %9527 = vmatmul.mubr.msk.f32.gmra.mrb[36].mxu1 %vm903_vm2, %v1809_v28  ;;  %v1980_v8 = vpop.permute.xlu1 %1979 }
 0x744   : > { %10459 = vmatpush3.bf16.xpose.msk.msra.mxu1 %vm12995_vm1, %v10454_v12  ;;  %9529 = vmatprep.mubr.msk.f32.mxu1 %vm903_vm2, %v1810_v19 }
 0x745   : > { %10462 = vmatprep.subr.msk.bf16.mxu1 %vm12995_vm1, %v10460_v48  ;;  %v1978_v26 = vpop.permute.xlu0 %1977 }
 0x747   : > { %9530 = vmatmul.mubr.msk.f32.gmra.mrb[38].mxu1 %vm903_vm2, %v1811_v9 }
 0x748   : > { %9548 = vmatprep.mubr.msk.f32.mxu1 %vm741_vm0, %v1966_v62 }
 0x74c   : > { %10465 = vmatpush3.bf16.xpose.msk.msra.mxu1 %vm12995_vm1, %v10460_v48 }
 0x74d   : > { %10468 = vmatprep.subr.msk.bf16.mxu1 %vm12995_vm1, %v10466_v17 }
 0x754   : > { %10471 = vmatpush3.bf16.xpose.msk.msra.mxu1 %vm12995_vm1, %v10466_v17 }
 0x75b   : > { %9549 = vmatmul.mubr.msk.f32.vlgmr.msra.gmra.mrb[40].mxu1 %vm741_vm0, %v1968_v2 }
 0x75c   : > { %9551 = vmatprep.mubr.msk.f32.mxu1 %vm741_vm0, %v1970_v40 }
 0x75f   : > { %9552 = vmatmul.mubr.msk.f32.gmra.mrb[42].mxu1 %vm741_vm0, %v1972_v46 }
 0x760   : > { %9554 = vmatprep.mubr.msk.f32.mxu1 %vm741_vm0, %v1974_v45 }
 0x763   : > { %9555 = vmatmul.mubr.msk.f32.gmra.mrb[44].mxu1 %vm741_vm0, %v1976_v50 }
 0x764   : > { %9557 = vmatprep.mubr.msk.f32.mxu1 %vm741_vm0, %v1978_v26 }
 0x767   : > { %9558 = vmatmul.mubr.msk.f32.gmra.mrb[46].mxu1 %vm741_vm0, %v1980_v8 }
 0x7cf   : > { %v13537_v38 = vpop.f32.mrb[24].mxu1 }
 0x7d0   : > { %v13539_v15 = vpop.f32.mrb[25].mxu1 }
 0x7d6   : > { %v13543_v53 = vpop.f32.mrb[26].mxu1 }
 0x7d7   : > { %v13545_v29 = vpop.f32.mrb[27].mxu1 }
 0x801   : > { %v13549_v1 = vpop.f32.mrb[28].mxu1 }
 0x802   : > { %v13551_v21 = vpop.f32.mrb[29].mxu1 }
 0x80a   : > { %v13555_v34 = vpop.f32.mrb[30].mxu1 }
 0x80b   : > { %15901 = vst [vmem:[#allocation29_spill] sm:$0xff] %v13555_v34  ;;  %v13557_v14 = vpop.f32.mrb[31].mxu1 }
 0x80c   : > { %15902 = vst [vmem:[#allocation30_spill] sm:$0xff] %v13557_v14 }
 0x80e   : > { %v13561_v35 = vpop.f32.mrb[32].mxu1 }
 0x80f   : > { %v13563_v12 = vpop.f32.mrb[33].mxu1 }
 0x812   : > { %v13567_v16 = vpop.f32.mrb[34].mxu1 }
 0x813   : > { %v13569_v60 = vpop.f32.mrb[35].mxu1 }
 0x816   : > { %v13573_v56 = vpop.f32.mrb[36].mxu1 }
 0x817   : > { %v13575_v44 = vpop.f32.mrb[37].mxu1 }
 0x81a   : > { %v13579_v28 = vpop.f32.mrb[38].mxu1 }
 0x81b   : > { %15903 = vst [vmem:[#allocation31_spill] sm:$0xff] %v13579_v28  ;;  %v13581_v6 = vpop.f32.mrb[39].mxu1 }
 0x81c   : > { %15904 = vst [vmem:[#allocation32_spill] sm:$0xff] %v13581_v6 }
 0x82e   : > { %v9550_v48 = vpop.f32.mrb[40].mxu1 }
 0x82f   : > { %v2135_v23 = vmul.f32 0.25, %v9550_v48  ;;  %v2095_v9 = vpop.f32.mrb[41].mxu1 }
 0x830   : > { %v2134_v43 = vmul.f32 0.25, %v2095_v9 }
 0x831   : > { %v2145_v3 = vsel %vm903_vm2, %v2135_v23, -inf }
 0x832   : > { %2146 = vmax.xlane.f32.xlu1 %v2145_v3  ;;  %v9553_v62 = vpop.f32.mrb[42].mxu1  ;;  %v2142_v17 = vsel %vm903_vm2, %v2134_v43, -inf }
 0x833   : > { %v2137_v2 = vmul.f32 0.25, %v9553_v62  ;;  %2143 = vmax.xlane.f32.xlu0 %v2142_v17  ;;  %v2105_v40 = vpop.f32.mrb[43].mxu1 }
 0x834   : > { %v2136_v45 = vmul.f32 0.25, %v2105_v40 }
 0x835   : > { %v2151_v46 = vsel %vm903_vm2, %v2137_v2, -inf }
 0x836   : > { %v9556_v50 = vpop.f32.mrb[44].mxu1  ;;  %v2148_v3 = vsel %vm903_vm2, %v2136_v45, -inf }
 0x837   : > { %v2139_v26 = vmul.f32 0.25, %v9556_v50  ;;  %2152 = vmax.xlane.f32.xlu0 %v2151_v46  ;;  %v2115_v8 = vpop.f32.mrb[45].mxu1 }
 0x838   : > { %v2138_v0 = vmul.f32 0.25, %v2115_v8 }
 0x839   : > { %v2157_v48 = vsel %vm903_vm2, %v2139_v26, -inf }
 0x83a   : > { %2158 = vmax.xlane.f32.xlu1 %v2157_v48  ;;  %v9559_v9 = vpop.f32.mrb[46].mxu1  ;;  %v2154_v40 = vsel %vm903_vm2, %v2138_v0, -inf }
 0x83b   : > { %v13590_v19 = vmul.f32 0.25, %v9559_v9  ;;  %2149 = vmax.xlane.f32.xlu0 %v2148_v3  ;;  %v2125_v62 = vpop.f32.mrb[47].mxu1 }
 0x83c   : > { %v13594_v54 = vmul.f32 0.25, %v2125_v62 }
 0x83d   : > { %v2163_v17 = vsel %vm903_vm2, %v13590_v19, -inf }
 0x83e   : > { %2164 = vmax.xlane.f32.xlu1 %v2163_v17  ;;  %v2160_v46 = vsel %vm903_vm2, %v13594_v54, -inf }
 0x83f   : > { %2155 = vmax.xlane.f32.xlu0 %v2154_v40 }
 0x843   : > { %2161 = vmax.xlane.f32.xlu0 %v2160_v46 }
 0x84f   : > { %11184 = vrot.lane.b32.xlu1 %v13209_v52, %s12598_s29 }
 0x853   : > { %11189 = vrot.lane.b32.xlu1 %v13217_v4, %s12598_s29 }
 0x857   : > { %11194 = vrot.lane.b32.xlu1 %v13221_v5, %s12598_s29 }
 0x859   : > { %11179 = vrot.lane.b32.xlu0 %v13203_v41, %s12598_s29 }
 0x85b   : > { %11204 = vrot.lane.b32.xlu1 %v13009_v30, %s12599_s13 }
 0x85d   : > { %11199 = vrot.lane.b32.xlu0 %v12999_v24, %s12599_s13 }
 0x8bf   : > { %v2147_v50 = vpop.xlane.xlu1 %2146 }
 0x8c0   : > { %v2167_v8 = vsub.f32 %v2135_v23, %v2147_v50  ;;  %v2144_v48 = vpop.xlane.xlu0 %2143 }
 0x8c1   : > { %v2166_v9 = vsub.f32 %v2134_v43, %v2144_v48 }
 0x8c2   : > { %v2176_v3 = vmul.f32 1.442695, %v2167_v8 }
 0x8c3   : > { %v2174_v62 = vmul.f32 1.442695, %v2166_v9 }
 0x8c4   : > { %11874 = vpow2.f32 %v2176_v3  ;;  %v2153_v17 = vpop.xlane.xlu0 %2152 }
 0x8c5   : > { %11876 = vpow2.f32 %v2174_v62  ;;  %v2169_v40 = vsub.f32 %v2137_v2, %v2153_v17 }
 0x8c7   : > { %v2180_v46 = vmul.f32 1.442695, %v2169_v40  ;;  %v2159_v47 = vpop.xlane.xlu1 %2158 }
 0x8c8   : > { %v2171_v51 = vsub.f32 %v2139_v26, %v2159_v47  ;;  %v2150_v7 = vpop.xlane.xlu0 %2149 }
 0x8c9   : > { %11878 = vpow2.f32 %v2180_v46  ;;  %v2168_v32 = vsub.f32 %v2136_v45, %v2150_v7 }
 0x8ca   : > { %v2184_v63 = vmul.f32 1.442695, %v2171_v51 }
 0x8cb   : > { %v2178_v61 = vmul.f32 1.442695, %v2168_v32  ;;  %v2165_v13 = vpop.xlane.xlu1 %2164 }
 0x8cc   : > { %v2156_v57 = vpop.xlane.xlu0 %2155 }
 0x8cd   : > { %11880 = vpow2.f32 %v2178_v61  ;;  %v2170_v23 = vsub.f32 %v2138_v0, %v2156_v57 }
 0x8ce   : > { %v13611_v50 = vpop.eup %11874  ;;  %11882 = vpow2.f32 %v2184_v63 }
 0x8cf   : > { %v13613_v43 = vpop.eup %11876  ;;  %v2182_v8 = vmul.f32 1.442695, %v2170_v23  ;;  %v11185_v48 = vpop.permute.xlu1 %11184  ;;  %v2193_v2 = vsel %vm903_vm2, %v13611_v50, 0.0 }
 0x8d0   : > { %2194 = vadd.xlane.f32.xlu1 %v2193_v2  ;;  %v2162_v47 = vpop.xlane.xlu0 %2161  ;;  %v2190_v7 = vsel %vm903_vm2, %v13613_v43, 0.0  ;;  %v11187_v61 = vunpack.i.h.bf16 %v11185_v48  ;;  %v11186_v63 = vunpack.i.l.bf16 %v11185_v48 }
 0x8d1   : > { %2191 = vadd.xlane.f32.xlu0 %v2190_v7  ;;  %11884 = vpow2.f32 %v2182_v8 }
 0x8d2   : > { %v10476_v23 = vpack.c.bf16 %v11187_v61, %v11186_v63 }
 0x8d3   : > { %v13619_v32 = vpop.eup %11878  ;;  %v11190_v0 = vpop.permute.xlu1 %11189 }
 0x8d4   : > { %v11180_v57 = vpop.permute.xlu0 %11179  ;;  %v2199_v51 = vsel %vm903_vm2, %v13619_v32, 0.0  ;;  %v11192_v40 = vunpack.i.h.bf16 %v11190_v0  ;;  %v11191_v46 = vunpack.i.l.bf16 %v11190_v0 }
 0x8d5   : > { %v11182_v45 = vunpack.i.h.bf16 %v11180_v57  ;;  %v11181_v26 = vunpack.i.l.bf16 %v11180_v57  ;;  %2200 = vadd.xlane.f32.xlu1 %v2199_v51 }
 0x8d6   : > { %v10480_v51 = vpack.c.bf16 %v11192_v40, %v11191_v46  ;;  %v2172_v46 = vsub.f32 %v13594_v54, %v2162_v47 }
 0x8d7   : > { %v13623_v9 = vpop.eup %11880  ;;  %v10472_v3 = vpack.c.bf16 %v11182_v45, %v11181_v26  ;;  %v11195_v8 = vpop.permute.xlu1 %11194 }
 0x8d8   : > { %v2196_v62 = vsel %vm903_vm2, %v13623_v9, 0.0  ;;  %v13627_v17 = vpop.eup %11882  ;;  %v11197_v7 = vunpack.i.h.bf16 %v11195_v8  ;;  %v11196_v57 = vunpack.i.l.bf16 %v11195_v8  ;;  %v11200_v45 = vpop.permute.xlu0 %11199 }
 0x8d9   : > { %2197 = vadd.xlane.f32.xlu0 %v2196_v62  ;;  %10473 = vmatprep.subr.bf16.mxu0 %v10472_v3  ;;  %v2205_v48 = vsel %vm903_vm2, %v13627_v17, 0.0  ;;  %v11202_v26 = vunpack.i.h.bf16 %v11200_v45  ;;  %v11201_v61 = vunpack.i.l.bf16 %v11200_v45  ;;  %v2173_v62 = vsub.f32 %v13590_v19, %v2165_v13 }
 0x8da   : > { %10475 = vmatpush3.bf16.msra.mxu0 %v10472_v3  ;;  %v10484_v63 = vpack.c.bf16 %v11197_v7, %v11196_v57 }
 0x8db   : > { %10477 = vmatprep.subr.bf16.mxu0 %v10476_v23  ;;  %v13631_v2 = vpop.eup %11884  ;;  %v10488_v3 = vpack.c.bf16 %v11202_v26, %v11201_v61  ;;  %v2188_v40 = vmul.f32 1.442695, %v2173_v62  ;;  %v11205_v47 = vpop.permute.xlu1 %11204 }
 0x8dc   : > { %v2202_v0 = vsel %vm903_vm2, %v13631_v2, 0.0  ;;  %v11207_v26 = vunpack.i.h.bf16 %v11205_v47  ;;  %v11206_v61 = vunpack.i.l.bf16 %v11205_v47 }
 0x8dd   : > { %2206 = vadd.xlane.f32.xlu0 %v2205_v48  ;;  %11886 = vpow2.f32 %v2188_v40 }
 0x8de   : > { %10479 = vmatpush3.bf16.msra.mxu0 %v10476_v23  ;;  %v2186_v23 = vmul.f32 1.442695, %v2172_v46  ;;  %v10494_v46 = vpack.c.bf16 %v11207_v26, %v11206_v61 }
 0x8df   : > { %10481 = vmatprep.subr.bf16.mxu0 %v10480_v51 }
 0x8e0   : > { %11888 = vpow2.f32 %v2186_v23 }
 0x8e1   : > { %2203 = vadd.xlane.f32.xlu0 %v2202_v0 }
 0x8e2   : > { %10483 = vmatpush3.bf16.msra.mxu0 %v10480_v51 }
 0x8e3   : > { %10485 = vmatprep.subr.bf16.mxu0 %v10484_v63 }
 0x8e6   : > { %11214 = vrot.lane.b32.xlu1 %v13029_v42, %s12599_s13  ;;  %10487 = vmatpush3.bf16.msra.mxu0 %v10484_v63 }
 0x8e7   : > { %10490 = vmatprep.subr.msk.bf16.mxu0 %vm12995_vm1, %v10488_v3  ;;  %v13649_v8 = vpop.eup %11886 }
 0x8e8   : > { %v2211_v13 = vsel %vm903_vm2, %v13649_v8, 0.0 }
 0x8ea   : > { %v13655_v54 = vpop.eup %11888 }
 0x8eb   : > { %v2208_v19 = vsel %vm903_vm2, %v13655_v54, 0.0 }
 0x8f7   : > { %11209 = vrot.lane.b32.xlu0 %v13019_v36, %s12599_s13 }
 0x8fb   : > { %2383 = vrot.lane.b32.xlu0 %v12987_v18, %s12599_s13 }
 0x8ff   : > { %2387 = vrot.lane.b32.xlu0 %v13001_v25, %s12599_s13 }
 0x903   : > { %2391 = vrot.lane.b32.xlu0 %v13011_v31, %s12599_s13 }
 0x907   : > { %2395 = vrot.lane.b32.xlu0 %v13021_v37, %s12599_s13 }
 0x90a   : > { %2212 = vadd.xlane.f32.xlu1 %v2211_v13 }
 0x90e   : > { %2209 = vadd.xlane.f32.xlu1 %v2208_v19 }
 0x91f   : > { %2385 = vrot.lane.b32.xlu1 %v12991_v20, %s12599_s13 }
 0x923   : > { %2389 = vrot.lane.b32.xlu1 %v13007_v27, %s12599_s13 }
 0x927   : > { %2393 = vrot.lane.b32.xlu1 %v13017_v33, %s12599_s13 }
 0x92b   : > { %2397 = vrot.lane.b32.xlu1 %v13027_v39, %s12599_s13 }
 0x95d   : > { %v2195_v48 = vpop.xlane.xlu1 %2194 }
 0x95e   : > { %11890 = vrcp.f32 %v2195_v48  ;;  %v2192_v7 = vpop.xlane.xlu0 %2191 }
 0x95f   : > { %11892 = vrcp.f32 %v2192_v7 }
 0x962   : > { %v2201_v57 = vpop.xlane.xlu1 %2200 }
 0x963   : > { %11894 = vrcp.f32 %v2201_v57 }
 0x966   : > { %v2198_v51 = vpop.xlane.xlu0 %2197 }
 0x967   : > { %11896 = vrcp.f32 %v2198_v51 }
 0x968   : > { %v11891_v45 = vpop.eup %11890 }
 0x969   : > { %v11893_v0 = vpop.eup %11892  ;;  %v2223_v40 = vmul.f32 %v11891_v45, %v13611_v50 }
 0x96a   : > { %v2207_v63 = vpop.xlane.xlu0 %2206  ;;  %v2222_v62 = vmul.f32 %v11893_v0, %v13613_v43 }
 0x96b   : > { %11898 = vrcp.f32 %v2207_v63 }
 0x96c   : > { %9576 = vmatprep.mubr.msk.f32.mxu0 %vm903_vm2, %v2222_v62 }
 0x96d   : > { %9577 = vmatmul.mubr.msk.f32.vlgmr.msra.gmra.mrb[32].mxu0 %vm903_vm2, %v2223_v40  ;;  %v11895_v13 = vpop.eup %11894 }
 0x96e   : > { %10493 = vmatpush3.bf16.xpose.msk.msra.mxu0 %vm12995_vm1, %v10488_v3  ;;  %v2204_v23 = vpop.xlane.xlu0 %2203  ;;  %v2225_v7 = vmul.f32 %v11895_v13, %v13619_v32  ;;  %v11215_v3 = vpop.permute.xlu1 %11214 }
 0x96f   : > { %11900 = vrcp.f32 %v2204_v23  ;;  %10496 = vmatprep.subr.msk.bf16.mxu0 %vm12995_vm1, %v10494_v46  ;;  %v11217_v0 = vunpack.i.h.bf16 %v11215_v3 }
 0x971   : > { %v11897_v19 = vpop.eup %11896 }
 0x972   : > { %v11210_v47 = vpop.permute.xlu0 %11209  ;;  %v2224_v43 = vmul.f32 %v11897_v19, %v13623_v9  ;;  %v11216_v9 = vunpack.i.l.bf16 %v11215_v3 }
 0x973   : > { %v11212_v50 = vunpack.i.h.bf16 %v11210_v47  ;;  %v11211_v48 = vunpack.i.l.bf16 %v11210_v47 }
 0x974   : > { %9579 = vmatprep.mubr.msk.f32.mxu0 %vm903_vm2, %v2224_v43  ;;  %v10506_v61 = vpack.c.bf16 %v11217_v0, %v11216_v9 }
 0x975   : > { %v10500_v57 = vpack.c.bf16 %v11212_v50, %v11211_v48  ;;  %9580 = vmatmul.mubr.msk.f32.gmra.mrb[34].mxu0 %vm903_vm2, %v2225_v7  ;;  %v11899_v51 = vpop.eup %11898 }
 0x976   : > { %10499 = vmatpush3.bf16.xpose.msk.msra.mxu0 %vm12995_vm1, %v10494_v46  ;;  %v2227_v32 = vmul.f32 %v11899_v51, %v13627_v17 }
 0x977   : > { %10502 = vmatprep.subr.msk.bf16.mxu0 %vm12995_vm1, %v10500_v57 }
 0x979   : > { %v11901_v45 = vpop.eup %11900 }
 0x97a   : > { %v2226_v26 = vmul.f32 %v11901_v45, %v13631_v2  ;;  %v2384_v2 = vpop.permute.xlu0 %2383 }
 0x97c   : > { %9582 = vmatprep.mubr.msk.f32.mxu0 %vm903_vm2, %v2226_v26 }
 0x97d   : > { %9583 = vmatmul.mubr.msk.f32.gmra.mrb[36].mxu0 %vm903_vm2, %v2227_v32 }
 0x97e   : > { %10505 = vmatpush3.bf16.xpose.msk.msra.mxu0 %vm12995_vm1, %v10500_v57  ;;  %v2388_v19 = vpop.permute.xlu0 %2387 }
 0x97f   : > { %10508 = vmatprep.subr.msk.bf16.mxu0 %vm12995_vm1, %v10506_v61 }
 0x982   : > { %v2392_v43 = vpop.permute.xlu0 %2391 }
 0x986   : > { %10511 = vmatpush3.bf16.xpose.msk.msra.mxu0 %vm12995_vm1, %v10506_v61 }
 0x997   : > { %v2213_v63 = vpop.xlane.xlu1 %2212 }
 0x998   : > { %11902 = vrcp.f32 %v2213_v63 }
 0x99b   : > { %v2210_v62 = vpop.xlane.xlu1 %2209 }
 0x99c   : > { %11904 = vrcp.f32 %v2210_v62 }
 0x99f   : > { %v2386_v46 = vpop.permute.xlu1 %2385 }
 0x9a2   : > { %v11903_v17 = vpop.eup %11902 }
 0x9a3   : > { %v2229_v13 = vmul.f32 %v11903_v17, %v13649_v8  ;;  %v2390_v47 = vpop.permute.xlu1 %2389 }
 0x9a6   : > { %v11905_v40 = vpop.eup %11904 }
 0x9a7   : > { %v2228_v23 = vmul.f32 %v11905_v40, %v13655_v54  ;;  %v2394_v50 = vpop.permute.xlu1 %2393  ;;  %v2396_v54 = vpop.permute.xlu0 %2395 }
 0x9a9   : > { %9585 = vmatprep.mubr.msk.f32.mxu0 %vm903_vm2, %v2228_v23 }
 0x9aa   : > { %9586 = vmatmul.mubr.msk.f32.gmra.mrb[38].mxu0 %vm903_vm2, %v2229_v13 }
 0x9ab   : > { %9604 = vmatprep.mubr.msk.f32.mxu0 %vm741_vm0, %v2384_v2  ;;  %v2398_v8 = vpop.permute.xlu1 %2397 }
 0x9ae   : > { %9605 = vmatmul.mubr.msk.f32.vlgmr.msra.gmra.mrb[40].mxu0 %vm741_vm0, %v2386_v46 }
 0x9af   : > { %9607 = vmatprep.mubr.msk.f32.mxu0 %vm741_vm0, %v2388_v19 }
 0x9b2   : > { %9608 = vmatmul.mubr.msk.f32.gmra.mrb[42].mxu0 %vm741_vm0, %v2390_v47 }
 0x9b3   : > { %9610 = vmatprep.mubr.msk.f32.mxu0 %vm741_vm0, %v2392_v43 }
 0x9b6   : > { %9611 = vmatmul.mubr.msk.f32.gmra.mrb[44].mxu0 %vm741_vm0, %v2394_v50 }
 0x9b7   : > { %9613 = vmatprep.mubr.msk.f32.mxu0 %vm741_vm0, %v2396_v54 }
 0x9ba   : > { %9614 = vmatmul.mubr.msk.f32.gmra.mrb[46].mxu0 %vm741_vm0, %v2398_v8 }
 0xa40   : > { %v13705_v48 = vpop.f32.mrb[32].mxu0 }
 0xa41   : > { %v13707_v7 = vpop.f32.mrb[33].mxu0 }
 0xa48   : > { %v13711_v3 = vpop.f32.mrb[34].mxu0 }
 0xa49   : > { %v13713_v51 = vpop.f32.mrb[35].mxu0 }
 0xa50   : > { %v13717_v0 = vpop.f32.mrb[36].mxu0 }
 0xa51   : > { %15905 = vst [vmem:[#allocation33_spill] sm:$0xff] %v13717_v0  ;;  %v13719_v9 = vpop.f32.mrb[37].mxu0 }
 0xa52   : > { %15906 = vst [vmem:[#allocation34_spill] sm:$0xff] %v13719_v9 }
 0xa7d   : > { %v13723_v32 = vpop.f32.mrb[38].mxu0 }
 0xa7e   : > { %15907 = vst [vmem:[#allocation35_spill] sm:$0xff] %v13723_v32  ;;  %v13725_v61 = vpop.f32.mrb[39].mxu0 }
 0xa7f   : > { %15908 = vst [vmem:[#allocation36_spill] sm:$0xff] %v13725_v61 }
 0xa81   : > { %v9606_v62 = vpop.f32.mrb[40].mxu0 }
 0xa82   : > { %v2553_v2 = vmul.f32 0.25, %v9606_v62  ;;  %v2513_v17 = vpop.f32.mrb[41].mxu0 }
 0xa83   : > { %v2552_v40 = vmul.f32 0.25, %v2513_v17 }
 0xa84   : > { %v2563_v46 = vsel %vm903_vm2, %v2553_v2, -inf }
 0xa85   : > { %2564 = vmax.xlane.f32.xlu1 %v2563_v46  ;;  %v9609_v23 = vpop.f32.mrb[42].mxu0  ;;  %v2560_v13 = vsel %vm903_vm2, %v2552_v40, -inf }
 0xa86   : > { %v2555_v19 = vmul.f32 0.25, %v9609_v23  ;;  %2561 = vmax.xlane.f32.xlu0 %v2560_v13  ;;  %v2523_v47 = vpop.f32.mrb[43].mxu0 }
 0xa87   : > { %v2554_v50 = vmul.f32 0.25, %v2523_v47 }
 0xa88   : > { %v2569_v43 = vsel %vm903_vm2, %v2555_v19, -inf }
 0xa89   : > { %v9612_v54 = vpop.f32.mrb[44].mxu0  ;;  %v2566_v46 = vsel %vm903_vm2, %v2554_v50, -inf }
 0xa8a   : > { %v2557_v8 = vmul.f32 0.25, %v9612_v54  ;;  %2570 = vmax.xlane.f32.xlu0 %v2569_v43  ;;  %v2533_v63 = vpop.f32.mrb[45].mxu0 }
 0xa8b   : > { %v2556_v26 = vmul.f32 0.25, %v2533_v63 }
 0xa8c   : > { %v2575_v62 = vsel %vm903_vm2, %v2557_v8, -inf }
 0xa8d   : > { %2576 = vmax.xlane.f32.xlu1 %v2575_v62  ;;  %v9615_v17 = vpop.f32.mrb[46].mxu0  ;;  %v2572_v47 = vsel %vm903_vm2, %v2556_v26, -inf }
 0xa8e   : > { %v13734_v45 = vmul.f32 0.25, %v9615_v17  ;;  %2567 = vmax.xlane.f32.xlu0 %v2566_v46  ;;  %v2543_v23 = vpop.f32.mrb[47].mxu0 }
 0xa8f   : > { %v13738_v57 = vmul.f32 0.25, %v2543_v23 }
 0xa90   : > { %v2581_v13 = vsel %vm903_vm2, %v13734_v45, -inf }
 0xa91   : > { %2582 = vmax.xlane.f32.xlu1 %v2581_v13  ;;  %v2578_v63 = vsel %vm903_vm2, %v13738_v57, -inf }
 0xa92   : > { %2573 = vmax.xlane.f32.xlu0 %v2572_v47 }
 0xa96   : > { %2579 = vmax.xlane.f32.xlu0 %v2578_v63 }
 0xaa2   : > { %11224 = vrot.lane.b32.xlu1 %v13209_v52, %s12599_s13 }
 0xaa6   : > { %11229 = vrot.lane.b32.xlu1 %v13217_v4, %s12599_s13 }
 0xaaa   : > { %11234 = vrot.lane.b32.xlu1 %v13221_v5, %s12599_s13 }
 0xaac   : > { %11219 = vrot.lane.b32.xlu0 %v13203_v41, %s12599_s13 }
 0xaae   : > { %11244 = vrot.lane.b32.xlu1 %v13009_v30, %s12600_s14 }
 0xab0   : > { %11239 = vrot.lane.b32.xlu0 %v12999_v24, %s12600_s14 }
 0xb12   : > { %v2565_v43 = vpop.xlane.xlu1 %2564 }
 0xb13   : > { %v2585_v54 = vsub.f32 %v2553_v2, %v2565_v43  ;;  %v2562_v62 = vpop.xlane.xlu0 %2561 }
 0xb14   : > { %v2584_v17 = vsub.f32 %v2552_v40, %v2562_v62 }
 0xb15   : > { %v2594_v46 = vmul.f32 1.442695, %v2585_v54 }
 0xb16   : > { %v2592_v23 = vmul.f32 1.442695, %v2584_v17 }
 0xb17   : > { %11906 = vpow2.f32 %v2594_v46  ;;  %v2571_v13 = vpop.xlane.xlu0 %2570 }
 0xb18   : > { %11908 = vpow2.f32 %v2592_v23  ;;  %v2587_v47 = vsub.f32 %v2555_v19, %v2571_v13 }
 0xb1a   : > { %v2598_v63 = vmul.f32 1.442695, %v2587_v47  ;;  %v2577_v49 = vpop.xlane.xlu1 %2576 }
 0xb1b   : > { %v2589_v11 = vsub.f32 %v2557_v8, %v2577_v49  ;;  %v2568_v10 = vpop.xlane.xlu0 %2567 }
 0xb1c   : > { %11910 = vpow2.f32 %v2598_v63  ;;  %v2586_v59 = vsub.f32 %v2554_v50, %v2568_v10 }
 0xb1d   : > { %v2602_v58 = vmul.f32 1.442695, %v2589_v11 }
 0xb1e   : > { %v2596_v55 = vmul.f32 1.442695, %v2586_v59  ;;  %v2583_v61 = vpop.xlane.xlu1 %2582 }
 0xb1f   : > { %v2574_v32 = vpop.xlane.xlu0 %2573 }
 0xb20   : > { %11912 = vpow2.f32 %v2596_v55  ;;  %v2588_v2 = vsub.f32 %v2556_v26, %v2574_v32 }
 0xb21   : > { %v13755_v43 = vpop.eup %11906  ;;  %11914 = vpow2.f32 %v2602_v58 }
 0xb22   : > { %v13757_v40 = vpop.eup %11908  ;;  %v2600_v54 = vmul.f32 1.442695, %v2588_v2  ;;  %v11225_v62 = vpop.permute.xlu1 %11224  ;;  %v2611_v19 = vsel %vm903_vm2, %v13755_v43, 0.0 }
 0xb23   : > { %2612 = vadd.xlane.f32.xlu1 %v2611_v19  ;;  %v2580_v49 = vpop.xlane.xlu0 %2579  ;;  %v2608_v10 = vsel %vm903_vm2, %v13757_v40, 0.0  ;;  %v11227_v58 = vunpack.i.h.bf16 %v11225_v62  ;;  %v11226_v32 = vunpack.i.l.bf16 %v11225_v62 }
 0xb24   : > { %2609 = vadd.xlane.f32.xlu0 %v2608_v10  ;;  %11916 = vpow2.f32 %v2600_v54 }
 0xb25   : > { %v10516_v2 = vpack.c.bf16 %v11227_v58, %v11226_v32 }
 0xb26   : > { %v13763_v59 = vpop.eup %11910  ;;  %v11230_v55 = vpop.permute.xlu1 %11229 }
 0xb27   : > { %v11220_v11 = vpop.permute.xlu0 %11219  ;;  %v2617_v26 = vsel %vm903_vm2, %v13763_v59, 0.0  ;;  %v11232_v47 = vunpack.i.h.bf16 %v11230_v55  ;;  %v11231_v63 = vunpack.i.l.bf16 %v11230_v55 }
 0xb28   : > { %v11222_v50 = vunpack.i.h.bf16 %v11220_v11  ;;  %v11221_v8 = vunpack.i.l.bf16 %v11220_v11  ;;  %2618 = vadd.xlane.f32.xlu1 %v2617_v26 }
 0xb29   : > { %v10520_v26 = vpack.c.bf16 %v11232_v47, %v11231_v63  ;;  %v2590_v63 = vsub.f32 %v13738_v57, %v2580_v49 }
 0xb2a   : > { %v13767_v17 = vpop.eup %11912  ;;  %v10512_v46 = vpack.c.bf16 %v11222_v50, %v11221_v8  ;;  %v11235_v54 = vpop.permute.xlu1 %11234 }
 0xb2b   : > { %v2614_v23 = vsel %vm903_vm2, %v13767_v17, 0.0  ;;  %v13771_v13 = vpop.eup %11914  ;;  %v11237_v10 = vunpack.i.h.bf16 %v11235_v54  ;;  %v11236_v11 = vunpack.i.l.bf16 %v11235_v54  ;;  %v11240_v50 = vpop.permute.xlu0 %11239 }
 0xb2c   : > { %2615 = vadd.xlane.f32.xlu0 %v2614_v23  ;;  %10513 = vmatprep.subr.bf16.mxu1 %v10512_v46  ;;  %v2623_v62 = vsel %vm903_vm2, %v13771_v13, 0.0  ;;  %v11242_v8 = vunpack.i.h.bf16 %v11240_v50  ;;  %v11241_v58 = vunpack.i.l.bf16 %v11240_v50  ;;  %v2591_v23 = vsub.f32 %v13734_v45, %v2583_v61 }
 0xb2d   : > { %10515 = vmatpush3.bf16.msra.mxu1 %v10512_v46  ;;  %v10524_v32 = vpack.c.bf16 %v11237_v10, %v11236_v11 }
 0xb2e   : > { %10517 = vmatprep.subr.bf16.mxu1 %v10516_v2  ;;  %v13775_v19 = vpop.eup %11916  ;;  %v10528_v46 = vpack.c.bf16 %v11242_v8, %v11241_v58  ;;  %v2606_v47 = vmul.f32 1.442695, %v2591_v23  ;;  %v11245_v49 = vpop.permute.xlu1 %11244 }
 0xb2f   : > { %v2620_v55 = vsel %vm903_vm2, %v13775_v19, 0.0  ;;  %v11247_v8 = vunpack.i.h.bf16 %v11245_v49  ;;  %v11246_v58 = vunpack.i.l.bf16 %v11245_v49 }
 0xb30   : > { %2624 = vadd.xlane.f32.xlu0 %v2623_v62  ;;  %11918 = vpow2.f32 %v2606_v47 }
 0xb31   : > { %10519 = vmatpush3.bf16.msra.mxu1 %v10516_v2  ;;  %v2604_v2 = vmul.f32 1.442695, %v2590_v63  ;;  %v10534_v63 = vpack.c.bf16 %v11247_v8, %v11246_v58 }
 0xb32   : > { %10521 = vmatprep.subr.bf16.mxu1 %v10520_v26 }
 0xb33   : > { %11920 = vpow2.f32 %v2604_v2 }
 0xb34   : > { %2621 = vadd.xlane.f32.xlu0 %v2620_v55 }
 0xb35   : > { %10523 = vmatpush3.bf16.msra.mxu1 %v10520_v26 }
 0xb36   : > { %10525 = vmatprep.subr.bf16.mxu1 %v10524_v32 }
 0xb39   : > { %11254 = vrot.lane.b32.xlu1 %v13029_v42, %s12600_s14  ;;  %10527 = vmatpush3.bf16.msra.mxu1 %v10524_v32 }
 0xb3a   : > { %10530 = vmatprep.subr.msk.bf16.mxu1 %vm12995_vm1, %v10528_v46  ;;  %v13793_v54 = vpop.eup %11918 }
 0xb3b   : > { %v2629_v57 = vsel %vm903_vm2, %v13793_v54, 0.0 }
 0xb3d   : > { %v13799_v45 = vpop.eup %11920 }
 0xb3e   : > { %v2626_v61 = vsel %vm903_vm2, %v13799_v45, 0.0 }
 0xb4a   : > { %11249 = vrot.lane.b32.xlu0 %v13019_v36, %s12600_s14 }
 0xb4e   : > { %2801 = vrot.lane.b32.xlu0 %v12987_v18, %s12600_s14 }
 0xb52   : > { %2805 = vrot.lane.b32.xlu0 %v13001_v25, %s12600_s14 }
 0xb56   : > { %2809 = vrot.lane.b32.xlu0 %v13011_v31, %s12600_s14 }
 0xb5a   : > { %2813 = vrot.lane.b32.xlu0 %v13021_v37, %s12600_s14 }
 0xb5d   : > { %2630 = vadd.xlane.f32.xlu1 %v2629_v57 }
 0xb61   : > { %2627 = vadd.xlane.f32.xlu1 %v2626_v61 }
 0xb72   : > { %2803 = vrot.lane.b32.xlu1 %v12991_v20, %s12600_s14 }
 0xb76   : > { %2807 = vrot.lane.b32.xlu1 %v13007_v27, %s12600_s14 }
 0xb7a   : > { %2811 = vrot.lane.b32.xlu1 %v13017_v33, %s12600_s14 }
 0xb7e   : > { %2815 = vrot.lane.b32.xlu1 %v13027_v39, %s12600_s14 }
 0xbb0   : > { %v2613_v62 = vpop.xlane.xlu1 %2612 }
 0xbb1   : > { %11922 = vrcp.f32 %v2613_v62  ;;  %v2610_v10 = vpop.xlane.xlu0 %2609 }
 0xbb2   : > { %11924 = vrcp.f32 %v2610_v10 }
 0xbb5   : > { %v2619_v11 = vpop.xlane.xlu1 %2618 }
 0xbb6   : > { %11926 = vrcp.f32 %v2619_v11 }
 0xbb9   : > { %v2616_v26 = vpop.xlane.xlu0 %2615 }
 0xbba   : > { %11928 = vrcp.f32 %v2616_v26 }
 0xbbb   : > { %v11923_v50 = vpop.eup %11922 }
 0xbbc   : > { %v11925_v55 = vpop.eup %11924  ;;  %v2641_v47 = vmul.f32 %v11923_v50, %v13755_v43 }
 0xbbd   : > { %v2625_v32 = vpop.xlane.xlu0 %2624  ;;  %v2640_v23 = vmul.f32 %v11925_v55, %v13757_v40 }
 0xbbe   : > { %11930 = vrcp.f32 %v2625_v32 }
 0xbbf   : > { %9632 = vmatprep.mubr.msk.f32.mxu1 %vm903_vm2, %v2640_v23 }
 0xbc0   : > { %9633 = vmatmul.mubr.msk.f32.vlgmr.msra.gmra.mrb[48].mxu1 %vm903_vm2, %v2641_v47  ;;  %v11927_v57 = vpop.eup %11926 }
 0xbc1   : > { %10533 = vmatpush3.bf16.xpose.msk.msra.mxu1 %vm12995_vm1, %v10528_v46  ;;  %v2622_v2 = vpop.xlane.xlu0 %2621  ;;  %v2643_v10 = vmul.f32 %v11927_v57, %v13763_v59  ;;  %v11255_v46 = vpop.permute.xlu1 %11254 }
 0xbc2   : > { %11932 = vrcp.f32 %v2622_v2  ;;  %10536 = vmatprep.subr.msk.bf16.mxu1 %vm12995_vm1, %v10534_v63  ;;  %v11257_v55 = vunpack.i.h.bf16 %v11255_v46 }
 0xbc4   : > { %v11929_v61 = vpop.eup %11928 }
 0xbc5   : > { %v11250_v49 = vpop.permute.xlu0 %11249  ;;  %v2642_v40 = vmul.f32 %v11929_v61, %v13767_v17  ;;  %v11256_v17 = vunpack.i.l.bf16 %v11255_v46 }
 0xbc6   : > { %v11252_v43 = vunpack.i.h.bf16 %v11250_v49  ;;  %v11251_v62 = vunpack.i.l.bf16 %v11250_v49 }
 0xbc7   : > { %9635 = vmatprep.mubr.msk.f32.mxu1 %vm903_vm2, %v2642_v40  ;;  %v10546_v58 = vpack.c.bf16 %v11257_v55, %v11256_v17 }
 0xbc8   : > { %v10540_v11 = vpack.c.bf16 %v11252_v43, %v11251_v62  ;;  %9636 = vmatmul.mubr.msk.f32.gmra.mrb[50].mxu1 %vm903_vm2, %v2643_v10  ;;  %v11931_v26 = vpop.eup %11930 }
 0xbc9   : > { %10539 = vmatpush3.bf16.xpose.msk.msra.mxu1 %vm12995_vm1, %v10534_v63  ;;  %v2645_v59 = vmul.f32 %v11931_v26, %v13771_v13 }
 0xbca   : > { %10542 = vmatprep.subr.msk.bf16.mxu1 %vm12995_vm1, %v10540_v11 }
 0xbcc   : > { %v11933_v50 = vpop.eup %11932 }
 0xbcd   : > { %v2644_v8 = vmul.f32 %v11933_v50, %v13775_v19  ;;  %v2802_v19 = vpop.permute.xlu0 %2801 }
 0xbcf   : > { %9638 = vmatprep.mubr.msk.f32.mxu1 %vm903_vm2, %v2644_v8 }
 0xbd0   : > { %9639 = vmatmul.mubr.msk.f32.gmra.mrb[52].mxu1 %vm903_vm2, %v2645_v59 }
 0xbd1   : > { %10545 = vmatpush3.bf16.xpose.msk.msra.mxu1 %vm12995_vm1, %v10540_v11  ;;  %v2806_v61 = vpop.permute.xlu0 %2805 }
 0xbd2   : > { %10548 = vmatprep.subr.msk.bf16.mxu1 %vm12995_vm1, %v10546_v58 }
 0xbd5   : > { %v2810_v40 = vpop.permute.xlu0 %2809 }
 0xbd9   : > { %10551 = vmatpush3.bf16.xpose.msk.msra.mxu1 %vm12995_vm1, %v10546_v58 }
 0xbea   : > { %v2631_v32 = vpop.xlane.xlu1 %2630 }
 0xbeb   : > { %11934 = vrcp.f32 %v2631_v32 }
 0xbee   : > { %v2628_v23 = vpop.xlane.xlu1 %2627 }
 0xbef   : > { %11936 = vrcp.f32 %v2628_v23 }
 0xbf2   : > { %v2804_v63 = vpop.permute.xlu1 %2803 }
 0xbf5   : > { %v11935_v13 = vpop.eup %11934 }
 0xbf6   : > { %v2647_v57 = vmul.f32 %v11935_v13, %v13793_v54  ;;  %v2808_v49 = vpop.permute.xlu1 %2807 }
 0xbf9   : > { %v11937_v47 = vpop.eup %11936 }
 0xbfa   : > { %v2646_v2 = vmul.f32 %v11937_v47, %v13799_v45  ;;  %v2812_v43 = vpop.permute.xlu1 %2811  ;;  %v2814_v45 = vpop.permute.xlu0 %2813 }
 0xbfc   : > { %9641 = vmatprep.mubr.msk.f32.mxu1 %vm903_vm2, %v2646_v2 }
 0xbfd   : > { %9642 = vmatmul.mubr.msk.f32.gmra.mrb[54].mxu1 %vm903_vm2, %v2647_v57 }
 0xbfe   : > { %9660 = vmatprep.mubr.msk.f32.mxu1 %vm741_vm0, %v2802_v19  ;;  %v2816_v54 = vpop.permute.xlu1 %2815 }
 0xc01   : > { %9661 = vmatmul.mubr.msk.f32.vlgmr.msra.gmra.mrb[56].mxu1 %vm741_vm0, %v2804_v63 }
 0xc02   : > { %9663 = vmatprep.mubr.msk.f32.mxu1 %vm741_vm0, %v2806_v61 }
 0xc05   : > { %9664 = vmatmul.mubr.msk.f32.gmra.mrb[58].mxu1 %vm741_vm0, %v2808_v49 }
 0xc06   : > { %9666 = vmatprep.mubr.msk.f32.mxu1 %vm741_vm0, %v2810_v40 }
 0xc09   : > { %9667 = vmatmul.mubr.msk.f32.gmra.mrb[60].mxu1 %vm741_vm0, %v2812_v43 }
 0xc0a   : > { %9669 = vmatprep.mubr.msk.f32.mxu1 %vm741_vm0, %v2814_v45 }
 0xc0d   : > { %9670 = vmatmul.mubr.msk.f32.gmra.mrb[62].mxu1 %vm741_vm0, %v2816_v54 }
 0xc93   : > { %v13849_v62 = vpop.f32.mrb[48].mxu1 }
 0xc94   : > { %v13851_v10 = vpop.f32.mrb[49].mxu1 }
 0xc9b   : > { %v13855_v46 = vpop.f32.mrb[50].mxu1 }
 0xc9c   : > { %v13857_v26 = vpop.f32.mrb[51].mxu1 }
 0xca3   : > { %v13861_v55 = vpop.f32.mrb[52].mxu1 }
 0xca4   : > { %15909 = vst [vmem:[#allocation37_spill] sm:$0xff] %v13861_v55  ;;  %v13863_v17 = vpop.f32.mrb[53].mxu1 }
 0xca5   : > { %15910 = vst [vmem:[#allocation38_spill] sm:$0xff] %v13863_v17 }
 0xcd0   : > { %v13867_v59 = vpop.f32.mrb[54].mxu1 }
 0xcd1   : > { %15911 = vst [vmem:[#allocation39_spill] sm:$0xff] %v13867_v59  ;;  %v13869_v58 = vpop.f32.mrb[55].mxu1 }
 0xcd2   : > { %15912 = vst [vmem:[#allocation40_spill] sm:$0xff] %v13869_v58 }
 0xcd4   : > { %v9662_v23 = vpop.f32.mrb[56].mxu1 }
 0xcd5   : > { %v2971_v19 = vmul.f32 0.25, %v9662_v23  ;;  %v2931_v13 = vpop.f32.mrb[57].mxu1 }
 0xcd6   : > { %v2970_v47 = vmul.f32 0.25, %v2931_v13 }
 0xcd7   : > { %v2981_v63 = vsel %vm903_vm2, %v2971_v19, -inf }
 0xcd8   : > { %2982 = vmax.xlane.f32.xlu1 %v2981_v63  ;;  %v9665_v2 = vpop.f32.mrb[58].mxu1  ;;  %v2978_v57 = vsel %vm903_vm2, %v2970_v47, -inf }
 0xcd9   : > { %v2973_v61 = vmul.f32 0.25, %v9665_v2  ;;  %2979 = vmax.xlane.f32.xlu0 %v2978_v57  ;;  %v2941_v49 = vpop.f32.mrb[59].mxu1 }
 0xcda   : > { %v2972_v43 = vmul.f32 0.25, %v2941_v49 }
 0xcdb   : > { %v2987_v40 = vsel %vm903_vm2, %v2973_v61, -inf }
 0xcdc   : > { %v9668_v45 = vpop.f32.mrb[60].mxu1  ;;  %v2984_v63 = vsel %vm903_vm2, %v2972_v43, -inf }
 0xcdd   : > { %v2975_v54 = vmul.f32 0.25, %v9668_v45  ;;  %2988 = vmax.xlane.f32.xlu0 %v2987_v40  ;;  %v2951_v32 = vpop.f32.mrb[61].mxu1 }
 0xcde   : > { %v2974_v8 = vmul.f32 0.25, %v2951_v32 }
 0xcdf   : > { %v2993_v23 = vsel %vm903_vm2, %v2975_v54, -inf }
 0xce0   : > { %2994 = vmax.xlane.f32.xlu1 %v2993_v23  ;;  %v9671_v13 = vpop.f32.mrb[62].mxu1  ;;  %v2990_v49 = vsel %vm903_vm2, %v2974_v8, -inf }
 0xce1   : > { %v13878_v50 = vmul.f32 0.25, %v9671_v13  ;;  %2985 = vmax.xlane.f32.xlu0 %v2984_v63  ;;  %v2961_v2 = vpop.f32.mrb[63].mxu1 }
 0xce2   : > { %v13882_v11 = vmul.f32 0.25, %v2961_v2 }
 0xce3   : > { %v2999_v57 = vsel %vm903_vm2, %v13878_v50, -inf }
 0xce4   : > { %3000 = vmax.xlane.f32.xlu1 %v2999_v57  ;;  %v2996_v32 = vsel %vm903_vm2, %v13882_v11, -inf }
 0xce5   : > { %2991 = vmax.xlane.f32.xlu0 %v2990_v49 }
 0xce9   : > { %2997 = vmax.xlane.f32.xlu0 %v2996_v32 }
 0xcf5   : > { %11264 = vrot.lane.b32.xlu1 %v13209_v52, %s12600_s14 }
 0xcf9   : > { %11269 = vrot.lane.b32.xlu1 %v13217_v4, %s12600_s14 }
 0xcfd   : > { %11274 = vrot.lane.b32.xlu1 %v13221_v5, %s12600_s14 }
 0xcff   : > { %11259 = vrot.lane.b32.xlu0 %v13203_v41, %s12600_s14 }
 0xd01   : > { %11284 = vrot.lane.b32.xlu1 %v13009_v30, %s12601_s2 }
 0xd03   : > { %11279 = vrot.lane.b32.xlu0 %v12999_v24, %s12601_s2 }
 0xd65   : > { %v2983_v40 = vpop.xlane.xlu1 %2982 }
 0xd66   : > { %v3003_v45 = vsub.f32 %v2971_v19, %v2983_v40  ;;  %v2980_v23 = vpop.xlane.xlu0 %2979 }
 0xd67   : > { %v3002_v13 = vsub.f32 %v2970_v47, %v2980_v23 }
 0xd68   : > { %v3012_v63 = vmul.f32 1.442695, %v3003_v45 }
 0xd69   : > { %v3010_v2 = vmul.f32 1.442695, %v3002_v13 }
 0xd6a   : > { %11938 = vpow2.f32 %v3012_v63  ;;  %v2989_v57 = vpop.xlane.xlu0 %2988 }
 0xd6b   : > { %11940 = vpow2.f32 %v3010_v2  ;;  %v3005_v49 = vsub.f32 %v2973_v61, %v2989_v57 }
 0xd6d   : > { %v3016_v32 = vmul.f32 1.442695, %v3005_v49  ;;  %v2995_v58 = vpop.xlane.xlu1 %2994 }
 0xd6e   : > { %v3007_v59 = vsub.f32 %v2975_v54, %v2995_v58  ;;  %v2986_v6 = vpop.xlane.xlu0 %2985 }
 0xd6f   : > { %11942 = vpow2.f32 %v3016_v32  ;;  %v3004_v28 = vsub.f32 %v2972_v43, %v2986_v6 }
 0xd70   : > { %v3020_v14 = vmul.f32 1.442695, %v3007_v59 }
 0xd71   : > { %v3014_v34 = vmul.f32 1.442695, %v3004_v28  ;;  %v3001_v17 = vpop.xlane.xlu1 %3000 }
 0xd72   : > { %v2992_v55 = vpop.xlane.xlu0 %2991 }
 0xd73   : > { %11944 = vpow2.f32 %v3014_v34  ;;  %v3006_v19 = vsub.f32 %v2974_v8, %v2992_v55 }
 0xd74   : > { %v13899_v40 = vpop.eup %11938  ;;  %11946 = vpow2.f32 %v3020_v14 }
 0xd75   : > { %v13901_v47 = vpop.eup %11940  ;;  %v3018_v45 = vmul.f32 1.442695, %v3006_v19  ;;  %v11265_v23 = vpop.permute.xlu1 %11264  ;;  %v3029_v61 = vsel %vm903_vm2, %v13899_v40, 0.0 }
 0xd76   : > { %3030 = vadd.xlane.f32.xlu1 %v3029_v61  ;;  %v2998_v58 = vpop.xlane.xlu0 %2997  ;;  %v3026_v6 = vsel %vm903_vm2, %v13901_v47, 0.0  ;;  %v11267_v14 = vunpack.i.h.bf16 %v11265_v23  ;;  %v11266_v59 = vunpack.i.l.bf16 %v11265_v23 }
 0xd77   : > { %3027 = vadd.xlane.f32.xlu0 %v3026_v6  ;;  %11948 = vpow2.f32 %v3018_v45 }
 0xd78   : > { %v10556_v19 = vpack.c.bf16 %v11267_v14, %v11266_v59 }
 0xd79   : > { %v13907_v28 = vpop.eup %11942  ;;  %v11270_v34 = vpop.permute.xlu1 %11269 }
 0xd7a   : > { %v11260_v55 = vpop.permute.xlu0 %11259  ;;  %v3035_v8 = vsel %vm903_vm2, %v13907_v28, 0.0  ;;  %v11272_v49 = vunpack.i.h.bf16 %v11270_v34  ;;  %v11271_v32 = vunpack.i.l.bf16 %v11270_v34 }
 0xd7b   : > { %v11262_v43 = vunpack.i.h.bf16 %v11260_v55  ;;  %v11261_v54 = vunpack.i.l.bf16 %v11260_v55  ;;  %3036 = vadd.xlane.f32.xlu1 %v3035_v8 }
 0xd7c   : > { %v10560_v8 = vpack.c.bf16 %v11272_v49, %v11271_v32  ;;  %v3008_v32 = vsub.f32 %v13882_v11, %v2998_v58 }
 0xd7d   : > { %v13911_v13 = vpop.eup %11944  ;;  %v10552_v63 = vpack.c.bf16 %v11262_v43, %v11261_v54  ;;  %v11275_v45 = vpop.permute.xlu1 %11274 }
 0xd7e   : > { %v3032_v2 = vsel %vm903_vm2, %v13911_v13, 0.0  ;;  %v13915_v57 = vpop.eup %11946  ;;  %v11277_v6 = vunpack.i.h.bf16 %v11275_v45  ;;  %v11276_v55 = vunpack.i.l.bf16 %v11275_v45  ;;  %v11280_v43 = vpop.permute.xlu0 %11279 }
 0xd7f   : > { %3033 = vadd.xlane.f32.xlu0 %v3032_v2  ;;  %10553 = vmatprep.subr.bf16.mxu0 %v10552_v63  ;;  %v3041_v23 = vsel %vm903_vm2, %v13915_v57, 0.0  ;;  %v11282_v54 = vunpack.i.h.bf16 %v11280_v43  ;;  %v11281_v14 = vunpack.i.l.bf16 %v11280_v43  ;;  %v3009_v2 = vsub.f32 %v13878_v50, %v3001_v17 }
 0xd80   : > { %10555 = vmatpush3.bf16.msra.mxu0 %v10552_v63  ;;  %v10564_v59 = vpack.c.bf16 %v11277_v6, %v11276_v55 }
 0xd81   : > { %10557 = vmatprep.subr.bf16.mxu0 %v10556_v19  ;;  %v13919_v61 = vpop.eup %11948  ;;  %v10568_v63 = vpack.c.bf16 %v11282_v54, %v11281_v14  ;;  %v3024_v49 = vmul.f32 1.442695, %v3009_v2  ;;  %v11285_v58 = vpop.permute.xlu1 %11284 }
 0xd82   : > { %v3038_v34 = vsel %vm903_vm2, %v13919_v61, 0.0  ;;  %v11287_v54 = vunpack.i.h.bf16 %v11285_v58  ;;  %v11286_v14 = vunpack.i.l.bf16 %v11285_v58 }
 0xd83   : > { %3042 = vadd.xlane.f32.xlu0 %v3041_v23  ;;  %11950 = vpow2.f32 %v3024_v49 }
 0xd84   : > { %10559 = vmatpush3.bf16.msra.mxu0 %v10556_v19  ;;  %v3022_v19 = vmul.f32 1.442695, %v3008_v32  ;;  %v10574_v32 = vpack.c.bf16 %v11287_v54, %v11286_v14 }
 0xd85   : > { %10561 = vmatprep.subr.bf16.mxu0 %v10560_v8 }
 0xd86   : > { %11952 = vpow2.f32 %v3022_v19 }
 0xd87   : > { %3039 = vadd.xlane.f32.xlu0 %v3038_v34 }
 0xd88   : > { %10563 = vmatpush3.bf16.msra.mxu0 %v10560_v8 }
 0xd89   : > { %10565 = vmatprep.subr.bf16.mxu0 %v10564_v59 }
 0xd8c   : > { %11294 = vrot.lane.b32.xlu1 %v13029_v42, %s12601_s2  ;;  %10567 = vmatpush3.bf16.msra.mxu0 %v10564_v59 }
 0xd8d   : > { %10570 = vmatprep.subr.msk.bf16.mxu0 %vm12995_vm1, %v10568_v63  ;;  %v13937_v45 = vpop.eup %11950 }
 0xd8e   : > { %v3047_v11 = vsel %vm903_vm2, %v13937_v45, 0.0 }
 0xd90   : > { %v13943_v50 = vpop.eup %11952 }
 0xd91   : > { %v3044_v17 = vsel %vm903_vm2, %v13943_v50, 0.0 }
 0xd9d   : > { %11289 = vrot.lane.b32.xlu0 %v13019_v36, %s12601_s2 }
 0xda1   : > { %3219 = vrot.lane.b32.xlu0 %v12987_v18, %s12601_s2 }
 0xda5   : > { %3223 = vrot.lane.b32.xlu0 %v13001_v25, %s12601_s2 }
 0xda9   : > { %3227 = vrot.lane.b32.xlu0 %v13011_v31, %s12601_s2 }
 0xdad   : > { %3231 = vrot.lane.b32.xlu0 %v13021_v37, %s12601_s2 }
 0xdb0   : > { %3048 = vadd.xlane.f32.xlu1 %v3047_v11 }
 0xdb4   : > { %3045 = vadd.xlane.f32.xlu1 %v3044_v17 }
 0xdc5   : > { %3221 = vrot.lane.b32.xlu1 %v12991_v20, %s12601_s2 }
 0xdc9   : > { %3225 = vrot.lane.b32.xlu1 %v13007_v27, %s12601_s2 }
 0xdcd   : > { %3229 = vrot.lane.b32.xlu1 %v13017_v33, %s12601_s2 }
 0xdd1   : > { %3233 = vrot.lane.b32.xlu1 %v13027_v39, %s12601_s2 }
 0xe03   : > { %v3031_v23 = vpop.xlane.xlu1 %3030 }
 0xe04   : > { %11954 = vrcp.f32 %v3031_v23  ;;  %v3028_v6 = vpop.xlane.xlu0 %3027 }
 0xe05   : > { %11956 = vrcp.f32 %v3028_v6 }
 0xe08   : > { %v3037_v55 = vpop.xlane.xlu1 %3036 }
 0xe09   : > { %11958 = vrcp.f32 %v3037_v55 }
 0xe0c   : > { %v3034_v8 = vpop.xlane.xlu0 %3033 }
 0xe0d   : > { %11960 = vrcp.f32 %v3034_v8 }
 0xe0e   : > { %v11955_v43 = vpop.eup %11954 }
 0xe0f   : > { %v11957_v34 = vpop.eup %11956  ;;  %v3059_v49 = vmul.f32 %v11955_v43, %v13899_v40 }
 0xe10   : > { %v3043_v59 = vpop.xlane.xlu0 %3042  ;;  %v3058_v2 = vmul.f32 %v11957_v34, %v13901_v47 }
 0xe11   : > { %11962 = vrcp.f32 %v3043_v59 }
 0xe12   : > { %9688 = vmatprep.mubr.msk.f32.mxu0 %vm903_vm2, %v3058_v2 }
 0xe13   : > { %9689 = vmatmul.mubr.msk.f32.vlgmr.msra.gmra.mrb[48].mxu0 %vm903_vm2, %v3059_v49  ;;  %v11959_v11 = vpop.eup %11958 }
 0xe14   : > { %10573 = vmatpush3.bf16.xpose.msk.msra.mxu0 %vm12995_vm1, %v10568_v63  ;;  %v3040_v19 = vpop.xlane.xlu0 %3039  ;;  %v3061_v6 = vmul.f32 %v11959_v11, %v13907_v28  ;;  %v11295_v63 = vpop.permute.xlu1 %11294 }
 0xe15   : > { %11964 = vrcp.f32 %v3040_v19  ;;  %10576 = vmatprep.subr.msk.bf16.mxu0 %vm12995_vm1, %v10574_v32  ;;  %v11297_v34 = vunpack.i.h.bf16 %v11295_v63 }
 0xe17   : > { %v11961_v17 = vpop.eup %11960 }
 0xe18   : > { %v11290_v58 = vpop.permute.xlu0 %11289  ;;  %v3060_v47 = vmul.f32 %v11961_v17, %v13911_v13  ;;  %v11296_v13 = vunpack.i.l.bf16 %v11295_v63 }
 0xe19   : > { %v11292_v40 = vunpack.i.h.bf16 %v11290_v58  ;;  %v11291_v23 = vunpack.i.l.bf16 %v11290_v58 }
 0xe1a   : > { %9691 = vmatprep.mubr.msk.f32.mxu0 %vm903_vm2, %v3060_v47  ;;  %v10586_v14 = vpack.c.bf16 %v11297_v34, %v11296_v13 }
 0xe1b   : > { %v10580_v55 = vpack.c.bf16 %v11292_v40, %v11291_v23  ;;  %9692 = vmatmul.mubr.msk.f32.gmra.mrb[50].mxu0 %vm903_vm2, %v3061_v6  ;;  %v11963_v8 = vpop.eup %11962 }
 0xe1c   : > { %10579 = vmatpush3.bf16.xpose.msk.msra.mxu0 %vm12995_vm1, %v10574_v32  ;;  %v3063_v28 = vmul.f32 %v11963_v8, %v13915_v57 }
 0xe1d   : > { %10582 = vmatprep.subr.msk.bf16.mxu0 %vm12995_vm1, %v10580_v55 }
 0xe1f   : > { %v11965_v43 = vpop.eup %11964 }
 0xe20   : > { %v3062_v54 = vmul.f32 %v11965_v43, %v13919_v61  ;;  %v3220_v61 = vpop.permute.xlu0 %3219 }
 0xe22   : > { %9694 = vmatprep.mubr.msk.f32.mxu0 %vm903_vm2, %v3062_v54 }
 0xe23   : > { %9695 = vmatmul.mubr.msk.f32.gmra.mrb[52].mxu0 %vm903_vm2, %v3063_v28 }
 0xe24   : > { %10585 = vmatpush3.bf16.xpose.msk.msra.mxu0 %vm12995_vm1, %v10580_v55  ;;  %v3224_v17 = vpop.permute.xlu0 %3223 }
 0xe25   : > { %10588 = vmatprep.subr.msk.bf16.mxu0 %vm12995_vm1, %v10586_v14 }
 0xe28   : > { %v3228_v47 = vpop.permute.xlu0 %3227 }
 0xe2c   : > { %10591 = vmatpush3.bf16.xpose.msk.msra.mxu0 %vm12995_vm1, %v10586_v14 }
 0xe3d   : > { %v3049_v59 = vpop.xlane.xlu1 %3048 }
 0xe3e   : > { %11966 = vrcp.f32 %v3049_v59 }
 0xe41   : > { %v3046_v2 = vpop.xlane.xlu1 %3045 }
 0xe42   : > { %11968 = vrcp.f32 %v3046_v2 }
 0xe45   : > { %v3222_v32 = vpop.permute.xlu1 %3221 }
 0xe48   : > { %v11967_v57 = vpop.eup %11966 }
 0xe49   : > { %v3065_v11 = vmul.f32 %v11967_v57, %v13937_v45  ;;  %v3226_v58 = vpop.permute.xlu1 %3225 }
 0xe4c   : > { %v11969_v49 = vpop.eup %11968 }
 0xe4d   : > { %v3064_v19 = vmul.f32 %v11969_v49, %v13943_v50  ;;  %v3230_v40 = vpop.permute.xlu1 %3229  ;;  %v3232_v50 = vpop.permute.xlu0 %3231 }
 0xe4f   : > { %9697 = vmatprep.mubr.msk.f32.mxu0 %vm903_vm2, %v3064_v19 }
 0xe50   : > { %9698 = vmatmul.mubr.msk.f32.gmra.mrb[54].mxu0 %vm903_vm2, %v3065_v11 }
 0xe51   : > { %9716 = vmatprep.mubr.msk.f32.mxu0 %vm741_vm0, %v3220_v61  ;;  %v3234_v45 = vpop.permute.xlu1 %3233 }
 0xe54   : > { %9717 = vmatmul.mubr.msk.f32.vlgmr.msra.gmra.mrb[56].mxu0 %vm741_vm0, %v3222_v32 }
 0xe55   : > { %9719 = vmatprep.mubr.msk.f32.mxu0 %vm741_vm0, %v3224_v17 }
 0xe58   : > { %9720 = vmatmul.mubr.msk.f32.gmra.mrb[58].mxu0 %vm741_vm0, %v3226_v58 }
 0xe59   : > { %9722 = vmatprep.mubr.msk.f32.mxu0 %vm741_vm0, %v3228_v47 }
 0xe5c   : > { %9723 = vmatmul.mubr.msk.f32.gmra.mrb[60].mxu0 %vm741_vm0, %v3230_v40 }
 0xe5d   : > { %9725 = vmatprep.mubr.msk.f32.mxu0 %vm741_vm0, %v3232_v50 }
 0xe60   : > { %9726 = vmatmul.mubr.msk.f32.gmra.mrb[62].mxu0 %vm741_vm0, %v3234_v45 }
 0xee6   : > { %v13993_v23 = vpop.f32.mrb[48].mxu0 }
 0xee7   : > { %v13995_v6 = vpop.f32.mrb[49].mxu0 }
 0xeee   : > { %v13999_v63 = vpop.f32.mrb[50].mxu0 }
 0xeef   : > { %v14001_v8 = vpop.f32.mrb[51].mxu0 }
 0xef6   : > { %v14005_v34 = vpop.f32.mrb[52].mxu0 }
 0xef7   : > { %15913 = vst [vmem:[#allocation41_spill] sm:$0xff] %v14005_v34  ;;  %v14007_v13 = vpop.f32.mrb[53].mxu0 }
 0xef8   : > { %15914 = vst [vmem:[#allocation42_spill] sm:$0xff] %v14007_v13 }
 0xf23   : > { %v14011_v28 = vpop.f32.mrb[54].mxu0 }
 0xf24   : > { %15915 = vst [vmem:[#allocation43_spill] sm:$0xff] %v14011_v28  ;;  %v14013_v14 = vpop.f32.mrb[55].mxu0 }
 0xf25   : > { %15916 = vst [vmem:[#allocation44_spill] sm:$0xff] %v14013_v14 }
 0xf27   : > { %v9718_v2 = vpop.f32.mrb[56].mxu0 }
 0xf28   : > { %v3389_v61 = vmul.f32 0.25, %v9718_v2  ;;  %v3349_v57 = vpop.f32.mrb[57].mxu0 }
 0xf29   : > { %v3388_v49 = vmul.f32 0.25, %v3349_v57 }
 0xf2a   : > { %v3399_v32 = vsel %vm903_vm2, %v3389_v61, -inf }
 0xf2b   : > { %3400 = vmax.xlane.f32.xlu1 %v3399_v32  ;;  %v9721_v19 = vpop.f32.mrb[58].mxu0  ;;  %v3396_v11 = vsel %vm903_vm2, %v3388_v49, -inf }
 0xf2c   : > { %v3391_v17 = vmul.f32 0.25, %v9721_v19  ;;  %3397 = vmax.xlane.f32.xlu0 %v3396_v11  ;;  %v3359_v58 = vpop.f32.mrb[59].mxu0 }
 0xf2d   : > { %v3390_v40 = vmul.f32 0.25, %v3359_v58 }
 0xf2e   : > { %v3405_v47 = vsel %vm903_vm2, %v3391_v17, -inf }
 0xf2f   : > { %v9724_v50 = vpop.f32.mrb[60].mxu0  ;;  %v3402_v32 = vsel %vm903_vm2, %v3390_v40, -inf }
 0xf30   : > { %v3393_v45 = vmul.f32 0.25, %v9724_v50  ;;  %3406 = vmax.xlane.f32.xlu0 %v3405_v47  ;;  %v3369_v59 = vpop.f32.mrb[61].mxu0 }
 0xf31   : > { %v3392_v54 = vmul.f32 0.25, %v3369_v59 }
 0xf32   : > { %v3411_v2 = vsel %vm903_vm2, %v3393_v45, -inf }
 0xf33   : > { %3412 = vmax.xlane.f32.xlu1 %v3411_v2  ;;  %v9727_v57 = vpop.f32.mrb[62].mxu0  ;;  %v3408_v58 = vsel %vm903_vm2, %v3392_v54, -inf }
 0xf34   : > { %v14022_v43 = vmul.f32 0.25, %v9727_v57  ;;  %3403 = vmax.xlane.f32.xlu0 %v3402_v32  ;;  %v3379_v19 = vpop.f32.mrb[63].mxu0 }
 0xf35   : > { %v14026_v55 = vmul.f32 0.25, %v3379_v19 }
 0xf36   : > { %v3417_v11 = vsel %vm903_vm2, %v14022_v43, -inf }
 0xf37   : > { %3418 = vmax.xlane.f32.xlu1 %v3417_v11  ;;  %v3414_v59 = vsel %vm903_vm2, %v14026_v55, -inf }
 0xf38   : > { %3409 = vmax.xlane.f32.xlu0 %v3408_v58 }
 0xf3c   : > { %3415 = vmax.xlane.f32.xlu0 %v3414_v59 }
 0xf48   : > { %11304 = vrot.lane.b32.xlu1 %v13209_v52, %s12601_s2 }
 0xf4c   : > { %11309 = vrot.lane.b32.xlu1 %v13217_v4, %s12601_s2 }
 0xf50   : > { %11314 = vrot.lane.b32.xlu1 %v13221_v5, %s12601_s2 }
 0xf52   : > { %11299 = vrot.lane.b32.xlu0 %v13203_v41, %s12601_s2 }
 0xf54   : > { %11324 = vrot.lane.b32.xlu1 %v13009_v30, %s12602_s26 }
 0xf56   : > { %11319 = vrot.lane.b32.xlu0 %v12999_v24, %s12602_s26 }
 0xfb8   : > { %v3401_v47 = vpop.xlane.xlu1 %3400 }
 0xfb9   : > { %v3421_v50 = vsub.f32 %v3389_v61, %v3401_v47  ;;  %v3398_v2 = vpop.xlane.xlu0 %3397 }
 0xfba   : > { %v3420_v57 = vsub.f32 %v3388_v49, %v3398_v2 }
 0xfbb   : > { %v3430_v32 = vmul.f32 1.442695, %v3421_v50 }
 0xfbc   : > { %v3428_v19 = vmul.f32 1.442695, %v3420_v57 }
 0xfbd   : > { %11970 = vpow2.f32 %v3430_v32  ;;  %v3407_v11 = vpop.xlane.xlu0 %3406 }
 0xfbe   : > { %11972 = vpow2.f32 %v3428_v19  ;;  %v3423_v58 = vsub.f32 %v3391_v17, %v3407_v11 }
 0xfc0   : > { %v3434_v59 = vmul.f32 1.442695, %v3423_v58  ;;  %v3413_v14 = vpop.xlane.xlu1 %3412 }
 0xfc1   : > { %v3425_v28 = vsub.f32 %v3393_v45, %v3413_v14  ;;  %v3404_v13 = vpop.xlane.xlu0 %3403 }
 0xfc2   : > { %11974 = vpow2.f32 %v3434_v59  ;;  %v3422_v34 = vsub.f32 %v3390_v40, %v3404_v13 }
 0xfc3   : > { %v3438_v30 = vmul.f32 1.442695, %v3425_v28 }
 0xfc4   : > { %v3432_v9 = vmul.f32 1.442695, %v3422_v34  ;;  %v3419_v0 = vpop.xlane.xlu1 %3418 }
 0xfc5   : > { %v3410_v24 = vpop.xlane.xlu0 %3409 }
 0xfc6   : > { %11976 = vpow2.f32 %v3432_v9  ;;  %v3424_v61 = vsub.f32 %v3392_v54, %v3410_v24 }
 0xfc7   : > { %v14043_v47 = vpop.eup %11970  ;;  %11978 = vpow2.f32 %v3438_v30 }
 0xfc8   : > { %v14045_v49 = vpop.eup %11972  ;;  %v3436_v50 = vmul.f32 1.442695, %v3424_v61  ;;  %v11305_v2 = vpop.permute.xlu1 %11304  ;;  %v3447_v17 = vsel %vm903_vm2, %v14043_v47, 0.0 }
 0xfc9   : > { %3448 = vadd.xlane.f32.xlu1 %v3447_v17  ;;  %v3416_v14 = vpop.xlane.xlu0 %3415  ;;  %v3444_v13 = vsel %vm903_vm2, %v14045_v49, 0.0  ;;  %v11307_v40 = vunpack.i.h.bf16 %v11305_v2  ;;  %v11306_v45 = vunpack.i.l.bf16 %v11305_v2 }
 0xfca   : > { %3445 = vadd.xlane.f32.xlu0 %v3444_v13  ;;  %11980 = vpow2.f32 %v3436_v50 }
 0xfcb   : > { %v10596_v61 = vpack.c.bf16 %v11307_v40, %v11306_v45 }
 0xfcc   : > { %v14051_v34 = vpop.eup %11974  ;;  %v11310_v9 = vpop.permute.xlu1 %11309 }
 0xfcd   : > { %v11300_v54 = vpop.permute.xlu0 %11299  ;;  %v3453_v28 = vsel %vm903_vm2, %v14051_v34, 0.0  ;;  %v11312_v30 = vunpack.i.h.bf16 %v11310_v9  ;;  %v11311_v24 = vunpack.i.l.bf16 %v11310_v9 }
 0xfce   : > { %v11302_v57 = vunpack.i.h.bf16 %v11300_v54  ;;  %v11301_v32 = vunpack.i.l.bf16 %v11300_v54  ;;  %3454 = vadd.xlane.f32.xlu1 %v3453_v28 }
 0xfcf   : > { %v10600_v28 = vpack.c.bf16 %v11312_v30, %v11311_v24  ;;  %v3426_v24 = vsub.f32 %v14026_v55, %v3416_v14 }
 0xfd0   : > { %v14055_v19 = vpop.eup %11976  ;;  %v10592_v11 = vpack.c.bf16 %v11302_v57, %v11301_v32  ;;  %v11315_v50 = vpop.permute.xlu1 %11314 }
 0xfd1   : > { %v3450_v58 = vsel %vm903_vm2, %v14055_v19, 0.0  ;;  %v14059_v59 = vpop.eup %11978  ;;  %v11317_v13 = vunpack.i.h.bf16 %v11315_v50  ;;  %v11316_v54 = vunpack.i.l.bf16 %v11315_v50  ;;  %v11320_v57 = vpop.permute.xlu0 %11319 }
 0xfd2   : > { %3451 = vadd.xlane.f32.xlu0 %v3450_v58  ;;  %10593 = vmatprep.subr.bf16.mxu1 %v10592_v11  ;;  %v3459_v2 = vsel %vm903_vm2, %v14059_v59, 0.0  ;;  %v11322_v32 = vunpack.i.h.bf16 %v11320_v57  ;;  %v11321_v40 = vunpack.i.l.bf16 %v11320_v57  ;;  %v3427_v58 = vsub.f32 %v14022_v43, %v3419_v0 }
 0xfd3   : > { %10595 = vmatpush3.bf16.msra.mxu1 %v10592_v11  ;;  %v10604_v45 = vpack.c.bf16 %v11317_v13, %v11316_v54 }
 0xfd4   : > { %10597 = vmatprep.subr.bf16.mxu1 %v10596_v61  ;;  %v14063_v17 = vpop.eup %11980  ;;  %v10608_v11 = vpack.c.bf16 %v11322_v32, %v11321_v40  ;;  %v3442_v30 = vmul.f32 1.442695, %v3427_v58 }
 0xfd5   : > { %v3456_v9 = vsel %vm903_vm2, %v14063_v17, 0.0 }
 0xfd6   : > { %3460 = vadd.xlane.f32.xlu0 %v3459_v2  ;;  %11982 = vpow2.f32 %v3442_v30 }
 0xfd7   : > { %10599 = vmatpush3.bf16.msra.mxu1 %v10596_v61  ;;  %v3440_v61 = vmul.f32 1.442695, %v3426_v24 }
 0xfd8   : > { %10601 = vmatprep.subr.bf16.mxu1 %v10600_v28 }
 0xfd9   : > { %11984 = vpow2.f32 %v3440_v61 }
 0xfda   : > { %3457 = vadd.xlane.f32.xlu0 %v3456_v9 }
 0xfdb   : > { %10603 = vmatpush3.bf16.msra.mxu1 %v10600_v28 }
 0xfdc   : > { %10605 = vmatprep.subr.bf16.mxu1 %v10604_v45 }
 0xfdf   : > { %11334 = vrot.lane.b32.xlu1 %v13029_v42, %s12602_s26  ;;  %10607 = vmatpush3.bf16.msra.mxu1 %v10604_v45 }
 0xfe0   : > { %10610 = vmatprep.subr.msk.bf16.mxu1 %vm12995_vm1, %v10608_v11  ;;  %v14081_v42 = vpop.eup %11982 }
 0xfe3   : > { %v14087_v0 = vpop.eup %11984 }
 0xff0   : > { %11329 = vrot.lane.b32.xlu0 %v13019_v36, %s12602_s26  ;;  %v3465_v36 = vsel %vm903_vm2, %v14081_v42, 0.0 }
 0xff4   : > { %3637 = vrot.lane.b32.xlu0 %v12987_v18, %s12602_s26  ;;  %v3462_v18 = vsel %vm903_vm2, %v14087_v0, 0.0 }
 0xff8   : > { %3641 = vrot.lane.b32.xlu0 %v13001_v25, %s12602_s26  ;;  %v11325_v25 = vpop.permute.xlu1 %11324 }
 0xff9   : > { %v11327_v50 = vunpack.i.h.bf16 %v11325_v25  ;;  %v11326_v2 = vunpack.i.l.bf16 %v11325_v25 }
 0xffc   : > { %3645 = vrot.lane.b32.xlu0 %v13011_v31, %s12602_s26 }
0x1000   : > { %3649 = vrot.lane.b32.xlu0 %v13021_v37, %s12602_s26 }
0x1003   : > { %3466 = vadd.xlane.f32.xlu1 %v3465_v36 }
0x1007   : > { %3463 = vadd.xlane.f32.xlu1 %v3462_v18 }
0x1018   : > { %3639 = vrot.lane.b32.xlu1 %v12991_v20, %s12602_s26 }
0x101c   : > { %3643 = vrot.lane.b32.xlu1 %v13007_v27, %s12602_s26 }
0x1020   : > { %3647 = vrot.lane.b32.xlu1 %v13017_v33, %s12602_s26 }
0x1024   : > { %3651 = vrot.lane.b32.xlu1 %v13027_v39, %s12602_s26  ;;  %v10614_v39 = vpack.c.bf16 %v11327_v50, %v11326_v2 }
0x1056   : > { %v3449_v31 = vpop.xlane.xlu1 %3448 }
0x1057   : > { %11986 = vrcp.f32 %v3449_v31  ;;  %v3446_v37 = vpop.xlane.xlu0 %3445 }
0x1058   : > { %11988 = vrcp.f32 %v3446_v37 }
0x105b   : > { %v3455_v55 = vpop.xlane.xlu1 %3454 }
0x105c   : > { %11990 = vrcp.f32 %v3455_v55 }
0x105f   : > { %v3452_v43 = vpop.xlane.xlu0 %3451 }
0x1060   : > { %11992 = vrcp.f32 %v3452_v43 }
0x1061   : > { %v11987_v14 = vpop.eup %11986 }
0x1062   : > { %v11989_v20 = vpop.eup %11988  ;;  %v3477_v33 = vmul.f32 %v11987_v14, %v14043_v47 }
0x1063   : > { %v3461_v27 = vpop.xlane.xlu0 %3460  ;;  %v3476_v13 = vmul.f32 %v11989_v20, %v14045_v49 }
0x1064   : > { %11994 = vrcp.f32 %v3461_v27  ;;  %v12290_v27 = vld [vmem:[%s12945_s19] sm:$0xff] }
0x1065   : > { %9744 = vmatprep.mubr.msk.f32.mxu1 %vm903_vm2, %v3476_v13 }
0x1066   : > { %9745 = vmatmul.mubr.msk.f32.vlgmr.msra.gmra.mrb[64].mxu1 %vm903_vm2, %v3477_v33  ;;  %v11991_v28 = vpop.eup %11990 }
0x1067   : > { %10613 = vmatpush3.bf16.xpose.msk.msra.mxu1 %vm12995_vm1, %v10608_v11  ;;  %v3458_v54 = vpop.xlane.xlu0 %3457  ;;  %v3479_v40 = vmul.f32 %v11991_v28, %v14051_v34  ;;  %v11335_v11 = vpop.permute.xlu1 %11334 }
0x1068   : > { %11996 = vrcp.f32 %v3458_v54  ;;  %10616 = vmatprep.subr.msk.bf16.mxu1 %vm12995_vm1, %v10614_v39  ;;  %v11337_v24 = vunpack.i.h.bf16 %v11335_v11 }
0x106a   : > { %v11993_v57 = vpop.eup %11992 }
0x106b   : > { %v11330_v9 = vpop.permute.xlu0 %11329  ;;  %v3478_v49 = vmul.f32 %v11993_v57, %v14055_v19  ;;  %v11336_v19 = vunpack.i.l.bf16 %v11335_v11 }
0x106c   : > { %v11332_v47 = vunpack.i.h.bf16 %v11330_v9  ;;  %v11331_v32 = vunpack.i.l.bf16 %v11330_v9 }
0x106d   : > { %9747 = vmatprep.mubr.msk.f32.mxu1 %vm903_vm2, %v3478_v49  ;;  %v10626_v36 = vpack.c.bf16 %v11337_v24, %v11336_v19 }
0x106e   : > { %v10620_v45 = vpack.c.bf16 %v11332_v47, %v11331_v32  ;;  %9748 = vmatmul.mubr.msk.f32.gmra.mrb[66].mxu1 %vm903_vm2, %v3479_v40  ;;  %v11995_v58 = vpop.eup %11994 }
0x106f   : > { %10619 = vmatpush3.bf16.xpose.msk.msra.mxu1 %vm12995_vm1, %v10614_v39  ;;  %v3481_v34 = vmul.f32 %v11995_v58, %v14059_v59 }
0x1070   : > { %10622 = vmatprep.subr.msk.bf16.mxu1 %vm12995_vm1, %v10620_v45 }
0x1072   : > { %v11997_v30 = vpop.eup %11996 }
0x1073   : > { %v3480_v61 = vmul.f32 %v11997_v30, %v14063_v17  ;;  %v3638_v17 = vpop.permute.xlu0 %3637 }
0x1075   : > { %9750 = vmatprep.mubr.msk.f32.mxu1 %vm903_vm2, %v3480_v61 }
0x1076   : > { %9751 = vmatmul.mubr.msk.f32.gmra.mrb[68].mxu1 %vm903_vm2, %v3481_v34 }
0x1077   : > { %10625 = vmatpush3.bf16.xpose.msk.msra.mxu1 %vm12995_vm1, %v10620_v45  ;;  %v3642_v14 = vpop.permute.xlu0 %3641 }
0x1078   : > { %10628 = vmatprep.subr.msk.bf16.mxu1 %vm12995_vm1, %v10626_v36 }
0x107b   : > { %v3646_v50 = vpop.permute.xlu0 %3645 }
0x107f   : > { %10631 = vmatpush3.bf16.xpose.msk.msra.mxu1 %vm12995_vm1, %v10626_v36 }
0x1090   : > { %v3467_v18 = vpop.xlane.xlu1 %3466 }
0x1091   : > { %11998 = vrcp.f32 %v3467_v18 }
0x1094   : > { %v3464_v25 = vpop.xlane.xlu1 %3463 }
0x1095   : > { %12000 = vrcp.f32 %v3464_v25 }
0x1098   : > { %v3640_v37 = vpop.permute.xlu1 %3639 }
0x109b   : > { %v11999_v59 = vpop.eup %11998 }
0x109c   : > { %v3483_v43 = vmul.f32 %v11999_v59, %v14081_v42  ;;  %v3644_v20 = vpop.permute.xlu1 %3643  ;;  %v3650_v42 = vpop.permute.xlu0 %3649 }
0x109f   : > { %v12001_v31 = vpop.eup %12000 }
0x10a0   : > { %v3482_v55 = vmul.f32 %v12001_v31, %v14087_v0  ;;  %v3648_v2 = vpop.permute.xlu1 %3647 }
0x10a2   : > { %9753 = vmatprep.mubr.msk.f32.mxu1 %vm903_vm2, %v3482_v55 }
0x10a3   : > { %9754 = vmatmul.mubr.msk.f32.gmra.mrb[70].mxu1 %vm903_vm2, %v3483_v43 }
0x10a4   : > { %9772 = vmatprep.mubr.msk.f32.mxu1 %vm741_vm0, %v3638_v17  ;;  %v3652_v0 = vpop.permute.xlu1 %3651 }
0x10a7   : > { %9773 = vmatmul.mubr.msk.f32.vlgmr.msra.gmra.mrb[72].mxu1 %vm741_vm0, %v3640_v37 }
0x10a8   : > { %9775 = vmatprep.mubr.msk.f32.mxu1 %vm741_vm0, %v3642_v14 }
0x10ab   : > { %9776 = vmatmul.mubr.msk.f32.gmra.mrb[74].mxu1 %vm741_vm0, %v3644_v20 }
0x10ac   : > { %9778 = vmatprep.mubr.msk.f32.mxu1 %vm741_vm0, %v3646_v50 }
0x10af   : > { %9779 = vmatmul.mubr.msk.f32.gmra.mrb[76].mxu1 %vm741_vm0, %v3648_v2 }
0x10b0   : > { %9781 = vmatprep.mubr.msk.f32.mxu1 %vm741_vm0, %v3650_v42 }
0x10b3   : > { %9782 = vmatmul.mubr.msk.f32.gmra.mrb[78].mxu1 %vm741_vm0, %v3652_v0 }
0x10b4   : > { %9888 = vmatprep.mubr.f32.mxu1 %v12290_v27 }
0x1139   : > { %v14138_v13 = vpop.f32.mrb[64].mxu1 }
0x113a   : > { %v14140_v33 = vpop.f32.mrb[65].mxu1 }
0x113b   : > { %v11383_v39 = vpack.i.bf16 %v14138_v13, %v14140_v33  ;;  %v15929_v13 = vld [vmem:[#allocation33_spill] sm:$0xff]  ;;  %v15930_v33 = vld [vmem:[#allocation34_spill] sm:$0xff] }
0x1141   : > { %v14144_v54 = vpop.f32.mrb[66].mxu1 }
0x1142   : > { %v14146_v28 = vpop.f32.mrb[67].mxu1 }
0x1143   : > { %v11428_v57 = vpack.i.bf16 %v14144_v54, %v14146_v28  ;;  %v4474_v28 = vld [vmem:[#allocation10 + $0x30] sm:$0xff] }
0x1149   : > { %v14150_v9 = vpop.f32.mrb[68].mxu1 }
0x114a   : > { %v14152_v49 = vpop.f32.mrb[69].mxu1 }
0x114b   : > { %v11458_v47 = vpack.i.bf16 %v14150_v9, %v14152_v49 }
0x1176   : > { %v14156_v32 = vpop.f32.mrb[70].mxu1 }
0x1177   : > { %v14158_v40 = vpop.f32.mrb[71].mxu1 }
0x1178   : > { %v11483_v45 = vpack.i.bf16 %v14156_v32, %v14158_v40  ;;  %v12297_v32 = vld [vmem:[%s12945_s19 + $0x38] sm:$0xff] }
0x117a   : > { %v9774_v11 = vpop.f32.mrb[72].mxu1 }
0x117b   : > { %v3807_v58 = vmul.f32 0.25, %v9774_v11  ;;  %v3767_v30 = vpop.f32.mrb[73].mxu1 }
0x117c   : > { %v3806_v24 = vmul.f32 0.25, %v3767_v30 }
0x117d   : > { %v3817_v19 = vsel %vm903_vm2, %v3807_v58, -inf }
0x117e   : > { %3818 = vmax.xlane.f32.xlu1 %v3817_v19  ;;  %v9777_v61 = vpop.f32.mrb[74].mxu1  ;;  %v3814_v34 = vsel %vm903_vm2, %v3806_v24, -inf }
0x117f   : > { %v3809_v36 = vmul.f32 0.25, %v9777_v61  ;;  %3815 = vmax.xlane.f32.xlu0 %v3814_v34  ;;  %v3777_v18 = vpop.f32.mrb[75].mxu1 }
0x1180   : > { %v14165_v17 = vmul.f32 0.25, %v3777_v18 }
0x1181   : > { %v3823_v25 = vsel %vm903_vm2, %v3809_v36, -inf }
0x1182   : > { %v9780_v59 = vpop.f32.mrb[76].mxu1  ;;  %v3820_v20 = vsel %vm903_vm2, %v14165_v17, -inf }
0x1183   : > { %v14167_v31 = vmul.f32 0.25, %v9780_v59  ;;  %3824 = vmax.xlane.f32.xlu0 %v3823_v25  ;;  %v3787_v37 = vpop.f32.mrb[77].mxu1 }
0x1184   : > { %v14171_v43 = vmul.f32 0.25, %v3787_v37 }
0x1185   : > { %v3829_v55 = vsel %vm903_vm2, %v14167_v31, -inf }
0x1186   : > { %3830 = vmax.xlane.f32.xlu1 %v3829_v55  ;;  %v9783_v14 = vpop.f32.mrb[78].mxu1  ;;  %v3826_v27 = vsel %vm903_vm2, %v14171_v43, -inf }
0x1187   : > { %v14175_v50 = vmul.f32 0.25, %v9783_v14  ;;  %3821 = vmax.xlane.f32.xlu0 %v3820_v20  ;;  %v3797_v2 = vpop.f32.mrb[79].mxu1 }
0x1188   : > { %v14179_v0 = vmul.f32 0.25, %v3797_v2 }
0x1189   : > { %v3835_v42 = vsel %vm903_vm2, %v14175_v50, -inf }
0x118a   : > { %3836 = vmax.xlane.f32.xlu1 %v3835_v42  ;;  %v3832_v11 = vsel %vm903_vm2, %v14179_v0, -inf }
0x118b   : > { %3827 = vmax.xlane.f32.xlu0 %v3826_v27 }
0x118f   : > { %3833 = vmax.xlane.f32.xlu0 %v3832_v11 }
0x119b   : > { %11344 = vrot.lane.b32.xlu1 %v13209_v52, %s12602_s26 }
0x11a5   : > { %11339 = vrot.lane.b32.xlu0 %v13203_v41, %s12602_s26 }
0x120b   : > { %v3819_v30 = vpop.xlane.xlu1 %3818 }
0x120c   : > { %v3839_v19 = vsub.f32 %v3807_v58, %v3819_v30  ;;  %v3816_v61 = vpop.xlane.xlu0 %3815 }
0x120d   : > { %v3838_v34 = vsub.f32 %v3806_v24, %v3816_v61 }
0x120e   : > { %v3848_v18 = vmul.f32 1.442695, %v3839_v19 }
0x120f   : > { %v3846_v25 = vmul.f32 1.442695, %v3838_v34 }
0x1210   : > { %12002 = vpow2.f32 %v3848_v18  ;;  %v3825_v59 = vpop.xlane.xlu0 %3824 }
0x1211   : > { %12004 = vpow2.f32 %v3846_v25  ;;  %v3841_v37 = vsub.f32 %v3809_v36, %v3825_v59 }
0x1213   : > { %v3852_v55 = vmul.f32 1.442695, %v3841_v37  ;;  %v3831_v14 = vpop.xlane.xlu1 %3830 }
0x1214   : > { %v3822_v20 = vpop.xlane.xlu0 %3821 }
0x1215   : > { %12006 = vpow2.f32 %v3852_v55  ;;  %v3840_v55 = vsub.f32 %v14165_v17, %v3822_v20  ;;  %v15920_v17 = vpack.i.bf16 %v13993_v23, %v13995_v6  ;;  %v15925_v20 = vpack.i.bf16 %v13543_v53, %v13545_v29  ;;  %v15932_v29 = vld [vmem:[#allocation37_spill] sm:$0xff] }
0x1216   : > { %v15931_v53 = vpack.i.bf16 %v15929_v13, %v15930_v33  ;;  %v4349_v13 = vld [vmem:[#allocation8 + $0x48] sm:$0xff] }
0x1217   : > { %v3837_v2 = vpop.xlane.xlu1 %3836 }
0x1218   : > { %v3828_v42 = vpop.xlane.xlu0 %3827 }
0x121a   : > { %v14189_v52 = vpop.eup %12002 }
0x121b   : > { %v14191_v27 = vpop.eup %12004  ;;  %v3865_v41 = vsel %vm903_vm2, %v14189_v52, 0.0  ;;  %v11345_v36 = vpop.permute.xlu1 %11344 }
0x121c   : > { %3866 = vadd.xlane.f32.xlu1 %v3865_v41  ;;  %v3834_v58 = vpop.xlane.xlu0 %3833  ;;  %v3862_v24 = vsel %vm903_vm2, %v14191_v27, 0.0  ;;  %v11347_v61 = vunpack.i.h.bf16 %v11345_v36  ;;  %v11346_v34 = vunpack.i.l.bf16 %v11345_v36  ;;  %v15917_v41 = vpack.i.bf16 %v13561_v35, %v13563_v12 }
0x121d   : > { %3863 = vadd.xlane.f32.xlu0 %v3862_v24  ;;  %v3843_v24 = vsub.f32 %v14167_v31, %v3831_v14  ;;  %v3850_v36 = vmul.f32 1.442695, %v3840_v55  ;;  %v3844_v12 = vsub.f32 %v14179_v0, %v3834_v58  ;;  %v15921_v31 = vpack.i.bf16 %v13567_v16, %v13569_v60 }
0x121e   : > { %v10636_v37 = vpack.c.bf16 %v11347_v61, %v11346_v34  ;;  %v15923_v16 = vpack.i.bf16 %v13999_v63, %v14001_v8  ;;  %v15924_v8 = vpack.i.bf16 %v13537_v38, %v13539_v15  ;;  %v15927_v38 = vpack.i.bf16 %v13549_v1, %v13551_v21  ;;  %v15938_v21 = vld [vmem:[#allocation43_spill] sm:$0xff] }
0x121f   : > { %v14197_v11 = vpop.eup %12006  ;;  %12008 = vpow2.f32 %v3850_v36  ;;  %v15928_v15 = vpack.i.bf16 %v13573_v56, %v13575_v44  ;;  %v15939_v56 = vld [vmem:[#allocation44_spill] sm:$0xff] }
0x1220   : > { %v11340_v30 = vpop.permute.xlu0 %11339  ;;  %v3871_v19 = vsel %vm903_vm2, %v14197_v11, 0.0  ;;  %v15940_v44 = vpack.i.bf16 %v15938_v21, %v15939_v56  ;;  %v4355_v21 = vld [vmem:[#allocation8 + $0x78] sm:$0xff] }
0x1221   : > { %v11342_v18 = vunpack.i.h.bf16 %v11340_v30  ;;  %v11341_v25 = vunpack.i.l.bf16 %v11340_v30  ;;  %3872 = vadd.xlane.f32.xlu0 %v3871_v19  ;;  %v15918_v30 = vpack.i.bf16 %v13705_v48, %v13707_v7  ;;  %v3856_v19 = vmul.f32 1.442695, %v3843_v24 }
0x1222   : > { %v3845_v48 = vsub.f32 %v14175_v50, %v3837_v2  ;;  %v3858_v7 = vmul.f32 1.442695, %v3844_v12  ;;  %v15926_v2 = vpack.i.bf16 %v13711_v3, %v13713_v51  ;;  %v15935_v51 = vld [vmem:[#allocation41_spill] sm:$0xff] }
0x1223   : > { %v10632_v59 = vpack.c.bf16 %v11342_v18, %v11341_v25  ;;  %12010 = vpow2.f32 %v3856_v19 }
0x1225   : > { %10633 = vmatprep.subr.bf16.mxu0 %v10632_v59 }
0x1226   : > { %10635 = vmatpush3.bf16.msra.mxu0 %v10632_v59 }
0x1227   : > { %10637 = vmatprep.subr.bf16.mxu0 %v10636_v37 }
0x122a   : > { %10639 = vmatpush3.bf16.msra.mxu0 %v10636_v37 }
0x122d   : > { %11349 = vrot.lane.b32.xlu1 %v13217_v4, %s12602_s26  ;;  %v3842_v4 = vsub.f32 %v14171_v43, %v3828_v42  ;;  %v15922_v43 = vpack.i.bf16 %v13855_v46, %v13857_v26  ;;  %v15936_v42 = vld [vmem:[#allocation42_spill] sm:$0xff] }
0x122e   : > { %v15937_v1 = vpack.i.bf16 %v15935_v51, %v15936_v42  ;;  %v4353_v51 = vld [vmem:[#allocation8 + $0x68] sm:$0xff] }
0x122f   : > { %v3854_v35 = vmul.f32 1.442695, %v3842_v4 }
0x1231   : > { %12012 = vpow2.f32 %v3854_v35 }
0x1232   : > { %12014 = vpow2.f32 %v3858_v7 }
0x1237   : > { %11354 = vrot.lane.b32.xlu0 %v13221_v5, %s12602_s26  ;;  %v15919_v5 = vpack.i.bf16 %v13849_v62, %v13851_v10  ;;  %v14230_v62 = vpop.eup %12008  ;;  %v3860_v10 = vmul.f32 1.442695, %v3845_v48 }
0x1238   : > { %v3868_v23 = vsel %vm903_vm2, %v14230_v62, 0.0  ;;  %v14238_v6 = vpop.eup %12010 }
0x1239   : > { %12016 = vpow2.f32 %v3860_v10  ;;  %v3877_v60 = vsel %vm903_vm2, %v14238_v6, 0.0 }
0x123b   : > { %11364 = vrot.lane.b32.xlu0 %v15917_v41, %s12601_s2  ;;  %v14246_v50 = vpop.eup %12012 }
0x123c   : > { %v3874_v46 = vsel %vm903_vm2, %v14246_v50, 0.0  ;;  %v14250_v26 = vpop.eup %12014 }
0x123d   : > { %v3880_v0 = vsel %vm903_vm2, %v14250_v26, 0.0 }
0x123f   : > { %11369 = vrot.lane.b32.xlu0 %v15918_v30, %s12600_s14 }
0x1243   : > { %11374 = vrot.lane.b32.xlu0 %v15919_v5, %s12599_s13  ;;  %v14254_v14 = vpop.eup %12016 }
0x1244   : > { %v3883_v63 = vsel %vm903_vm2, %v14254_v14, 0.0 }
0x1247   : > { %11379 = vrot.lane.b32.xlu0 %v15920_v17, %s12598_s29 }
0x124b   : > { %11394 = vrot.lane.b32.xlu0 %v15921_v31, %s12601_s2 }
0x124f   : > { %11404 = vrot.lane.b32.xlu0 %v15922_v43, %s12599_s13 }
0x1251   : > { %3869 = vadd.xlane.f32.xlu1 %v3868_v23 }
0x1253   : > { %11414 = vrot.lane.b32.xlu0 %v15923_v16, %s12598_s29 }
0x1255   : > { %3878 = vadd.xlane.f32.xlu1 %v3877_v60  ;;  %v4340_v60 = vld [vmem:[#allocation8] sm:$0xff] }
0x1259   : > { %3875 = vadd.xlane.f32.xlu1 %v3874_v46  ;;  %v4341_v46 = vld [vmem:[#allocation8 + $0x8] sm:$0xff] }
0x125d   : > { %3881 = vadd.xlane.f32.xlu1 %v3880_v0  ;;  %v4342_v0 = vld [vmem:[#allocation8 + $0x10] sm:$0xff] }
0x1261   : > { %3884 = vadd.xlane.f32.xlu1 %v3883_v63  ;;  %v4343_v63 = vld [vmem:[#allocation8 + $0x18] sm:$0xff] }
0x1272   : > { %11359 = vrot.lane.b32.xlu1 %v15924_v8, %s12602_s26  ;;  %v4344_v8 = vld [vmem:[#allocation8 + $0x20] sm:$0xff] }
0x1276   : > { %11384 = vrot.lane.b32.xlu1 %v11383_v39, %s12597_s23  ;;  %v15933_v39 = vld [vmem:[#allocation38_spill] sm:$0xff] }
0x1277   : > { %v15934_v3 = vpack.i.bf16 %v15932_v29, %v15933_v39  ;;  %v4351_v29 = vld [vmem:[#allocation8 + $0x58] sm:$0xff] }
0x127a   : > { %11389 = vrot.lane.b32.xlu1 %v15925_v20, %s12602_s26  ;;  %v4345_v20 = vld [vmem:[#allocation8 + $0x28] sm:$0xff] }
0x127e   : > { %11399 = vrot.lane.b32.xlu1 %v15926_v2, %s12600_s14  ;;  %v10656_v2 = vpack.c.bf16 %v4345_v20, %v4344_v8  ;;  %v15950_v8 = vld [vmem:[#allocation39_spill] sm:$0xff]  ;;  %v15951_v20 = vld [vmem:[#allocation40_spill] sm:$0xff] }
0x1282   : > { %11409 = vrot.lane.b32.xlu1 %v15927_v38, %s12602_s26  ;;  %v4347_v38 = vld [vmem:[#allocation8 + $0x38] sm:$0xff] }
0x1286   : > { %11419 = vrot.lane.b32.xlu1 %v15928_v15, %s12601_s2 }
0x128a   : > { %11434 = vrot.lane.b32.xlu1 %v15931_v53, %s12600_s14  ;;  %v4350_v53 = vld [vmem:[#allocation8 + $0x50] sm:$0xff] }
0x128b   : > { %v10668_v39 = vpack.c.bf16 %v4351_v29, %v4350_v53  ;;  %v12293_v53 = vld [vmem:[%s12945_s19 + $0x18] sm:$0xff] }
0x128e   : > { %11439 = vrot.lane.b32.xlu1 %v15934_v3, %s12599_s13  ;;  %v4352_v3 = vld [vmem:[#allocation8 + $0x60] sm:$0xff] }
0x128f   : > { %v10672_v42 = vpack.c.bf16 %v4353_v51, %v4352_v3  ;;  %v12295_v51 = vld [vmem:[%s12945_s19 + $0x28] sm:$0xff] }
0x1292   : > { %11449 = vrot.lane.b32.xlu1 %v15937_v1, %s12598_s29  ;;  %v4354_v1 = vld [vmem:[#allocation8 + $0x70] sm:$0xff] }
0x1293   : > { %v10676_v56 = vpack.c.bf16 %v4355_v21, %v4354_v1 }
0x1296   : > { %11459 = vrot.lane.b32.xlu1 %v11458_v47, %s12597_s23 }
0x129a   : > { %11479 = vrot.lane.b32.xlu1 %v15940_v44, %s12598_s29 }
0x12a9   : > { %v3867_v58 = vpop.xlane.xlu1 %3866 }
0x12aa   : > { %v3864_v61 = vpop.xlane.xlu0 %3863 }
0x12ab   : > { %12018 = vrcp.f32 %v3864_v61 }
0x12ac   : > { %12020 = vrcp.f32 %v3867_v58 }
0x12ad   : > { %v11350_v34 = vpop.permute.xlu1 %11349 }
0x12ae   : > { %v11352_v18 = vunpack.i.h.bf16 %v11350_v34  ;;  %v11351_v25 = vunpack.i.l.bf16 %v11350_v34  ;;  %v3873_v59 = vpop.xlane.xlu0 %3872  ;;  %v4468_v34 = vld [vmem:[#allocation10] sm:$0xff] }
0x12af   : > { %12022 = vrcp.f32 %v3873_v59 }
0x12b0   : > { %v10640_v37 = vpack.c.bf16 %v11352_v18, %v11351_v25  ;;  %v4469_v18 = vld [vmem:[#allocation10 + $0x8] sm:$0xff]  ;;  %v4470_v25 = vld [vmem:[#allocation10 + $0x10] sm:$0xff] }
0x12b1   : > { %v10680_v59 = vpack.c.bf16 %v4469_v18, %v4468_v34  ;;  %v15953_v34 = vld [vmem:[#allocation21_spill] sm:$0xff] }
0x12b2   : > { %v11355_v55 = vpop.permute.xlu0 %11354  ;;  %10641 = vmatprep.subr.bf16.mxu0 %v10640_v37 }
0x12b3   : > { %v11357_v41 = vunpack.i.h.bf16 %v11355_v55  ;;  %v11356_v24 = vunpack.i.l.bf16 %v11355_v55  ;;  %10643 = vmatpush3.bf16.msra.mxu0 %v10640_v37  ;;  %v4471_v37 = vld [vmem:[#allocation10 + $0x18] sm:$0xff]  ;;  %v4590_v55 = vld [vmem:[#allocation11 + $0x8] sm:$0xff]  ;;  %10681 = vmatprep.subr.bf16.mxu1 %v10680_v59 }
0x12b4   : > { %10683 = vmatpush3.bf16.msra.mxu1 %v10680_v59 }
0x12b5   : > { %v12019_v9 = vpop.eup %12018  ;;  %v10644_v49 = vpack.c.bf16 %v11357_v41, %v11356_v24  ;;  %v4592_v41 = vld [vmem:[#allocation11 + $0x18] sm:$0xff]  ;;  %v10684_v24 = vpack.c.bf16 %v4471_v37, %v4470_v25  ;;  %v15954_v25 = vld [vmem:[#allocation22_spill] sm:$0xff] }
0x12b6   : > { %v12021_v47 = vpop.eup %12020  ;;  %v3894_v36 = vmul.f32 %v12019_v9, %v14191_v27  ;;  %v10712_v9 = vpack.c.bf16 %v4592_v41, %v4590_v55  ;;  %v11365_v40 = vpop.permute.xlu0 %11364 }
0x12b7   : > { %10645 = vmatprep.subr.bf16.mxu0 %v10644_v49  ;;  %v3895_v30 = vmul.f32 %v12021_v47, %v14189_v52  ;;  %v15941_v47 = vld [vmem:[#allocation29_spill] sm:$0xff]  ;;  %10685 = vmatprep.subr.bf16.mxu1 %v10684_v24  ;;  %v11367_v37 = vunpack.i.h.bf16 %v11365_v40  ;;  %v11366_v55 = vunpack.i.l.bf16 %v11365_v40  ;;  %v4608_v40 = vld [vmem:[#allocation11 + $0x98] sm:$0xff] }
0x12b8   : > { %10647 = vmatpush3.bf16.msra.mxu0 %v10644_v49  ;;  %9800 = vmatprep.mubr.msk.f32.mxu0 %vm903_vm2, %v3894_v36  ;;  %v4472_v49 = vld [vmem:[#allocation10 + $0x20] sm:$0xff]  ;;  %v15942_v36 = vld [vmem:[#allocation30_spill] sm:$0xff] }
0x12b9   : > { %v12023_v35 = vpop.eup %12022  ;;  %10687 = vmatpush3.bf16.msra.mxu1 %v10684_v24 }
0x12ba   : > { %v3897_v48 = vmul.f32 %v12023_v35, %v14197_v11 }
0x12bb   : > { %9801 = vmatmul.mubr.msk.f32.vlgmr.msra.gmra.mrb[64].mxu0 %vm903_vm2, %v3895_v30  ;;  %v15943_v30 = vpack.i.bf16 %v15941_v47, %v15942_v36 }
0x12de   : > { %v3870_v19 = vpop.xlane.xlu1 %3869 }
0x12df   : > { %12024 = vrcp.f32 %v3870_v19  ;;  %v4473_v19 = vld [vmem:[#allocation10 + $0x28] sm:$0xff] }
0x12e0   : > { %v10688_v54 = vpack.c.bf16 %v4473_v19, %v4472_v49 }
0x12e2   : > { %v3879_v4 = vpop.xlane.xlu1 %3878  ;;  %10689 = vmatprep.subr.bf16.mxu1 %v10688_v54 }
0x12e3   : > { %12026 = vrcp.f32 %v3879_v4  ;;  %v15944_v4 = vld [vmem:[#allocation31_spill] sm:$0xff]  ;;  %10691 = vmatpush3.bf16.msra.mxu1 %v10688_v54 }
0x12e6   : > { %v3876_v5 = vpop.xlane.xlu1 %3875 }
0x12e7   : > { %12028 = vrcp.f32 %v3876_v5  ;;  %v15945_v5 = vld [vmem:[#allocation32_spill] sm:$0xff] }
0x12e8   : > { %v15946_v35 = vpack.i.bf16 %v15944_v4, %v15945_v5 }
0x12e9   : > { %v12025_v12 = vpop.eup %12024 }
0x12ea   : > { %v3882_v17 = vpop.xlane.xlu1 %3881  ;;  %v3896_v27 = vmul.f32 %v12025_v12, %v14230_v62 }
0x12eb   : > { %12030 = vrcp.f32 %v3882_v17  ;;  %v15947_v17 = vld [vmem:[#allocation35_spill] sm:$0xff] }
0x12ec   : > { %9803 = vmatprep.mubr.msk.f32.mxu0 %vm903_vm2, %v3896_v27  ;;  %v15948_v27 = vld [vmem:[#allocation36_spill] sm:$0xff] }
0x12ed   : > { %9804 = vmatmul.mubr.msk.f32.gmra.mrb[66].mxu0 %vm903_vm2, %v3897_v48  ;;  %v12027_v7 = vpop.eup %12026  ;;  %v15949_v48 = vpack.i.bf16 %v15947_v17, %v15948_v27 }
0x12ee   : > { %v3885_v52 = vpop.xlane.xlu1 %3884  ;;  %v3899_v43 = vmul.f32 %v12027_v7, %v14238_v6  ;;  %v10652_v6 = vpack.c.bf16 %v4343_v63, %v4342_v0  ;;  %v4477_v7 = vld [vmem:[#allocation10 + $0x48] sm:$0xff]  ;;  %v4483_v63 = vld [vmem:[#allocation10 + $0x78] sm:$0xff] }
0x12ef   : > { %12032 = vrcp.f32 %v3885_v52  ;;  %v4476_v52 = vld [vmem:[#allocation10 + $0x40] sm:$0xff] }
0x12f1   : > { %v12029_v31 = vpop.eup %12028 }
0x12f2   : > { %v3898_v10 = vmul.f32 %v12029_v31, %v14246_v50  ;;  %v10648_v50 = vpack.c.bf16 %v4341_v46, %v4340_v60  ;;  %v10696_v31 = vpack.c.bf16 %v4477_v7, %v4476_v52  ;;  %v4589_v7 = vld [vmem:[#allocation11] sm:$0xff] }
0x12f4   : > { %9806 = vmatprep.mubr.msk.f32.mxu0 %vm903_vm2, %v3898_v10  ;;  %10649 = vmatprep.subr.bf16.mxu0 %v10648_v50  ;;  %v4478_v10 = vld [vmem:[#allocation10 + $0x50] sm:$0xff] }
0x12f5   : > { %v12031_v23 = vpop.eup %12030  ;;  %9807 = vmatmul.mubr.msk.f32.gmra.mrb[68].mxu0 %vm903_vm2, %v3899_v43  ;;  %v4479_v43 = vld [vmem:[#allocation10 + $0x58] sm:$0xff] }
0x12f6   : > { %v3900_v62 = vmul.f32 %v12031_v23, %v14250_v26  ;;  %10651 = vmatpush3.bf16.msra.mxu0 %v10648_v50  ;;  %v4346_v26 = vld [vmem:[#allocation8 + $0x30] sm:$0xff]  ;;  %v10700_v23 = vpack.c.bf16 %v4479_v43, %v4478_v10  ;;  %v4594_v43 = vld [vmem:[#allocation11 + $0x28] sm:$0xff] }
0x12f7   : > { %10653 = vmatprep.subr.bf16.mxu0 %v10652_v6  ;;  %v10660_v15 = vpack.c.bf16 %v4347_v38, %v4346_v26  ;;  %v4482_v50 = vld [vmem:[#allocation10 + $0x70] sm:$0xff] }
0x12f8   : > { %9809 = vmatprep.mubr.msk.f32.mxu0 %vm903_vm2, %v3900_v62 }
0x12f9   : > { %v12033_v11 = vpop.eup %12032 }
0x12fa   : > { %v3901_v16 = vmul.f32 %v12033_v11, %v14254_v14  ;;  %10655 = vmatpush3.bf16.msra.mxu0 %v10652_v6  ;;  %v4348_v14 = vld [vmem:[#allocation8 + $0x40] sm:$0xff]  ;;  %v10708_v6 = vpack.c.bf16 %v4483_v63, %v4482_v50 }
0x12fb   : > { %10657 = vmatprep.subr.bf16.mxu0 %v10656_v2  ;;  %v10664_v33 = vpack.c.bf16 %v4349_v13, %v4348_v14  ;;  %v4480_v11 = vld [vmem:[#allocation10 + $0x60] sm:$0xff]  ;;  %v12291_v14 = vld [vmem:[%s12945_s19 + $0x8] sm:$0xff]  ;;  %v12292_v13 = vld [vmem:[%s12945_s19 + $0x10] sm:$0xff] }
0x12fc   : > { %9810 = vmatmul.mubr.msk.f32.gmra.mrb[70].mxu0 %vm903_vm2, %v3901_v16  ;;  %v4481_v16 = vld [vmem:[#allocation10 + $0x68] sm:$0xff] }
0x12fd   : > { %v10704_v46 = vpack.c.bf16 %v4481_v16, %v4480_v11 }
0x12fe   : > { %10659 = vmatpush3.bf16.msra.mxu0 %v10656_v2  ;;  %v15952_v2 = vpack.i.bf16 %v15950_v8, %v15951_v20  ;;  %v4595_v8 = vld [vmem:[#allocation11 + $0x30] sm:$0xff]  ;;  %v4598_v20 = vld [vmem:[#allocation11 + $0x48] sm:$0xff] }
0x12ff   : > { %10661 = vmatprep.subr.bf16.mxu0 %v10660_v15 }
0x1302   : > { %10663 = vmatpush3.bf16.msra.mxu0 %v10660_v15 }
0x1303   : > { %10665 = vmatprep.subr.bf16.mxu0 %v10664_v33 }
0x1306   : > { %10667 = vmatpush3.bf16.msra.mxu0 %v10664_v33 }
0x1307   : > { %10669 = vmatprep.subr.bf16.mxu0 %v10668_v39 }
0x130a   : > { %10671 = vmatpush3.bf16.msra.mxu0 %v10668_v39  ;;  %v12294_v39 = vld [vmem:[%s12945_s19 + $0x20] sm:$0xff] }
0x130b   : > { %10673 = vmatprep.subr.bf16.mxu0 %v10672_v42 }
0x130e   : > { %10675 = vmatpush3.bf16.msra.mxu0 %v10672_v42  ;;  %v12296_v42 = vld [vmem:[%s12945_s19 + $0x30] sm:$0xff]  ;;  %s8248_s19 = sshll.u32 %s462_s20, 4  ;;  %s15741_s19 = int_to_ptr.vmem [resolvable:$true] %s8248_s19 }
0x130f   : > { %10677 = vmatprep.subr.bf16.mxu0 %v10676_v56 }
0x1312   : > { %10679 = vmatpush3.bf16.msra.mxu0 %v10676_v56  ;;  %v11360_v56 = vpop.permute.xlu1 %11359 }
0x1313   : > { %10713 = vmatprep.subr.bf16.mxu0 %v10712_v9 }
0x138e   : > { %v9802_v44 = vpop.f32.mrb[64].mxu0 }
0x138f   : > { %v4016_v58 = vpop.f32.mrb[65].mxu0 }
0x1390   : > { %v11423_v61 = vpack.i.bf16 %v9802_v44, %v4016_v58  ;;  %v11362_v44 = vunpack.i.h.bf16 %v11360_v56  ;;  %v11361_v58 = vunpack.i.l.bf16 %v11360_v56  ;;  %v4607_v56 = vld [vmem:[#allocation11 + $0x90] sm:$0xff] }
0x1392   : > { %11424 = vrot.lane.b32.xlu0 %v11423_v61, %s12596_s28  ;;  %v4280_v18 = vsel %vm741_vm0, %v15953_v34, %v11362_v44  ;;  %v4279_v59 = vsel %vm741_vm0, %v15954_v25, %v11361_v58  ;;  %v4610_v44 = vld [vmem:[#allocation11 + $0xa8] sm:$0xff]  ;;  %v4612_v58 = vld [vmem:[#allocation11 + $0xb8] sm:$0xff] }
0x1393   : > { %v4288_v24 = vsel %vm4287_vm3, %v4279_v59, %v11366_v55  ;;  %v4289_v9 = vsel %vm4287_vm3, %v4280_v18, %v11367_v37  ;;  %v10732_v25 = vpack.c.bf16 %v4612_v58, %v4610_v44  ;;  %v4609_v59 = vld [vmem:[#allocation11 + $0xa0] sm:$0xff]  ;;  %v4611_v37 = vld [vmem:[#allocation11 + $0xb0] sm:$0xff]  ;;  %v4614_v55 = vld [vmem:[#allocation11 + $0xc8] sm:$0xff] }
0x1394   : > { %v15958_v58 = vld [vmem:[#allocation26_spill] sm:$0xff] }
0x1396   : > { %11429 = vrot.lane.b32.xlu0 %v11428_v57, %s12597_s23  ;;  %v4475_v57 = vld [vmem:[#allocation10 + $0x38] sm:$0xff] }
0x1397   : > { %v10692_v12 = vpack.c.bf16 %v4475_v57, %v4474_v28  ;;  %v11385_v28 = vpop.permute.xlu1 %11384 }
0x1398   : > { %v11387_v17 = vunpack.i.h.bf16 %v11385_v28  ;;  %v11386_v27 = vunpack.i.l.bf16 %v11385_v28 }
0x1399   : > { %10693 = vmatprep.subr.bf16.mxu1 %v10692_v12 }
0x139a   : > { %11444 = vrot.lane.b32.xlu0 %v15943_v30, %s12602_s26  ;;  %10695 = vmatpush3.bf16.msra.mxu1 %v10692_v12 }
0x139b   : > { %10697 = vmatprep.subr.bf16.mxu1 %v10696_v31 }
0x139e   : > { %11454 = vrot.lane.b32.xlu0 %v15946_v35, %s12601_s2  ;;  %10699 = vmatpush3.bf16.msra.mxu1 %v10696_v31  ;;  %v4591_v31 = vld [vmem:[#allocation11 + $0x10] sm:$0xff] }
0x139f   : > { %10701 = vmatprep.subr.bf16.mxu1 %v10700_v23 }
0x13a2   : > { %11464 = vrot.lane.b32.xlu0 %v15949_v48, %s12600_s14  ;;  %10703 = vmatpush3.bf16.msra.mxu1 %v10700_v23  ;;  %v4596_v23 = vld [vmem:[#allocation11 + $0x38] sm:$0xff] }
0x13a3   : > { %10705 = vmatprep.subr.bf16.mxu1 %v10704_v46  ;;  %v10716_v63 = vpack.c.bf16 %v4596_v23, %v4594_v43  ;;  %v15956_v23 = vld [vmem:[#allocation24_spill] sm:$0xff] }
0x13a6   : > { %10707 = vmatpush3.bf16.msra.mxu1 %v10704_v46  ;;  %v10714_v46 = vpack.c.bf16 %v4591_v31, %v4589_v7 }
0x13a7   : > { %10709 = vmatprep.subr.bf16.mxu1 %v10708_v6 }
0x13aa   : > { %10711 = vmatpush3.bf16.msra.mxu1 %v10708_v6  ;;  %v4593_v6 = vld [vmem:[#allocation11 + $0x20] sm:$0xff] }
0x13ad   : > { %9889 = vmatmul.mubr.f32.vlgmr.msra.gmra.mrb[80].mxu1 %v12291_v14  ;;  %v4597_v14 = vld [vmem:[#allocation11 + $0x40] sm:$0xff] }
0x13ae   : > { %9891 = vmatprep.mubr.f32.mxu1 %v12292_v13  ;;  %v4599_v13 = vld [vmem:[#allocation11 + $0x50] sm:$0xff] }
0x13b1   : > { %9892 = vmatmul.mubr.f32.gmra.mrb[82].mxu1 %v12293_v53  ;;  %v4604_v53 = vld [vmem:[#allocation11 + $0x78] sm:$0xff] }
0x13b2   : > { %9894 = vmatprep.mubr.f32.mxu1 %v12294_v39 }
0x13b5   : > { %9895 = vmatmul.mubr.f32.gmra.mrb[84].mxu1 %v12295_v51  ;;  %v4603_v51 = vld [vmem:[#allocation11 + $0x70] sm:$0xff] }
0x13b6   : > { %9897 = vmatprep.mubr.f32.mxu1 %v12296_v42 }
0x13b9   : > { %9898 = vmatmul.mubr.f32.gmra.mrb[86].mxu1 %v12297_v32  ;;  %v4606_v32 = vld [vmem:[#allocation11 + $0x88] sm:$0xff] }
0x13c0   : > { %v9805_v62 = vpop.f32.mrb[66].mxu0 }
0x13c1   : > { %v4026_v60 = vpop.f32.mrb[67].mxu0 }
0x13c2   : > { %v11468_v0 = vpack.i.bf16 %v9805_v62, %v4026_v60 }
0x13c4   : > { %11469 = vrot.lane.b32.xlu0 %v11468_v0, %s12596_s28 }
0x13c8   : > { %11474 = vrot.lane.b32.xlu0 %v15952_v2, %s12599_s13  ;;  %v9808_v26 = vpop.f32.mrb[68].mxu0  ;;  %v4600_v2 = vld [vmem:[#allocation11 + $0x58] sm:$0xff] }
0x13c9   : > { %v4036_v38 = vpop.f32.mrb[69].mxu0 }
0x13ca   : > { %v11488_v15 = vpack.i.bf16 %v9808_v26, %v4036_v38  ;;  %v14375_v26 = vpop.permute.xlu1 %11389  ;;  %v10718_v38 = vpack.c.bf16 %v4595_v8, %v4593_v6 }
0x13cb   : > { %v11391_v7 = vunpack.i.l.bf16 %v14375_v26 }
0x13cc   : > { %11484 = vrot.lane.b32.xlu0 %v11483_v45, %s12597_s23  ;;  %11489 = vrot.lane.b32.xlu1 %v11488_v15, %s12596_s28  ;;  %v11370_v45 = vpop.permute.xlu0 %11369  ;;  %v10720_v15 = vpack.c.bf16 %v4600_v2, %v4598_v20 }
0x13cd   : > { %v11372_v49 = vunpack.i.h.bf16 %v11370_v45  ;;  %v11371_v47 = vunpack.i.l.bf16 %v11370_v45 }
0x13ce   : > { %v11400_v42 = vpop.permute.xlu1 %11399 }
0x13cf   : > { %v9811_v33 = vpop.f32.mrb[70].mxu0  ;;  %v4298_v36 = vsel %vm4296_vm4, %v4289_v9, %v11372_v49  ;;  %v4297_v30 = vsel %vm4296_vm4, %v4288_v24, %v11371_v47  ;;  %v4616_v24 = vld [vmem:[#allocation11 + $0xd8] sm:$0xff]  ;;  %v10734_v9 = vpack.c.bf16 %v4611_v37, %v4609_v59  ;;  %v4613_v47 = vld [vmem:[#allocation11 + $0xc0] sm:$0xff] }
0x13d0   : > { %v4046_v29 = vpop.f32.mrb[71].mxu0  ;;  %v11375_v1 = vpop.permute.xlu0 %11374  ;;  %v10736_v49 = vpack.c.bf16 %v4616_v24, %v4614_v55 }
0x13d1   : > { %v11493_v3 = vpack.i.bf16 %v9811_v33, %v4046_v29  ;;  %v11377_v19 = vunpack.i.h.bf16 %v11375_v1  ;;  %v11376_v54 = vunpack.i.l.bf16 %v11375_v1  ;;  %v4602_v33 = vld [vmem:[#allocation11 + $0x68] sm:$0xff]  ;;  %v10722_v29 = vpack.c.bf16 %v4599_v13, %v4597_v14 }
0x13d2   : > { %v10724_v39 = vpack.c.bf16 %v4604_v53, %v4602_v33  ;;  %v10728_v1 = vpack.c.bf16 %v4608_v40, %v4606_v32  ;;  %v14377_v34 = vpop.permute.xlu1 %11409 }
0x13d3   : > { %11494 = vrot.lane.b32.xlu1 %v11493_v3, %s12596_s28  ;;  %v4305_v4 = vsel %vm903_vm2, %v4297_v30, %v11376_v54  ;;  %v4306_v5 = vsel %vm903_vm2, %v4298_v36, %v11377_v19  ;;  %v4601_v3 = vld [vmem:[#allocation11 + $0x60] sm:$0xff]  ;;  %v4615_v36 = vld [vmem:[#allocation11 + $0xd0] sm:$0xff]  ;;  %v4618_v19 = vld [vmem:[#allocation11 + $0xe8] sm:$0xff]  ;;  %v11412_v33 = vunpack.i.h.bf16 %v14377_v34  ;;  %v11411_v53 = vunpack.i.l.bf16 %v14377_v34 }
0x13d4   : > { %v11380_v21 = vpop.permute.xlu0 %11379  ;;  %v10726_v45 = vpack.c.bf16 %v4603_v51, %v4601_v3  ;;  %v4620_v54 = vld [vmem:[#allocation11 + $0xf8] sm:$0xff]  ;;  %v10738_v28 = vpack.c.bf16 %v4615_v36, %v4613_v47 }
0x13d5   : > { %v11382_v35 = vunpack.i.h.bf16 %v11380_v21  ;;  %v11381_v12 = vunpack.i.l.bf16 %v11380_v21  ;;  %v4605_v21 = vld [vmem:[#allocation11 + $0x80] sm:$0xff]  ;;  %v4283_v34 = vsel %vm741_vm0, %v15958_v58, %v11411_v53  ;;  %v472_v58 = vld [vmem:[%s12953_s9 + $0x8] sm:$0xff] }
0x13d6   : > { %v10730_v18 = vpack.c.bf16 %v4607_v56, %v4605_v21  ;;  %v14379_v30 = vpop.permute.xlu1 %11419  ;;  %v15957_v56 = vld [vmem:[#allocation25_spill] sm:$0xff] }
0x13d7   : > { %v4314_v48 = vsel %vm4313_vm5, %v4305_v4, %v11381_v12  ;;  %v4315_v52 = vsel %vm4313_vm5, %v4306_v5, %v11382_v35  ;;  %v10740_v4 = vpack.c.bf16 %v4620_v54, %v4618_v19  ;;  %v4617_v5 = vld [vmem:[#allocation11 + $0xe0] sm:$0xff]  ;;  %v4619_v35 = vld [vmem:[#allocation11 + $0xf0] sm:$0xff]  ;;  %v11422_v51 = vunpack.i.h.bf16 %v14379_v30 }
0x13d8   : > { %v14353_v61 = vpop.permute.xlu0 %11394  ;;  %v4323_v16 = vsel %vm4322_vm6, %v4314_v48, %v11386_v27  ;;  %v4324_v60 = vsel %vm4322_vm6, %v4315_v52, %v11387_v17  ;;  %v10742_v27 = vpack.c.bf16 %v4619_v35, %v4617_v5  ;;  %v11392_v52 = vunpack.i.h.bf16 %v14375_v26 }
0x13d9   : > { %v4284_v44 = vsel %vm741_vm0, %v15957_v56, %v11412_v33  ;;  %v15961_v56 = vmov 0.0  }
0x13da   : > { %v11435_v17 = vpop.permute.xlu1 %11434 }
0x13db   : > { %v11437_v40 = vunpack.i.h.bf16 %v11435_v17 }
0x13dc   : > { %v14359_v41 = vpop.permute.xlu0 %11404 }
0x13dd   : > { %v11407_v2 = vunpack.i.h.bf16 %v14359_v41  ;;  %v11406_v26 = vunpack.i.l.bf16 %v14359_v41  ;;  %v11421_v41 = vunpack.i.l.bf16 %v14379_v30 }
0x13de   : > { %v11440_v31 = vpop.permute.xlu1 %11439 }
0x13df   : > { %v11442_v59 = vunpack.i.h.bf16 %v11440_v31  ;;  %v11441_v37 = vunpack.i.l.bf16 %v11440_v31 }
0x13e0   : > { %v14365_v57 = vpop.permute.xlu0 %11414 }
0x13e1   : > { %v11416_v14 = vunpack.i.l.bf16 %v14365_v57 }
0x1404   : > { %v11425_v10 = vpop.permute.xlu0 %11424 }
0x1405   : > { %v11427_v62 = vunpack.i.h.bf16 %v11425_v10  ;;  %v11426_v11 = vunpack.i.l.bf16 %v11425_v10  ;;  %v15955_v10 = vld [vmem:[#allocation23_spill] sm:$0xff] }
0x1406   : > { %v4282_v43 = vsel %vm741_vm0, %v15955_v10, %v11392_v52 }
0x1407   : > { %v4332_v0 = vsel %vm4331_vm7, %v4323_v16, %v11426_v11  ;;  %v4333_v50 = vsel %vm4331_vm7, %v4324_v60, %v11427_v62  ;;  %v4281_v62 = vsel %vm741_vm0, %v15956_v23, %v11391_v7  ;;  %v11402_v11 = vunpack.i.h.bf16 %v11400_v42 }
0x1408   : > { %9844 = vmatprep.mubr.f32.mxu0 %v4332_v0  ;;  %v11430_v12 = vpop.permute.xlu0 %11429  ;;  %v11401_v16 = vunpack.i.l.bf16 %v11400_v42  ;;  %v11396_v0 = vunpack.i.l.bf16 %v14353_v61 }
0x1409   : > { %9845 = vmatmul.mubr.f32.vlgmr.msra.gmra.mrb[72].mxu0 %v4333_v50  ;;  %v11450_v50 = vpop.permute.xlu1 %11449  ;;  %v11431_v3 = vunpack.i.l.bf16 %v11430_v12 }
0x140a   : > { %10715 = vmatpush1.bf16.msra.mxu0 %v10714_v46  ;;  %v11397_v46 = vunpack.i.h.bf16 %v14353_v61  ;;  %v11452_v47 = vunpack.i.h.bf16 %v11450_v50  ;;  %v11451_v36 = vunpack.i.l.bf16 %v11450_v50 }
0x140b   : > { %10717 = vmatprep.subr.bf16.mxu0 %v10716_v63  ;;  %v4290_v63 = vsel %vm4287_vm3, %v4281_v62, %v11396_v0  ;;  %v15959_v0 = vld [vmem:[#allocation27_spill] sm:$0xff] }
0x140c   : > { %v14381_v48 = vpop.permute.xlu0 %11444  ;;  %v4291_v6 = vsel %vm4287_vm3, %v4282_v43, %v11397_v46  ;;  %v4299_v8 = vsel %vm4296_vm4, %v4290_v63, %v11401_v16  ;;  %v15960_v63 = vld [vmem:[#allocation28_spill] sm:$0xff] }
0x140d   : > { %v4300_v20 = vsel %vm4296_vm4, %v4291_v6, %v11402_v11  ;;  %v4307_v61 = vsel %vm903_vm2, %v4299_v8, %v11406_v26  ;;  %v11447_v35 = vunpack.i.h.bf16 %v14381_v48 }
0x140e   : > { %10719 = vmatpush1.bf16.msra.mxu0 %v10718_v38  ;;  %v4308_v13 = vsel %vm903_vm2, %v4300_v20, %v11407_v2  ;;  %v4316_v32 = vsel %vm4313_vm5, %v4307_v61, %v11416_v14 }
0x140f   : > { %10721 = vmatprep.subr.bf16.mxu0 %v10720_v15  ;;  %v11417_v15 = vunpack.i.h.bf16 %v14365_v57  ;;  %v4286_v50 = vsel %vm741_vm0, %v15959_v0, %v11447_v35 }
0x1410   : > { %v14389_v60 = vpop.permute.xlu0 %11454 }
0x1411   : > { %v4317_v57 = vsel %vm4313_vm5, %v4308_v13, %v11417_v15  ;;  %v11457_v52 = vunpack.i.h.bf16 %v14389_v60  ;;  %v11456_v7 = vunpack.i.l.bf16 %v14389_v60 }
0x1412   : > { %10723 = vmatpush1.bf16.msra.mxu0 %v10722_v29  ;;  %v11460_v29 = vpop.permute.xlu1 %11459 }
0x1413   : > { %10725 = vmatprep.subr.bf16.mxu0 %v10724_v39  ;;  %v11432_v39 = vunpack.i.h.bf16 %v11430_v12  ;;  %v11461_v5 = vunpack.i.l.bf16 %v11460_v29  ;;  %v11446_v12 = vunpack.i.l.bf16 %v14381_v48  ;;  %v4295_v26 = vsel %vm4287_vm3, %v4286_v50, %v11457_v52 }
0x1414   : > { %v14399_v38 = vpop.permute.xlu0 %11464 }
0x1415   : > { %v11467_v31 = vunpack.i.h.bf16 %v14399_v38  ;;  %v11466_v10 = vunpack.i.l.bf16 %v14399_v38  ;;  %v4285_v6 = vsel %vm741_vm0, %v15960_v63, %v11446_v12 }
0x1416   : > { %10727 = vmatpush1.bf16.msra.mxu0 %v10726_v45  ;;  %v11436_v45 = vunpack.i.l.bf16 %v11435_v17  ;;  %v11480_v30 = vpop.permute.xlu1 %11479  ;;  %v4294_v2 = vsel %vm4287_vm3, %v4285_v6, %v11456_v7 }
0x1417   : > { %10729 = vmatprep.subr.bf16.mxu0 %v10728_v1  ;;  %v4303_v14 = vsel %vm4296_vm4, %v4294_v2, %v11466_v10  ;;  %v4304_v61 = vsel %vm4296_vm4, %v4295_v26, %v11467_v31 }
0x141a   : > { %10731 = vmatpush1.bf16.msra.mxu0 %v10730_v18  ;;  %v4325_v18 = vsel %vm4322_vm6, %v4316_v32, %v11431_v3  ;;  %v11481_v3 = vunpack.i.l.bf16 %v11480_v30 }
0x141b   : > { %10733 = vmatprep.subr.bf16.mxu0 %v10732_v25  ;;  %v4326_v25 = vsel %vm4322_vm6, %v4317_v57, %v11432_v39  ;;  %v11482_v39 = vunpack.i.h.bf16 %v11480_v30 }
0x141e   : > { %10735 = vmatpush1.bf16.msra.mxu0 %v10734_v9  ;;  %v4292_v9 = vsel %vm4287_vm3, %v4283_v34, %v11421_v41  ;;  %v473_v34 = vld [vmem:[%s12953_s9 + $0x10] sm:$0xff] }
0x141f   : > { %10737 = vmatprep.subr.bf16.mxu0 %v10736_v49  ;;  %v4293_v49 = vsel %vm4287_vm3, %v4284_v44, %v11422_v51  ;;  %v4301_v54 = vsel %vm4296_vm4, %v4292_v9, %v11436_v45  ;;  %v471_v44 = vld [vmem:[%s12953_s9] sm:$0xff] }
0x1420   : > { %v4309_v17 = vsel %vm903_vm2, %v4301_v54, %v11441_v37 }
0x1421   : > { %v4318_v23 = vsel %vm4313_vm5, %v4309_v17, %v11451_v36 }
0x1422   : > { %10739 = vmatpush1.bf16.msra.mxu0 %v10738_v28  ;;  %v4302_v28 = vsel %vm4296_vm4, %v4293_v49, %v11437_v40  ;;  %v4327_v8 = vsel %vm4322_vm6, %v4318_v23, %v11461_v5 }
0x1423   : > { %10741 = vmatprep.subr.bf16.mxu0 %v10740_v4  ;;  %v11462_v4 = vunpack.i.h.bf16 %v11460_v29 }
0x1426   : > { %10743 = vmatpush1.bf16.msra.mxu0 %v10742_v27  ;;  %v4310_v27 = vsel %vm903_vm2, %v4302_v28, %v11442_v59 }
0x1427   : > { %v4319_v62 = vsel %vm4313_vm5, %v4310_v27, %v11452_v47 }
0x1428   : > { %v4328_v20 = vsel %vm4322_vm6, %v4319_v62, %v11462_v4 }
0x1436   : > { %v11470_v42 = vpop.permute.xlu0 %11469 }
0x1437   : > { %v11472_v1 = vunpack.i.h.bf16 %v11470_v42  ;;  %v11471_v21 = vunpack.i.l.bf16 %v11470_v42 }
0x1439   : > { %v4334_v55 = vsel %vm4331_vm7, %v4325_v18, %v11471_v21  ;;  %v4335_v24 = vsel %vm4331_vm7, %v4326_v25, %v11472_v1  ;;  %v474_v18 = vld [vmem:[%s12953_s9 + $0x18] sm:$0xff]  ;;  %s15746_s9 = scalar_lea.hbm %s16030_s17, %s8775_s6 }
0x143a   : > { %v11475_v19 = vpop.permute.xlu0 %11474  ;;  %9847 = vmatprep.mubr.f32.mxu0 %v4334_v55 }
0x143b   : > { %9848 = vmatmul.mubr.f32.gmra.mrb[74].mxu0 %v4335_v24  ;;  %v11477_v11 = vunpack.i.h.bf16 %v11475_v19  ;;  %v11476_v16 = vunpack.i.l.bf16 %v11475_v19 }
0x143d   : > { %v4312_v13 = vsel %vm903_vm2, %v4304_v61, %v11477_v11  ;;  %v4311_v33 = vsel %vm903_vm2, %v4303_v14, %v11476_v16 }
0x143e   : > { %v11490_v43 = vpop.permute.xlu1 %11489  ;;  %v11485_v60 = vpop.permute.xlu0 %11484  ;;  %v4320_v32 = vsel %vm4313_vm5, %v4311_v33, %v11481_v3  ;;  %v4321_v57 = vsel %vm4313_vm5, %v4312_v13, %v11482_v39 }
0x143f   : > { %v11492_v48 = vunpack.i.h.bf16 %v11490_v43  ;;  %v11491_v46 = vunpack.i.l.bf16 %v11490_v43  ;;  %v11487_v53 = vunpack.i.h.bf16 %v11485_v60  ;;  %v11486_v29 = vunpack.i.l.bf16 %v11485_v60 }
0x1441   : > { %v4336_v38 = vsel %vm4331_vm7, %v4327_v8, %v11491_v46  ;;  %v4337_v15 = vsel %vm4331_vm7, %v4328_v20, %v11492_v48  ;;  %v4329_v40 = vsel %vm4322_vm6, %v4320_v32, %v11486_v29  ;;  %v4330_v45 = vsel %vm4322_vm6, %v4321_v57, %v11487_v53 }
0x1442   : > { %9850 = vmatprep.mubr.f32.mxu0 %v4336_v38 }
0x1443   : > { %9851 = vmatmul.mubr.f32.gmra.mrb[76].mxu0 %v4337_v15 }
0x1445   : > { %v11495_v51 = vpop.permute.xlu1 %11494 }
0x1446   : > { %v11497_v41 = vunpack.i.h.bf16 %v11495_v51  ;;  %v11496_v42 = vunpack.i.l.bf16 %v11495_v51 }
0x1448   : > { %v4338_v1 = vsel %vm4331_vm7, %v4329_v40, %v11496_v42  ;;  %v4339_v21 = vsel %vm4331_vm7, %v4330_v45, %v11497_v41 }
0x1449   : > { %9853 = vmatprep.mubr.f32.mxu0 %v4338_v1 }
0x144a   : > { %9854 = vmatmul.mubr.f32.gmra.mrb[78].mxu0 %v4339_v21 }
0x144b   : > { %4685 = vmatprep.mubr.f32.mxu0 %v15961_v56 }
0x144e   : > { %4686 = vmatmul.mubr.f32.vlgmr.msra.gmra.mrb[80].mxu0 %v471_v44 }
0x144f   : > { %4691 = vmatprep.mubr.f32.mxu0 %v15961_v56 }
0x1452   : > { %4692 = vmatmul.mubr.f32.gmra.mrb[82].mxu0 %v472_v58 }
0x1453   : > { %4697 = vmatprep.mubr.f32.mxu0 %v15961_v56 }
0x1456   : > { %4698 = vmatmul.mubr.f32.gmra.mrb[84].mxu0 %v473_v34 }
0x1457   : > { %4703 = vmatprep.mubr.f32.mxu0 %v15961_v56 }
0x145a   : > { %4704 = vmatmul.mubr.f32.gmra.mrb[86].mxu0 %v474_v18 }
0x1480   : > { %v14461_v25 = vpop.f32.mrb[80].mxu1 }
0x1481   : > { %v14463_v59 = vpop.f32.mrb[81].mxu1  ;;  %5078 = vrot.lane.b32.xlu0 %v14461_v25, %s12596_s28 }
0x1482   : > { %9908 = vmatprep.mubr.msk.f32.mxu1 %vm741_vm0, %v14463_v59  ;;  %5076 = vrot.lane.b32.xlu1 %v14463_v59, %s12596_s28 }
0x1484   : > { %v14471_v37 = vpop.f32.mrb[82].mxu1 }
0x1485   : > { %v14473_v55 = vpop.f32.mrb[83].mxu1  ;;  %5082 = vrot.lane.b32.xlu0 %v14471_v37, %s12596_s28 }
0x1486   : > { %5080 = vrot.lane.b32.xlu1 %v14473_v55, %s12596_s28 }
0x1488   : > { %v14479_v24 = vpop.f32.mrb[84].mxu1 }
0x1489   : > { %v14481_v9 = vpop.f32.mrb[85].mxu1 }
0x148a   : > { %5086 = vrot.lane.b32.xlu1 %v14479_v24, %s12596_s28 }
0x148c   : > { %v14485_v49 = vpop.f32.mrb[86].mxu1 }
0x148d   : > { %v14487_v47 = vpop.f32.mrb[87].mxu1 }
0x148e   : > { %5090 = vrot.lane.b32.xlu1 %v14485_v49, %s12596_s28 }
0x14f3   : > { %v5079_v62 = vpop.permute.xlu0 %5078 }
0x14f4   : > { %v5077_v36 = vpop.permute.xlu1 %5076 }
0x14f5   : > { %9948 = vmatprep.mubr.msk.f32.mxu0 %vm741_vm0, %v5077_v36 }
0x14f7   : > { %v5083_v16 = vpop.permute.xlu0 %5082 }
0x14f8   : > { %v5081_v11 = vpop.permute.xlu1 %5080 }
0x14fc   : > { %v5087_v48 = vpop.permute.xlu1 %5086 }
0x1500   : > { %v5091_v63 = vpop.permute.xlu1 %5090 }
0x1521   : > { %v4687_v30 = vpop.f32.mrb[80].mxu0 }
0x1522   : > { %v4689_v19 = vpop.f32.mrb[81].mxu0 }
0x1525   : > { %v4693_v54 = vpop.f32.mrb[82].mxu0 }
0x1526   : > { %v4695_v28 = vpop.f32.mrb[83].mxu0  ;;  %v14492_v4 = vpack.i.bf16 %v4693_v54, %v4687_v30  ;;  %v10744_v5 = vpack.c.bf16 %v4693_v54, %v4687_v30 }
0x1527   : > { %v10756_v35 = vpack.c.bf16 %v4695_v28, %v4689_v19  ;;  %v14498_v12 = vpack.i.bf16 %v4695_v28, %v4689_v19 }
0x1528   : > { %11499 = vrot.lane.b32.xlu0 %v14492_v4, %s12596_s28  ;;  %10746 = vmatprep.subr.msk.bf16.mxu1 %vm12995_vm1, %v10744_v5 }
0x1529   : > { %15962 = vst [vmem:[#allocation33_spill] sm:$0xff] %v14498_v12  ;;  %v4699_v17 = vpop.f32.mrb[84].mxu0  ;;  %10749 = vmatpush3.bf16.xpose.msk.msra.mxu1 %vm12995_vm1, %v10744_v5 }
0x152a   : > { %v4701_v27 = vpop.f32.mrb[85].mxu0 }
0x152c   : > { %5084 = vrot.lane.b32.xlu0 %v14481_v9, %s12596_s28 }
0x152d   : > { %v4705_v52 = vpop.f32.mrb[86].mxu0 }
0x152e   : > { %v4707_v7 = vpop.f32.mrb[87].mxu0  ;;  %v14504_v31 = vpack.i.bf16 %v4705_v52, %v4699_v17  ;;  %v10750_v10 = vpack.c.bf16 %v4705_v52, %v4699_v17 }
0x152f   : > { %v10760_v43 = vpack.c.bf16 %v4707_v7, %v4701_v27  ;;  %v14510_v23 = vpack.i.bf16 %v4707_v7, %v4701_v27 }
0x1530   : > { %5088 = vrot.lane.b32.xlu0 %v14487_v47, %s12596_s28  ;;  %11514 = vrot.lane.b32.xlu1 %v14504_v31, %s12596_s28 }
0x1531   : > { %15963 = vst [vmem:[#allocation34_spill] sm:$0xff] %v14510_v23  ;;  %10752 = vmatprep.subr.msk.bf16.mxu1 %vm12995_vm1, %v10750_v10 }
0x1532   : > { %10755 = vmatpush3.bf16.xpose.msk.msra.mxu1 %vm12995_vm1, %v10750_v10 }
0x1533   : > { %10757 = vmatprep.subr.bf16.mxu1 %v10756_v35 }
0x1534   : > { %11504 = vrot.lane.b32.xlu0 %v14492_v4, %s12597_s23  ;;  %5470 = vrot.lane.b32.xlu1 %v14463_v59, %s12597_s23 }
0x1538   : > { %11509 = vrot.lane.b32.xlu0 %v14492_v4, %s12598_s29  ;;  %5474 = vrot.lane.b32.xlu1 %v14473_v55, %s12597_s23 }
0x1539   : > { %9909 = vmatmul.mubr.msk.f32.vlgmr.msra.gmra.mrb[88].mxu1 %vm741_vm0, %v14461_v25 }
0x153a   : > { %9911 = vmatprep.mubr.msk.f32.mxu1 %vm741_vm0, %v14473_v55  ;;  %10759 = vmatpush3.bf16.msra.mxu1 %v10756_v35 }
0x153b   : > { %10761 = vmatprep.subr.bf16.mxu1 %v10760_v43 }
0x153c   : > { %5472 = vrot.lane.b32.xlu0 %v14461_v25, %s12597_s23  ;;  %5480 = vrot.lane.b32.xlu1 %v14479_v24, %s12597_s23 }
0x153d   : > { %9912 = vmatmul.mubr.msk.f32.gmra.mrb[90].mxu1 %vm741_vm0, %v14471_v37 }
0x153e   : > { %9914 = vmatprep.mubr.msk.f32.mxu1 %vm741_vm0, %v14481_v9  ;;  %10763 = vmatpush3.bf16.msra.mxu1 %v10760_v43 }
0x1540   : > { %5476 = vrot.lane.b32.xlu0 %v14471_v37, %s12597_s23  ;;  %11519 = vrot.lane.b32.xlu1 %v14504_v31, %s12597_s23 }
0x1541   : > { %9915 = vmatmul.mubr.msk.f32.gmra.mrb[92].mxu1 %vm741_vm0, %v14479_v24 }
0x1542   : > { %9917 = vmatprep.mubr.msk.f32.mxu1 %vm741_vm0, %v14487_v47 }
0x1544   : > { %5478 = vrot.lane.b32.xlu0 %v14481_v9, %s12597_s23  ;;  %5484 = vrot.lane.b32.xlu1 %v14485_v49, %s12597_s23 }
0x1545   : > { %9918 = vmatmul.mubr.msk.f32.gmra.mrb[94].mxu1 %vm741_vm0, %v14485_v49 }
0x1548   : > { %5482 = vrot.lane.b32.xlu0 %v14487_v47, %s12597_s23  ;;  %5860 = vrot.lane.b32.xlu1 %v14463_v59, %s12598_s29 }
0x154c   : > { %11524 = vrot.lane.b32.xlu0 %v14492_v4, %s12599_s13  ;;  %5864 = vrot.lane.b32.xlu1 %v14473_v55, %s12598_s29 }
0x1550   : > { %5862 = vrot.lane.b32.xlu0 %v14461_v25, %s12598_s29  ;;  %11529 = vrot.lane.b32.xlu1 %v14504_v31, %s12598_s29 }
0x1554   : > { %5866 = vrot.lane.b32.xlu0 %v14471_v37, %s12598_s29  ;;  %5870 = vrot.lane.b32.xlu1 %v14479_v24, %s12598_s29 }
0x1558   : > { %5868 = vrot.lane.b32.xlu0 %v14481_v9, %s12598_s29  ;;  %5874 = vrot.lane.b32.xlu1 %v14485_v49, %s12598_s29 }
0x155c   : > { %5872 = vrot.lane.b32.xlu0 %v14487_v47, %s12598_s29  ;;  %6250 = vrot.lane.b32.xlu1 %v14463_v59, %s12599_s13 }
0x1560   : > { %11534 = vrot.lane.b32.xlu0 %v14492_v4, %s12600_s14  ;;  %11539 = vrot.lane.b32.xlu1 %v14504_v31, %s12599_s13 }
0x1564   : > { %6252 = vrot.lane.b32.xlu0 %v14461_v25, %s12599_s13  ;;  %6254 = vrot.lane.b32.xlu1 %v14473_v55, %s12599_s13 }
0x1568   : > { %6256 = vrot.lane.b32.xlu0 %v14471_v37, %s12599_s13  ;;  %6260 = vrot.lane.b32.xlu1 %v14479_v24, %s12599_s13 }
0x156c   : > { %6258 = vrot.lane.b32.xlu0 %v14481_v9, %s12599_s13  ;;  %6264 = vrot.lane.b32.xlu1 %v14485_v49, %s12599_s13 }
0x1570   : > { %6262 = vrot.lane.b32.xlu0 %v14487_v47, %s12599_s13  ;;  %11549 = vrot.lane.b32.xlu1 %v14504_v31, %s12600_s14 }
0x1574   : > { %11544 = vrot.lane.b32.xlu0 %v14492_v4, %s12601_s2  ;;  %6640 = vrot.lane.b32.xlu1 %v14463_v59, %s12600_s14 }
0x1578   : > { %6642 = vrot.lane.b32.xlu0 %v14461_v25, %s12600_s14  ;;  %6644 = vrot.lane.b32.xlu1 %v14473_v55, %s12600_s14 }
0x157c   : > { %6646 = vrot.lane.b32.xlu0 %v14471_v37, %s12600_s14  ;;  %6650 = vrot.lane.b32.xlu1 %v14479_v24, %s12600_s14 }
0x1580   : > { %6648 = vrot.lane.b32.xlu0 %v14481_v9, %s12600_s14  ;;  %11554 = vrot.lane.b32.xlu1 %v14504_v31, %s12601_s2 }
0x1584   : > { %6652 = vrot.lane.b32.xlu0 %v14487_v47, %s12600_s14  ;;  %6654 = vrot.lane.b32.xlu1 %v14485_v49, %s12600_s14 }
0x1588   : > { %11559 = vrot.lane.b32.xlu0 %v14492_v4, %s12602_s26  ;;  %7030 = vrot.lane.b32.xlu1 %v14463_v59, %s12601_s2 }
0x158c   : > { %7032 = vrot.lane.b32.xlu0 %v14461_v25, %s12601_s2  ;;  %7034 = vrot.lane.b32.xlu1 %v14473_v55, %s12601_s2 }
0x1590   : > { %7036 = vrot.lane.b32.xlu0 %v14471_v37, %s12601_s2  ;;  %11564 = vrot.lane.b32.xlu1 %v14504_v31, %s12602_s26 }
0x1594   : > { %7038 = vrot.lane.b32.xlu0 %v14481_v9, %s12601_s2  ;;  %7040 = vrot.lane.b32.xlu1 %v14479_v24, %s12601_s2 }
0x1598   : > { %7042 = vrot.lane.b32.xlu0 %v14487_v47, %s12601_s2  ;;  %7044 = vrot.lane.b32.xlu1 %v14485_v49, %s12601_s2 }
0x159a   : > { %v11500_v46 = vpop.permute.xlu0 %11499 }
0x159b   : > { %v11502_v0 = vunpack.i.h.bf16 %v11500_v46  ;;  %v11501_v50 = vunpack.i.l.bf16 %v11500_v46 }
0x159c   : > { %7420 = vrot.lane.b32.xlu0 %v14463_v59, %s12602_s26  ;;  %7422 = vrot.lane.b32.xlu1 %v14461_v25, %s12602_s26 }
0x159d   : > { %v10764_v6 = vpack.c.bf16 %v11502_v0, %v11501_v50 }
0x159e   : > { %v5085_v60 = vpop.permute.xlu0 %5084 }
0x159f   : > { %10766 = vmatprep.subr.msk.bf16.mxu0 %vm12995_vm1, %v10764_v6 }
0x15a0   : > { %7424 = vrot.lane.b32.xlu0 %v14473_v55, %s12602_s26  ;;  %10769 = vmatpush3.bf16.xpose.msk.msra.mxu0 %vm12995_vm1, %v10764_v6 }
0x15a1   : > { %7426 = vrot.lane.b32.xlu1 %v14471_v37, %s12602_s26 }
0x15a2   : > { %v5089_v8 = vpop.permute.xlu0 %5088  ;;  %v11515_v20 = vpop.permute.xlu1 %11514 }
0x15a3   : > { %v11517_v2 = vunpack.i.h.bf16 %v11515_v20  ;;  %v11516_v26 = vunpack.i.l.bf16 %v11515_v20 }
0x15a4   : > { %7428 = vrot.lane.b32.xlu0 %v14481_v9, %s12602_s26 }
0x15a5   : > { %v10770_v38 = vpack.c.bf16 %v11517_v2, %v11516_v26  ;;  %7430 = vrot.lane.b32.xlu1 %v14479_v24, %s12602_s26 }
0x15a6   : > { %v11505_v15 = vpop.permute.xlu0 %11504  ;;  %v5471_v14 = vpop.permute.xlu1 %5470 }
0x15a7   : > { %v11507_v61 = vunpack.i.h.bf16 %v11505_v15  ;;  %v11506_v13 = vunpack.i.l.bf16 %v11505_v15  ;;  %10772 = vmatprep.subr.msk.bf16.mxu0 %vm12995_vm1, %v10770_v38 }
0x15a8   : > { %7432 = vrot.lane.b32.xlu0 %v14487_v47, %s12602_s26  ;;  %10775 = vmatpush3.bf16.xpose.msk.msra.mxu0 %vm12995_vm1, %v10770_v38 }
0x15a9   : > { %v10784_v33 = vpack.c.bf16 %v11507_v61, %v11506_v13  ;;  %7434 = vrot.lane.b32.xlu1 %v14485_v49, %s12602_s26 }
0x15aa   : > { %v11510_v53 = vpop.permute.xlu0 %11509  ;;  %v5475_v29 = vpop.permute.xlu1 %5474 }
0x15ab   : > { %10786 = vmatprep.subr.msk.bf16.mxu0 %vm12995_vm1, %v10784_v33  ;;  %v11512_v57 = vunpack.i.h.bf16 %v11510_v53  ;;  %v11511_v40 = vunpack.i.l.bf16 %v11510_v53 }
0x15ac   : > { %11569 = vrot.lane.b32.xlu0 %v14498_v12, %s12596_s28 }
0x15ad   : > { %11599 = vrot.lane.b32.xlu1 %v14510_v23, %s12596_s28  ;;  %v10804_v56 = vpack.c.bf16 %v11512_v57, %v11511_v40 }
0x15ae   : > { %v5473_v39 = vpop.permute.xlu0 %5472  ;;  %v5481_v3 = vpop.permute.xlu1 %5480 }
0x15af   : > { %9949 = vmatmul.mubr.msk.f32.vlgmr.msra.gmra.mrb[88].mxu0 %vm741_vm0, %v5079_v62 }
0x15b0   : > { %11574 = vrot.lane.b32.xlu0 %v14498_v12, %s12597_s23  ;;  %9951 = vmatprep.mubr.msk.f32.mxu0 %vm741_vm0, %v5081_v11 }
0x15b1   : > { %10789 = vmatpush3.bf16.xpose.msk.msra.mxu0 %vm12995_vm1, %v10784_v33  ;;  %11604 = vrot.lane.b32.xlu1 %v14510_v23, %s12597_s23 }
0x15b2   : > { %v5477_v51 = vpop.permute.xlu0 %5476  ;;  %v11520_v41 = vpop.permute.xlu1 %11519 }
0x15b3   : > { %v11522_v42 = vunpack.i.h.bf16 %v11520_v41  ;;  %v11521_v32 = vunpack.i.l.bf16 %v11520_v41  ;;  %9952 = vmatmul.mubr.msk.f32.gmra.mrb[90].mxu0 %vm741_vm0, %v5083_v16 }
0x15b4   : > { %11579 = vrot.lane.b32.xlu0 %v14498_v12, %s12598_s29  ;;  %9954 = vmatprep.mubr.msk.f32.mxu0 %vm741_vm0, %v5085_v60 }
0x15b5   : > { %v10790_v45 = vpack.c.bf16 %v11522_v42, %v11521_v32  ;;  %11609 = vrot.lane.b32.xlu1 %v14510_v23, %s12598_s29 }
0x15b6   : > { %v5479_v1 = vpop.permute.xlu0 %5478  ;;  %v5485_v21 = vpop.permute.xlu1 %5484 }
0x15b7   : > { %9955 = vmatmul.mubr.msk.f32.gmra.mrb[92].mxu0 %vm741_vm0, %v5087_v48  ;;  %10792 = vmatprep.subr.msk.bf16.mxu0 %vm12995_vm1, %v10790_v45 }
0x15b8   : > { %11584 = vrot.lane.b32.xlu0 %v14498_v12, %s12599_s13  ;;  %9957 = vmatprep.mubr.msk.f32.mxu0 %vm741_vm0, %v5089_v8 }
0x15b9   : > { %10795 = vmatpush3.bf16.xpose.msk.msra.mxu0 %vm12995_vm1, %v10790_v45  ;;  %11614 = vrot.lane.b32.xlu1 %v14510_v23, %s12599_s13 }
0x15ba   : > { %10806 = vmatprep.subr.msk.bf16.mxu0 %vm12995_vm1, %v10804_v56  ;;  %v5483_v44 = vpop.permute.xlu0 %5482  ;;  %v5861_v58 = vpop.permute.xlu1 %5860 }
0x15bb   : > { %9958 = vmatmul.mubr.msk.f32.gmra.mrb[94].mxu0 %vm741_vm0, %v5091_v63 }
0x15bc   : > { %11589 = vrot.lane.b32.xlu0 %v14498_v12, %s12600_s14  ;;  %9988 = vmatprep.mubr.msk.f32.mxu0 %vm741_vm0, %v5471_v14 }
0x15bd   : > { %11619 = vrot.lane.b32.xlu1 %v14510_v23, %s12600_s14 }
0x15be   : > { %v11525_v34 = vpop.permute.xlu0 %11524  ;;  %v5865_v18 = vpop.permute.xlu1 %5864 }
0x15bf   : > { %v11527_v24 = vunpack.i.h.bf16 %v11525_v34  ;;  %v11526_v9 = vunpack.i.l.bf16 %v11525_v34 }
0x15c0   : > { %9989 = vmatmul.mubr.msk.f32.vlgmr.msra.gmra.mrb[96].mxu0 %vm741_vm0, %v5473_v39  ;;  %11594 = vrot.lane.b32.xlu0 %v14498_v12, %s12601_s2 }
0x15c1   : > { %9991 = vmatprep.mubr.msk.f32.mxu0 %vm741_vm0, %v5475_v29  ;;  %10809 = vmatpush3.bf16.xpose.msk.msra.mxu0 %vm12995_vm1, %v10804_v56  ;;  %v10824_v30 = vpack.c.bf16 %v11527_v24, %v11526_v9 }
0x15c2   : > { %11624 = vrot.lane.b32.xlu1 %v14510_v23, %s12601_s2  ;;  %v5863_v25 = vpop.permute.xlu0 %5862  ;;  %v11530_v59 = vpop.permute.xlu1 %11529 }
0x15c3   : > { %v11532_v37 = vunpack.i.h.bf16 %v11530_v59  ;;  %v11531_v55 = vunpack.i.l.bf16 %v11530_v59 }
0x15c4   : > { %9992 = vmatmul.mubr.msk.f32.gmra.mrb[98].mxu0 %vm741_vm0, %v5477_v51 }
0x15c5   : > { %v10810_v49 = vpack.c.bf16 %v11532_v37, %v11531_v55  ;;  %9994 = vmatprep.mubr.msk.f32.mxu0 %vm741_vm0, %v5479_v1 }
0x15c6   : > { %v5867_v47 = vpop.permute.xlu0 %5866  ;;  %v5871_v36 = vpop.permute.xlu1 %5870 }
0x15c7   : > { %10812 = vmatprep.subr.msk.bf16.mxu0 %vm12995_vm1, %v10810_v49 }
0x15c8   : > { %9995 = vmatmul.mubr.msk.f32.gmra.mrb[100].mxu0 %vm741_vm0, %v5481_v3 }
0x15c9   : > { %9997 = vmatprep.mubr.msk.f32.mxu0 %vm741_vm0, %v5483_v44  ;;  %10815 = vmatpush3.bf16.xpose.msk.msra.mxu0 %vm12995_vm1, %v10810_v49 }
0x15ca   : > { %10826 = vmatprep.subr.msk.bf16.mxu0 %vm12995_vm1, %v10824_v30  ;;  %v5869_v19 = vpop.permute.xlu0 %5868  ;;  %v5875_v54 = vpop.permute.xlu1 %5874 }
0x15cc   : > { %9998 = vmatmul.mubr.msk.f32.gmra.mrb[102].mxu0 %vm741_vm0, %v5485_v21 }
0x15cd   : > { %10028 = vmatprep.mubr.msk.f32.mxu0 %vm741_vm0, %v5861_v58 }
0x15ce   : > { %v5873_v28 = vpop.permute.xlu0 %5872  ;;  %v6251_v4 = vpop.permute.xlu1 %6250 }
0x15d0   : > { %10029 = vmatmul.mubr.msk.f32.vlgmr.msra.gmra.mrb[104].mxu0 %vm741_vm0, %v5863_v25 }
0x15d1   : > { %10031 = vmatprep.mubr.msk.f32.mxu0 %vm741_vm0, %v5865_v18  ;;  %10829 = vmatpush3.bf16.xpose.msk.msra.mxu0 %vm12995_vm1, %v10824_v30 }
0x15d2   : > { %v11535_v5 = vpop.permute.xlu0 %11534  ;;  %v11540_v35 = vpop.permute.xlu1 %11539 }
0x15d3   : > { %v11542_v17 = vunpack.i.h.bf16 %v11540_v35  ;;  %v11541_v27 = vunpack.i.l.bf16 %v11540_v35  ;;  %v11537_v52 = vunpack.i.h.bf16 %v11535_v5  ;;  %v11536_v7 = vunpack.i.l.bf16 %v11535_v5 }
0x15d4   : > { %10032 = vmatmul.mubr.msk.f32.gmra.mrb[106].mxu0 %vm741_vm0, %v5867_v47 }
0x15d5   : > { %v10830_v31 = vpack.c.bf16 %v11542_v17, %v11541_v27  ;;  %10034 = vmatprep.mubr.msk.f32.mxu0 %vm741_vm0, %v5869_v19  ;;  %v10844_v62 = vpack.c.bf16 %v11537_v52, %v11536_v7 }
0x15d6   : > { %v6253_v10 = vpop.permute.xlu0 %6252  ;;  %v6255_v43 = vpop.permute.xlu1 %6254 }
0x15d7   : > { %10832 = vmatprep.subr.msk.bf16.mxu0 %vm12995_vm1, %v10830_v31 }
0x15d8   : > { %10035 = vmatmul.mubr.msk.f32.gmra.mrb[108].mxu0 %vm741_vm0, %v5871_v36 }
0x15d9   : > { %10037 = vmatprep.mubr.msk.f32.mxu0 %vm741_vm0, %v5873_v28  ;;  %10835 = vmatpush3.bf16.xpose.msk.msra.mxu0 %vm12995_vm1, %v10830_v31 }
0x15da   : > { %10846 = vmatprep.subr.msk.bf16.mxu0 %vm12995_vm1, %v10844_v62  ;;  %v6257_v11 = vpop.permute.xlu0 %6256  ;;  %v6261_v16 = vpop.permute.xlu1 %6260 }
0x15dc   : > { %10038 = vmatmul.mubr.msk.f32.gmra.mrb[110].mxu0 %vm741_vm0, %v5875_v54 }
0x15dd   : > { %10068 = vmatprep.mubr.msk.f32.mxu0 %vm741_vm0, %v6251_v4 }
0x15de   : > { %v6259_v48 = vpop.permute.xlu0 %6258  ;;  %v6265_v46 = vpop.permute.xlu1 %6264 }
0x15e0   : > { %10069 = vmatmul.mubr.msk.f32.vlgmr.msra.gmra.mrb[112].mxu0 %vm741_vm0, %v6253_v10 }
0x15e1   : > { %10071 = vmatprep.mubr.msk.f32.mxu0 %vm741_vm0, %v6255_v43  ;;  %10849 = vmatpush3.bf16.xpose.msk.msra.mxu0 %vm12995_vm1, %v10844_v62 }
0x15e2   : > { %v6263_v0 = vpop.permute.xlu0 %6262  ;;  %v11550_v50 = vpop.permute.xlu1 %11549 }
0x15e3   : > { %v11552_v63 = vunpack.i.h.bf16 %v11550_v50  ;;  %v11551_v6 = vunpack.i.l.bf16 %v11550_v50 }
0x15e4   : > { %10072 = vmatmul.mubr.msk.f32.gmra.mrb[114].mxu0 %vm741_vm0, %v6257_v11 }
0x15e5   : > { %v10850_v60 = vpack.c.bf16 %v11552_v63, %v11551_v6  ;;  %10074 = vmatprep.mubr.msk.f32.mxu0 %vm741_vm0, %v6259_v48 }
0x15e6   : > { %v11545_v8 = vpop.permute.xlu0 %11544  ;;  %v6641_v20 = vpop.permute.xlu1 %6640 }
0x15e7   : > { %v11547_v2 = vunpack.i.h.bf16 %v11545_v8  ;;  %v11546_v26 = vunpack.i.l.bf16 %v11545_v8  ;;  %10852 = vmatprep.subr.msk.bf16.mxu0 %vm12995_vm1, %v10850_v60 }
0x15e8   : > { %10075 = vmatmul.mubr.msk.f32.gmra.mrb[116].mxu0 %vm741_vm0, %v6261_v16 }
0x15e9   : > { %v10864_v38 = vpack.c.bf16 %v11547_v2, %v11546_v26  ;;  %10077 = vmatprep.mubr.msk.f32.mxu0 %vm741_vm0, %v6263_v0  ;;  %10855 = vmatpush3.bf16.xpose.msk.msra.mxu0 %vm12995_vm1, %v10850_v60 }
0x15ea   : > { %v6643_v15 = vpop.permute.xlu0 %6642  ;;  %v6645_v14 = vpop.permute.xlu1 %6644 }
0x15eb   : > { %10866 = vmatprep.subr.msk.bf16.mxu0 %vm12995_vm1, %v10864_v38 }
0x15ec   : > { %10078 = vmatmul.mubr.msk.f32.gmra.mrb[118].mxu0 %vm741_vm0, %v6265_v46 }
0x15ed   : > { %10108 = vmatprep.mubr.msk.f32.mxu0 %vm741_vm0, %v6641_v20 }
0x15ee   : > { %v6647_v61 = vpop.permute.xlu0 %6646  ;;  %v6651_v13 = vpop.permute.xlu1 %6650 }
0x15f0   : > { %10109 = vmatmul.mubr.msk.f32.vlgmr.msra.gmra.mrb[120].mxu0 %vm741_vm0, %v6643_v15 }
0x15f1   : > { %10111 = vmatprep.mubr.msk.f32.mxu0 %vm741_vm0, %v6645_v14  ;;  %10869 = vmatpush3.bf16.xpose.msk.msra.mxu0 %vm12995_vm1, %v10864_v38 }
0x15f2   : > { %v6649_v33 = vpop.permute.xlu0 %6648  ;;  %v11555_v53 = vpop.permute.xlu1 %11554 }
0x15f3   : > { %v11557_v29 = vunpack.i.h.bf16 %v11555_v53  ;;  %v11556_v39 = vunpack.i.l.bf16 %v11555_v53 }
0x15f4   : > { %10112 = vmatmul.mubr.msk.f32.gmra.mrb[122].mxu0 %vm741_vm0, %v6647_v61 }
0x15f5   : > { %v10870_v3 = vpack.c.bf16 %v11557_v29, %v11556_v39  ;;  %10114 = vmatprep.mubr.msk.f32.mxu0 %vm741_vm0, %v6649_v33 }
0x15f6   : > { %v6653_v51 = vpop.permute.xlu0 %6652  ;;  %v6655_v41 = vpop.permute.xlu1 %6654 }
0x15f7   : > { %10872 = vmatprep.subr.msk.bf16.mxu0 %vm12995_vm1, %v10870_v3 }
0x15f8   : > { %10115 = vmatmul.mubr.msk.f32.gmra.mrb[124].mxu0 %vm741_vm0, %v6651_v13 }
0x15f9   : > { %10117 = vmatprep.mubr.msk.f32.mxu0 %vm741_vm0, %v6653_v51  ;;  %10875 = vmatpush3.bf16.xpose.msk.msra.mxu0 %vm12995_vm1, %v10870_v3 }
0x15fa   : > { %v11560_v42 = vpop.permute.xlu0 %11559  ;;  %v7031_v32 = vpop.permute.xlu1 %7030 }
0x15fb   : > { %v11562_v57 = vunpack.i.h.bf16 %v11560_v42  ;;  %v11561_v40 = vunpack.i.l.bf16 %v11560_v42 }
0x15fc   : > { %10118 = vmatmul.mubr.msk.f32.gmra.mrb[126].mxu0 %vm741_vm0, %v6655_v41 }
0x15fd   : > { %v10884_v45 = vpack.c.bf16 %v11562_v57, %v11561_v40  ;;  %10148 = vmatprep.mubr.msk.f32.mxu0 %vm741_vm0, %v7031_v32 }
0x15fe   : > { %v7033_v1 = vpop.permute.xlu0 %7032  ;;  %v7035_v21 = vpop.permute.xlu1 %7034 }
0x15ff   : > { %10886 = vmatprep.subr.msk.bf16.mxu0 %vm12995_vm1, %v10884_v45 }
0x1600   : > { %10149 = vmatmul.mubr.msk.f32.vlgmr.msra.gmra.mrb[128].mxu0 %vm741_vm0, %v7033_v1 }
0x1601   : > { %10151 = vmatprep.mubr.msk.f32.mxu0 %vm741_vm0, %v7035_v21  ;;  %10889 = vmatpush3.bf16.xpose.msk.msra.mxu0 %vm12995_vm1, %v10884_v45 }
0x1602   : > { %v7037_v56 = vpop.permute.xlu0 %7036  ;;  %v11565_v44 = vpop.permute.xlu1 %11564 }
0x1603   : > { %v11567_v58 = vunpack.i.h.bf16 %v11565_v44  ;;  %v11566_v34 = vunpack.i.l.bf16 %v11565_v44 }
0x1604   : > { %10152 = vmatmul.mubr.msk.f32.gmra.mrb[130].mxu0 %vm741_vm0, %v7037_v56 }
0x1605   : > { %v10890_v18 = vpack.c.bf16 %v11567_v58, %v11566_v34 }
0x1606   : > { %v7039_v25 = vpop.permute.xlu0 %7038  ;;  %v7041_v59 = vpop.permute.xlu1 %7040 }
0x1607   : > { %10154 = vmatprep.mubr.msk.f32.mxu0 %vm741_vm0, %v7039_v25  ;;  %10892 = vmatprep.subr.msk.bf16.mxu0 %vm12995_vm1, %v10890_v18 }
0x1608   : > { %10155 = vmatmul.mubr.msk.f32.gmra.mrb[132].mxu0 %vm741_vm0, %v7041_v59 }
0x1609   : > { %10895 = vmatpush3.bf16.xpose.msk.msra.mxu0 %vm12995_vm1, %v10890_v18 }
0x160a   : > { %v7043_v37 = vpop.permute.xlu0 %7042  ;;  %v7045_v55 = vpop.permute.xlu1 %7044 }
0x160b   : > { %10157 = vmatprep.mubr.msk.f32.mxu0 %vm741_vm0, %v7043_v37 }
0x160c   : > { %v9910_v24 = vpop.f32.mrb[88].mxu1  ;;  %10158 = vmatmul.mubr.msk.f32.gmra.mrb[134].mxu0 %vm741_vm0, %v7045_v55 }
0x160d   : > { %v14777_v9 = vmul.f32 0.25, %v9910_v24  ;;  %v4812_v49 = vpop.f32.mrb[89].mxu1 }
0x160e   : > { %v14779_v47 = vmul.f32 0.25, %v4812_v49  ;;  %v7421_v36 = vpop.permute.xlu0 %7420  ;;  %v7423_v30 = vpop.permute.xlu1 %7422 }
0x160f   : > { %10188 = vmatprep.mubr.msk.f32.mxu0 %vm741_vm0, %v7421_v36  ;;  %v4862_v22 = vsel %vm4287_vm3, %v14777_v9, -inf }
0x1610   : > { %v9913_v19 = vpop.f32.mrb[90].mxu1  ;;  %4863 = vmax.xlane.f32.xlu1 %v4862_v22  ;;  %10189 = vmatmul.mubr.msk.f32.vlgmr.msra.gmra.mrb[136].mxu0 %vm741_vm0, %v7423_v30  ;;  %v4859_v54 = vsel %vm4287_vm3, %v14779_v47, -inf }
0x1611   : > { %v14787_v28 = vmul.f32 0.25, %v9913_v19  ;;  %4860 = vmax.xlane.f32.xlu0 %v4859_v54  ;;  %v4822_v4 = vpop.f32.mrb[91].mxu1 }
0x1612   : > { %v7425_v5 = vpop.permute.xlu0 %7424  ;;  %v14792_v27 = vmul.f32 0.25, %v4822_v4 }
0x1613   : > { %v7427_v35 = vpop.permute.xlu1 %7426  ;;  %10191 = vmatprep.mubr.msk.f32.mxu0 %vm741_vm0, %v7425_v5  ;;  %v4868_v17 = vsel %vm4287_vm3, %v14787_v28, -inf }
0x1614   : > { %v9916_v52 = vpop.f32.mrb[92].mxu1  ;;  %10192 = vmatmul.mubr.msk.f32.gmra.mrb[138].mxu0 %vm741_vm0, %v7427_v35  ;;  %v4865_v48 = vsel %vm4287_vm3, %v14792_v27, -inf }
0x1615   : > { %v14795_v7 = vmul.f32 0.25, %v9916_v52  ;;  %4869 = vmax.xlane.f32.xlu0 %v4868_v17  ;;  %v4832_v31 = vpop.f32.mrb[93].mxu1 }
0x1616   : > { %v7429_v10 = vpop.permute.xlu0 %7428  ;;  %v14800_v11 = vmul.f32 0.25, %v4832_v31 }
0x1617   : > { %v7431_v43 = vpop.permute.xlu1 %7430  ;;  %10194 = vmatprep.mubr.msk.f32.mxu0 %vm741_vm0, %v7429_v10  ;;  %v4874_v62 = vsel %vm4287_vm3, %v14795_v7, -inf }
0x1618   : > { %v9919_v16 = vpop.f32.mrb[94].mxu1  ;;  %4875 = vmax.xlane.f32.xlu1 %v4874_v62  ;;  %10195 = vmatmul.mubr.msk.f32.gmra.mrb[140].mxu0 %vm741_vm0, %v7431_v43  ;;  %v4871_v8 = vsel %vm4287_vm3, %v14800_v11, -inf }
0x1619   : > { %v14805_v46 = vmul.f32 0.25, %v9919_v16  ;;  %4866 = vmax.xlane.f32.xlu0 %v4865_v48  ;;  %v4842_v0 = vpop.f32.mrb[95].mxu1 }
0x161a   : > { %v7433_v50 = vpop.permute.xlu0 %7432  ;;  %v14810_v60 = vmul.f32 0.25, %v4842_v0 }
0x161b   : > { %v7435_v63 = vpop.permute.xlu1 %7434  ;;  %10197 = vmatprep.mubr.msk.f32.mxu0 %vm741_vm0, %v7433_v50  ;;  %v4880_v6 = vsel %vm4287_vm3, %v14805_v46, -inf }
0x161c   : > { %4881 = vmax.xlane.f32.xlu1 %v4880_v6  ;;  %10198 = vmatmul.mubr.msk.f32.gmra.mrb[142].mxu0 %vm741_vm0, %v7435_v63  ;;  %v4877_v38 = vsel %vm4287_vm3, %v14810_v60, -inf }
0x161d   : > { %4872 = vmax.xlane.f32.xlu0 %v4871_v8 }
0x161e   : > { %v11570_v20 = vpop.permute.xlu0 %11569 }
0x161f   : > { %v11572_v2 = vunpack.i.h.bf16 %v11570_v20  ;;  %v11571_v26 = vunpack.i.l.bf16 %v11570_v20  ;;  %v14820_v14 = vpop.permute.xlu1 %11599 }
0x1621   : > { %4878 = vmax.xlane.f32.xlu0 %v4877_v38  ;;  %v14817_v15 = vpack.c.bf16 %v11572_v2, %v11571_v26 }
0x1622   : > { %v14824_v33 = vpop.permute.xlu0 %11574 }
0x1623   : > { %10777 = vmatprep.subr.bf16.mxu1 %v14817_v15  ;;  %v14822_v61 = vpop.permute.xlu1 %11604 }
0x1624   : > { %15964 = vst [vmem:[#allocation37_spill] sm:$0xff] %v14822_v61 }
0x1626   : > { %v14840_v45 = vpop.permute.xlu0 %11579 }
0x1627   : > { %v14834_v42 = vpop.permute.xlu1 %11609  ;;  %15966 = vst [vmem:[#allocation41_spill] sm:$0xff] %v14840_v45 }
0x1628   : > { %15965 = vst [vmem:[#allocation38_spill] sm:$0xff] %v14834_v42 }
0x162a   : > { %v14856_v55 = vpop.permute.xlu0 %11584 }
0x162b   : > { %v14850_v18 = vpop.permute.xlu1 %11614  ;;  %15968 = vst [vmem:[#allocation43_spill] sm:$0xff] %v14856_v55 }
0x162c   : > { %15967 = vst [vmem:[#allocation42_spill] sm:$0xff] %v14850_v18 }
0x162e   : > { %v14870_v35 = vpop.permute.xlu0 %11589 }
0x162f   : > { %v14866_v19 = vpop.permute.xlu1 %11619  ;;  %15970 = vst [vmem:[#allocation29_spill] sm:$0xff] %v14870_v35 }
0x1630   : > { %15969 = vst [vmem:[#allocation44_spill] sm:$0xff] %v14866_v19 }
0x1632   : > { %v14886_v50 = vpop.permute.xlu0 %11594 }
0x1633   : > { %15972 = vst [vmem:[#allocation31_spill] sm:$0xff] %v14886_v50 }
0x1634   : > { %v14880_v16 = vpop.permute.xlu1 %11624 }
0x1635   : > { %15971 = vst [vmem:[#allocation30_spill] sm:$0xff] %v14880_v16 }
0x1682   : > { %v9950_v13 = vpop.f32.mrb[88].mxu0 }
0x1683   : > { %v14826_v53 = vmul.f32 0.25, %v9950_v13  ;;  %v5190_v29 = vpop.f32.mrb[89].mxu0 }
0x1684   : > { %v14828_v39 = vmul.f32 0.25, %v5190_v29 }
0x1685   : > { %v5240_v3 = vsel %vm4287_vm3, %v14826_v53, -inf }
0x1686   : > { %5241 = vmax.xlane.f32.xlu1 %v5240_v3  ;;  %v9953_v51 = vpop.f32.mrb[90].mxu0  ;;  %v5237_v41 = vsel %vm4287_vm3, %v14828_v39, -inf }
0x1687   : > { %v14836_v32 = vmul.f32 0.25, %v9953_v51  ;;  %5238 = vmax.xlane.f32.xlu0 %v5237_v41  ;;  %v5200_v57 = vpop.f32.mrb[91].mxu0 }
0x1688   : > { %v14838_v40 = vmul.f32 0.25, %v5200_v57 }
0x1689   : > { %v5246_v1 = vsel %vm4287_vm3, %v14836_v32, -inf }
0x168a   : > { %5247 = vmax.xlane.f32.xlu1 %v5246_v1  ;;  %v9956_v21 = vpop.f32.mrb[92].mxu0  ;;  %v5243_v56 = vsel %vm4287_vm3, %v14838_v40, -inf }
0x168b   : > { %v14846_v44 = vmul.f32 0.25, %v9956_v21  ;;  %5244 = vmax.xlane.f32.xlu0 %v5243_v56  ;;  %v5210_v58 = vpop.f32.mrb[93].mxu0 }
0x168c   : > { %v14848_v34 = vmul.f32 0.25, %v5210_v58 }
0x168d   : > { %v5252_v25 = vsel %vm4287_vm3, %v14846_v44, -inf }
0x168e   : > { %5253 = vmax.xlane.f32.xlu1 %v5252_v25  ;;  %v9959_v59 = vpop.f32.mrb[94].mxu0  ;;  %v5249_v37 = vsel %vm4287_vm3, %v14848_v34, -inf }
0x168f   : > { %v14858_v24 = vmul.f32 0.25, %v9959_v59  ;;  %5250 = vmax.xlane.f32.xlu0 %v5249_v37  ;;  %v5220_v49 = vpop.f32.mrb[95].mxu0 }
0x1690   : > { %v14860_v36 = vmul.f32 0.25, %v5220_v49 }
0x1691   : > { %v5258_v30 = vsel %vm4287_vm3, %v14858_v24, -inf }
0x1692   : > { %5259 = vmax.xlane.f32.xlu1 %v5258_v30  ;;  %v5255_v22 = vsel %vm4287_vm3, %v14860_v36, -inf }
0x1693   : > { %v9990_v54 = vpop.f32.mrb[96].mxu0  ;;  %5256 = vmax.xlane.f32.xlu0 %v5255_v22 }
0x1694   : > { %v14868_v4 = vmul.f32 0.25, %v9990_v54  ;;  %v5584_v5 = vpop.f32.mrb[97].mxu0 }
0x1695   : > { %v14872_v17 = vmul.f32 0.25, %v5584_v5 }
0x1696   : > { %v5634_v52 = vsel %vm4287_vm3, %v14868_v4, -inf }
0x1697   : > { %5635 = vmax.xlane.f32.xlu1 %v5634_v52  ;;  %v9993_v31 = vpop.f32.mrb[98].mxu0  ;;  %v5631_v10 = vsel %vm4287_vm3, %v14872_v17, -inf }
0x1698   : > { %v14878_v43 = vmul.f32 0.25, %v9993_v31  ;;  %v5594_v62 = vpop.f32.mrb[99].mxu0  ;;  %5632 = vmax.xlane.f32.xlu0 %v5631_v10 }
0x1699   : > { %v14882_v48 = vmul.f32 0.25, %v5594_v62 }
0x169a   : > { %v5640_v0 = vsel %vm4287_vm3, %v14878_v43, -inf }
0x169b   : > { %5641 = vmax.xlane.f32.xlu1 %v5640_v0  ;;  %v9996_v63 = vpop.f32.mrb[100].mxu0  ;;  %v5637_v6 = vsel %vm4287_vm3, %v14882_v48, -inf }
0x169c   : > { %v14890_v8 = vmul.f32 0.25, %v9996_v63  ;;  %v5604_v20 = vpop.f32.mrb[101].mxu0  ;;  %5638 = vmax.xlane.f32.xlu0 %v5637_v6 }
0x169d   : > { %v14892_v2 = vmul.f32 0.25, %v5604_v20  ;;  %v4864_v26 = vpop.xlane.xlu1 %4863 }
0x169e   : > { %v4884_v38 = vsub.f32 %v14777_v9, %v4864_v26  ;;  %v5646_v13 = vsel %vm4287_vm3, %v14890_v8, -inf  ;;  %v4861_v29 = vpop.xlane.xlu0 %4860 }
0x169f   : > { %5647 = vmax.xlane.f32.xlu1 %v5646_v13  ;;  %v9999_v3 = vpop.f32.mrb[102].mxu0  ;;  %v5643_v51 = vsel %vm4287_vm3, %v14892_v2, -inf  ;;  %v4883_v56 = vsub.f32 %v14779_v47, %v4861_v29 }
0x16a0   : > { %v14899_v41 = vmul.f32 0.25, %v9999_v3  ;;  %v5614_v57 = vpop.f32.mrb[103].mxu0  ;;  %5644 = vmax.xlane.f32.xlu0 %v5643_v51  ;;  %v4893_v21 = vmul.f32 1.442695, %v4884_v38 }
0x16a1   : > { %v14901_v1 = vmul.f32 0.25, %v5614_v57  ;;  %v4891_v22 = vmul.f32 1.442695, %v4883_v56 }
0x16a2   : > { %v5652_v9 = vsel %vm4287_vm3, %v14899_v41, -inf  ;;  %v4870_v49 = vpop.xlane.xlu0 %4869  ;;  %12034 = vpow2.f32 %v4893_v21 }
0x16a3   : > { %5653 = vmax.xlane.f32.xlu1 %v5652_v9  ;;  %v10030_v58 = vpop.f32.mrb[104].mxu0  ;;  %v5649_v25 = vsel %vm4287_vm3, %v14901_v1, -inf  ;;  %12036 = vpow2.f32 %v4891_v22  ;;  %v4886_v62 = vsub.f32 %v14787_v28, %v4870_v49 }
0x16a4   : > { %v14908_v59 = vmul.f32 0.25, %v10030_v58  ;;  %v5974_v37 = vpop.f32.mrb[105].mxu0  ;;  %5650 = vmax.xlane.f32.xlu0 %v5649_v25 }
0x16a5   : > { %v14910_v30 = vmul.f32 0.25, %v5974_v37  ;;  %v4897_v29 = vmul.f32 1.442695, %v4886_v62 }
0x16a6   : > { %v6024_v47 = vsel %vm4287_vm3, %v14908_v59, -inf  ;;  %v4867_v63 = vpop.xlane.xlu0 %4866 }
0x16a7   : > { %6025 = vmax.xlane.f32.xlu1 %v6024_v47  ;;  %v10033_v54 = vpop.f32.mrb[106].mxu0  ;;  %v6021_v5 = vsel %vm4287_vm3, %v14910_v30, -inf  ;;  %v4885_v3 = vsub.f32 %v14792_v27, %v4867_v63  ;;  %12038 = vpow2.f32 %v4897_v29  ;;  %v4876_v27 = vpop.xlane.xlu1 %4875 }
0x16a8   : > { %v14916_v52 = vmul.f32 0.25, %v10033_v54  ;;  %v5984_v31 = vpop.f32.mrb[107].mxu0  ;;  %6022 = vmax.xlane.f32.xlu0 %v6021_v5  ;;  %v4888_v5 = vsub.f32 %v14795_v7, %v4876_v27 }
0x16a9   : > { %v14918_v10 = vmul.f32 0.25, %v5984_v31  ;;  %v4895_v58 = vmul.f32 1.442695, %v4885_v3 }
0x16aa   : > { %v6030_v0 = vsel %vm4287_vm3, %v14916_v52, -inf  ;;  %v4873_v62 = vpop.xlane.xlu0 %4872  ;;  %v4901_v29 = vmul.f32 1.442695, %v4888_v5 }
0x16ab   : > { %6031 = vmax.xlane.f32.xlu1 %v6030_v0  ;;  %v10036_v6 = vpop.f32.mrb[108].mxu0  ;;  %v6027_v20 = vsel %vm4287_vm3, %v14918_v10, -inf  ;;  %12040 = vpow2.f32 %v4895_v58  ;;  %v4887_v3 = vsub.f32 %v14800_v11, %v4873_v62  ;;  %v4882_v27 = vpop.xlane.xlu1 %4881 }
0x16ac   : > { %v14925_v26 = vmul.f32 0.25, %v10036_v6  ;;  %v5994_v38 = vpop.f32.mrb[109].mxu0  ;;  %6028 = vmax.xlane.f32.xlu0 %v6027_v20  ;;  %v14934_v21 = vpop.eup %12034  ;;  %12042 = vpow2.f32 %v4901_v29 }
0x16ad   : > { %v14927_v13 = vmul.f32 0.25, %v5994_v38  ;;  %v4910_v49 = vsel %vm4287_vm3, %v14934_v21, 0.0  ;;  %v14942_v22 = vpop.eup %12036 }
0x16ae   : > { %v6036_v28 = vsel %vm4287_vm3, %v14925_v26, -inf  ;;  %v4907_v6 = vsel %vm4287_vm3, %v14942_v22, 0.0  ;;  %v4879_v29 = vpop.xlane.xlu0 %4878 }
0x16af   : > { %6037 = vmax.xlane.f32.xlu1 %v6036_v28  ;;  %v10039_v51 = vpop.f32.mrb[110].mxu0  ;;  %v6033_v57 = vsel %vm4287_vm3, %v14927_v13, -inf }
0x16b0   : > { %v14936_v56 = vmul.f32 0.25, %v10039_v51  ;;  %v6004_v9 = vpop.f32.mrb[111].mxu0  ;;  %6034 = vmax.xlane.f32.xlu0 %v6033_v57 }
0x16b1   : > { %v14949_v0 = vmul.f32 0.25, %v6004_v9  ;;  %v14960_v57 = vpop.eup %12038 }
0x16b2   : > { %v6042_v25 = vsel %vm4287_vm3, %v14936_v56, -inf }
0x16b3   : > { %6043 = vmax.xlane.f32.xlu1 %v6042_v25  ;;  %v10070_v37 = vpop.f32.mrb[112].mxu0  ;;  %v6039_v51 = vsel %vm4287_vm3, %v14949_v0, -inf  ;;  %v4899_v25 = vmul.f32 1.442695, %v4887_v3 }
0x16b4   : > { %v14944_v47 = vmul.f32 0.25, %v10070_v37  ;;  %v6364_v54 = vpop.f32.mrb[113].mxu0  ;;  %4911 = vadd.xlane.f32.xlu0 %v4910_v49  ;;  %v4916_v49 = vsel %vm4287_vm3, %v14960_v57, 0.0 }
0x16b5   : > { %v14970_v5 = vpop.eup %12040  ;;  %12044 = vpow2.f32 %v4899_v25  ;;  %v14979_v3 = vmul.f32 0.25, %v6364_v54 }
0x16b6   : > { %v6414_v31 = vsel %vm4287_vm3, %v14944_v47, -inf }
0x16b7   : > { %6415 = vmax.xlane.f32.xlu1 %v6414_v31  ;;  %v10073_v63 = vpop.f32.mrb[114].mxu0  ;;  %v6411_v54 = vsel %vm4287_vm3, %v14979_v3, -inf }
0x16b8   : > { %v14953_v20 = vmul.f32 0.25, %v10073_v63  ;;  %v6374_v38 = vpop.f32.mrb[115].mxu0  ;;  %4908 = vadd.xlane.f32.xlu0 %v4907_v6  ;;  %v4890_v63 = vsub.f32 %v14805_v46, %v4882_v27  ;;  %v4889_v46 = vsub.f32 %v14810_v60, %v4879_v29 }
0x16ba   : > { %v6420_v7 = vsel %vm4287_vm3, %v14953_v20, -inf }
0x16bb   : > { %6421 = vmax.xlane.f32.xlu1 %v6420_v7  ;;  %v10076_v28 = vpop.f32.mrb[116].mxu0 }
0x16bc   : > { %v14962_v9 = vmul.f32 0.25, %v10076_v28  ;;  %v14964_v58 = vpop.f32.mrb[117].mxu0  ;;  %6040 = vmax.xlane.f32.xlu0 %v6039_v51  ;;  %v4913_v28 = vsel %vm4287_vm3, %v14970_v5, 0.0 }
0x16be   : > { %v6426_v11 = vsel %vm4287_vm3, %v14962_v9, -inf }
0x16bf   : > { %6427 = vmax.xlane.f32.xlu1 %v6426_v11  ;;  %v10079_v37 = vpop.f32.mrb[118].mxu0 }
0x16c0   : > { %v14972_v31 = vmul.f32 0.25, %v10079_v37  ;;  %v14974_v62 = vpop.f32.mrb[119].mxu0  ;;  %4917 = vadd.xlane.f32.xlu0 %v4916_v49  ;;  %v4905_v37 = vmul.f32 1.442695, %v4890_v63  ;;  %v14992_v49 = vpop.eup %12042 }
0x16c1   : > { %v4922_v29 = vsel %vm4287_vm3, %v14992_v49, 0.0 }
0x16c2   : > { %v6432_v6 = vsel %vm4287_vm3, %v14972_v31, -inf  ;;  %12046 = vpow2.f32 %v4905_v37 }
0x16c3   : > { %6433 = vmax.xlane.f32.xlu1 %v6432_v6  ;;  %v10110_v7 = vpop.f32.mrb[120].mxu0 }
0x16c4   : > { %v14983_v51 = vmul.f32 0.25, %v10110_v7  ;;  %v14985_v11 = vpop.f32.mrb[121].mxu0  ;;  %4914 = vadd.xlane.f32.xlu0 %v4913_v28  ;;  %v4903_v28 = vmul.f32 1.442695, %v4889_v46  ;;  %v15010_v46 = vmul.f32 0.25, %v6374_v38 }
0x16c6   : > { %v6804_v25 = vsel %vm4287_vm3, %v14983_v51, -inf  ;;  %12048 = vpow2.f32 %v4903_v28  ;;  %v6417_v28 = vsel %vm4287_vm3, %v15010_v46, -inf }
0x16c7   : > { %6805 = vmax.xlane.f32.xlu1 %v6804_v25  ;;  %v10113_v27 = vpop.f32.mrb[122].mxu0  ;;  %v15002_v25 = vpop.eup %12044 }
0x16c8   : > { %v14994_v6 = vmul.f32 0.25, %v10113_v27  ;;  %v14996_v7 = vpop.f32.mrb[123].mxu0  ;;  %6412 = vmax.xlane.f32.xlu0 %v6411_v54 }
0x16ca   : > { %v6810_v60 = vsel %vm4287_vm3, %v14994_v6, -inf }
0x16cb   : > { %6811 = vmax.xlane.f32.xlu1 %v6810_v60  ;;  %v10116_v63 = vpop.f32.mrb[124].mxu0  ;;  %v4919_v60 = vsel %vm4287_vm3, %v15002_v25, 0.0 }
0x16cc   : > { %v15004_v16 = vmul.f32 0.25, %v10116_v63  ;;  %v6774_v50 = vpop.f32.mrb[125].mxu0  ;;  %4923 = vadd.xlane.f32.xlu0 %v4922_v29  ;;  %v15020_v29 = vpop.eup %12046 }
0x16cd   : > { %v15006_v27 = vmul.f32 0.25, %v6774_v50  ;;  %15976 = vst [vmem:[#allocation39_spill] sm:$0xff] %v15020_v29 }
0x16ce   : > { %15973 = vst [vmem:[#allocation32_spill] sm:$0xff] %v15004_v16  ;;  %v6816_v37 = vsel %vm4287_vm3, %v15004_v16, -inf }
0x16cf   : > { %15974 = vst [vmem:[#allocation35_spill] sm:$0xff] %v15006_v27  ;;  %6817 = vmax.xlane.f32.xlu1 %v6816_v37  ;;  %v10119_v54 = vpop.f32.mrb[126].mxu0  ;;  %v6813_v63 = vsel %vm4287_vm3, %v15006_v27, -inf }
0x16d0   : > { %v6784_v19 = vpop.f32.mrb[127].mxu0  ;;  %4920 = vadd.xlane.f32.xlu0 %v4919_v60  ;;  %v15014_v35 = vmul.f32 0.25, %v10119_v54  ;;  %v4928_v60 = vsel %vm4287_vm3, %v15020_v29, 0.0  ;;  %v15028_v55 = vpop.eup %12048 }
0x16d1   : > { %v15022_v37 = vmul.f32 0.25, %v6784_v19  ;;  %v15035_v19 = vmul.f32 0.25, %v14964_v58 }
0x16d2   : > { %15975 = vst [vmem:[#allocation36_spill] sm:$0xff] %v15014_v35  ;;  %v6822_v18 = vsel %vm4287_vm3, %v15014_v35, -inf }
0x16d3   : > { %6814 = vmax.xlane.f32.xlu1 %v6813_v63  ;;  %v10150_v50 = vpop.f32.mrb[128].mxu0  ;;  %15977 = vst [vmem:[#allocation40_spill] sm:$0xff] %v15022_v37  ;;  %v6819_v12 = vsel %vm4287_vm3, %v15022_v37, -inf  ;;  %v6423_v58 = vsel %vm4287_vm3, %v15035_v19, -inf }
0x16d4   : > { %v7144_v38 = vpop.f32.mrb[129].mxu0  ;;  %6418 = vmax.xlane.f32.xlu0 %v6417_v28  ;;  %v15030_v42 = vmul.f32 0.25, %v10150_v50  ;;  %v15044_v50 = vmul.f32 0.25, %v14974_v62 }
0x16d5   : > { %v15039_v61 = vmul.f32 0.25, %v7144_v38  ;;  %v15053_v38 = vmul.f32 0.25, %v14985_v11 }
0x16d6   : > { %15978 = vst [vmem:[#allocation21_spill] sm:$0xff] %v15030_v42  ;;  %v6429_v62 = vsel %vm4287_vm3, %v15044_v50, -inf }
0x16d7   : > { %6823 = vmax.xlane.f32.xlu1 %v6822_v18  ;;  %v10153_v54 = vpop.f32.mrb[130].mxu0  ;;  %v4925_v18 = vsel %vm4287_vm3, %v15028_v55, 0.0  ;;  %15979 = vst [vmem:[#allocation22_spill] sm:$0xff] %v15039_v61  ;;  %v6801_v11 = vsel %vm4287_vm3, %v15053_v38, -inf }
0x16d8   : > { %v7154_v63 = vpop.f32.mrb[131].mxu0  ;;  %4929 = vadd.xlane.f32.xlu0 %v4928_v60  ;;  %v7194_v60 = vsel %vm4287_vm3, %v15030_v42, -inf  ;;  %v15048_v37 = vmul.f32 0.25, %v10153_v54  ;;  %v15062_v54 = vmul.f32 0.25, %v14996_v7 }
0x16d9   : > { %v15057_v35 = vmul.f32 0.25, %v7154_v63 }
0x16da   : > { %15980 = vst [vmem:[#allocation23_spill] sm:$0xff] %v15048_v37 }
0x16db   : > { %6820 = vmax.xlane.f32.xlu1 %v6819_v12  ;;  %v10156_v28 = vpop.f32.mrb[132].mxu0  ;;  %15981 = vst [vmem:[#allocation24_spill] sm:$0xff] %v15057_v35 }
0x16dc   : > { %4926 = vadd.xlane.f32.xlu0 %v4925_v18  ;;  %v7164_v45 = vpop.f32.mrb[133].mxu0  ;;  %v7191_v18 = vsel %vm4287_vm3, %v15039_v61, -inf  ;;  %v15066_v27 = vmul.f32 0.25, %v10156_v28 }
0x16dd   : > { %v15072_v16 = vmul.f32 0.25, %v7164_v45 }
0x16de   : > { %15982 = vst [vmem:[#allocation25_spill] sm:$0xff] %v15066_v27 }
0x16df   : > { %7195 = vmax.xlane.f32.xlu1 %v7194_v60  ;;  %v10159_v23 = vpop.f32.mrb[134].mxu0  ;;  %15983 = vst [vmem:[#allocation26_spill] sm:$0xff] %v15072_v16 }
0x16e0   : > { %6424 = vmax.xlane.f32.xlu0 %v6423_v58  ;;  %v7174_v12 = vpop.f32.mrb[135].mxu0  ;;  %v7200_v58 = vsel %vm4287_vm3, %v15048_v37, -inf  ;;  %v6807_v37 = vsel %vm4287_vm3, %v15062_v54, -inf  ;;  %v15076_v28 = vmul.f32 0.25, %v10159_v23 }
0x16e3   : > { %7192 = vmax.xlane.f32.xlu1 %v7191_v18  ;;  %v10190_v42 = vpop.f32.mrb[136].mxu0 }
0x16e4   : > { %6430 = vmax.xlane.f32.xlu0 %v6429_v62  ;;  %v7534_v60 = vpop.f32.mrb[137].mxu0  ;;  %v7197_v62 = vsel %vm4287_vm3, %v15057_v35, -inf  ;;  %v7203_v35 = vsel %vm4287_vm3, %v15072_v16, -inf  ;;  %v15084_v45 = vmul.f32 0.25, %v10190_v42 }
0x16e6   : > { %v7584_v23 = vsel %vm4287_vm3, %v15084_v45, -inf }
0x16e7   : > { %7201 = vmax.xlane.f32.xlu1 %v7200_v58  ;;  %v10193_v61 = vpop.f32.mrb[138].mxu0  ;;  %v7206_v58 = vsel %vm4287_vm3, %v15066_v27, -inf }
0x16e8   : > { %6802 = vmax.xlane.f32.xlu0 %v6801_v11  ;;  %v7544_v18 = vpop.f32.mrb[139].mxu0  ;;  %v15092_v16 = vmul.f32 0.25, %v10193_v61 }
0x16ea   : > { %15984 = vst [vmem:[#allocation27_spill] sm:$0xff] %v15092_v16  ;;  %v7590_v42 = vsel %vm4287_vm3, %v15092_v16, -inf }
0x16eb   : > { %7198 = vmax.xlane.f32.xlu1 %v7197_v62  ;;  %v10196_v63 = vpop.f32.mrb[140].mxu0  ;;  %v15080_v62 = vmul.f32 0.25, %v7174_v12  ;;  %v15096_v12 = vmul.f32 0.25, %v7544_v18 }
0x16ec   : > { %6808 = vmax.xlane.f32.xlu0 %v6807_v37  ;;  %v7554_v7 = vpop.f32.mrb[141].mxu0  ;;  %v7212_v37 = vsel %vm4287_vm3, %v15076_v28, -inf }
0x16ed   : > { %v7209_v27 = vsel %vm4287_vm3, %v15080_v62, -inf  ;;  %15985 = vst [vmem:[#allocation28_spill] sm:$0xff] %v15096_v12 }
0x16ef   : > { %7207 = vmax.xlane.f32.xlu1 %v7206_v58  ;;  %v10199_v11 = vpop.f32.mrb[142].mxu0  ;;  %v15088_v58 = vmul.f32 0.25, %v7534_v60  ;;  %v15104_v60 = vmul.f32 0.25, %v7554_v7 }
0x16f0   : > { %v7564_v29 = vpop.f32.mrb[143].mxu0 }
0x16f1   : > { %15987 = vst [vmem:[#allocation46_spill] sm:$0xff] %v15104_v60  ;;  %v7593_v18 = vsel %vm4287_vm3, %v15104_v60, -inf }
0x16f3   : > { %7204 = vmax.xlane.f32.xlu1 %v7203_v35  ;;  %v7581_v35 = vsel %vm4287_vm3, %v15088_v58, -inf }
0x16f7   : > { %7213 = vmax.xlane.f32.xlu1 %v7212_v37  ;;  %v15100_v37 = vmul.f32 0.25, %v10196_v63 }
0x16f9   : > { %15986 = vst [vmem:[#allocation45_spill] sm:$0xff] %v15100_v37  ;;  %v7596_v61 = vsel %vm4287_vm3, %v15100_v37, -inf }
0x16fb   : > { %7210 = vmax.xlane.f32.xlu1 %v7209_v27  ;;  %v7587_v27 = vsel %vm4287_vm3, %v15096_v12, -inf  ;;  %v15114_v12 = vmul.f32 0.25, %v7564_v29 }
0x16ff   : > { %7585 = vmax.xlane.f32.xlu1 %v7584_v23  ;;  %v15108_v23 = vmul.f32 0.25, %v10199_v11 }
0x1703   : > { %7582 = vmax.xlane.f32.xlu1 %v7581_v35 }
0x1707   : > { %7591 = vmax.xlane.f32.xlu1 %v7590_v42 }
0x170b   : > { %7588 = vmax.xlane.f32.xlu1 %v7587_v27  ;;  %v7602_v27 = vsel %vm4287_vm3, %v15108_v23, -inf }
0x170f   : > { %7597 = vmax.xlane.f32.xlu1 %v7596_v61 }
0x1713   : > { %7594 = vmax.xlane.f32.xlu1 %v7593_v18  ;;  %v5242_v35 = vpop.xlane.xlu1 %5241 }
0x1714   : > { %v5262_v63 = vsub.f32 %v14826_v53, %v5242_v35  ;;  %v5239_v42 = vpop.xlane.xlu0 %5238 }
0x1715   : > { %v5261_v16 = vsub.f32 %v14828_v39, %v5239_v42  ;;  %v7599_v39 = vsel %vm4287_vm3, %v15114_v12, -inf }
0x1716   : > { %v5271_v7 = vmul.f32 1.442695, %v5262_v63 }
0x1717   : > { %v5269_v37 = vmul.f32 1.442695, %v5261_v16  ;;  %7603 = vmax.xlane.f32.xlu1 %v7602_v27  ;;  %v5248_v11 = vpop.xlane.xlu1 %5247 }
0x1718   : > { %12050 = vpow2.f32 %v5271_v7  ;;  %v5264_v61 = vsub.f32 %v14836_v32, %v5248_v11  ;;  %v5245_v60 = vpop.xlane.xlu0 %5244 }
0x1719   : > { %12052 = vpow2.f32 %v5269_v37  ;;  %v5263_v53 = vsub.f32 %v14838_v40, %v5245_v60 }
0x171a   : > { %v5275_v18 = vmul.f32 1.442695, %v5264_v61 }
0x171b   : > { %7600 = vmax.xlane.f32.xlu1 %v7599_v39  ;;  %v5254_v29 = vpop.xlane.xlu1 %5253  ;;  %v5273_v63 = vmul.f32 1.442695, %v5263_v53 }
0x171c   : > { %v5251_v35 = vpop.xlane.xlu0 %5250  ;;  %12054 = vpow2.f32 %v5275_v18  ;;  %v5266_v16 = vsub.f32 %v14846_v44, %v5254_v29 }
0x171d   : > { %12056 = vpow2.f32 %v5273_v63  ;;  %v5265_v37 = vsub.f32 %v14848_v34, %v5251_v35 }
0x171e   : > { %v5279_v32 = vmul.f32 1.442695, %v5266_v16 }
0x171f   : > { %v5260_v42 = vpop.xlane.xlu1 %5259  ;;  %v5277_v18 = vmul.f32 1.442695, %v5265_v37 }
0x1720   : > { %v5257_v27 = vpop.xlane.xlu0 %5256  ;;  %12058 = vpow2.f32 %v5279_v32  ;;  %v5268_v44 = vsub.f32 %v14858_v24, %v5260_v42 }
0x1721   : > { %12060 = vpow2.f32 %v5277_v18  ;;  %v5267_v16 = vsub.f32 %v14860_v36, %v5257_v27 }
0x1722   : > { %v15123_v7 = vpop.eup %12050  ;;  %v5283_v63 = vmul.f32 1.442695, %v5268_v44 }
0x1723   : > { %15988 = vst [vmem:[#allocation47_spill] sm:$0xff] %v15123_v7  ;;  %v5288_v40 = vsel %vm4287_vm3, %v15123_v7, 0.0  ;;  %v15128_v60 = vpop.eup %12052  ;;  %v5281_v18 = vmul.f32 1.442695, %v5267_v16 }
0x1724   : > { %v5636_v11 = vpop.xlane.xlu1 %5635  ;;  %5289 = vadd.xlane.f32.xlu0 %v5288_v40  ;;  %v5285_v53 = vsel %vm4287_vm3, %v15128_v60, 0.0 }
0x1725   : > { %v5633_v61 = vpop.xlane.xlu0 %5632  ;;  %v5656_v44 = vsub.f32 %v14868_v4, %v5636_v11 }
0x1726   : > { %v15133_v39 = vpop.eup %12054 }
0x1727   : > { %v5294_v24 = vsel %vm4287_vm3, %v15133_v39, 0.0  ;;  %v15140_v42 = vpop.eup %12056 }
0x1728   : > { %v5642_v29 = vpop.xlane.xlu1 %5641  ;;  %5286 = vadd.xlane.f32.xlu0 %v5285_v53 }
0x1729   : > { %v5658_v34 = vsub.f32 %v14878_v43, %v5642_v29  ;;  %v5639_v35 = vpop.xlane.xlu0 %5638 }
0x172a   : > { %v5657_v40 = vsub.f32 %v14882_v48, %v5639_v35  ;;  %v5291_v48 = vsel %vm4287_vm3, %v15140_v42, 0.0  ;;  %v15146_v27 = vpop.eup %12058  ;;  %v5665_v35 = vmul.f32 1.442695, %v5656_v44 }
0x172b   : > { %v5669_v32 = vmul.f32 1.442695, %v5658_v34 }
0x172c   : > { %v5667_v37 = vmul.f32 1.442695, %v5657_v40  ;;  %v5648_v7 = vpop.xlane.xlu1 %5647  ;;  %5295 = vadd.xlane.f32.xlu0 %v5294_v24  ;;  %v5655_v40 = vsub.f32 %v14872_v17, %v5633_v61 }
0x172d   : > { %12062 = vpow2.f32 %v5669_v32  ;;  %v5660_v53 = vsub.f32 %v14890_v8, %v5648_v7  ;;  %v5645_v43 = vpop.xlane.xlu0 %5644  ;;  %v5300_v8 = vsel %vm4287_vm3, %v15146_v27, 0.0  ;;  %v15151_v7 = vpop.eup %12060 }
0x172e   : > { %12064 = vpow2.f32 %v5283_v63  ;;  %v5663_v63 = vmul.f32 1.442695, %v5655_v40  ;;  %v5659_v16 = vsub.f32 %v14892_v2, %v5645_v43  ;;  %v5297_v24 = vsel %vm4287_vm3, %v15151_v7, 0.0 }
0x172f   : > { %12066 = vpow2.f32 %v5667_v37  ;;  %v5673_v36 = vmul.f32 1.442695, %v5660_v53 }
0x1730   : > { %v5654_v29 = vpop.xlane.xlu1 %5653  ;;  %5292 = vadd.xlane.f32.xlu0 %v5291_v48  ;;  %12068 = vpow2.f32 %v5281_v18  ;;  %v5671_v2 = vmul.f32 1.442695, %v5659_v16 }
0x1731   : > { %v5651_v34 = vpop.xlane.xlu0 %5650  ;;  %12070 = vpow2.f32 %v5673_v36  ;;  %v5662_v43 = vsub.f32 %v14899_v41, %v5654_v29 }
0x1732   : > { %12072 = vpow2.f32 %v5665_v35 }
0x1733   : > { %12074 = vpow2.f32 %v5663_v63  ;;  %v5677_v29 = vmul.f32 1.442695, %v5662_v43 }
0x1734   : > { %v6026_v4 = vpop.xlane.xlu1 %6025  ;;  %5301 = vadd.xlane.f32.xlu0 %v5300_v8  ;;  %v5661_v8 = vsub.f32 %v14901_v1, %v5651_v34 }
0x1735   : > { %v15153_v11 = vpop.xlane.xlu0 %6022 }
0x1737   : > { %v15156_v32 = vpop.eup %12062 }
0x1738   : > { %15989 = vst [vmem:[#allocation48_spill] sm:$0xff] %v15156_v32  ;;  %v15160_v17 = vpop.eup %12064  ;;  %v6032_v61 = vpop.xlane.xlu1 %6031  ;;  %v5688_v37 = vsel %vm4287_vm3, %v15156_v32, 0.0  ;;  %5298 = vadd.xlane.f32.xlu0 %v5297_v24 }
0x1739   : > { %v15164_v53 = vpop.eup %12066  ;;  %v6048_v18 = vsub.f32 %v14916_v52, %v6032_v61  ;;  %5689 = vadd.xlane.f32.xlu1 %v5688_v37  ;;  %v6029_v44 = vpop.xlane.xlu0 %6028  ;;  %v5306_v35 = vsel %vm4287_vm3, %v15160_v17, 0.0  ;;  %v5675_v61 = vmul.f32 1.442695, %v5661_v8  ;;  %v6045_v8 = vsub.f32 %v14910_v30, %v15153_v11 }
0x173a   : > { %v6047_v36 = vsub.f32 %v14918_v10, %v6029_v44  ;;  %v15171_v40 = vpop.eup %12068  ;;  %v5685_v52 = vsel %vm4287_vm3, %v15164_v53, 0.0 }
0x173b   : > { %v6059_v48 = vmul.f32 1.442695, %v6048_v18  ;;  %v15176_v63 = vpop.eup %12070  ;;  %v5303_v1 = vsel %vm4287_vm3, %v15171_v40, 0.0 }
0x173c   : > { %v6057_v24 = vmul.f32 1.442695, %v6047_v36  ;;  %v6038_v32 = vpop.xlane.xlu1 %6037  ;;  %5307 = vadd.xlane.f32.xlu0 %v5306_v35  ;;  %v15181_v34 = vpop.eup %12072  ;;  %v5694_v18 = vsel %vm4287_vm3, %v15176_v63, 0.0 }
0x173d   : > { %12076 = vpow2.f32 %v6059_v48  ;;  %v6050_v41 = vsub.f32 %v14925_v26, %v6038_v32  ;;  %5686 = vadd.xlane.f32.xlu1 %v5685_v52  ;;  %v6035_v10 = vpop.xlane.xlu0 %6034  ;;  %v6046_v26 = vsub.f32 %v14908_v59, %v6026_v4  ;;  %v5682_v32 = vsel %vm4287_vm3, %v15181_v34, 0.0 }
0x173e   : > { %12078 = vpow2.f32 %v5671_v2  ;;  %v15188_v2 = vpop.eup %12074 }
0x173f   : > { %12080 = vpow2.f32 %v6057_v24  ;;  %v6063_v16 = vmul.f32 1.442695, %v6050_v41  ;;  %v6055_v35 = vmul.f32 1.442695, %v6046_v26  ;;  %v5679_v4 = vsel %vm4287_vm3, %v15188_v2, 0.0 }
0x1740   : > { %v6044_v37 = vpop.xlane.xlu1 %6043  ;;  %5304 = vadd.xlane.f32.xlu0 %v5303_v1  ;;  %12082 = vpow2.f32 %v5677_v29  ;;  %v6049_v41 = vsub.f32 %v14927_v13, %v6035_v10  ;;  %v6053_v1 = vmul.f32 1.442695, %v6045_v8 }
0x1741   : > { %5695 = vadd.xlane.f32.xlu1 %v5694_v18  ;;  %v4912_v44 = vpop.xlane.xlu0 %4911  ;;  %12084 = vpow2.f32 %v6063_v16 }
0x1742   : > { %12086 = vpow2.f32 %v5675_v61  ;;  %v6061_v13 = vmul.f32 1.442695, %v6049_v41 }
0x1743   : > { %12088 = vrcp.f32 %v4912_v44 }
0x1744   : > { %v6416_v43 = vpop.xlane.xlu1 %6415  ;;  %5683 = vadd.xlane.f32.xlu0 %v5682_v32 }
0x1745   : > { %v6436_v36 = vsub.f32 %v14944_v47, %v6416_v43  ;;  %v4909_v48 = vpop.xlane.xlu0 %4908 }
0x1746   : > { %12090 = vrcp.f32 %v4909_v48 }
0x1747   : > { %v15193_v24 = vpop.eup %12076  ;;  %v6445_v59 = vmul.f32 1.442695, %v6436_v36  ;;  %v6052_v36 = vsub.f32 %v14936_v56, %v6044_v37 }
0x1748   : > { %v15197_v52 = vpop.eup %12078  ;;  %v6422_v29 = vpop.xlane.xlu1 %6421  ;;  %5680 = vadd.xlane.f32.xlu0 %v5679_v4  ;;  %v6078_v47 = vsel %vm4287_vm3, %v15193_v24, 0.0  ;;  %v11601_v4 = vunpack.i.l.bf16 %v14820_v14 }
0x1749   : > { %v15202_v16 = vpop.eup %12080  ;;  %12092 = vpow2.f32 %v6445_v59  ;;  %v6438_v30 = vsub.f32 %v14953_v20, %v6422_v29  ;;  %6079 = vadd.xlane.f32.xlu1 %v6078_v47  ;;  %v6041_v11 = vpop.xlane.xlu0 %6040  ;;  %v5691_v18 = vsel %vm4287_vm3, %v15197_v52, 0.0  ;;  %v11602_v59 = vunpack.i.h.bf16 %v14820_v14 }
0x174a   : > { %12094 = vpow2.f32 %v6055_v35  ;;  %v15207_v44 = vpop.eup %12082  ;;  %v6075_v26 = vsel %vm4287_vm3, %v15202_v16, 0.0  ;;  %v6067_v37 = vmul.f32 1.442695, %v6052_v36 }
0x174b   : > { %v6449_v61 = vmul.f32 1.442695, %v6438_v30  ;;  %v15213_v32 = vpop.eup %12084  ;;  %v5700_v35 = vsel %vm4287_vm3, %v15207_v44, 0.0 }
0x174c   : > { %v15209_v10 = vpop.xlane.xlu1 %6427  ;;  %5692 = vadd.xlane.f32.xlu0 %v5691_v18  ;;  %v15215_v43 = vpop.eup %12086  ;;  %v6084_v29 = vsel %vm4287_vm3, %v15213_v32, 0.0 }
0x174d   : > { %12096 = vpow2.f32 %v6449_v61  ;;  %6076 = vadd.xlane.f32.xlu1 %v6075_v26  ;;  %v4918_v20 = vpop.xlane.xlu0 %4917  ;;  %v12089_v48 = vpop.eup %12088  ;;  %v5697_v14 = vsel %vm4287_vm3, %v15215_v43, 0.0  ;;  %v11576_v26 = vunpack.i.l.bf16 %v14824_v33 }
0x174e   : > { %12098 = vpow2.f32 %v6053_v1  ;;  %v4940_v30 = vmul.f32 %v12089_v48, %v14934_v21  ;;  %v6051_v1 = vsub.f32 %v14949_v0, %v6041_v11  ;;  %v10780_v0 = vpack.c.bf16 %v11602_v59, %v11601_v4 }
0x174f   : > { %12100 = vpow2.f32 %v6061_v13  ;;  %v11577_v13 = vunpack.i.h.bf16 %v14824_v33 }
0x1750   : > { %v12091_v8 = vpop.eup %12090  ;;  %v15222_v41 = vpop.xlane.xlu1 %6433  ;;  %5701 = vadd.xlane.f32.xlu0 %v5700_v35  ;;  %12102 = vrcp.f32 %v4918_v20  ;;  %v6065_v20 = vmul.f32 1.442695, %v6051_v1 }
0x1751   : > { %6085 = vadd.xlane.f32.xlu1 %v6084_v29  ;;  %v4915_v47 = vpop.xlane.xlu0 %4914  ;;  %v4939_v56 = vmul.f32 %v12091_v8, %v14942_v22  ;;  %v15251_v59 = vpack.c.bf16 %v11577_v13, %v11576_v26 }
0x1752   : > { %12104 = vrcp.f32 %v4915_v47 }
0x1753   : > { %v15229_v61 = vpop.eup %12092  ;;  %9928 = vmatprep.mubr.msk.f32.mxu1 %vm4287_vm3, %v4939_v56  ;;  %12106 = vpow2.f32 %v6067_v37 }
0x1754   : > { %v15234_v18 = vpop.eup %12094  ;;  %v6806_v22 = vpop.xlane.xlu1 %6805  ;;  %9929 = vmatmul.mubr.msk.f32.vlgmr.msra.gmra.mrb[96].mxu1 %vm4287_vm3, %v4940_v30  ;;  %5698 = vadd.xlane.f32.xlu0 %v5697_v14  ;;  %v6462_v21 = vsel %vm4287_vm3, %v15229_v61, 0.0  ;;  %12108 = vpow2.f32 %v6065_v20 }
0x1755   : > { %10779 = vmatpush3.bf16.msra.mxu1 %v14817_v15  ;;  %6463 = vadd.xlane.f32.xlu1 %v6462_v21  ;;  %v6413_v11 = vpop.xlane.xlu0 %6412  ;;  %v6072_v33 = vsel %vm4287_vm3, %v15234_v18, 0.0 }
0x1756   : > { %v6435_v36 = vsub.f32 %v14979_v3, %v6413_v11  ;;  %10781 = vmatprep.subr.bf16.mxu1 %v10780_v0 }
0x1757   : > { %v15243_v48 = vpop.eup %12096 }
0x1758   : > { %v15247_v35 = vpop.eup %12098  ;;  %v6443_v8 = vmul.f32 1.442695, %v6435_v36  ;;  %v6812_v29 = vpop.xlane.xlu1 %6811  ;;  %6073 = vadd.xlane.f32.xlu0 %v6072_v33  ;;  %v6468_v15 = vsel %vm4287_vm3, %v15243_v48, 0.0 }
0x1759   : > { %10783 = vmatpush3.bf16.msra.mxu1 %v10780_v0  ;;  %6469 = vadd.xlane.f32.xlu1 %v6468_v15  ;;  %v4924_v4 = vpop.xlane.xlu0 %4923  ;;  %v15253_v3 = vpop.eup %12100  ;;  %v6069_v56 = vsel %vm4287_vm3, %v15247_v35, 0.0  ;;  %v6440_v0 = vsub.f32 %v14962_v9, %v15209_v10 }
0x175a   : > { %10797 = vmatprep.subr.bf16.mxu1 %v15251_v59  ;;  %v12103_v47 = vpop.eup %12102  ;;  %12110 = vpow2.f32 %v6443_v8  ;;  %v6081_v26 = vsel %vm4287_vm3, %v15253_v3, 0.0  ;;  %v6826_v8 = vsub.f32 %v14983_v51, %v6806_v22 }
0x175b   : > { %12112 = vrcp.f32 %v4924_v4  ;;  %v4942_v13 = vmul.f32 %v12103_v47, %v14960_v57  ;;  %v6453_v33 = vmul.f32 1.442695, %v6440_v0  ;;  %v6442_v0 = vsub.f32 %v14972_v31, %v15222_v41 }
0x175c   : > { %v12105_v37 = vpop.eup %12104  ;;  %v15258_v30 = vpop.xlane.xlu1 %6817  ;;  %6070 = vadd.xlane.f32.xlu0 %v6069_v56 }
0x175d   : > { %v4921_v1 = vpop.xlane.xlu0 %4920  ;;  %v4941_v14 = vmul.f32 %v12105_v37, %v14970_v5  ;;  %v15265_v21 = vpop.eup %12106  ;;  %v6835_v37 = vmul.f32 1.442695, %v6826_v8 }
0x175e   : > { %12114 = vrcp.f32 %v4921_v1  ;;  %v6090_v57 = vsel %vm4287_vm3, %v15265_v21, 0.0  ;;  %v15275_v36 = vpop.eup %12108  ;;  %v6828_v1 = vsub.f32 %v14994_v6, %v6812_v29 }
0x175f   : > { %9931 = vmatprep.mubr.msk.f32.mxu1 %vm4287_vm3, %v4941_v14 }
0x1760   : > { %v15269_v11 = vpop.xlane.xlu1 %6814  ;;  %9932 = vmatmul.mubr.msk.f32.gmra.mrb[98].mxu1 %vm4287_vm3, %v4942_v13  ;;  %6082 = vadd.xlane.f32.xlu0 %v6081_v26  ;;  %v6839_v6 = vmul.f32 1.442695, %v6828_v1 }
0x1761   : > { %v6419_v20 = vpop.xlane.xlu0 %6418 }
0x1762   : > { %v6437_v5 = vsub.f32 %v15010_v46, %v6419_v20  ;;  %v6087_v46 = vsel %vm4287_vm3, %v15275_v36, 0.0 }
0x1764   : > { %v6447_v15 = vmul.f32 1.442695, %v6437_v5  ;;  %v15278_v4 = vpop.xlane.xlu1 %6823  ;;  %6091 = vadd.xlane.f32.xlu0 %v6090_v57  ;;  %v15280_v10 = vpop.eup %12110 }
0x1765   : > { %v4930_v9 = vpop.xlane.xlu0 %4929  ;;  %v12113_v47 = vpop.eup %12112  ;;  %v6459_v26 = vsel %vm4287_vm3, %v15280_v10, 0.0 }
0x1766   : > { %12116 = vpow2.f32 %v6447_v15  ;;  %v4944_v13 = vmul.f32 %v12113_v47, %v14992_v49  ;;  %v6457_v49 = vmul.f32 1.442695, %v6442_v0 }
0x1767   : > { %12118 = vpow2.f32 %v6453_v33 }
0x1768   : > { %v12115_v56 = vpop.eup %12114  ;;  %v15285_v14 = vpop.xlane.xlu1 %6820  ;;  %6088 = vadd.xlane.f32.xlu0 %v6087_v46  ;;  %12120 = vrcp.f32 %v4930_v9 }
0x1769   : > { %v4927_v51 = vpop.xlane.xlu0 %4926  ;;  %v4943_v22 = vmul.f32 %v12115_v56, %v15002_v25 }
0x176a   : > { %12122 = vrcp.f32 %v4927_v51 }
0x176b   : > { %9934 = vmatprep.mubr.msk.f32.mxu1 %vm4287_vm3, %v4943_v22  ;;  %12124 = vpow2.f32 %v6835_v37 }
0x176c   : > { %v7196_v29 = vpop.xlane.xlu1 %7195  ;;  %9935 = vmatmul.mubr.msk.f32.gmra.mrb[100].mxu1 %vm4287_vm3, %v4944_v13  ;;  %6460 = vadd.xlane.f32.xlu0 %v6459_v26  ;;  %12126 = vpow2.f32 %v6839_v6  ;;  %v15990_v13 = vld [vmem:[#allocation39_spill] sm:$0xff] }
0x176d   : > { %v6425_v20 = vpop.xlane.xlu0 %6424  ;;  %v15992_v6 = vld [vmem:[#allocation35_spill] sm:$0xff] }
0x176e   : > { %v6439_v25 = vsub.f32 %v15035_v19, %v6425_v20  ;;  %v6829_v20 = vsub.f32 %v15992_v6, %v15269_v11 }
0x1770   : > { %v15296_v5 = vpop.eup %12116  ;;  %v6451_v57 = vmul.f32 1.442695, %v6439_v25  ;;  %v15298_v33 = vpop.xlane.xlu1 %7192  ;;  %v6841_v11 = vmul.f32 1.442695, %v6829_v20 }
0x1771   : > { %v6431_v8 = vpop.xlane.xlu0 %6430  ;;  %v6465_v31 = vsel %vm4287_vm3, %v15296_v5, 0.0  ;;  %v15302_v41 = vpop.eup %12118 }
0x1772   : > { %12128 = vpow2.f32 %v6451_v57  ;;  %v6441_v15 = vsub.f32 %v15044_v50, %v6431_v8  ;;  %6466 = vadd.xlane.f32.xlu1 %v6465_v31  ;;  %v12121_v9 = vpop.eup %12120  ;;  %v6474_v37 = vsel %vm4287_vm3, %v15302_v41, 0.0  ;;  %v15991_v50 = vld [vmem:[#allocation32_spill] sm:$0xff] }
0x1773   : > { %12130 = vpow2.f32 %v6457_v49  ;;  %v4946_v26 = vmul.f32 %v12121_v9, %v15990_v13  ;;  %v6830_v0 = vsub.f32 %v15991_v50, %v15258_v30  ;;  %v15993_v31 = vld [vmem:[#allocation36_spill] sm:$0xff]  ;;  %v15996_v50 = vld [vmem:[#allocation23_spill] sm:$0xff] }
0x1774   : > { %v12123_v47 = vpop.eup %12122  ;;  %v6455_v19 = vmul.f32 1.442695, %v6441_v15  ;;  %v7202_v46 = vpop.xlane.xlu1 %7201  ;;  %v6832_v15 = vsub.f32 %v15993_v31, %v15278_v4  ;;  %v15995_v13 = vld [vmem:[#allocation40_spill] sm:$0xff] }
0x1775   : > { %v6803_v56 = vpop.xlane.xlu0 %6802  ;;  %v4945_v1 = vmul.f32 %v12123_v47, %v15028_v55  ;;  %v15308_v51 = vpop.eup %12124  ;;  %v6843_v30 = vmul.f32 1.442695, %v6830_v0  ;;  %v15994_v47 = vld [vmem:[#allocation21_spill] sm:$0xff]  ;;  %v7218_v0 = vsub.f32 %v15996_v50, %v7202_v46  ;;  %v15998_v31 = vld [vmem:[#allocation24_spill] sm:$0xff] }
0x1776   : > { %v6825_v22 = vsub.f32 %v15053_v38, %v6803_v56  ;;  %6475 = vadd.xlane.f32.xlu1 %v6474_v37  ;;  %12132 = vpow2.f32 %v6455_v19  ;;  %v6852_v38 = vsel %vm4287_vm3, %v15308_v51, 0.0  ;;  %v15320_v57 = vpop.eup %12126  ;;  %v7216_v19 = vsub.f32 %v15994_v47, %v7196_v29 }
0x1777   : > { %9937 = vmatprep.mubr.msk.f32.mxu1 %vm4287_vm3, %v4945_v1  ;;  %v6858_v1 = vsel %vm4287_vm3, %v15320_v57, 0.0  ;;  %v6847_v4 = vmul.f32 1.442695, %v6832_v15 }
0x1778   : > { %v6833_v25 = vmul.f32 1.442695, %v6825_v22  ;;  %v7199_v49 = vpop.xlane.xlu1 %7198  ;;  %9938 = vmatmul.mubr.msk.f32.gmra.mrb[102].mxu1 %vm4287_vm3, %v4946_v26  ;;  %v6831_v26 = vsub.f32 %v15995_v13, %v15285_v14  ;;  %v7225_v29 = vmul.f32 1.442695, %v7216_v19  ;;  %v15999_v19 = vld [vmem:[#allocation25_spill] sm:$0xff] }
0x1779   : > { %v6809_v55 = vpop.xlane.xlu0 %6808  ;;  %v7217_v14 = vsub.f32 %v15998_v31, %v7199_v49 }
0x177a   : > { %v6827_v8 = vsub.f32 %v15062_v54, %v6809_v55  ;;  %6853 = vadd.xlane.f32.xlu1 %v6852_v38  ;;  %12134 = vpow2.f32 %v6833_v25  ;;  %v6845_v55 = vmul.f32 1.442695, %v6831_v26  ;;  %v15997_v38 = vld [vmem:[#allocation22_spill] sm:$0xff] }
0x177c   : > { %v15325_v9 = vpop.eup %12128  ;;  %v6837_v56 = vmul.f32 1.442695, %v6827_v8  ;;  %v7208_v37 = vpop.xlane.xlu1 %7207  ;;  %v7215_v8 = vsub.f32 %v15997_v38, %v15298_v33  ;;  %v16000_v33 = vld [vmem:[#allocation26_spill] sm:$0xff] }
0x177d   : > { %v6471_v22 = vsel %vm4287_vm3, %v15325_v9, 0.0  ;;  %v15332_v54 = vpop.eup %12130 }
0x177e   : > { %12136 = vpow2.f32 %v6837_v56  ;;  %6859 = vadd.xlane.f32.xlu1 %v6858_v1  ;;  %6472 = vadd.xlane.f32.xlu0 %v6471_v22  ;;  %v6480_v20 = vsel %vm4287_vm3, %v15332_v54, 0.0  ;;  %v7223_v47 = vmul.f32 1.442695, %v7215_v8  ;;  %v7220_v56 = vsub.f32 %v15999_v19, %v7208_v37 }
0x177f   : > { %12138 = vpow2.f32 %v6843_v30  ;;  %v7229_v30 = vmul.f32 1.442695, %v7218_v0  ;;  %v7227_v22 = vmul.f32 1.442695, %v7217_v14 }
0x1780   : > { %12140 = vpow2.f32 %v6841_v11  ;;  %v7205_v6 = vpop.xlane.xlu1 %7204  ;;  %v15339_v25 = vpop.eup %12132  ;;  %v7233_v37 = vmul.f32 1.442695, %v7220_v56 }
0x1781   : > { %12142 = vpow2.f32 %v6847_v4  ;;  %v6477_v46 = vsel %vm4287_vm3, %v15339_v25, 0.0  ;;  %v7219_v4 = vsub.f32 %v16000_v33, %v7205_v6 }
0x1782   : > { %6481 = vadd.xlane.f32.xlu0 %v6480_v20  ;;  %12144 = vpow2.f32 %v7225_v29 }
0x1783   : > { %12146 = vpow2.f32 %v6845_v55  ;;  %v7231_v20 = vmul.f32 1.442695, %v7219_v4 }
0x1784   : > { %v7214_v15 = vpop.xlane.xlu1 %7213  ;;  %v15346_v11 = vpop.eup %12134  ;;  %12148 = vpow2.f32 %v7229_v30 }
0x1785   : > { %v6849_v49 = vsel %vm4287_vm3, %v15346_v11, 0.0  ;;  %12150 = vpow2.f32 %v7223_v47  ;;  %v7222_v0 = vsub.f32 %v15076_v28, %v7214_v15 }
0x1786   : > { %6478 = vadd.xlane.f32.xlu0 %v6477_v46  ;;  %12152 = vpow2.f32 %v7227_v22 }
0x1787   : > { %12154 = vpow2.f32 %v7233_v37  ;;  %v7237_v14 = vmul.f32 1.442695, %v7222_v0 }
0x1788   : > { %v15349_v1 = vpop.eup %12136  ;;  %v7211_v13 = vpop.xlane.xlu1 %7210  ;;  %12156 = vpow2.f32 %v7231_v20 }
0x1789   : > { %v15352_v26 = vpop.eup %12138  ;;  %v6855_v29 = vsel %vm4287_vm3, %v15349_v1, 0.0  ;;  %v7221_v28 = vsub.f32 %v15080_v62, %v7211_v13  ;;  %12158 = vpow2.f32 %v7237_v14  ;;  %v16001_v13 = vld [vmem:[#allocation27_spill] sm:$0xff] }
0x178a   : > { %v15358_v50 = vpop.eup %12140  ;;  %6850 = vadd.xlane.f32.xlu0 %v6849_v49  ;;  %6856 = vadd.xlane.f32.xlu1 %v6855_v29  ;;  %v6864_v30 = vsel %vm4287_vm3, %v15352_v26, 0.0 }
0x178b   : > { %v15361_v55 = vpop.eup %12142  ;;  %v6861_v8 = vsel %vm4287_vm3, %v15358_v50, 0.0  ;;  %v7235_v22 = vmul.f32 1.442695, %v7221_v28 }
0x178c   : > { %v7586_v6 = vpop.xlane.xlu1 %7585  ;;  %v15368_v31 = vpop.eup %12144 }
0x178d   : > { %v7606_v38 = vsub.f32 %v15084_v45, %v7586_v6  ;;  %v15371_v47 = vpop.eup %12146  ;;  %v6870_v45 = vsel %vm4287_vm3, %v15361_v55, 0.0  ;;  %v7242_v19 = vsel %vm4287_vm3, %v15368_v31, 0.0 }
0x178e   : > { %6862 = vadd.xlane.f32.xlu0 %v6861_v8  ;;  %6865 = vadd.xlane.f32.xlu1 %v6864_v30  ;;  %v15377_v56 = vpop.eup %12148  ;;  %v6867_v29 = vsel %vm4287_vm3, %v15371_v47, 0.0  ;;  %v16002_v8 = vld [vmem:[#allocation28_spill] sm:$0xff] }
0x178f   : > { %v7615_v15 = vmul.f32 1.442695, %v7606_v38  ;;  %v15380_v4 = vpop.eup %12150  ;;  %v7248_v37 = vsel %vm4287_vm3, %v15377_v56, 0.0 }
0x1790   : > { %v7583_v46 = vpop.xlane.xlu1 %7582  ;;  %v15387_v0 = vpop.eup %12152  ;;  %v7239_v14 = vsel %vm4287_vm3, %v15380_v4, 0.0 }
0x1791   : > { %12160 = vpow2.f32 %v7615_v15  ;;  %v7605_v33 = vsub.f32 %v15088_v58, %v7583_v46  ;;  %v15389_v58 = vpop.eup %12154  ;;  %v7245_v28 = vsel %vm4287_vm3, %v15387_v0, 0.0 }
0x1792   : > { %6871 = vadd.xlane.f32.xlu0 %v6870_v45  ;;  %7243 = vadd.xlane.f32.xlu1 %v7242_v19  ;;  %12162 = vpow2.f32 %v7235_v22  ;;  %v15396_v15 = vpop.eup %12156  ;;  %v16003_v22 = vld [vmem:[#allocation45_spill] sm:$0xff] }
0x1793   : > { %v7613_v6 = vmul.f32 1.442695, %v7605_v33  ;;  %v15398_v19 = vpop.eup %12158 }
0x1794   : > { %v7592_v62 = vpop.xlane.xlu1 %7591 }
0x1795   : > { %v7608_v49 = vsub.f32 %v16001_v13, %v7592_v62  ;;  %v7251_v62 = vsel %vm4287_vm3, %v15396_v15, 0.0  ;;  %v7254_v13 = vsel %vm4287_vm3, %v15389_v58, 0.0 }
0x1796   : > { %6868 = vadd.xlane.f32.xlu0 %v6867_v29  ;;  %7249 = vadd.xlane.f32.xlu1 %v7248_v37 }
0x1797   : > { %v7619_v20 = vmul.f32 1.442695, %v7608_v49 }
0x1798   : > { %v7589_v38 = vpop.xlane.xlu1 %7588 }
0x1799   : > { %12164 = vpow2.f32 %v7619_v20  ;;  %v7607_v30 = vsub.f32 %v16002_v8, %v7589_v38  ;;  %v16004_v20 = vld [vmem:[#allocation46_spill] sm:$0xff]  ;;  %v7260_v38 = vsel %vm4287_vm3, %v15398_v19, 0.0 }
0x179a   : > { %7240 = vadd.xlane.f32.xlu0 %v7239_v14  ;;  %7246 = vadd.xlane.f32.xlu1 %v7245_v28  ;;  %12166 = vpow2.f32 %v7613_v6 }
0x179b   : > { %v7617_v46 = vmul.f32 1.442695, %v7607_v30  ;;  %v15405_v49 = vpop.eup %12160 }
0x179c   : > { %v7598_v45 = vpop.xlane.xlu1 %7597  ;;  %v7632_v8 = vsel %vm4287_vm3, %v15405_v49, 0.0  ;;  %v15412_v30 = vpop.eup %12162 }
0x179d   : > { %12168 = vpow2.f32 %v7617_v46  ;;  %v7610_v33 = vsub.f32 %v16003_v22, %v7598_v45 }
0x179e   : > { %7252 = vadd.xlane.f32.xlu0 %v7251_v62  ;;  %7255 = vadd.xlane.f32.xlu1 %v7254_v13 }
0x179f   : > { %v7623_v29 = vmul.f32 1.442695, %v7610_v33  ;;  %v7257_v33 = vsel %vm4287_vm3, %v15412_v30, 0.0 }
0x17a0   : > { %v7595_v37 = vpop.xlane.xlu1 %7594 }
0x17a1   : > { %12170 = vpow2.f32 %v7623_v29  ;;  %v7609_v6 = vsub.f32 %v16004_v20, %v7595_v37 }
0x17a2   : > { %7261 = vadd.xlane.f32.xlu0 %v7260_v38  ;;  %7633 = vadd.xlane.f32.xlu1 %v7632_v8 }
0x17a3   : > { %v15414_v14 = vpop.eup %12164  ;;  %v7621_v28 = vmul.f32 1.442695, %v7609_v6 }
0x17a4   : > { %16005 = vst [vmem:[#allocation39_spill] sm:$0xff] %v15414_v14  ;;  %v7604_v46 = vpop.xlane.xlu1 %7603  ;;  %v7638_v45 = vsel %vm4287_vm3, %v15414_v14, 0.0  ;;  %v15421_v62 = vpop.eup %12166 }
0x17a5   : > { %12172 = vpow2.f32 %v7621_v28  ;;  %v7612_v22 = vsub.f32 %v15108_v23, %v7604_v46  ;;  %v7629_v23 = vsel %vm4287_vm3, %v15421_v62, 0.0 }
0x17a6   : > { %7258 = vadd.xlane.f32.xlu0 %v7257_v33  ;;  %7639 = vadd.xlane.f32.xlu1 %v7638_v45 }
0x17a7   : > { %v15423_v13 = vpop.eup %12168  ;;  %v7627_v29 = vmul.f32 1.442695, %v7612_v22 }
0x17a8   : > { %16006 = vst [vmem:[#allocation32_spill] sm:$0xff] %v15423_v13  ;;  %v7601_v37 = vpop.xlane.xlu1 %7600  ;;  %v7635_v20 = vsel %vm4287_vm3, %v15423_v13, 0.0 }
0x17a9   : > { %12174 = vpow2.f32 %v7627_v29  ;;  %v7611_v6 = vsub.f32 %v15114_v12, %v7601_v37 }
0x17aa   : > { %7630 = vadd.xlane.f32.xlu0 %v7629_v23  ;;  %7636 = vadd.xlane.f32.xlu1 %v7635_v20 }
0x17ab   : > { %v15430_v38 = vpop.eup %12170  ;;  %v7625_v8 = vmul.f32 1.442695, %v7611_v6 }
0x17ac   : > { %16007 = vst [vmem:[#allocation35_spill] sm:$0xff] %v15430_v38  ;;  %v7644_v28 = vsel %vm4287_vm3, %v15430_v38, 0.0 }
0x17ad   : > { %12176 = vpow2.f32 %v7625_v8 }
0x17ae   : > { %7645 = vadd.xlane.f32.xlu1 %v7644_v28  ;;  %v16011_v28 = vld [vmem:[#allocation34_spill] sm:$0xff] }
0x17af   : > { %v15434_v46 = vpop.eup %12172 }
0x17b0   : > { %16008 = vst [vmem:[#allocation36_spill] sm:$0xff] %v15434_v46  ;;  %v7641_v45 = vsel %vm4287_vm3, %v15434_v46, 0.0  ;;  %v16013_v46 = vld [vmem:[#allocation47_spill] sm:$0xff] }
0x17b1   : > { %7642 = vadd.xlane.f32.xlu0 %v7641_v45  ;;  %v5290_v12 = vpop.xlane.xlu0 %5289 }
0x17b2   : > { %12178 = vrcp.f32 %v5290_v12 }
0x17b3   : > { %v15438_v22 = vpop.eup %12174 }
0x17b4   : > { %16009 = vst [vmem:[#allocation21_spill] sm:$0xff] %v15438_v22  ;;  %v7650_v33 = vsel %vm4287_vm3, %v15438_v22, 0.0  ;;  %v16012_v22 = vld [vmem:[#allocation37_spill] sm:$0xff] }
0x17b5   : > { %7651 = vadd.xlane.f32.xlu0 %v7650_v33  ;;  %v5287_v29 = vpop.xlane.xlu0 %5286  ;;  %v11607_v12 = vunpack.i.h.bf16 %v16012_v22  ;;  %v11606_v33 = vunpack.i.l.bf16 %v16012_v22 }
0x17b6   : > { %12180 = vrcp.f32 %v5287_v29 }
0x17b7   : > { %v15442_v37 = vpop.eup %12176 }
0x17b8   : > { %16010 = vst [vmem:[#allocation40_spill] sm:$0xff] %v15442_v37  ;;  %v7647_v20 = vsel %vm4287_vm3, %v15442_v37, 0.0  ;;  %v10800_v37 = vpack.c.bf16 %v11607_v12, %v11606_v33  ;;  %v16015_v12 = vld [vmem:[#allocation33_spill] sm:$0xff] }
0x17b9   : > { %7648 = vadd.xlane.f32.xlu0 %v7647_v20  ;;  %v5296_v6 = vpop.xlane.xlu0 %5295  ;;  %v16014_v20 = vld [vmem:[#allocation41_spill] sm:$0xff] }
0x17ba   : > { %12182 = vrcp.f32 %v5296_v6  ;;  %v11582_v6 = vunpack.i.h.bf16 %v16014_v20 }
0x17bc   : > { %v12179_v8 = vpop.eup %12178 }
0x17bd   : > { %v5293_v23 = vpop.xlane.xlu0 %5292  ;;  %v5318_v14 = vmul.f32 %v12179_v8, %v16013_v46 }
0x17be   : > { %12184 = vrcp.f32 %v5293_v23  ;;  %v11581_v23 = vunpack.i.l.bf16 %v16014_v20 }
0x17bf   : > { %11634 = vrot.lane.b32.xlu1 %v16011_v28, %s12602_s26 }
0x17c0   : > { %v12181_v45 = vpop.eup %12180 }
0x17c1   : > { %v5302_v29 = vpop.xlane.xlu0 %5301  ;;  %v5317_v38 = vmul.f32 %v12181_v45, %v15128_v60  ;;  %v10816_v60 = vpack.c.bf16 %v11582_v6, %v11581_v23 }
0x17c2   : > { %12186 = vrcp.f32 %v5302_v29 }
0x17c3   : > { %9968 = vmatprep.mubr.msk.f32.mxu1 %vm4287_vm3, %v5317_v38 }
0x17c4   : > { %9969 = vmatmul.mubr.msk.f32.vlgmr.msra.gmra.mrb[104].mxu1 %vm4287_vm3, %v5318_v14  ;;  %v12183_v22 = vpop.eup %12182 }
0x17c5   : > { %10799 = vmatpush3.bf16.msra.mxu1 %v15251_v59  ;;  %v5299_v28 = vpop.xlane.xlu0 %5298  ;;  %v5320_v8 = vmul.f32 %v12183_v22, %v15133_v39 }
0x17c6   : > { %12188 = vrcp.f32 %v5299_v28  ;;  %10801 = vmatprep.subr.bf16.mxu1 %v10800_v37  ;;  %v5690_v45 = vpop.xlane.xlu1 %5689 }
0x17c8   : > { %v12185_v13 = vpop.eup %12184 }
0x17c9   : > { %10803 = vmatpush3.bf16.msra.mxu1 %v10800_v37  ;;  %v5308_v46 = vpop.xlane.xlu0 %5307  ;;  %v5319_v38 = vmul.f32 %v12185_v13, %v15140_v42 }
0x17ca   : > { %10817 = vmatprep.subr.bf16.mxu1 %v10816_v60  ;;  %12190 = vrcp.f32 %v5308_v46  ;;  %v5687_v37 = vpop.xlane.xlu1 %5686 }
0x17cb   : > { %9971 = vmatprep.mubr.msk.f32.mxu1 %vm4287_vm3, %v5319_v38 }
0x17cc   : > { %9972 = vmatmul.mubr.msk.f32.gmra.mrb[106].mxu1 %vm4287_vm3, %v5320_v8  ;;  %v12187_v14 = vpop.eup %12186 }
0x17cd   : > { %v5305_v59 = vpop.xlane.xlu0 %5304  ;;  %v5322_v13 = vmul.f32 %v12187_v14, %v15146_v27  ;;  %v16016_v14 = vld [vmem:[#allocation38_spill] sm:$0xff] }
0x17ce   : > { %12192 = vrcp.f32 %v5305_v59  ;;  %v5696_v22 = vpop.xlane.xlu1 %5695 }
0x17cf   : > { %11629 = vrot.lane.b32.xlu0 %v16015_v12, %s12602_s26  ;;  %12194 = vrcp.f32 %v5687_v37  ;;  %v11612_v12 = vunpack.i.h.bf16 %v16016_v14 }
0x17d0   : > { %v12189_v33 = vpop.eup %12188 }
0x17d1   : > { %v5684_v29 = vpop.xlane.xlu0 %5683  ;;  %v5321_v42 = vmul.f32 %v12189_v33, %v15151_v7 }
0x17d2   : > { %12196 = vrcp.f32 %v5684_v29 }
0x17d3   : > { %9974 = vmatprep.mubr.msk.f32.mxu1 %vm4287_vm3, %v5321_v42 }
0x17d4   : > { %9975 = vmatmul.mubr.msk.f32.gmra.mrb[108].mxu1 %vm4287_vm3, %v5322_v13  ;;  %v12191_v20 = vpop.eup %12190  ;;  %v16017_v13 = vld [vmem:[#allocation43_spill] sm:$0xff] }
0x17d5   : > { %v5681_v39 = vpop.xlane.xlu0 %5680  ;;  %v5324_v7 = vmul.f32 %v12191_v20, %v15160_v17  ;;  %v11586_v20 = vunpack.i.l.bf16 %v16017_v13 }
0x17d6   : > { %12198 = vrcp.f32 %v5681_v39  ;;  %v6080_v8 = vpop.xlane.xlu1 %6079  ;;  %v11587_v39 = vunpack.i.h.bf16 %v16017_v13 }
0x17d7   : > { %12200 = vrcp.f32 %v5690_v45  ;;  %v11611_v45 = vunpack.i.l.bf16 %v16016_v14 }
0x17d8   : > { %v12193_v6 = vpop.eup %12192 }
0x17d9   : > { %v5693_v23 = vpop.xlane.xlu0 %5692  ;;  %v5323_v28 = vmul.f32 %v12193_v6, %v15171_v40  ;;  %v12195_v46 = vpop.eup %12194  ;;  %v10820_v6 = vpack.c.bf16 %v11612_v12, %v11611_v45 }
0x17da   : > { %12202 = vrcp.f32 %v5693_v23  ;;  %v5713_v29 = vmul.f32 %v12195_v46, %v15164_v53  ;;  %v6077_v23 = vpop.xlane.xlu1 %6076  ;;  %v10836_v53 = vpack.c.bf16 %v11587_v39, %v11586_v20 }
0x17db   : > { %9977 = vmatprep.mubr.msk.f32.mxu1 %vm4287_vm3, %v5323_v28  ;;  %12204 = vrcp.f32 %v5696_v22 }
0x17dc   : > { %9978 = vmatmul.mubr.msk.f32.gmra.mrb[110].mxu1 %vm4287_vm3, %v5324_v7  ;;  %v12197_v38 = vpop.eup %12196 }
0x17dd   : > { %v5702_v27 = vpop.xlane.xlu0 %5701  ;;  %v5712_v17 = vmul.f32 %v12197_v38, %v15181_v34  ;;  %v16018_v34 = vld [vmem:[#allocation48_spill] sm:$0xff] }
0x17de   : > { %12206 = vrcp.f32 %v5702_v27  ;;  %v6086_v14 = vpop.xlane.xlu1 %6085 }
0x17e0   : > { %v12199_v59 = vpop.eup %12198 }
0x17e1   : > { %v5699_v40 = vpop.xlane.xlu0 %5698  ;;  %v5711_v33 = vmul.f32 %v12199_v59, %v15188_v2  ;;  %v12201_v37 = vpop.eup %12200 }
0x17e2   : > { %12208 = vrcp.f32 %v5699_v40  ;;  %v5714_v2 = vmul.f32 %v12201_v37, %v16018_v34 }
0x17e3   : > { %10008 = vmatprep.mubr.msk.f32.mxu1 %vm4287_vm3, %v5711_v33  ;;  %12210 = vrcp.f32 %v6077_v23 }
0x17e4   : > { %v12203_v42 = vpop.eup %12202  ;;  %10009 = vmatmul.mubr.msk.f32.vlgmr.msra.gmra.mrb[112].mxu1 %vm4287_vm3, %v5712_v17  ;;  %v16019_v17 = vld [vmem:[#allocation42_spill] sm:$0xff] }
0x17e5   : > { %10819 = vmatpush3.bf16.msra.mxu1 %v10816_v60  ;;  %v6074_v28 = vpop.xlane.xlu0 %6073  ;;  %10011 = vmatprep.mubr.msk.f32.mxu1 %vm4287_vm3, %v5713_v29  ;;  %v12205_v22 = vpop.eup %12204  ;;  %v5715_v7 = vmul.f32 %v12203_v42, %v15197_v52  ;;  %v11617_v37 = vunpack.i.h.bf16 %v16019_v17 }
0x17e6   : > { %10821 = vmatprep.subr.bf16.mxu1 %v10820_v6  ;;  %12212 = vrcp.f32 %v6074_v28  ;;  %v5716_v60 = vmul.f32 %v12205_v22, %v15176_v63  ;;  %v6464_v29 = vpop.xlane.xlu1 %6463 }
0x17e8   : > { %10012 = vmatmul.mubr.msk.f32.gmra.mrb[114].mxu1 %vm4287_vm3, %v5714_v2  ;;  %v12207_v46 = vpop.eup %12206 }
0x17e9   : > { %10823 = vmatpush3.bf16.msra.mxu1 %v10820_v6  ;;  %v6071_v27 = vpop.xlane.xlu0 %6070  ;;  %10014 = vmatprep.mubr.msk.f32.mxu1 %vm4287_vm3, %v5715_v7  ;;  %v5718_v12 = vmul.f32 %v12207_v46, %v15207_v44  ;;  %v16020_v6 = vld [vmem:[#allocation29_spill] sm:$0xff] }
0x17ea   : > { %12214 = vrcp.f32 %v6071_v27  ;;  %10837 = vmatprep.subr.bf16.mxu1 %v10836_v53  ;;  %v11592_v23 = vunpack.i.h.bf16 %v16020_v6  ;;  %v11591_v28 = vunpack.i.l.bf16 %v16020_v6  ;;  %v6470_v22 = vpop.xlane.xlu1 %6469 }
0x17eb   : > { %12216 = vrcp.f32 %v6080_v8  ;;  %v11616_v8 = vunpack.i.l.bf16 %v16019_v17 }
0x17ec   : > { %v12209_v38 = vpop.eup %12208  ;;  %10015 = vmatmul.mubr.msk.f32.gmra.mrb[116].mxu1 %vm4287_vm3, %v5716_v60  ;;  %v10856_v7 = vpack.c.bf16 %v11592_v23, %v11591_v28 }
0x17ed   : > { %v6083_v59 = vpop.xlane.xlu0 %6082  ;;  %v5717_v52 = vmul.f32 %v12209_v38, %v15215_v43  ;;  %v12211_v40 = vpop.eup %12210  ;;  %v10840_v34 = vpack.c.bf16 %v11617_v37, %v11616_v8 }
0x17ee   : > { %12218 = vrcp.f32 %v6083_v59  ;;  %v6103_v39 = vmul.f32 %v12211_v40, %v15202_v16 }
0x17ef   : > { %10017 = vmatprep.mubr.msk.f32.mxu1 %vm4287_vm3, %v5717_v52  ;;  %12220 = vrcp.f32 %v6086_v14  ;;  %v16021_v52 = vld [vmem:[#allocation44_spill] sm:$0xff] }
0x17f0   : > { %10018 = vmatmul.mubr.msk.f32.gmra.mrb[118].mxu1 %vm4287_vm3, %v5718_v12  ;;  %v12213_v63 = vpop.eup %12212  ;;  %v11622_v14 = vunpack.i.h.bf16 %v16021_v52  ;;  %v11621_v12 = vunpack.i.l.bf16 %v16021_v52 }
0x17f1   : > { %v6092_v45 = vpop.xlane.xlu0 %6091  ;;  %v6102_v44 = vmul.f32 %v12213_v63, %v15234_v18 }
0x17f2   : > { %12222 = vrcp.f32 %v6092_v45 }
0x17f4   : > { %v12215_v33 = vpop.eup %12214 }
0x17f5   : > { %v6089_v43 = vpop.xlane.xlu0 %6088  ;;  %v6101_v42 = vmul.f32 %v12215_v33, %v15247_v35  ;;  %v12217_v13 = vpop.eup %12216  ;;  %v10860_v33 = vpack.c.bf16 %v11622_v14, %v11621_v12 }
0x17f6   : > { %12224 = vrcp.f32 %v6089_v43  ;;  %v6104_v18 = vmul.f32 %v12217_v13, %v15193_v24 }
0x17f7   : > { %10048 = vmatprep.mubr.msk.f32.mxu1 %vm4287_vm3, %v6101_v42  ;;  %12226 = vrcp.f32 %v6464_v29 }
0x17f8   : > { %v12219_v20 = vpop.eup %12218  ;;  %10049 = vmatmul.mubr.msk.f32.vlgmr.msra.gmra.mrb[120].mxu1 %vm4287_vm3, %v6102_v44 }
0x17f9   : > { %10839 = vmatpush3.bf16.msra.mxu1 %v10836_v53  ;;  %v6461_v2 = vpop.xlane.xlu0 %6460  ;;  %10051 = vmatprep.mubr.msk.f32.mxu1 %vm4287_vm3, %v6103_v39  ;;  %v12221_v35 = vpop.eup %12220  ;;  %v6105_v16 = vmul.f32 %v12219_v20, %v15253_v3 }
0x17fa   : > { %12228 = vrcp.f32 %v6461_v2  ;;  %10841 = vmatprep.subr.bf16.mxu1 %v10840_v34  ;;  %v6106_v53 = vmul.f32 %v12221_v35, %v15213_v32 }
0x17fb   : > { %12230 = vrcp.f32 %v6470_v22 }
0x17fc   : > { %10052 = vmatmul.mubr.msk.f32.gmra.mrb[122].mxu1 %vm4287_vm3, %v6104_v18  ;;  %v12223_v27 = vpop.eup %12222 }
0x17fd   : > { %10843 = vmatpush3.bf16.msra.mxu1 %v10840_v34  ;;  %10054 = vmatprep.mubr.msk.f32.mxu1 %vm4287_vm3, %v6105_v16  ;;  %v6108_v3 = vmul.f32 %v12223_v27, %v15265_v21  ;;  %v16023_v27 = vld [vmem:[#allocation30_spill] sm:$0xff] }
0x17fe   : > { %10857 = vmatprep.subr.bf16.mxu1 %v10856_v7 }
0x17ff   : > { %v6467_v60 = vpop.xlane.xlu1 %6466 }
0x1800   : > { %v12225_v46 = vpop.eup %12224  ;;  %12232 = vrcp.f32 %v6467_v60  ;;  %10055 = vmatmul.mubr.msk.f32.gmra.mrb[124].mxu1 %vm4287_vm3, %v6106_v53  ;;  %v11627_v60 = vunpack.i.h.bf16 %v16023_v27 }
0x1801   : > { %v6107_v24 = vmul.f32 %v12225_v46, %v15275_v36  ;;  %v12227_v38 = vpop.eup %12226  ;;  %v16022_v36 = vld [vmem:[#allocation31_spill] sm:$0xff]  ;;  %v11626_v46 = vunpack.i.l.bf16 %v16023_v27 }
0x1802   : > { %v6492_v45 = vmul.f32 %v12227_v38, %v15229_v61  ;;  %v11597_v63 = vunpack.i.h.bf16 %v16022_v36  ;;  %v11596_v21 = vunpack.i.l.bf16 %v16022_v36 }
0x1803   : > { %10057 = vmatprep.mubr.msk.f32.mxu1 %vm4287_vm3, %v6107_v24  ;;  %v6476_v40 = vpop.xlane.xlu1 %6475 }
0x1804   : > { %v12229_v59 = vpop.eup %12228  ;;  %10058 = vmatmul.mubr.msk.f32.gmra.mrb[126].mxu1 %vm4287_vm3, %v6108_v3  ;;  %12234 = vrcp.f32 %v6476_v40 }
0x1805   : > { %v6491_v32 = vmul.f32 %v12229_v59, %v15280_v10  ;;  %v12231_v17 = vpop.eup %12230  ;;  %v10876_v10 = vpack.c.bf16 %v11597_v63, %v11596_v21 }
0x1806   : > { %v6494_v61 = vmul.f32 %v12231_v17, %v15243_v48 }
0x1807   : > { %10088 = vmatprep.mubr.msk.f32.mxu1 %vm4287_vm3, %v6491_v32  ;;  %v6854_v43 = vpop.xlane.xlu1 %6853  ;;  %v10880_v32 = vpack.c.bf16 %v11627_v60, %v11626_v46 }
0x1808   : > { %10089 = vmatmul.mubr.msk.f32.vlgmr.msra.gmra.mrb[128].mxu1 %vm4287_vm3, %v6492_v45 }
0x1809   : > { %10859 = vmatpush3.bf16.msra.mxu1 %v10856_v7 }
0x180a   : > { %v12233_v37 = vpop.eup %12232  ;;  %10861 = vmatprep.subr.bf16.mxu1 %v10860_v33 }
0x180b   : > { %v6473_v8 = vpop.xlane.xlu0 %6472  ;;  %v6493_v29 = vmul.f32 %v12233_v37, %v15296_v5  ;;  %v6860_v44 = vpop.xlane.xlu1 %6859 }
0x180c   : > { %12236 = vrcp.f32 %v6473_v8 }
0x180d   : > { %10091 = vmatprep.mubr.msk.f32.mxu1 %vm4287_vm3, %v6493_v29  ;;  %10863 = vmatpush3.bf16.msra.mxu1 %v10860_v33 }
0x180e   : > { %10092 = vmatmul.mubr.msk.f32.gmra.mrb[130].mxu1 %vm4287_vm3, %v6494_v61  ;;  %10877 = vmatprep.subr.bf16.mxu1 %v10876_v10  ;;  %v12235_v39 = vpop.eup %12234 }
0x180f   : > { %v6482_v42 = vpop.xlane.xlu0 %6481  ;;  %v6496_v23 = vmul.f32 %v12235_v39, %v15302_v41 }
0x1810   : > { %12238 = vrcp.f32 %v6482_v42 }
0x1813   : > { %v6479_v13 = vpop.xlane.xlu0 %6478 }
0x1814   : > { %12240 = vrcp.f32 %v6479_v13 }
0x1815   : > { %12242 = vrcp.f32 %v6854_v43 }
0x1816   : > { %v12237_v20 = vpop.eup %12236 }
0x1817   : > { %v6857_v5 = vpop.xlane.xlu1 %6856  ;;  %v6851_v6 = vpop.xlane.xlu0 %6850  ;;  %v6495_v48 = vmul.f32 %v12237_v20, %v15325_v9 }
0x1818   : > { %12244 = vrcp.f32 %v6857_v5 }
0x1819   : > { %12246 = vrcp.f32 %v6851_v6  ;;  %10094 = vmatprep.mubr.msk.f32.mxu1 %vm4287_vm3, %v6495_v48 }
0x181a   : > { %10095 = vmatmul.mubr.msk.f32.gmra.mrb[132].mxu1 %vm4287_vm3, %v6496_v23  ;;  %12248 = vrcp.f32 %v6860_v44  ;;  %v12239_v2 = vpop.eup %12238 }
0x181b   : > { %v6866_v28 = vpop.xlane.xlu1 %6865  ;;  %v6863_v34 = vpop.xlane.xlu0 %6862  ;;  %v6498_v9 = vmul.f32 %v12239_v2, %v15332_v54 }
0x181c   : > { %12250 = vrcp.f32 %v6863_v34 }
0x181d   : > { %12252 = vrcp.f32 %v6866_v28 }
0x181e   : > { %v12241_v18 = vpop.eup %12240 }
0x181f   : > { %v7244_v35 = vpop.xlane.xlu1 %7243  ;;  %v6872_v22 = vpop.xlane.xlu0 %6871  ;;  %v6497_v16 = vmul.f32 %v12241_v18, %v15339_v25 }
0x1820   : > { %v12243_v7 = vpop.eup %12242  ;;  %12254 = vrcp.f32 %v6872_v22 }
0x1821   : > { %10097 = vmatprep.mubr.msk.f32.mxu1 %vm4287_vm3, %v6497_v16  ;;  %v6882_v25 = vmul.f32 %v12243_v7, %v15308_v51 }
0x1822   : > { %v12245_v41 = vpop.eup %12244  ;;  %10098 = vmatmul.mubr.msk.f32.gmra.mrb[134].mxu1 %vm4287_vm3, %v6498_v9 }
0x1823   : > { %v12247_v53 = vpop.eup %12246  ;;  %v7250_v24 = vpop.xlane.xlu1 %7249  ;;  %v6883_v59 = vmul.f32 %v12245_v41, %v15349_v1 }
0x1824   : > { %v6869_v3 = vpop.xlane.xlu0 %6868  ;;  %v6881_v38 = vmul.f32 %v12247_v53, %v15346_v11  ;;  %v12249_v54 = vpop.eup %12248 }
0x1825   : > { %12256 = vrcp.f32 %v6869_v3  ;;  %v6884_v11 = vmul.f32 %v12249_v54, %v15320_v57 }
0x1826   : > { %10128 = vmatprep.mubr.msk.f32.mxu1 %vm4287_vm3, %v6881_v38  ;;  %v12251_v52 = vpop.eup %12250  ;;  %12258 = vrcp.f32 %v7244_v35 }
0x1827   : > { %10129 = vmatmul.mubr.msk.f32.vlgmr.msra.gmra.mrb[136].mxu1 %vm4287_vm3, %v6882_v25  ;;  %v7247_v14 = vpop.xlane.xlu1 %7246  ;;  %v15538_v45 = vpop.f32.mrb[96].mxu1  ;;  %v6885_v40 = vmul.f32 %v12251_v52, %v15358_v50 }
0x1828   : > { %v7241_v12 = vpop.xlane.xlu0 %7240  ;;  %10879 = vmatpush3.bf16.msra.mxu1 %v10876_v10  ;;  %12260 = vrcp.f32 %v7247_v14  ;;  %10131 = vmatprep.mubr.msk.f32.mxu1 %vm4287_vm3, %v6883_v59  ;;  %v15541_v51 = vpop.f32.mrb[97].mxu1  ;;  %v16024_v59 = vld [vmem:[#allocation32_spill] sm:$0xff] }
0x1829   : > { %12262 = vrcp.f32 %v7241_v12  ;;  %10881 = vmatprep.subr.bf16.mxu1 %v10880_v32  ;;  %v12253_v1 = vpop.eup %12252  ;;  %v16025_v12 = vld [vmem:[#allocation39_spill] sm:$0xff] }
0x182a   : > { %12264 = vrcp.f32 %v7250_v24  ;;  %v6886_v21 = vmul.f32 %v12253_v1, %v15352_v26  ;;  %v12255_v33 = vpop.eup %12254  ;;  %v16026_v1 = vld [vmem:[#allocation36_spill] sm:$0xff] }
0x182b   : > { %10132 = vmatmul.mubr.msk.f32.gmra.mrb[138].mxu1 %vm4287_vm3, %v6884_v11  ;;  %v7256_v36 = vpop.xlane.xlu1 %7255  ;;  %v6888_v29 = vmul.f32 %v12255_v33, %v15361_v55  ;;  %v16028_v33 = vld [vmem:[#allocation40_spill] sm:$0xff] }
0x182c   : > { %v7253_v63 = vpop.xlane.xlu0 %7252  ;;  %10883 = vmatpush3.bf16.msra.mxu1 %v10880_v32  ;;  %10134 = vmatprep.mubr.msk.f32.mxu1 %vm4287_vm3, %v6885_v40 }
0x182d   : > { %12266 = vrcp.f32 %v7253_v63  ;;  %v16027_v63 = vld [vmem:[#allocation35_spill] sm:$0xff] }
0x182e   : > { %12268 = vrcp.f32 %v7256_v36 }
0x182f   : > { %v12257_v17 = vpop.eup %12256  ;;  %10135 = vmatmul.mubr.msk.f32.gmra.mrb[140].mxu1 %vm4287_vm3, %v6886_v21  ;;  %v7634_v57 = vpop.xlane.xlu1 %7633 }
0x1830   : > { %v7262_v37 = vpop.xlane.xlu0 %7261  ;;  %v6887_v50 = vmul.f32 %v12257_v17, %v15371_v47  ;;  %v12259_v8 = vpop.eup %12258 }
0x1831   : > { %12270 = vrcp.f32 %v7262_v37  ;;  %v7272_v44 = vmul.f32 %v12259_v8, %v15368_v31  ;;  %v16029_v37 = vld [vmem:[#allocation21_spill] sm:$0xff] }
0x1832   : > { %v12261_v61 = vpop.eup %12260  ;;  %10137 = vmatprep.mubr.msk.f32.mxu1 %vm4287_vm3, %v6887_v50 }
0x1833   : > { %v12263_v10 = vpop.eup %12262  ;;  %10138 = vmatmul.mubr.msk.f32.gmra.mrb[142].mxu1 %vm4287_vm3, %v6888_v29  ;;  %v15553_v26 = vpop.f32.mrb[98].mxu1  ;;  %v7273_v55 = vmul.f32 %v12261_v61, %v15387_v0 }
0x1834   : > { %v7259_v43 = vpop.xlane.xlu0 %7258  ;;  %v7271_v42 = vmul.f32 %v12263_v10, %v15380_v4  ;;  %v15557_v13 = vpop.f32.mrb[99].mxu1 }
0x1835   : > { %12272 = vrcp.f32 %v7259_v43  ;;  %v12265_v47 = vpop.eup %12264  ;;  %v7640_v39 = vpop.xlane.xlu1 %7639 }
0x1836   : > { %10168 = vmatprep.mubr.msk.f32.mxu1 %vm4287_vm3, %v7271_v42  ;;  %v7274_v4 = vmul.f32 %v12265_v47, %v15377_v56 }
0x1837   : > { %v12267_v20 = vpop.eup %12266  ;;  %10169 = vmatmul.mubr.msk.f32.vlgmr.msra.gmra.mrb[144].mxu1 %vm4287_vm3, %v7272_v44 }
0x1838   : > { %v7631_v5 = vpop.xlane.xlu0 %7630  ;;  %10171 = vmatprep.mubr.msk.f32.mxu1 %vm4287_vm3, %v7273_v55  ;;  %v12269_v6 = vpop.eup %12268  ;;  %v7275_v31 = vmul.f32 %v12267_v20, %v15396_v15 }
0x1839   : > { %12274 = vrcp.f32 %v7631_v5  ;;  %v7637_v48 = vpop.xlane.xlu1 %7636  ;;  %v7276_v23 = vmul.f32 %v12269_v6, %v15389_v58 }
0x183a   : > { %12276 = vrcp.f32 %v7634_v57 }
0x183b   : > { %10172 = vmatmul.mubr.msk.f32.gmra.mrb[146].mxu1 %vm4287_vm3, %v7274_v4  ;;  %v12271_v0 = vpop.eup %12270  ;;  %12278 = vrcp.f32 %v7637_v48 }
0x183c   : > { %10174 = vmatprep.mubr.msk.f32.mxu1 %vm4287_vm3, %v7275_v31  ;;  %v7278_v15 = vmul.f32 %v12271_v0, %v15398_v19  ;;  %12280 = vrcp.f32 %v7640_v39 }
0x183d   : > { %v7646_v35 = vpop.xlane.xlu1 %7645 }
0x183e   : > { %v7643_v28 = vpop.xlane.xlu0 %7642 }
0x183f   : > { %v12273_v34 = vpop.eup %12272  ;;  %10175 = vmatmul.mubr.msk.f32.gmra.mrb[148].mxu1 %vm4287_vm3, %v7276_v23  ;;  %v15569_v2 = vpop.f32.mrb[100].mxu1  ;;  %12282 = vrcp.f32 %v7643_v28 }
0x1840   : > { %v15571_v18 = vpop.f32.mrb[101].mxu1  ;;  %v7277_v56 = vmul.f32 %v12273_v34, %v15412_v30  ;;  %12284 = vrcp.f32 %v7646_v35 }
0x1841   : > { %v11635_v7 = vpop.permute.xlu1 %11634 }
0x1842   : > { %10177 = vmatprep.mubr.msk.f32.mxu1 %vm4287_vm3, %v7277_v56  ;;  %v7652_v22 = vpop.xlane.xlu0 %7651  ;;  %v11637_v53 = vunpack.i.h.bf16 %v11635_v7  ;;  %v11636_v30 = vunpack.i.l.bf16 %v11635_v7 }
0x1843   : > { %v12275_v16 = vpop.eup %12274  ;;  %10178 = vmatmul.mubr.msk.f32.gmra.mrb[150].mxu1 %vm4287_vm3, %v7278_v15 }
0x1844   : > { %v7661_v58 = vmul.f32 %v12275_v16, %v15421_v62  ;;  %v10900_v3 = vpack.c.bf16 %v11637_v53, %v11636_v30  ;;  %v12277_v62 = vpop.eup %12276 }
0x1845   : > { %v12279_v38 = vpop.eup %12278  ;;  %v7662_v25 = vmul.f32 %v12277_v62, %v15405_v49 }
0x1846   : > { %10208 = vmatprep.mubr.msk.f32.mxu1 %vm4287_vm3, %v7661_v58  ;;  %v7649_v9 = vpop.xlane.xlu0 %7648  ;;  %v12281_v54 = vpop.eup %12280  ;;  %v7663_v52 = vmul.f32 %v12279_v38, %v16024_v59 }
0x1847   : > { %12286 = vrcp.f32 %v7649_v9  ;;  %v7664_v32 = vmul.f32 %v12281_v54, %v16025_v12 }
0x1848   : > { %12288 = vrcp.f32 %v7652_v22 }
0x1849   : > { %v12283_v14 = vpop.eup %12282 }
0x184a   : > { %v11630_v41 = vpop.permute.xlu0 %11629  ;;  %v12285_v11 = vpop.eup %12284  ;;  %v7665_v40 = vmul.f32 %v12283_v14, %v16026_v1 }
0x184b   : > { %v11632_v27 = vunpack.i.h.bf16 %v11630_v41  ;;  %v11631_v19 = vunpack.i.l.bf16 %v11630_v41  ;;  %v15579_v60 = vpop.f32.mrb[102].mxu1  ;;  %v7666_v49 = vmul.f32 %v12285_v11, %v16027_v63 }
0x184c   : > { %v15581_v46 = vpop.f32.mrb[103].mxu1 }
0x184d   : > { %v10896_v24 = vpack.c.bf16 %v11632_v27, %v11631_v19 }
0x184f   : > { %10897 = vmatprep.subr.bf16.mxu1 %v10896_v24 }
0x1850   : > { %10899 = vmatpush3.bf16.msra.mxu1 %v10896_v24 }
0x1851   : > { %10901 = vmatprep.subr.bf16.mxu1 %v10900_v3  ;;  %v12287_v36 = vpop.eup %12286 }
0x1852   : > { %v12289_v21 = vpop.eup %12288  ;;  %v7667_v17 = vmul.f32 %v12287_v36, %v16028_v33 }
0x1853   : > { %v7668_v57 = vmul.f32 %v12289_v21, %v16029_v37 }
0x1854   : > { %10903 = vmatpush3.bf16.msra.mxu1 %v10900_v3 }
0x1857   : > { %10209 = vmatmul.mubr.msk.f32.vlgmr.msra.gmra.mrb[152].mxu1 %vm4287_vm3, %v7662_v25 }
0x1858   : > { %10211 = vmatprep.mubr.msk.f32.mxu1 %vm4287_vm3, %v7663_v52 }
0x185b   : > { %10212 = vmatmul.mubr.msk.f32.gmra.mrb[154].mxu1 %vm4287_vm3, %v7664_v32 }
0x185c   : > { %10214 = vmatprep.mubr.msk.f32.mxu1 %vm4287_vm3, %v7665_v40 }
0x185f   : > { %10215 = vmatmul.mubr.msk.f32.gmra.mrb[156].mxu1 %vm4287_vm3, %v7666_v49 }
0x1860   : > { %10217 = vmatprep.mubr.msk.f32.mxu1 %vm4287_vm3, %v7667_v17 }
0x1863   : > { %10218 = vmatmul.mubr.msk.f32.gmra.mrb[158].mxu1 %vm4287_vm3, %v7668_v57 }
0x1897   : > { %v9970_v50 = vpop.f32.mrb[104].mxu1 }
0x1898   : > { %v5431_v8 = vpop.f32.mrb[105].mxu1 }
0x1899   : > { %v11638_v29 = vpack.i.bf16 %v9970_v50, %v5431_v8  ;;  %v8090_v8 = vld [vmem:[#allocation13] sm:$0xff] }
0x189b   : > { %11639 = vrot.lane.b32.xlu1 %v11638_v29, %s12602_s26  ;;  %v8091_v29 = vld [vmem:[#allocation13 + $0x8] sm:$0xff] }
0x189f   : > { %v9973_v61 = vpop.f32.mrb[106].mxu1 }
0x18a0   : > { %v5441_v10 = vpop.f32.mrb[107].mxu1 }
0x18a1   : > { %v11643_v43 = vpack.i.bf16 %v9973_v61, %v5441_v10  ;;  %v10904_v61 = vpack.c.bf16 %v8091_v29, %v8090_v8 }
0x18a3   : > { %11644 = vrot.lane.b32.xlu0 %v11643_v43, %s12602_s26  ;;  %10905 = vmatprep.subr.bf16.mxu0 %v10904_v61 }
0x18a4   : > { %10907 = vmatpush3.bf16.msra.mxu0 %v10904_v61 }
0x18a7   : > { %v9976_v42 = vpop.f32.mrb[108].mxu1 }
0x18a8   : > { %v5451_v44 = vpop.f32.mrb[109].mxu1 }
0x18a9   : > { %v11648_v47 = vpack.i.bf16 %v9976_v42, %v5451_v44  ;;  %v8092_v44 = vld [vmem:[#allocation13 + $0x10] sm:$0xff] }
0x18ab   : > { %11649 = vrot.lane.b32.xlu1 %v11648_v47, %s12602_s26  ;;  %v8093_v47 = vld [vmem:[#allocation13 + $0x18] sm:$0xff] }
0x18af   : > { %v9979_v39 = vpop.f32.mrb[110].mxu1 }
0x18b0   : > { %v5461_v55 = vpop.f32.mrb[111].mxu1 }
0x18b1   : > { %v11653_v20 = vpack.i.bf16 %v9979_v39, %v5461_v55  ;;  %v10908_v39 = vpack.c.bf16 %v8093_v47, %v8092_v44  ;;  %v8094_v55 = vld [vmem:[#allocation13 + $0x20] sm:$0xff] }
0x18b3   : > { %11654 = vrot.lane.b32.xlu0 %v11653_v20, %s12602_s26  ;;  %v8095_v20 = vld [vmem:[#allocation13 + $0x28] sm:$0xff]  ;;  %10909 = vmatprep.subr.bf16.mxu0 %v10908_v39 }
0x18b4   : > { %10911 = vmatpush3.bf16.msra.mxu0 %v10908_v39 }
0x18b7   : > { %v10010_v5 = vpop.f32.mrb[112].mxu1 }
0x18b8   : > { %v5821_v4 = vpop.f32.mrb[113].mxu1 }
0x18b9   : > { %v11658_v6 = vpack.i.bf16 %v10010_v5, %v5821_v4  ;;  %v10912_v4 = vpack.c.bf16 %v8095_v20, %v8094_v55 }
0x18bb   : > { %11659 = vrot.lane.b32.xlu1 %v11658_v6, %s12601_s2  ;;  %v10013_v31 = vpop.f32.mrb[114].mxu1  ;;  %v8096_v6 = vld [vmem:[#allocation13 + $0x30] sm:$0xff]  ;;  %10913 = vmatprep.subr.bf16.mxu0 %v10912_v4 }
0x18bc   : > { %v5831_v48 = vpop.f32.mrb[115].mxu1  ;;  %10915 = vmatpush3.bf16.msra.mxu0 %v10912_v4 }
0x18bd   : > { %v11663_v23 = vpack.i.bf16 %v10013_v31, %v5831_v48  ;;  %v8097_v31 = vld [vmem:[#allocation13 + $0x38] sm:$0xff] }
0x18bf   : > { %11664 = vrot.lane.b32.xlu0 %v11663_v23, %s12601_s2  ;;  %v10016_v0 = vpop.f32.mrb[116].mxu1 }
0x18c0   : > { %v5841_v28 = vpop.f32.mrb[117].mxu1 }
0x18c1   : > { %v11668_v34 = vpack.i.bf16 %v10016_v0, %v5841_v28  ;;  %v10916_v0 = vpack.c.bf16 %v8097_v31, %v8096_v6 }
0x18c3   : > { %11669 = vrot.lane.b32.xlu1 %v11668_v34, %s12601_s2  ;;  %v10019_v56 = vpop.f32.mrb[118].mxu1  ;;  %v8098_v34 = vld [vmem:[#allocation13 + $0x40] sm:$0xff]  ;;  %10917 = vmatprep.subr.bf16.mxu0 %v10916_v0 }
0x18c4   : > { %v5851_v15 = vpop.f32.mrb[119].mxu1  ;;  %10919 = vmatpush3.bf16.msra.mxu0 %v10916_v0 }
0x18c5   : > { %v11673_v35 = vpack.i.bf16 %v10019_v56, %v5851_v15  ;;  %v8099_v56 = vld [vmem:[#allocation13 + $0x48] sm:$0xff] }
0x18c7   : > { %11674 = vrot.lane.b32.xlu0 %v11673_v35, %s12601_s2 }
0x18cb   : > { %v10050_v22 = vpop.f32.mrb[120].mxu1 }
0x18cc   : > { %v6211_v16 = vpop.f32.mrb[121].mxu1 }
0x18cd   : > { %v11678_v58 = vpack.i.bf16 %v10050_v22, %v6211_v16  ;;  %v10920_v22 = vpack.c.bf16 %v8099_v56, %v8098_v34 }
0x18cf   : > { %11679 = vrot.lane.b32.xlu0 %v11678_v58, %s12600_s14  ;;  %v10053_v9 = vpop.f32.mrb[122].mxu1  ;;  %v8100_v58 = vld [vmem:[#allocation13 + $0x50] sm:$0xff]  ;;  %10921 = vmatprep.subr.bf16.mxu0 %v10920_v22 }
0x18d0   : > { %v6221_v7 = vpop.f32.mrb[123].mxu1  ;;  %10923 = vmatpush3.bf16.msra.mxu0 %v10920_v22 }
0x18d1   : > { %v11683_v41 = vpack.i.bf16 %v10053_v9, %v6221_v7  ;;  %v8101_v9 = vld [vmem:[#allocation13 + $0x58] sm:$0xff] }
0x18d3   : > { %11684 = vrot.lane.b32.xlu0 %v11683_v41, %s12600_s14  ;;  %v10056_v53 = vpop.f32.mrb[124].mxu1 }
0x18d4   : > { %v6231_v30 = vpop.f32.mrb[125].mxu1 }
0x18d5   : > { %v11688_v27 = vpack.i.bf16 %v10056_v53, %v6231_v30  ;;  %v10924_v53 = vpack.c.bf16 %v8101_v9, %v8100_v58 }
0x18d7   : > { %11689 = vrot.lane.b32.xlu1 %v11688_v27, %s12600_s14  ;;  %v10059_v19 = vpop.f32.mrb[126].mxu1  ;;  %v8102_v27 = vld [vmem:[#allocation13 + $0x60] sm:$0xff]  ;;  %10925 = vmatprep.subr.bf16.mxu0 %v10924_v53 }
0x18d8   : > { %v6241_v24 = vpop.f32.mrb[127].mxu1  ;;  %10927 = vmatpush3.bf16.msra.mxu0 %v10924_v53 }
0x18d9   : > { %v11693_v3 = vpack.i.bf16 %v10059_v19, %v6241_v24  ;;  %v8103_v19 = vld [vmem:[#allocation13 + $0x68] sm:$0xff] }
0x18db   : > { %11694 = vrot.lane.b32.xlu0 %v11693_v3, %s12600_s14  ;;  %v10090_v62 = vpop.f32.mrb[128].mxu1 }
0x18dc   : > { %v6601_v38 = vpop.f32.mrb[129].mxu1 }
0x18dd   : > { %v11698_v25 = vpack.i.bf16 %v10090_v62, %v6601_v38  ;;  %v10928_v62 = vpack.c.bf16 %v8103_v19, %v8102_v27  ;;  %v8104_v38 = vld [vmem:[#allocation13 + $0x70] sm:$0xff] }
0x18df   : > { %11699 = vrot.lane.b32.xlu1 %v11698_v25, %s12599_s13  ;;  %10929 = vmatprep.subr.bf16.mxu0 %v10928_v62  ;;  %v8105_v25 = vld [vmem:[#allocation13 + $0x78] sm:$0xff] }
0x18e0   : > { %10931 = vmatpush3.bf16.msra.mxu0 %v10928_v62 }
0x18e1   : > { %v10093_v54 = vpop.f32.mrb[130].mxu1 }
0x18e2   : > { %v6611_v59 = vpop.f32.mrb[131].mxu1 }
0x18e3   : > { %v11703_v52 = vpack.i.bf16 %v10093_v54, %v6611_v59  ;;  %v10932_v54 = vpack.c.bf16 %v8105_v25, %v8104_v38 }
0x18e5   : > { %11704 = vrot.lane.b32.xlu0 %v11703_v52, %s12599_s13  ;;  %10933 = vmatprep.subr.bf16.mxu0 %v10932_v54 }
0x18e6   : > { %10935 = vmatpush3.bf16.msra.mxu0 %v10932_v54 }
0x18ed   : > { %v10096_v14 = vpop.f32.mrb[132].mxu1 }
0x18ee   : > { %v6621_v12 = vpop.f32.mrb[133].mxu1 }
0x18ef   : > { %v11708_v32 = vpack.i.bf16 %v10096_v14, %v6621_v12 }
0x18f1   : > { %11709 = vrot.lane.b32.xlu1 %v11708_v32, %s12599_s13 }
0x18f5   : > { %v15612_v11 = vpop.f32.mrb[134].mxu1 }
0x18f6   : > { %v15614_v1 = vpop.f32.mrb[135].mxu1 }
0x18f7   : > { %v11753_v40 = vpack.i.bf16 %v15612_v11, %v15614_v1 }
0x18fa   : > { %v10130_v36 = vpop.f32.mrb[136].mxu1 }
0x18fb   : > { %v6991_v63 = vpop.f32.mrb[137].mxu1 }
0x18fc   : > { %v11713_v49 = vpack.i.bf16 %v10130_v36, %v6991_v63 }
0x18fe   : > { %11714 = vrot.lane.b32.xlu1 %v11713_v49, %s12598_s29  ;;  %v10133_v21 = vpop.f32.mrb[138].mxu1 }
0x18ff   : > { %v7001_v33 = vpop.f32.mrb[139].mxu1 }
0x1900   : > { %v11718_v17 = vpack.i.bf16 %v10133_v21, %v7001_v33 }
0x1902   : > { %11719 = vrot.lane.b32.xlu0 %v11718_v17, %s12598_s29  ;;  %v10136_v37 = vpop.f32.mrb[140].mxu1 }
0x1903   : > { %v7011_v57 = vpop.f32.mrb[141].mxu1 }
0x1904   : > { %v11723_v50 = vpack.i.bf16 %v10136_v37, %v7011_v57 }
0x1906   : > { %11724 = vrot.lane.b32.xlu1 %v11723_v50, %s12598_s29  ;;  %v10139_v10 = vpop.f32.mrb[142].mxu1 }
0x1907   : > { %v7021_v43 = vpop.f32.mrb[143].mxu1 }
0x1908   : > { %v11758_v42 = vpack.i.bf16 %v10139_v10, %v7021_v43 }
0x190a   : > { %v10170_v5 = vpop.f32.mrb[144].mxu1 }
0x190b   : > { %v7381_v48 = vpop.f32.mrb[145].mxu1 }
0x190c   : > { %v11728_v23 = vpack.i.bf16 %v10170_v5, %v7381_v48 }
0x190d   : > { %v11640_v57 = vpop.permute.xlu1 %11639 }
0x190e   : > { %11729 = vrot.lane.b32.xlu1 %v11728_v23, %s12597_s23  ;;  %v10173_v28 = vpop.f32.mrb[146].mxu1  ;;  %v11642_v55 = vunpack.i.h.bf16 %v11640_v57  ;;  %v11641_v20 = vunpack.i.l.bf16 %v11640_v57 }
0x190f   : > { %v7391_v15 = vpop.f32.mrb[147].mxu1 }
0x1910   : > { %v11733_v35 = vpack.i.bf16 %v10173_v28, %v7391_v15  ;;  %v8035_v15 = vsel %vm741_vm0, %v15538_v45, %v11642_v55 }
0x1912   : > { %11734 = vrot.lane.b32.xlu0 %v11733_v35, %s12597_s23  ;;  %v10176_v16 = vpop.f32.mrb[148].mxu1  ;;  %v8034_v35 = vsel %vm741_vm0, %v15541_v51, %v11641_v20 }
0x1913   : > { %v7401_v7 = vpop.f32.mrb[149].mxu1 }
0x1914   : > { %v11738_v41 = vpack.i.bf16 %v10176_v16, %v7401_v7 }
0x1915   : > { %v11645_v8 = vpop.permute.xlu0 %11644 }
0x1916   : > { %11739 = vrot.lane.b32.xlu1 %v11738_v41, %s12597_s23  ;;  %v10179_v30 = vpop.f32.mrb[150].mxu1  ;;  %v11647_v5 = vunpack.i.h.bf16 %v11645_v8  ;;  %v11646_v4 = vunpack.i.l.bf16 %v11645_v8 }
0x1917   : > { %v7411_v24 = vpop.f32.mrb[151].mxu1 }
0x1918   : > { %v11768_v3 = vpack.i.bf16 %v10179_v30, %v7411_v24  ;;  %v8037_v22 = vsel %vm741_vm0, %v15553_v26, %v11647_v5  ;;  %v8036_v16 = vsel %vm741_vm0, %v15557_v13, %v11646_v4 }
0x191d   : > { %v11650_v50 = vpop.permute.xlu1 %11649 }
0x191e   : > { %v11652_v6 = vunpack.i.h.bf16 %v11650_v50  ;;  %v11651_v31 = vunpack.i.l.bf16 %v11650_v50 }
0x1920   : > { %v8039_v7 = vsel %vm741_vm0, %v15569_v2, %v11652_v6  ;;  %v8038_v41 = vsel %vm741_vm0, %v15571_v18, %v11651_v31 }
0x1925   : > { %v11655_v61 = vpop.permute.xlu0 %11654 }
0x1926   : > { %v11657_v23 = vunpack.i.h.bf16 %v11655_v61  ;;  %v11656_v0 = vunpack.i.l.bf16 %v11655_v61 }
0x1928   : > { %v15660_v51 = vsel %vm741_vm0, %v15579_v60, %v11657_v23  ;;  %v15664_v26 = vsel %vm741_vm0, %v15581_v46, %v11656_v0 }
0x192a   : > { %v10210_v59 = vpop.f32.mrb[152].mxu1 }
0x192b   : > { %v7771_v52 = vpop.f32.mrb[153].mxu1 }
0x192c   : > { %v11743_v14 = vpack.i.bf16 %v10210_v59, %v7771_v52 }
0x192d   : > { %v11660_v29 = vpop.permute.xlu1 %11659 }
0x192e   : > { %11744 = vrot.lane.b32.xlu1 %v11743_v14, %s12596_s28  ;;  %v10213_v12 = vpop.f32.mrb[154].mxu1  ;;  %v11662_v28 = vunpack.i.h.bf16 %v11660_v29  ;;  %v11661_v34 = vunpack.i.l.bf16 %v11660_v29 }
0x192f   : > { %v7781_v32 = vpop.f32.mrb[155].mxu1 }
0x1930   : > { %v11748_v36 = vpack.i.bf16 %v10213_v12, %v7781_v32  ;;  %v8043_v13 = vsel %vm4287_vm3, %v8035_v15, %v11662_v28  ;;  %v8042_v27 = vsel %vm4287_vm3, %v8034_v35, %v11661_v34 }
0x1931   : > { %v11665_v43 = vpop.permute.xlu0 %11664 }
0x1932   : > { %11759 = vrot.lane.b32.xlu1 %v11758_v42, %s12598_s29  ;;  %11749 = vrot.lane.b32.xlu0 %v11748_v36, %s12596_s28  ;;  %v10216_v63 = vpop.f32.mrb[156].mxu1  ;;  %v11667_v58 = vunpack.i.h.bf16 %v11665_v43  ;;  %v11666_v9 = vunpack.i.l.bf16 %v11665_v43  ;;  %s12502_s29 = sshll.u32 %s12603_s15, 4  ;;  %s12503_s29 = int_to_ptr.vmem [resolvable:$false] %s12502_s29 }
0x1933   : > { %v7791_v49 = vpop.f32.mrb[157].mxu1  ;;  %p12505_p0 = scmp.lt.s32.totalorder %s15741_s19, %s12503_s29 }
0x1934   : > { %v11763_v21 = vpack.i.bf16 %v10216_v63, %v7791_v49  ;;  %v8045_v62 = vsel %vm4287_vm3, %v8037_v22, %v11667_v58  ;;  %v8044_v38 = vsel %vm4287_vm3, %v8036_v16, %v11666_v9 }
0x1935   : > { %v11670_v10 = vpop.permute.xlu1 %11669 }
0x1936   : > { %11754 = vrot.lane.b32.xlu0 %v11753_v40, %s12599_s13  ;;  %11764 = vrot.lane.b32.xlu1 %v11763_v21, %s12596_s28  ;;  %v10219_v33 = vpop.f32.mrb[158].mxu1  ;;  %v11672_v53 = vunpack.i.h.bf16 %v11670_v10  ;;  %v11671_v30 = vunpack.i.l.bf16 %v11670_v10  ;;  %s12504_s13 = scalar_lea.vmem %s12503_s29, 2048 }
0x1937   : > { %v7801_v17 = vpop.f32.mrb[159].mxu1 }
0x1938   : > { %v11773_v37 = vpack.i.bf16 %v10219_v33, %v7801_v17  ;;  %v8047_v54 = vsel %vm4287_vm3, %v8039_v7, %v11672_v53  ;;  %v8046_v46 = vsel %vm4287_vm3, %v8038_v41, %v11671_v30 }
0x1939   : > { %v15634_v44 = vpop.permute.xlu0 %11674 }
0x193a   : > { %11769 = vrot.lane.b32.xlu0 %v11768_v3, %s12597_s23  ;;  %11774 = vrot.lane.b32.xlu1 %v11773_v37, %s12596_s28  ;;  %v11677_v12 = vunpack.i.h.bf16 %v15634_v44  ;;  %v11676_v32 = vunpack.i.l.bf16 %v15634_v44  ;;  %s8235_s28 = scalar_lea.sflag [#allocation4], %s12939_s7  ;;  %s12498_s23 = scalar_lea.vmem %s15741_s19, 1024 }
0x193b   : > { %p12499_p2 = scmp.ne.s32.totalorder %s15741_s19, %s12498_s23  ;;  %p12506_p5 = scmp.lt.s32.totalorder %s12504_s13, %s12498_s23 }
0x193d   : > { %p12500_p6 = pnand %p12499_p2, %p16031_p13  ;;  %p12507_p7 = por %p12506_p5, %p12505_p0 }
0x193f   : > { %p12501_p9 = pneg %p12500_p6 }
0x1941   : > { %v11680_v1 = vpop.permute.xlu0 %11679  ;;  %p12508_p8 = pnand %p12507_p7, %p12501_p9 }
0x1942   : > { %v11682_v2 = vunpack.i.h.bf16 %v11680_v1  ;;  %v11681_v24 = vunpack.i.l.bf16 %v11680_v1 }
0x1944   : > { %v8051_v21 = vsel %vm4296_vm4, %v8043_v13, %v11682_v2  ;;  %v8050_v33 = vsel %vm4296_vm4, %v8042_v27, %v11681_v24 }
0x1945   : > { %v11685_v47 = vpop.permute.xlu0 %11684 }
0x1946   : > { %v11687_v3 = vunpack.i.h.bf16 %v11685_v47  ;;  %v11686_v18 = vunpack.i.l.bf16 %v11685_v47 }
0x1948   : > { %v8053_v17 = vsel %vm4296_vm4, %v8045_v62, %v11687_v3  ;;  %v8052_v37 = vsel %vm4296_vm4, %v8044_v38, %v11686_v18  ;;  %v8049_v62 = vsel %vm4287_vm3, %v15660_v51, %v11677_v12  ;;  %v8048_v38 = vsel %vm4287_vm3, %v15664_v26, %v11676_v32 }
0x1949   : > { %v11690_v42 = vpop.permute.xlu1 %11689 }
0x194a   : > { %v11692_v25 = vunpack.i.h.bf16 %v11690_v42  ;;  %v11691_v60 = vunpack.i.l.bf16 %v11690_v42 }
0x194c   : > { %v8055_v57 = vsel %vm4296_vm4, %v8047_v54, %v11692_v25  ;;  %v8054_v50 = vsel %vm4296_vm4, %v8046_v46, %v11691_v60 }
0x194d   : > { %v15642_v48 = vpop.permute.xlu0 %11694 }
0x194e   : > { %v11697_v61 = vunpack.i.h.bf16 %v15642_v48  ;;  %v11696_v10 = vunpack.i.l.bf16 %v15642_v48 }
0x1951   : > { %v15636_v11 = vpop.permute.xlu1 %11699 }
0x1952   : > { %v11702_v59 = vunpack.i.h.bf16 %v15636_v11  ;;  %v11701_v52 = vunpack.i.l.bf16 %v15636_v11 }
0x1954   : > { %v8059_v43 = vsel %vm903_vm2, %v8051_v21, %v11702_v59  ;;  %v8058_v42 = vsel %vm903_vm2, %v8050_v33, %v11701_v52 }
0x1957   : > { %v11705_v45 = vpop.permute.xlu0 %11704 }
0x1958   : > { %v11707_v11 = vunpack.i.h.bf16 %v11705_v45  ;;  %v11706_v1 = vunpack.i.l.bf16 %v11705_v45 }
0x195a   : > { %v8061_v22 = vsel %vm903_vm2, %v8053_v17, %v11707_v11  ;;  %v8060_v16 = vsel %vm903_vm2, %v8052_v37, %v11706_v1 }
0x1963   : > { %v15638_v40 = vpop.permute.xlu1 %11709 }
0x1964   : > { %v11712_v28 = vunpack.i.h.bf16 %v15638_v40  ;;  %v11711_v34 = vunpack.i.l.bf16 %v15638_v40 }
0x1966   : > { %v8062_v24 = vsel %vm903_vm2, %v8054_v50, %v11711_v34 }
0x1970   : > { %v15640_v39 = vpop.permute.xlu1 %11714 }
0x1971   : > { %v11717_v36 = vunpack.i.h.bf16 %v15640_v39  ;;  %v11716_v63 = vunpack.i.l.bf16 %v15640_v39 }
0x1973   : > { %v8067_v47 = vsel %vm4313_vm5, %v8059_v43, %v11717_v36  ;;  %v8066_v55 = vsel %vm4313_vm5, %v8058_v42, %v11716_v63  ;;  %v8057_v63 = vsel %vm4296_vm4, %v8049_v62, %v11697_v61 }
0x1974   : > { %v11720_v14 = vpop.permute.xlu0 %11719 }
0x1975   : > { %v11722_v20 = vunpack.i.h.bf16 %v11720_v14  ;;  %v11721_v5 = vunpack.i.l.bf16 %v11720_v14 }
0x1977   : > { %v8068_v40 = vsel %vm4313_vm5, %v8060_v16, %v11721_v5  ;;  %v8069_v45 = vsel %vm4313_vm5, %v8061_v22, %v11722_v20 }
0x1978   : > { %v15644_v56 = vpop.permute.xlu1 %11724 }
0x1979   : > { %v11727_v58 = vunpack.i.h.bf16 %v15644_v56  ;;  %v11726_v9 = vunpack.i.l.bf16 %v15644_v56  ;;  %v8063_v56 = vsel %vm903_vm2, %v8055_v57, %v11712_v28 }
0x197b   : > { %v8070_v54 = vsel %vm4313_vm5, %v8062_v24, %v11726_v9  ;;  %v8071_v46 = vsel %vm4313_vm5, %v8063_v56, %v11727_v58 }
0x1980   : > { %v11730_v19 = vpop.permute.xlu1 %11729 }
0x1981   : > { %v11732_v8 = vunpack.i.h.bf16 %v11730_v19  ;;  %v11731_v29 = vunpack.i.l.bf16 %v11730_v19 }
0x1983   : > { %v8075_v31 = vsel %vm4322_vm6, %v8067_v47, %v11732_v8  ;;  %v8074_v0 = vsel %vm4322_vm6, %v8066_v55, %v11731_v29  ;;  %v8767_v55 = vld [vmem:[%s15798_s8] ss:$0 sm:$0xff] }
0x1984   : > { %v11735_v44 = vpop.permute.xlu0 %11734 }
0x1985   : > { %v11737_v23 = vunpack.i.h.bf16 %v11735_v44  ;;  %v11736_v48 = vunpack.i.l.bf16 %v11735_v44 }
0x1987   : > { %v8076_v19 = vsel %vm4322_vm6, %v8068_v40, %v11736_v48  ;;  %v8077_v2 = vsel %vm4322_vm6, %v8069_v45, %v11737_v23 }
0x1988   : > { %v15678_v49 = vpop.permute.xlu1 %11739 }
0x1989   : > { %v11742_v13 = vunpack.i.h.bf16 %v15678_v49  ;;  %v11741_v27 = vunpack.i.l.bf16 %v15678_v49  ;;  %v8056_v49 = vsel %vm4296_vm4, %v8048_v38, %v11696_v10 }
0x198b   : > { %v8078_v51 = vsel %vm4322_vm6, %v8070_v54, %v11741_v27  ;;  %v8079_v26 = vsel %vm4322_vm6, %v8071_v46, %v11742_v13 }
0x19a0   : > { %v11745_v39 = vpop.permute.xlu1 %11744 }
0x19a1   : > { %v11747_v4 = vunpack.i.h.bf16 %v11745_v39  ;;  %v11746_v6 = vunpack.i.l.bf16 %v11745_v39  ;;  %v8606_v39 = vld [vmem:[%s15794_s4] ss:$0 sm:$0xff] }
0x19a3   : > { %v8082_v15 = vsel %vm4331_vm7, %v8074_v0, %v11746_v6  ;;  %v8083_v35 = vsel %vm4331_vm7, %v8075_v31, %v11747_v4  ;;  %v10942_v4 = vadd.f32 %v8767_v55, %v8606_v39 }
0x19a4   : > { %v11760_v7 = vpop.permute.xlu1 %11759  ;;  %10252 = vmatprep.mubr.f32.mxu0 %v8082_v15  ;;  %v11750_v41 = vpop.permute.xlu0 %11749 }
0x19a5   : > { %v11752_v53 = vunpack.i.h.bf16 %v11750_v41  ;;  %v11751_v30 = vunpack.i.l.bf16 %v11750_v41  ;;  %10253 = vmatmul.mubr.f32.vlgmr.msra.gmra.mrb[72].mxu0 %v8083_v35  ;;  %v11762_v17 = vunpack.i.h.bf16 %v11760_v7  ;;  %v11761_v37 = vunpack.i.l.bf16 %v11760_v7 }
0x19a7   : > { %v8084_v3 = vsel %vm4331_vm7, %v8076_v19, %v11751_v30  ;;  %v8085_v18 = vsel %vm4331_vm7, %v8077_v2, %v11752_v53 }
0x19a8   : > { %v11755_v25 = vpop.permute.xlu0 %11754  ;;  %10255 = vmatprep.mubr.f32.mxu0 %v8084_v3  ;;  %v11765_v60 = vpop.permute.xlu1 %11764 }
0x19a9   : > { %v11757_v59 = vunpack.i.h.bf16 %v11755_v25  ;;  %v11756_v52 = vunpack.i.l.bf16 %v11755_v25  ;;  %v11767_v14 = vunpack.i.h.bf16 %v11765_v60  ;;  %v11766_v36 = vunpack.i.l.bf16 %v11765_v60  ;;  %10256 = vmatmul.mubr.f32.gmra.mrb[74].mxu0 %v8085_v18 }
0x19ab   : > { %v8065_v12 = vsel %vm903_vm2, %v8057_v63, %v11757_v59  ;;  %v8064_v32 = vsel %vm903_vm2, %v8056_v49, %v11756_v52  ;;  %v8086_v21 = vsel %vm4331_vm7, %v8078_v51, %v11766_v36  ;;  %v8087_v33 = vsel %vm4331_vm7, %v8079_v26, %v11767_v14 }
0x19ac   : > { %v11770_v57 = vpop.permute.xlu0 %11769  ;;  %10258 = vmatprep.mubr.f32.mxu0 %v8086_v21  ;;  %v11775_v50 = vpop.permute.xlu1 %11774  ;;  %v8072_v43 = vsel %vm4313_vm5, %v8064_v32, %v11761_v37  ;;  %v8073_v42 = vsel %vm4313_vm5, %v8065_v12, %v11762_v17 }
0x19ad   : > { %v11772_v8 = vunpack.i.h.bf16 %v11770_v57  ;;  %v11771_v29 = vunpack.i.l.bf16 %v11770_v57  ;;  %v11777_v61 = vunpack.i.h.bf16 %v11775_v50  ;;  %v11776_v10 = vunpack.i.l.bf16 %v11775_v50  ;;  %10259 = vmatmul.mubr.f32.gmra.mrb[76].mxu0 %v8087_v33 }
0x19af   : > { %v8080_v44 = vsel %vm4322_vm6, %v8072_v43, %v11771_v29  ;;  %v8081_v11 = vsel %vm4322_vm6, %v8073_v42, %v11772_v8 }
0x19b0   : > { %v8088_v1 = vsel %vm4331_vm7, %v8080_v44, %v11776_v10  ;;  %v8089_v47 = vsel %vm4331_vm7, %v8081_v11, %v11777_v61 }
0x19b1   : > { %10261 = vmatprep.mubr.f32.mxu0 %v8088_v1 }
0x19b2   : > { %10262 = vmatmul.mubr.f32.gmra.mrb[78].mxu0 %v8089_v47 }
0x1a78   : > { %v10254_v20 = vpop.f32.mrb[72].mxu0 }
0x1a79   : > { %v10936_v5 = vadd.f32 %v10254_v20, %v8606_v39  ;;  %v8179_v6 = vpop.f32.mrb[73].mxu0 }
0x1a7a   : > { %v10938_v31 = vadd.f32 %v8606_v39, %v8179_v6 }
0x1a7b   : > { %v10937_v23 = vadd.f32 %v10936_v5, %v8767_v55 }
0x1a7c   : > { %v10939_v48 = vadd.f32 %v10938_v31, %v8767_v55  ;;  %v10257_v0 = vpop.f32.mrb[74].mxu0 }
0x1a7d   : > { %8227 = vst [vmem:[%s462_s20 + $0x8] sm:$0xff] %v10937_v23  ;;  %v10941_v28 = vadd.f32 %v10942_v4, %v10257_v0  ;;  %v8189_v34 = vpop.f32.mrb[75].mxu0 }
0x1a7e   : > { %8226 = vst [vmem:[%s462_s20] sm:$0xff] %v10939_v48  ;;  %v10943_v15 = vadd.f32 %v10942_v4, %v8189_v34 }
0x1a7f   : > { %8229 = vst [vmem:[%s462_s20 + $0x18] sm:$0xff] %v10941_v28 }
0x1a80   : > { %8228 = vst [vmem:[%s462_s20 + $0x10] sm:$0xff] %v10943_v15  ;;  %v10260_v35 = vpop.f32.mrb[76].mxu0 }
0x1a81   : > { %v10945_v22 = vadd.f32 %v10942_v4, %v10260_v35  ;;  %v8199_v16 = vpop.f32.mrb[77].mxu0 }
0x1a82   : > { %v10947_v58 = vadd.f32 %v10942_v4, %v8199_v16 }
0x1a83   : > { %8231 = vst [vmem:[%s462_s20 + $0x28] sm:$0xff] %v10945_v22 }
0x1a84   : > { %8230 = vst [vmem:[%s462_s20 + $0x20] sm:$0xff] %v10947_v58 }
0x1a85   : > { %v10263_v9 = vpop.f32.mrb[78].mxu0 }
0x1a86   : > { %v10949_v7 = vadd.f32 %v10942_v4, %v10263_v9  ;;  %v8209_v41 = vpop.f32.mrb[79].mxu0 }
0x1a87   : > { %v10951_v53 = vadd.f32 %v10942_v4, %v8209_v41 }
0x1a88   : > { %8233 = vst [vmem:[%s462_s20 + $0x38] sm:$0xff] %v10949_v7 }
0x1a89   : > { %8232 = vst [vmem:[%s462_s20 + $0x30] sm:$0xff] %v10951_v53 }
0x1a8a   : > { %12511 = shalt.err (!%p12508_p8)
}
0x1a8b   : > { %s12512_s14 = scalar_lea.hbm %s15746_s9, 1024  ;;  %s12516_s0 = scalar_lea.hbm %s16030_s17, 2048 }
0x1a8c   : > { %p12513_p4 = scmp.ne.s32.totalorder %s15746_s9, %s12512_s14  ;;  %p12517_p1 = scmp.lt.u32.totalorder %s15746_s9, %s16030_s17 }
0x1a8d   : > { %p12518_p11 = scmp.lt.u32.totalorder %s12516_s0, %s12512_s14  ;;  %p12520_p2 = scmp.lt.u32.totalorder %s12512_s14, %s15746_s9 }
0x1a8e   : > { %p12514_p3 = pnand %p12513_p4, %p16031_p13 }
0x1a8f   : > { %p12519_p12 = por %p12518_p11, %p12517_p1 }
0x1a90   : > { %p12515_p10 = pneg %p12514_p3 }
0x1a91   : > { %p12521_p6 = por %p12520_p2, %p12519_p12 }
0x1a93   : > { %p12522_p9 = pnand %p12521_p6, %p12515_p10 }
0x1a95   : > { %12525 = shalt.err (!%p12522_p9)
}
0x1a96   : > { %s12604_s25 = smov 128   ;;  %s12605_s20 = smov 8  }
0x1a97   : > { %10984 = dma.vmem_to_hbm [thread:$0]  (%p16031_p13), %s15741_s19, 1024, %s15746_s9, %s8235_s28, %s12604_s25, %s12604_s25, %s12605_s20  }
0x1a98 PF: > { %s8263_s6 = sand.u32 1, %s12568_s30   ;;  %p16032_p0 = scmp.ne.s32.totalorder %s15880_s22, 0 }
0x1a99   : > { %p16033_p5 = scmp.ge.s32.totalorder %s12580_s12, 2  ;;  %s8264_s24 = scalar_lea.sflag [#allocation4], %s8263_s6 }
0x1a9b   : > { %p11010_p7 = pnand %p16033_p5, %p16032_p0 }
0x1a9d   : > { %12563 = dma.done.wait (!%p11010_p7), %s8264_s24, 1024  }
0x1a9e   : > { %12565 = vsyncadd (!%p11010_p7), %s8264_s24, 4294966272  ;;  %p27_p8 = scmp.ge.s32.totalorder %s12819_s27, 4   ;;  %s16034_s30 = smov %s12572_s10 }
0x1a9f   : > { %s16035_s10 = smov %s12576_s11  ;;  %s16036_s11 = smov %s12831_s3 }
0x1aa0   : > { %s16037_s12 = smov %s12819_s27  ;;  %29 = sbr.rel (!%p27_p8) target bundleno = 17 (0x11), region = 134 }
0x1aa7   :  { %8269 = vsyncpa [#allocation3], 1 }
0x1aa8   :  { %8271 = vsyncpa [#allocation3 + $0x1], 1 }
0x1aa9   :  { %8272 = vsyncpa [#allocation6], 1 }
0x1aaa   :  { %8274 = vsyncpa [#allocation6 + $0x1], 1 }
0x1aab   :  { %8275 = vsyncpa [#allocation9], 1 }
0x1aac   :  { %8276 = vsyncpa [#allocation12], 1 }
0x1aad   :  { %8277 = vsyncpa [#allocation4], 1 }
0x1aae   :  { %8279 = vsyncpa [#allocation4 + $0x1], 1 }

</bundles_post_ra>
